<compile_context>
chip_gen: v6e
topology: v6e:2x2x1
jax: 0.10.0
libtpu: 0.0.40
codegen_flags: <defaults>
</compile_context>

<pallas_src>
import functools
import numpy as np
import jax
import jax.numpy as jnp
from jax import lax
from jax.experimental import pallas as pl
from jax.experimental.pallas import tpu as pltpu

BN_EPS = 1e-5


# ---------------------------------------------------------------------------
# Fused Pallas kernel: [conv3x3x3 + per-channel affine + ReLU] x 2.
#
# The padded activation volume (B, D+2, H+2, W, C) is presented as a 2-D matrix
# X of shape (B*Dp*Hp, W*C): one row per (b, d, h) "pencil".  A 3x3x3 "same"
# convolution then becomes
#     out[q] = sum_{kd,kh in 0..2}  X[q + kd*Hp + kh]  @  Wband[kd*3 + kh]
# where Wband[(kd,kh)] is a (W*Cin, W*Cout) banded matrix encoding both the kw
# shift (zero padding along W folded into the band) and the channel mixing
# (with the folded-BN scale already multiplied in).
# ---------------------------------------------------------------------------
def _double_conv_kernel(x_ref, mask_ref, w1_ref, w2_ref, b1_ref, b2_ref,
                        o_ref, z_ref, *, HP, NOUT):
    n1 = w1_ref.shape[2]
    n2 = w2_ref.shape[2]

    # ------------- conv1: 9 banded matmuls, f32 register accumulation -------
    acc = jnp.zeros((NOUT, n1), jnp.float32)
    for t in range(9):                                   # unrolled, static offsets
        off = (t // 3) * HP + (t % 3)
        acc += jnp.dot(x_ref[off:off + NOUT, :], w1_ref[t],
                       preferred_element_type=jnp.float32)
    # Epilogue runs exactly once: folded BN shift + ReLU.  Rows whose (d, h)
    # fall outside the valid output window read garbage; the host-precomputed
    # mask zeros them so they double as conv2's zero padding.
    y = jnp.maximum(acc + b1_ref[...], 0.0) * mask_ref[...]

    # ------------- re-pad by 1 in D and H for conv2:  z[q + Hp + 1] = y[q] ---
    nrows = z_ref.shape[0]
    z_ref[0:HP + 1, :] = jnp.zeros((HP + 1, n1), jnp.float32)
    z_ref[HP + 1 + NOUT:nrows, :] = jnp.zeros((nrows - HP - 1 - NOUT, n1),
                                              jnp.float32)
    z_ref[HP + 1:HP + 1 + NOUT, :] = y

    # ------------- conv2: same formulation, fused epilogue, single store ----
    acc2 = jnp.zeros((NOUT, n2), jnp.float32)
    for t in range(9):
        off = (t // 3) * HP + (t % 3)
        acc2 += jnp.dot(z_ref[off:off + NOUT, :], w2_ref[t],
                        preferred_element_type=jnp.float32)
    o_ref[...] = jnp.maximum(acc2 + b2_ref[...], 0.0)


def _band_weights(w, W):
    """(Cout, Cin, 3, 3, 3) torch-layout weights -> (9, W*Cin, W*Cout) banded mats."""
    p = jnp.arange(W)[:, None]          # input  w position
    wo = jnp.arange(W)[None, :]         # output w position
    S = jnp.stack([(p == wo + k - 1) for k in range(3)], axis=0).astype(w.dtype)
    m = jnp.einsum('kpw,oiabk->abpiwo', S, w)            # (3,3,W,Cin,W,Cout)
    Co, Ci = w.shape[0], w.shape[1]
    return m.reshape(9, W * Ci, W * Co)


def fused_double_conv3x3(x, w1, scale1, shift1, w2, scale2, shift2):
    """relu(aff2(conv2(relu(aff1(conv1(x)))))) with 3x3x3 / stride 1 / pad 1 convs.

    x: (B, D, H, W, C1) float32 channels-last.  Returns (B, D, H, W, C2out).
    """
    B, D, H, W, C1 = x.shape
    Cm = w1.shape[0]
    Co = w2.shape[0]
    DP, HP = D + 2, H + 2
    NROWS = B * DP * HP
    NOUT = NROWS - 2 * HP - 2            # rows computable without OOB row reads

    # glue: zero-pad D/H only, fold (W, C) into the lane dimension.
    xp = jnp.pad(x, ((0, 0), (1, 1), (1, 1), (0, 0), (0, 0)))
    x2 = xp.reshape(NROWS, W * C1)

    # Banded weights with the folded-BN per-channel scale pre-multiplied in.
    w1m = _band_weights(w1, W) * jnp.tile(scale1, W)[None, None, :]   # (9, W*C1, W*Cm)
    w2m = _band_weights(w2, W) * jnp.tile(scale2, W)[None, None, :]   # (9, W*Cm, W*Co)
    b1 = jnp.tile(shift1, W)[None, :]
    b2 = jnp.tile(shift2, W)[None, :]

    # Host-precomputed (d, h) validity mask for the NOUT computable rows.
    row = np.arange(NOUT)
    valid = (((row // HP) % DP) < D) & ((row % HP) < H)
    mask = jnp.asarray(valid.astype(np.float32))[:, None]             # (NOUT, 1)

    kernel = functools.partial(_double_conv_kernel, HP=HP, NOUT=NOUT)
    out = pl.pallas_call(
        kernel,
        out_shape=jax.ShapeDtypeStruct((NOUT, W * Co), jnp.float32),
        grid=(1,),
        in_specs=[
            pl.BlockSpec((NROWS, W * C1), lambda g: (0, 0)),
            pl.BlockSpec((NOUT, 1), lambda g: (0, 0)),
            pl.BlockSpec((9, W * C1, W * Cm), lambda g: (0, 0, 0)),
            pl.BlockSpec((9, W * Cm, W * Co), lambda g: (0, 0, 0)),
            pl.BlockSpec((1, W * Cm), lambda g: (0, 0)),
            pl.BlockSpec((1, W * Co), lambda g: (0, 0)),
        ],
        out_specs=pl.BlockSpec((NOUT, W * Co), lambda g: (0, 0)),
        scratch_shapes=[pltpu.VMEM((NROWS, W * Cm), jnp.float32)],
        compiler_params=pltpu.CompilerParams(
            dimension_semantics=("arbitrary",)),
    )(x2, mask, w1m, w2m, b1, b2)

    # glue: place the valid rows back into a (B, D, H, W, Co) volume.
    out = jnp.pad(out, ((0, NROWS - NOUT), (0, 0)))
    out = out.reshape(B, DP, HP, W, Co)[:, :D, :H]
    return out


# ---------------------------------------------------------------------------
# Trilinear 2x upsample, align_corners=False (exact PyTorch semantics).  Glue.
# ---------------------------------------------------------------------------
def _upsample2x_axis(x, axis):
    n = x.shape[axis]
    x_prev = jnp.concatenate(
        [lax.slice_in_dim(x, 0, 1, axis=axis),
         lax.slice_in_dim(x, 0, n - 1, axis=axis)], axis=axis)
    x_next = jnp.concatenate(
        [lax.slice_in_dim(x, 1, n, axis=axis),
         lax.slice_in_dim(x, n - 1, n, axis=axis)], axis=axis)
    even = 0.75 * x + 0.25 * x_prev       # out[2i]
    odd = 0.75 * x + 0.25 * x_next        # out[2i+1]
    stacked = jnp.stack([even, odd], axis=axis + 1)
    new_shape = list(x.shape)
    new_shape[axis] = 2 * n
    return stacked.reshape(new_shape)


def upsample2x_trilinear(x):              # x: (B, D, H, W, C)
    for ax in (1, 2, 3):
        x = _upsample2x_axis(x, ax)
    return x


# ---------------------------------------------------------------------------
# Parameters (Conv3d bias=False + eval-mode BatchNorm3d folded to scale/shift).
# ---------------------------------------------------------------------------
def init_params(key, in_plus_skip, out_channels):
    k1, k2 = jax.random.split(key)

    def conv_bn(k, cin, cout):
        w = jax.random.normal(k, (cout, cin, 3, 3, 3), jnp.float32) / np.sqrt(cin * 27)
        gamma = jnp.ones((cout,), jnp.float32)
        beta = jnp.zeros((cout,), jnp.float32)
        mean = jnp.zeros((cout,), jnp.float32)
        var = jnp.ones((cout,), jnp.float32)
        scale = gamma / jnp.sqrt(var + BN_EPS)
        shift = beta - mean * scale
        return {'w': w, 'scale': scale, 'shift': shift}

    return {'conv1': conv_bn(k1, in_plus_skip, out_channels),
            'conv2': conv_bn(k2, out_channels, out_channels)}


# ---------------------------------------------------------------------------
# DecoderBlock1.forward
# ---------------------------------------------------------------------------
def decoder_block1_forward(params, x, skip):
    B, N, Cx = x.shape
    Hx = int(pow(N, 1 / 3)) + 1                           # same formula as PyTorch
    xv = jnp.transpose(x, (0, 2, 1)).reshape(B, Cx, Hx, Hx, Hx)
    xv = jnp.transpose(xv, (0, 2, 3, 4, 1))               # -> NDHWC

    Bs, n1, Cs = skip.shape
    Hs = int(pow(n1, 1 / 3)) + 1
    sv = jnp.transpose(skip, (0, 2, 1)).reshape(Bs, Cs, Hs, Hs, Hs)
    sv = jnp.transpose(sv, (0, 2, 3, 4, 1))

    xv = upsample2x_trilinear(xv)                         # Upsample(2x, trilinear)
    xv = jnp.concatenate([xv, sv], axis=-1)               # torch.cat(dim=1) in NCDHW

    y = fused_double_conv3x3(
        xv,
        params['conv1']['w'], params['conv1']['scale'], params['conv1']['shift'],
        params['conv2']['w'], params['conv2']['scale'], params['conv2']['shift'])

    # exact PyTorch tail:  x.view(B, C_skip, -1).transpose(-1, -2)
    y = jnp.transpose(y, (0, 4, 1, 2, 3))                 # NDHWC -> NCDHW
    y = y.reshape(B, Cs, -1)
    return jnp.transpose(y, (0, 2, 1))


# ---------------------------------------------------------------------------
# Pure-XLA reference (lax conv) -- used only for a one-time numerics check.
# ---------------------------------------------------------------------------
def _reference_forward(params, x, skip):
    B, N, Cx = x.shape
    Hx = int(pow(N, 1 / 3)) + 1
    xv = jnp.transpose(x, (0, 2, 1)).reshape(B, Cx, Hx, Hx, Hx)
    xv = jnp.transpose(xv, (0, 2, 3, 4, 1))
    Bs, n1, Cs = skip.shape
    Hs = int(pow(n1, 1 / 3)) + 1
    sv = jnp.transpose(skip, (0, 2, 1)).reshape(Bs, Cs, Hs, Hs, Hs)
    sv = jnp.transpose(sv, (0, 2, 3, 4, 1))
    xv = upsample2x_trilinear(xv)
    xv = jnp.concatenate([xv, sv], axis=-1)

    def conv_bn_relu(v, p):
        w = jnp.transpose(p['w'], (2, 3, 4, 1, 0))        # (kd,kh,kw,Ci,Co)
        v = lax.conv_general_dilated(
            v, w, window_strides=(1, 1, 1), padding='SAME',
            dimension_numbers=('NDHWC', 'DHWIO', 'NDHWC'),
            precision=lax.Precision.HIGHEST)
        return jnp.maximum(v * p['scale'] + p['shift'], 0.0)

    y = conv_bn_relu(xv, params['conv1'])
    y = conv_bn_relu(y, params['conv2'])
    y = jnp.transpose(y, (0, 4, 1, 2, 3)).reshape(B, Cs, -1)
    return jnp.transpose(y, (0, 2, 1))


# ---------------------------------------------------------------------------
if __name__ == "__main__":
    key = jax.random.PRNGKey(0)
    kp, kx, ks = jax.random.split(key, 3)

    B = 2
    N = 64                 # x tokens -> int(64**(1/3)) + 1 = 4 -> 4^3 volume
    C_IN = 16              # x channels
    C_SKIP = 16            # skip channels
    C_OUT = 16             # out_channels
    N_SKIP_TOK = 8 * N     # skip volume is 2x per axis (matches the upsample)

    params = init_params(kp, C_IN + C_SKIP, C_OUT)
    x = jax.random.normal(kx, (B, N, C_IN), jnp.float32)
    skip = jax.random.normal(ks, (B, N_SKIP_TOK, C_SKIP), jnp.float32)

    fwd = jax.jit(decoder_block1_forward)
    out = jax.block_until_ready(fwd(params, x, skip))
    assert out.shape == (B, N_SKIP_TOK, C_SKIP), out.shape
    assert out.dtype == jnp.float32

    ref = jax.block_until_ready(jax.jit(_reference_forward)(params, x, skip))
    err = float(jnp.max(jnp.abs(out - ref)))
    assert err < 2e-3, err

    print("KERNEL_OK")
</pallas_src>

<mosaic_0001>
module attributes {stable_mosaic.version = 11 : i64} {
  func.func @_double_conv_kernel(%arg0: i32, %arg1: memref<200x256xf32, #tpu.memory_space<vmem>>, %arg2: memref<178x1xf32, #tpu.memory_space<vmem>>, %arg3: memref<9x256x128xf32, #tpu.memory_space<vmem>>, %arg4: memref<9x128x128xf32, #tpu.memory_space<vmem>>, %arg5: memref<1x128xf32, #tpu.memory_space<vmem>>, %arg6: memref<1x128xf32, #tpu.memory_space<vmem>>, %arg7: memref<178x128xf32, #tpu.memory_space<vmem>>, %arg8: memref<200x128xf32, #tpu.memory_space<vmem>>) attributes {dimension_semantics = [#tpu.dimension_semantics<arbitrary>], iteration_bounds = array<i64: 1>, scalar_prefetch = 0 : i64, scratch_operands = 1 : i64, tpu.core_type = #tpu.core_type<tc>, window_params = [{pipeline_mode = #tpu.pipeline_mode<synchronous>, transform_indices = @transform_0, window_bounds = array<i64: 200, 256>}, {pipeline_mode = #tpu.pipeline_mode<synchronous>, transform_indices = @transform_1, window_bounds = array<i64: 178, 1>}, {pipeline_mode = #tpu.pipeline_mode<synchronous>, transform_indices = @transform_2, window_bounds = array<i64: 9, 256, 128>}, {pipeline_mode = #tpu.pipeline_mode<synchronous>, transform_indices = @transform_3, window_bounds = array<i64: 9, 128, 128>}, {pipeline_mode = #tpu.pipeline_mode<synchronous>, transform_indices = @transform_4, window_bounds = array<i64: 1, 128>}, {pipeline_mode = #tpu.pipeline_mode<synchronous>, transform_indices = @transform_5, window_bounds = array<i64: 1, 128>}, {pipeline_mode = #tpu.pipeline_mode<synchronous>, transform_indices = @transform_6, window_bounds = array<i64: 178, 128>}]} {
    %cst = arith.constant 0.000000e+00 : f32
    %0 = vector.broadcast %cst : f32 to vector<178x128xf32>
    %c0 = arith.constant 0 : index
    %c0_0 = arith.constant 0 : index
    %1 = vector.load %arg1[%c0, %c0_0] : memref<200x256xf32, #tpu.memory_space<vmem>>, vector<178x256xf32>
    %c0_1 = arith.constant 0 : index
    %c0_2 = arith.constant 0 : index
    %c0_3 = arith.constant 0 : index
    %2 = vector.load %arg3[%c0_1, %c0_2, %c0_3] : memref<9x256x128xf32, #tpu.memory_space<vmem>>, vector<1x256x128xf32>
    %3 = vector.shape_cast %2 : vector<1x256x128xf32> to vector<256x128xf32>
    %cst_4 = arith.constant dense<0.000000e+00> : vector<178x128xf32>
    %4 = tpu.matmul %1, %3, %cst_4 {dimension_numbers = #tpu.dot_dimension_numbers<[1], [0], [0], [1], [0, 0, 1, 1], [], []>} : vector<178x256xf32>, vector<256x128xf32>, vector<178x128xf32> -> vector<178x128xf32>
    %5 = arith.addf %0, %4 : vector<178x128xf32>
    %c1 = arith.constant 1 : index
    %c0_5 = arith.constant 0 : index
    %6 = vector.load %arg1[%c1, %c0_5] : memref<200x256xf32, #tpu.memory_space<vmem>>, vector<178x256xf32>
    %c1_6 = arith.constant 1 : index
    %c0_7 = arith.constant 0 : index
    %c0_8 = arith.constant 0 : index
    %7 = vector.load %arg3[%c1_6, %c0_7, %c0_8] : memref<9x256x128xf32, #tpu.memory_space<vmem>>, vector<1x256x128xf32>
    %8 = vector.shape_cast %7 : vector<1x256x128xf32> to vector<256x128xf32>
    %cst_9 = arith.constant dense<0.000000e+00> : vector<178x128xf32>
    %9 = tpu.matmul %6, %8, %cst_9 {dimension_numbers = #tpu.dot_dimension_numbers<[1], [0], [0], [1], [0, 0, 1, 1], [], []>} : vector<178x256xf32>, vector<256x128xf32>, vector<178x128xf32> -> vector<178x128xf32>
    %10 = arith.addf %5, %9 : vector<178x128xf32>
    %c2 = arith.constant 2 : index
    %c0_10 = arith.constant 0 : index
    %11 = vector.load %arg1[%c2, %c0_10] : memref<200x256xf32, #tpu.memory_space<vmem>>, vector<178x256xf32>
    %c2_11 = arith.constant 2 : index
    %c0_12 = arith.constant 0 : index
    %c0_13 = arith.constant 0 : index
    %12 = vector.load %arg3[%c2_11, %c0_12, %c0_13] : memref<9x256x128xf32, #tpu.memory_space<vmem>>, vector<1x256x128xf32>
    %13 = vector.shape_cast %12 : vector<1x256x128xf32> to vector<256x128xf32>
    %cst_14 = arith.constant dense<0.000000e+00> : vector<178x128xf32>
    %14 = tpu.matmul %11, %13, %cst_14 {dimension_numbers = #tpu.dot_dimension_numbers<[1], [0], [0], [1], [0, 0, 1, 1], [], []>} : vector<178x256xf32>, vector<256x128xf32>, vector<178x128xf32> -> vector<178x128xf32>
    %15 = arith.addf %10, %14 : vector<178x128xf32>
    %c10 = arith.constant 10 : index
    %c0_15 = arith.constant 0 : index
    %16 = vector.load %arg1[%c10, %c0_15] : memref<200x256xf32, #tpu.memory_space<vmem>>, vector<178x256xf32>
    %c3 = arith.constant 3 : index
    %c0_16 = arith.constant 0 : index
    %c0_17 = arith.constant 0 : index
    %17 = vector.load %arg3[%c3, %c0_16, %c0_17] : memref<9x256x128xf32, #tpu.memory_space<vmem>>, vector<1x256x128xf32>
    %18 = vector.shape_cast %17 : vector<1x256x128xf32> to vector<256x128xf32>
    %cst_18 = arith.constant dense<0.000000e+00> : vector<178x128xf32>
    %19 = tpu.matmul %16, %18, %cst_18 {dimension_numbers = #tpu.dot_dimension_numbers<[1], [0], [0], [1], [0, 0, 1, 1], [], []>} : vector<178x256xf32>, vector<256x128xf32>, vector<178x128xf32> -> vector<178x128xf32>
    %20 = arith.addf %15, %19 : vector<178x128xf32>
    %c11 = arith.constant 11 : index
    %c0_19 = arith.constant 0 : index
    %21 = vector.load %arg1[%c11, %c0_19] : memref<200x256xf32, #tpu.memory_space<vmem>>, vector<178x256xf32>
    %c4 = arith.constant 4 : index
    %c0_20 = arith.constant 0 : index
    %c0_21 = arith.constant 0 : index
    %22 = vector.load %arg3[%c4, %c0_20, %c0_21] : memref<9x256x128xf32, #tpu.memory_space<vmem>>, vector<1x256x128xf32>
    %23 = vector.shape_cast %22 : vector<1x256x128xf32> to vector<256x128xf32>
    %cst_22 = arith.constant dense<0.000000e+00> : vector<178x128xf32>
    %24 = tpu.matmul %21, %23, %cst_22 {dimension_numbers = #tpu.dot_dimension_numbers<[1], [0], [0], [1], [0, 0, 1, 1], [], []>} : vector<178x256xf32>, vector<256x128xf32>, vector<178x128xf32> -> vector<178x128xf32>
    %25 = arith.addf %20, %24 : vector<178x128xf32>
    %c12 = arith.constant 12 : index
    %c0_23 = arith.constant 0 : index
    %26 = vector.load %arg1[%c12, %c0_23] : memref<200x256xf32, #tpu.memory_space<vmem>>, vector<178x256xf32>
    %c5 = arith.constant 5 : index
    %c0_24 = arith.constant 0 : index
    %c0_25 = arith.constant 0 : index
    %27 = vector.load %arg3[%c5, %c0_24, %c0_25] : memref<9x256x128xf32, #tpu.memory_space<vmem>>, vector<1x256x128xf32>
    %28 = vector.shape_cast %27 : vector<1x256x128xf32> to vector<256x128xf32>
    %cst_26 = arith.constant dense<0.000000e+00> : vector<178x128xf32>
    %29 = tpu.matmul %26, %28, %cst_26 {dimension_numbers = #tpu.dot_dimension_numbers<[1], [0], [0], [1], [0, 0, 1, 1], [], []>} : vector<178x256xf32>, vector<256x128xf32>, vector<178x128xf32> -> vector<178x128xf32>
    %30 = arith.addf %25, %29 : vector<178x128xf32>
    %c20 = arith.constant 20 : index
    %c0_27 = arith.constant 0 : index
    %31 = vector.load %arg1[%c20, %c0_27] : memref<200x256xf32, #tpu.memory_space<vmem>>, vector<178x256xf32>
    %c6 = arith.constant 6 : index
    %c0_28 = arith.constant 0 : index
    %c0_29 = arith.constant 0 : index
    %32 = vector.load %arg3[%c6, %c0_28, %c0_29] : memref<9x256x128xf32, #tpu.memory_space<vmem>>, vector<1x256x128xf32>
    %33 = vector.shape_cast %32 : vector<1x256x128xf32> to vector<256x128xf32>
    %cst_30 = arith.constant dense<0.000000e+00> : vector<178x128xf32>
    %34 = tpu.matmul %31, %33, %cst_30 {dimension_numbers = #tpu.dot_dimension_numbers<[1], [0], [0], [1], [0, 0, 1, 1], [], []>} : vector<178x256xf32>, vector<256x128xf32>, vector<178x128xf32> -> vector<178x128xf32>
    %35 = arith.addf %30, %34 : vector<178x128xf32>
    %c21 = arith.constant 21 : index
    %c0_31 = arith.constant 0 : index
    %36 = vector.load %arg1[%c21, %c0_31] : memref<200x256xf32, #tpu.memory_space<vmem>>, vector<178x256xf32>
    %c7 = arith.constant 7 : index
    %c0_32 = arith.constant 0 : index
    %c0_33 = arith.constant 0 : index
    %37 = vector.load %arg3[%c7, %c0_32, %c0_33] : memref<9x256x128xf32, #tpu.memory_space<vmem>>, vector<1x256x128xf32>
    %38 = vector.shape_cast %37 : vector<1x256x128xf32> to vector<256x128xf32>
    %cst_34 = arith.constant dense<0.000000e+00> : vector<178x128xf32>
    %39 = tpu.matmul %36, %38, %cst_34 {dimension_numbers = #tpu.dot_dimension_numbers<[1], [0], [0], [1], [0, 0, 1, 1], [], []>} : vector<178x256xf32>, vector<256x128xf32>, vector<178x128xf32> -> vector<178x128xf32>
    %40 = arith.addf %35, %39 : vector<178x128xf32>
    %c22 = arith.constant 22 : index
    %c0_35 = arith.constant 0 : index
    %41 = vector.load %arg1[%c22, %c0_35] : memref<200x256xf32, #tpu.memory_space<vmem>>, vector<178x256xf32>
    %c8 = arith.constant 8 : index
    %c0_36 = arith.constant 0 : index
    %c0_37 = arith.constant 0 : index
    %42 = vector.load %arg3[%c8, %c0_36, %c0_37] : memref<9x256x128xf32, #tpu.memory_space<vmem>>, vector<1x256x128xf32>
    %43 = vector.shape_cast %42 : vector<1x256x128xf32> to vector<256x128xf32>
    %cst_38 = arith.constant dense<0.000000e+00> : vector<178x128xf32>
    %44 = tpu.matmul %41, %43, %cst_38 {dimension_numbers = #tpu.dot_dimension_numbers<[1], [0], [0], [1], [0, 0, 1, 1], [], []>} : vector<178x256xf32>, vector<256x128xf32>, vector<178x128xf32> -> vector<178x128xf32>
    %45 = arith.addf %40, %44 : vector<178x128xf32>
    %c0_39 = arith.constant 0 : index
    %c0_40 = arith.constant 0 : index
    %46 = vector.load %arg5[%c0_39, %c0_40] : memref<1x128xf32, #tpu.memory_space<vmem>>, vector<1x128xf32>
    %47 = vector.broadcast %46 : vector<1x128xf32> to vector<178x128xf32>
    %48 = arith.addf %45, %47 : vector<178x128xf32>
    %cst_41 = arith.constant 0.000000e+00 : f32
    %49 = vector.broadcast %cst_41 : f32 to vector<178x128xf32>
    %50 = arith.maximumf %48, %49 : vector<178x128xf32>
    %c0_42 = arith.constant 0 : index
    %c0_43 = arith.constant 0 : index
    %51 = vector.load %arg2[%c0_42, %c0_43] : memref<178x1xf32, #tpu.memory_space<vmem>>, vector<178x1xf32>
    %52 = vector.broadcast %51 : vector<178x1xf32> to vector<178x128xf32>
    %53 = arith.mulf %50, %52 : vector<178x128xf32>
    %cst_44 = arith.constant 0.000000e+00 : f32
    %54 = vector.broadcast %cst_44 : f32 to vector<11x128xf32>
    %c0_45 = arith.constant 0 : index
    %c0_46 = arith.constant 0 : index
    %55 = vector.load %arg8[%c0_45, %c0_46] : memref<200x128xf32, #tpu.memory_space<vmem>>, vector<11x128xf32>
    tpu.vector_store %arg8[%c0_45, %c0_46], %54 {strides = array<i32>} : memref<200x128xf32, #tpu.memory_space<vmem>>, vector<11x128xf32>,
    %cst_47 = arith.constant 0.000000e+00 : f32
    %56 = vector.broadcast %cst_47 : f32 to vector<11x128xf32>
    %c189 = arith.constant 189 : index
    %c0_48 = arith.constant 0 : index
    %57 = vector.load %arg8[%c189, %c0_48] : memref<200x128xf32, #tpu.memory_space<vmem>>, vector<11x128xf32>
    tpu.vector_store %arg8[%c189, %c0_48], %56 {strides = array<i32>} : memref<200x128xf32, #tpu.memory_space<vmem>>, vector<11x128xf32>,
    %c11_49 = arith.constant 11 : index
    %c0_50 = arith.constant 0 : index
    %58 = vector.load %arg8[%c11_49, %c0_50] : memref<200x128xf32, #tpu.memory_space<vmem>>, vector<178x128xf32>
    tpu.vector_store %arg8[%c11_49, %c0_50], %53 {strides = array<i32>} : memref<200x128xf32, #tpu.memory_space<vmem>>, vector<178x128xf32>,
    %cst_51 = arith.constant 0.000000e+00 : f32
    %59 = vector.broadcast %cst_51 : f32 to vector<178x128xf32>
    %c0_52 = arith.constant 0 : index
    %c0_53 = arith.constant 0 : index
    %60 = vector.load %arg8[%c0_52, %c0_53] : memref<200x128xf32, #tpu.memory_space<vmem>>, vector<178x128xf32>
    %c0_54 = arith.constant 0 : index
    %c0_55 = arith.constant 0 : index
    %c0_56 = arith.constant 0 : index
    %61 = vector.load %arg4[%c0_54, %c0_55, %c0_56] : memref<9x128x128xf32, #tpu.memory_space<vmem>>, vector<1x128x128xf32>
    %62 = vector.shape_cast %61 : vector<1x128x128xf32> to vector<128x128xf32>
    %cst_57 = arith.constant dense<0.000000e+00> : vector<178x128xf32>
    %63 = tpu.matmul %60, %62, %cst_57 {dimension_numbers = #tpu.dot_dimension_numbers<[1], [0], [0], [1], [0, 0, 1, 1], [], []>} : vector<178x128xf32>, vector<128x128xf32>, vector<178x128xf32> -> vector<178x128xf32>
    %64 = arith.addf %59, %63 : vector<178x128xf32>
    %c1_58 = arith.constant 1 : index
    %c0_59 = arith.constant 0 : index
    %65 = vector.load %arg8[%c1_58, %c0_59] : memref<200x128xf32, #tpu.memory_space<vmem>>, vector<178x128xf32>
    %c1_60 = arith.constant 1 : index
    %c0_61 = arith.constant 0 : index
    %c0_62 = arith.constant 0 : index
    %66 = vector.load %arg4[%c1_60, %c0_61, %c0_62] : memref<9x128x128xf32, #tpu.memory_space<vmem>>, vector<1x128x128xf32>
    %67 = vector.shape_cast %66 : vector<1x128x128xf32> to vector<128x128xf32>
    %cst_63 = arith.constant dense<0.000000e+00> : vector<178x128xf32>
    %68 = tpu.matmul %65, %67, %cst_63 {dimension_numbers = #tpu.dot_dimension_numbers<[1], [0], [0], [1], [0, 0, 1, 1], [], []>} : vector<178x128xf32>, vector<128x128xf32>, vector<178x128xf32> -> vector<178x128xf32>
    %69 = arith.addf %64, %68 : vector<178x128xf32>
    %c2_64 = arith.constant 2 : index
    %c0_65 = arith.constant 0 : index
    %70 = vector.load %arg8[%c2_64, %c0_65] : memref<200x128xf32, #tpu.memory_space<vmem>>, vector<178x128xf32>
    %c2_66 = arith.constant 2 : index
    %c0_67 = arith.constant 0 : index
    %c0_68 = arith.constant 0 : index
    %71 = vector.load %arg4[%c2_66, %c0_67, %c0_68] : memref<9x128x128xf32, #tpu.memory_space<vmem>>, vector<1x128x128xf32>
    %72 = vector.shape_cast %71 : vector<1x128x128xf32> to vector<128x128xf32>
    %cst_69 = arith.constant dense<0.000000e+00> : vector<178x128xf32>
    %73 = tpu.matmul %70, %72, %cst_69 {dimension_numbers = #tpu.dot_dimension_numbers<[1], [0], [0], [1], [0, 0, 1, 1], [], []>} : vector<178x128xf32>, vector<128x128xf32>, vector<178x128xf32> -> vector<178x128xf32>
    %74 = arith.addf %69, %73 : vector<178x128xf32>
    %c10_70 = arith.constant 10 : index
    %c0_71 = arith.constant 0 : index
    %75 = vector.load %arg8[%c10_70, %c0_71] : memref<200x128xf32, #tpu.memory_space<vmem>>, vector<178x128xf32>
    %c3_72 = arith.constant 3 : index
    %c0_73 = arith.constant 0 : index
    %c0_74 = arith.constant 0 : index
    %76 = vector.load %arg4[%c3_72, %c0_73, %c0_74] : memref<9x128x128xf32, #tpu.memory_space<vmem>>, vector<1x128x128xf32>
    %77 = vector.shape_cast %76 : vector<1x128x128xf32> to vector<128x128xf32>
    %cst_75 = arith.constant dense<0.000000e+00> : vector<178x128xf32>
    %78 = tpu.matmul %75, %77, %cst_75 {dimension_numbers = #tpu.dot_dimension_numbers<[1], [0], [0], [1], [0, 0, 1, 1], [], []>} : vector<178x128xf32>, vector<128x128xf32>, vector<178x128xf32> -> vector<178x128xf32>
    %79 = arith.addf %74, %78 : vector<178x128xf32>
    %c11_76 = arith.constant 11 : index
    %c0_77 = arith.constant 0 : index
    %80 = vector.load %arg8[%c11_76, %c0_77] : memref<200x128xf32, #tpu.memory_space<vmem>>, vector<178x128xf32>
    %c4_78 = arith.constant 4 : index
    %c0_79 = arith.constant 0 : index
    %c0_80 = arith.constant 0 : index
    %81 = vector.load %arg4[%c4_78, %c0_79, %c0_80] : memref<9x128x128xf32, #tpu.memory_space<vmem>>, vector<1x128x128xf32>
    %82 = vector.shape_cast %81 : vector<1x128x128xf32> to vector<128x128xf32>
    %cst_81 = arith.constant dense<0.000000e+00> : vector<178x128xf32>
    %83 = tpu.matmul %80, %82, %cst_81 {dimension_numbers = #tpu.dot_dimension_numbers<[1], [0], [0], [1], [0, 0, 1, 1], [], []>} : vector<178x128xf32>, vector<128x128xf32>, vector<178x128xf32> -> vector<178x128xf32>
    %84 = arith.addf %79, %83 : vector<178x128xf32>
    %c12_82 = arith.constant 12 : index
    %c0_83 = arith.constant 0 : index
    %85 = vector.load %arg8[%c12_82, %c0_83] : memref<200x128xf32, #tpu.memory_space<vmem>>, vector<178x128xf32>
    %c5_84 = arith.constant 5 : index
    %c0_85 = arith.constant 0 : index
    %c0_86 = arith.constant 0 : index
    %86 = vector.load %arg4[%c5_84, %c0_85, %c0_86] : memref<9x128x128xf32, #tpu.memory_space<vmem>>, vector<1x128x128xf32>
    %87 = vector.shape_cast %86 : vector<1x128x128xf32> to vector<128x128xf32>
    %cst_87 = arith.constant dense<0.000000e+00> : vector<178x128xf32>
    %88 = tpu.matmul %85, %87, %cst_87 {dimension_numbers = #tpu.dot_dimension_numbers<[1], [0], [0], [1], [0, 0, 1, 1], [], []>} : vector<178x128xf32>, vector<128x128xf32>, vector<178x128xf32> -> vector<178x128xf32>
    %89 = arith.addf %84, %88 : vector<178x128xf32>
    %c20_88 = arith.constant 20 : index
    %c0_89 = arith.constant 0 : index
    %90 = vector.load %arg8[%c20_88, %c0_89] : memref<200x128xf32, #tpu.memory_space<vmem>>, vector<178x128xf32>
    %c6_90 = arith.constant 6 : index
    %c0_91 = arith.constant 0 : index
    %c0_92 = arith.constant 0 : index
    %91 = vector.load %arg4[%c6_90, %c0_91, %c0_92] : memref<9x128x128xf32, #tpu.memory_space<vmem>>, vector<1x128x128xf32>
    %92 = vector.shape_cast %91 : vector<1x128x128xf32> to vector<128x128xf32>
    %cst_93 = arith.constant dense<0.000000e+00> : vector<178x128xf32>
    %93 = tpu.matmul %90, %92, %cst_93 {dimension_numbers = #tpu.dot_dimension_numbers<[1], [0], [0], [1], [0, 0, 1, 1], [], []>} : vector<178x128xf32>, vector<128x128xf32>, vector<178x128xf32> -> vector<178x128xf32>
    %94 = arith.addf %89, %93 : vector<178x128xf32>
    %c21_94 = arith.constant 21 : index
    %c0_95 = arith.constant 0 : index
    %95 = vector.load %arg8[%c21_94, %c0_95] : memref<200x128xf32, #tpu.memory_space<vmem>>, vector<178x128xf32>
    %c7_96 = arith.constant 7 : index
    %c0_97 = arith.constant 0 : index
    %c0_98 = arith.constant 0 : index
    %96 = vector.load %arg4[%c7_96, %c0_97, %c0_98] : memref<9x128x128xf32, #tpu.memory_space<vmem>>, vector<1x128x128xf32>
    %97 = vector.shape_cast %96 : vector<1x128x128xf32> to vector<128x128xf32>
    %cst_99 = arith.constant dense<0.000000e+00> : vector<178x128xf32>
    %98 = tpu.matmul %95, %97, %cst_99 {dimension_numbers = #tpu.dot_dimension_numbers<[1], [0], [0], [1], [0, 0, 1, 1], [], []>} : vector<178x128xf32>, vector<128x128xf32>, vector<178x128xf32> -> vector<178x128xf32>
    %99 = arith.addf %94, %98 : vector<178x128xf32>
    %c22_100 = arith.constant 22 : index
    %c0_101 = arith.constant 0 : index
    %100 = vector.load %arg8[%c22_100, %c0_101] : memref<200x128xf32, #tpu.memory_space<vmem>>, vector<178x128xf32>
    %c8_102 = arith.constant 8 : index
    %c0_103 = arith.constant 0 : index
    %c0_104 = arith.constant 0 : index
    %101 = vector.load %arg4[%c8_102, %c0_103, %c0_104] : memref<9x128x128xf32, #tpu.memory_space<vmem>>, vector<1x128x128xf32>
    %102 = vector.shape_cast %101 : vector<1x128x128xf32> to vector<128x128xf32>
    %cst_105 = arith.constant dense<0.000000e+00> : vector<178x128xf32>
    %103 = tpu.matmul %100, %102, %cst_105 {dimension_numbers = #tpu.dot_dimension_numbers<[1], [0], [0], [1], [0, 0, 1, 1], [], []>} : vector<178x128xf32>, vector<128x128xf32>, vector<178x128xf32> -> vector<178x128xf32>
    %104 = arith.addf %99, %103 : vector<178x128xf32>
    %c0_106 = arith.constant 0 : index
    %c0_107 = arith.constant 0 : index
    %105 = vector.load %arg6[%c0_106, %c0_107] : memref<1x128xf32, #tpu.memory_space<vmem>>, vector<1x128xf32>
    %106 = vector.broadcast %105 : vector<1x128xf32> to vector<178x128xf32>
    %107 = arith.addf %104, %106 : vector<178x128xf32>
    %cst_108 = arith.constant 0.000000e+00 : f32
    %108 = vector.broadcast %cst_108 : f32 to vector<178x128xf32>
    %109 = arith.maximumf %107, %108 : vector<178x128xf32>
    %c0_109 = arith.constant 0 : index
    %c0_110 = arith.constant 0 : index
    %110 = vector.load %arg7[%c0_109, %c0_110] : memref<178x128xf32, #tpu.memory_space<vmem>>, vector<178x128xf32>
    tpu.vector_store %arg7[%c0_109, %c0_110], %109 {strides = array<i32>} : memref<178x128xf32, #tpu.memory_space<vmem>>, vector<178x128xf32>,
    return
  }
  func.func @transform_0(%arg0: i32) -> (i32, i32) {
    %c0_i32 = arith.constant 0 : i32
    %c0_i32_0 = arith.constant 0 : i32
    %c0_i32_1 = arith.constant 0 : i32
    return %c0_i32, %c0_i32_0 : i32, i32
  }
  func.func @transform_1(%arg0: i32) -> (i32, i32) {
    %c0_i32 = arith.constant 0 : i32
    %c0_i32_0 = arith.constant 0 : i32
    %c0_i32_1 = arith.constant 0 : i32
    return %c0_i32, %c0_i32_0 : i32, i32
  }
  func.func @transform_2(%arg0: i32) -> (i32, i32, i32) {
    %c0_i32 = arith.constant 0 : i32
    %c0_i32_0 = arith.constant 0 : i32
    %c0_i32_1 = arith.constant 0 : i32
    %c0_i32_2 = arith.constant 0 : i32
    return %c0_i32, %c0_i32_0, %c0_i32_1 : i32, i32, i32
  }
  func.func @transform_3(%arg0: i32) -> (i32, i32, i32) {
    %c0_i32 = arith.constant 0 : i32
    %c0_i32_0 = arith.constant 0 : i32
    %c0_i32_1 = arith.constant 0 : i32
    %c0_i32_2 = arith.constant 0 : i32
    return %c0_i32, %c0_i32_0, %c0_i32_1 : i32, i32, i32
  }
  func.func @transform_4(%arg0: i32) -> (i32, i32) {
    %c0_i32 = arith.constant 0 : i32
    %c0_i32_0 = arith.constant 0 : i32
    %c0_i32_1 = arith.constant 0 : i32
    return %c0_i32, %c0_i32_0 : i32, i32
  }
  func.func @transform_5(%arg0: i32) -> (i32, i32) {
    %c0_i32 = arith.constant 0 : i32
    %c0_i32_0 = arith.constant 0 : i32
    %c0_i32_1 = arith.constant 0 : i32
    return %c0_i32, %c0_i32_0 : i32, i32
  }
  func.func @transform_6(%arg0: i32) -> (i32, i32) {
    %c0_i32 = arith.constant 0 : i32
    %c0_i32_0 = arith.constant 0 : i32
    %c0_i32_1 = arith.constant 0 : i32
    return %c0_i32, %c0_i32_0 : i32, i32
  }
}

</mosaic_0001>

<bundles_post_ra>
// kernel: tile.23
= control target key start
LH: loop header
LB: loop body
LE: loop exit
PB: predicated region body
PF: predicated region fallthrough
CT: control target
= control target key end

     0   :  { %2 = vsyncpa [#allocation1], 0  ;;  %s42_s6 = smov [#allocation0]   ;;  %s59_s0 = inlined_call_operand.hbm [shape: f32[16], index: 0, kind: input, shape index: {}]   ;;  %s60_s1 = inlined_call_operand.vmem [shape: f32[8,16], index: 1, kind: output, shape index: {}]  }
   0x1   :  { %s9_s7 = sshll.u32 %s42_s6, 4  ;;  %s10_s7 = int_to_ptr.vmem [resolvable:$true] %s9_s7 }
   0x2   :  { %s28_s8 = scalar_lea.vmem %s10_s7, 16  ;;  %s32_s9 = scalar_lea.vmem %s10_s7, 32 }
   0x3   :  { %p29_p0 = scmp.ne.s32.totalorder %s10_s7, %s28_s8  ;;  %p33_p1 = scmp.lt.s32.totalorder %s10_s7, %s10_s7 }
   0x4   :  { %p34_p2 = scmp.lt.s32.totalorder %s32_s9, %s28_s8 }
   0x6   :  { %p35_p3 = por %p34_p2, %p33_p1 }
   0x8   :  { %p36_p4 = pnand %p35_p3, %p29_p0 }
   0xa   :  { %39 = shalt.err (!%p36_p4)
}
   0xb   :  { %12 = dma.hbm_to_vmem [thread:$0]  %s59_s0, 16, %s10_s7, [#allocation1]  }
   0xc   :  { %40 = dma.done.wait [#allocation1], 16  }
   0xd   :  { %41 = vsyncadd [#allocation1], 4294967280  ;;  %v16_v0 = vld [vmem:[#allocation0] ss:$0 sm:$0xff] }
   0xe   :  { %17 = vst [vmem:[%s60_s1] sm:$0xff] %v16_v0 }
   0xf   :  { %18 = vsyncpa [#allocation1], 1 }

// kernel: mul.33
= control target key start
LH: loop header
LB: loop body
LE: loop exit
PB: predicated region body
PF: predicated region fallthrough
CT: control target
= control target key end

     0   :  { %s69_s10 = smov 112   ;;  %s70_s11 = smov 80   ;;  %vm3_vm0 = vcmask 130048   ;;  %vm9_vm1 = vcmask 1048448   ;;  %vm15_vm2 = vcmask 917248   ;;  %vm21_vm3 = vcmask 786048   ;;  %s113_s0 = inlined_call_operand.vmem [shape: f32[8,16], index: 0, kind: input, shape index: {}]   ;;  %s114_s1 = inlined_call_operand.vmem [shape: f32[128], index: 1, kind: output, shape index: {}]  }
   0x1   :  { %v55_v0 = vld [vmem:[%s113_s0 + $0x7] sm:$0x1]   ;;  %v57_v1 = vld [vmem:[%s113_s0 + $0x5] sm:$0x1]   ;;  %v56_v2 = vld [vmem:[%s113_s0 + $0x6] sm:$0x1]  }
   0x2   :  { %7 = vrot.lane.b32.xlu0 %v55_v0, %s69_s10  ;;  %19 = vrot.lane.b32.xlu1 %v57_v1, %s70_s11  ;;  %v58_v3 = vld [vmem:[%s113_s0 + $0x4] sm:$0x1]   ;;  %v2_v4 = vld [vmem:[%s113_s0] sm:$0x1]   ;;  %s71_s18 = smov 96   ;;  %s72_s19 = smov 64  }
   0x3   :  { %4 = vst.msk [vmem:[#allocation0] sm:$0x1] %vm3_vm0, %v2_v4   ;;  %v59_v5 = vld [vmem:[%s113_s0 + $0x3] sm:$0x1]   ;;  %v60_v6 = vld [vmem:[%s113_s0 + $0x2] sm:$0x1]  }
   0x4   :  { %s73_s24 = smov 48   ;;  %s74_s25 = smov 32   ;;  %v61_v7 = vld [vmem:[%s113_s0 + $0x1] sm:$0x1]   ;;  %vm27_vm4 = vcmask 654848   ;;  %vm33_vm5 = vcmask 523648  }
   0x5   :  { %s75_s0 = smov 16   ;;  %vm39_vm6 = vcmask 392448   ;;  %vm45_vm7 = vcmask 261248  }
   0x6   :  { %13 = vrot.lane.b32.xlu0 %v56_v2, %s71_s18  ;;  %25 = vrot.lane.b32.xlu1 %v58_v3, %s72_s19 }
   0xa   :  { %31 = vrot.lane.b32.xlu0 %v59_v5, %s73_s24  ;;  %37 = vrot.lane.b32.xlu1 %v60_v6, %s74_s25 }
   0xe   :  { %43 = vrot.lane.b32.xlu0 %v61_v7, %s75_s0 }
  0x74   :  { %v8_v8 = vpop.permute.xlu0 %7   ;;  %v20_v9 = vpop.permute.xlu1 %19  }
  0x75   :  { %10 = vst.msk [vmem:[#allocation0] sm:$0x1] %vm9_vm1, %v8_v8  }
  0x78   :  { %v14_v10 = vpop.permute.xlu0 %13   ;;  %v26_v11 = vpop.permute.xlu1 %25  }
  0x79   :  { %16 = vst.msk [vmem:[#allocation0] sm:$0x1] %vm15_vm2, %v14_v10  }
  0x7a   :  { %22 = vst.msk [vmem:[#allocation0] sm:$0x1] %vm21_vm3, %v20_v9  }
  0x7b   :  { %28 = vst.msk [vmem:[#allocation0] sm:$0x1] %vm27_vm4, %v26_v11  }
  0x7c   :  { %v32_v12 = vpop.permute.xlu0 %31   ;;  %v38_v13 = vpop.permute.xlu1 %37  }
  0x7d   :  { %34 = vst.msk [vmem:[#allocation0] sm:$0x1] %vm33_vm5, %v32_v12  }
  0x7e   :  { %40 = vst.msk [vmem:[#allocation0] sm:$0x1] %vm39_vm6, %v38_v13  }
  0x80   :  { %v44_v14 = vpop.permute.xlu0 %43  }
  0x81   :  { %46 = vst.msk [vmem:[#allocation0] sm:$0x1] %vm45_vm7, %v44_v14  }
  0x88   :  { %v51_v15 = vld [vmem:[#allocation0] sm:$0x1] }
  0x89   :  { %54 = vst [vmem:[%s114_s1] sm:$0x1] %v51_v15 }

// kernel: tile.34
= control target key start
LH: loop header
LB: loop body
LE: loop exit
PB: predicated region body
PF: predicated region fallthrough
CT: control target
= control target key end

     0   :  { %s69_s10 = smov 112   ;;  %s70_s11 = smov 80   ;;  %vm3_vm0 = vcmask 130048   ;;  %vm9_vm1 = vcmask 1048448   ;;  %vm15_vm2 = vcmask 917248   ;;  %vm21_vm3 = vcmask 786048   ;;  %s113_s0 = inlined_call_operand.vmem [shape: f32[8,16], index: 0, kind: input, shape index: {}]   ;;  %s114_s1 = inlined_call_operand.vmem [shape: f32[1,128], index: 1, kind: output, shape index: {}]  }
   0x1   :  { %v55_v0 = vld [vmem:[%s113_s0 + $0x7] sm:$0x1]   ;;  %v57_v1 = vld [vmem:[%s113_s0 + $0x5] sm:$0x1]   ;;  %v56_v2 = vld [vmem:[%s113_s0 + $0x6] sm:$0x1]  }
   0x2   :  { %7 = vrot.lane.b32.xlu0 %v55_v0, %s69_s10  ;;  %19 = vrot.lane.b32.xlu1 %v57_v1, %s70_s11  ;;  %v58_v3 = vld [vmem:[%s113_s0 + $0x4] sm:$0x1]   ;;  %v2_v4 = vld [vmem:[%s113_s0] sm:$0x1]   ;;  %s71_s18 = smov 96   ;;  %s72_s19 = smov 64  }
   0x3   :  { %4 = vst.msk [vmem:[#allocation0] sm:$0x1] %vm3_vm0, %v2_v4   ;;  %v59_v5 = vld [vmem:[%s113_s0 + $0x3] sm:$0x1]   ;;  %v60_v6 = vld [vmem:[%s113_s0 + $0x2] sm:$0x1]  }
   0x4   :  { %s73_s24 = smov 48   ;;  %s74_s25 = smov 32   ;;  %v61_v7 = vld [vmem:[%s113_s0 + $0x1] sm:$0x1]   ;;  %vm27_vm4 = vcmask 654848   ;;  %vm33_vm5 = vcmask 523648  }
   0x5   :  { %s75_s0 = smov 16   ;;  %vm39_vm6 = vcmask 392448   ;;  %vm45_vm7 = vcmask 261248  }
   0x6   :  { %13 = vrot.lane.b32.xlu0 %v56_v2, %s71_s18  ;;  %25 = vrot.lane.b32.xlu1 %v58_v3, %s72_s19 }
   0xa   :  { %31 = vrot.lane.b32.xlu0 %v59_v5, %s73_s24  ;;  %37 = vrot.lane.b32.xlu1 %v60_v6, %s74_s25 }
   0xe   :  { %43 = vrot.lane.b32.xlu0 %v61_v7, %s75_s0 }
  0x74   :  { %v8_v8 = vpop.permute.xlu0 %7   ;;  %v20_v9 = vpop.permute.xlu1 %19  }
  0x75   :  { %10 = vst.msk [vmem:[#allocation0] sm:$0x1] %vm9_vm1, %v8_v8  }
  0x78   :  { %v14_v10 = vpop.permute.xlu0 %13   ;;  %v26_v11 = vpop.permute.xlu1 %25  }
  0x79   :  { %16 = vst.msk [vmem:[#allocation0] sm:$0x1] %vm15_vm2, %v14_v10  }
  0x7a   :  { %22 = vst.msk [vmem:[#allocation0] sm:$0x1] %vm21_vm3, %v20_v9  }
  0x7b   :  { %28 = vst.msk [vmem:[#allocation0] sm:$0x1] %vm27_vm4, %v26_v11  }
  0x7c   :  { %v32_v12 = vpop.permute.xlu0 %31   ;;  %v38_v13 = vpop.permute.xlu1 %37  }
  0x7d   :  { %34 = vst.msk [vmem:[#allocation0] sm:$0x1] %vm33_vm5, %v32_v12  }
  0x7e   :  { %40 = vst.msk [vmem:[#allocation0] sm:$0x1] %vm39_vm6, %v38_v13  }
  0x80   :  { %v44_v14 = vpop.permute.xlu0 %43  }
  0x81   :  { %46 = vst.msk [vmem:[#allocation0] sm:$0x1] %vm45_vm7, %v44_v14  }
  0x88   :  { %v51_v15 = vld [vmem:[#allocation0] sm:$0x1] }
  0x89   :  { %54 = vst [vmem:[%s114_s1] sm:$0x1] %v51_v15 }

// kernel: decoder_block1_forward.1
= control target key start
LH: loop header
LB: loop body
LE: loop exit
PB: predicated region body
PF: predicated region fallthrough
CT: control target
= control target key end

     0   :  { %v7695_v0 = vmov 0.0   ;;  %vm184_vm0 = vcmask 1046528   ;;  %vm722_vm1 = vcmask 1045504   ;;  %vm1567_vm2 = vcmask 1044480   ;;  %s12194_s2 = inlined_call_operand.vmem [shape: f32[9,256,128], index: 2, kind: input, shape index: {}]   ;;  %s12195_s0 = inlined_call_operand.vmem [shape: f32[200,256], index: 0, kind: input, shape index: {}]   ;;  %s12196_s1 = inlined_call_operand.vmem [shape: f32[178,1], index: 1, kind: input, shape index: {}]   ;;  %s12197_s3 = inlined_call_operand.vmem [shape: f32[9,128,128], index: 3, kind: input, shape index: {}]   ;;  %s12198_s4 = inlined_call_operand.vmem [shape: f32[1,128], index: 4, kind: input, shape index: {}]   ;;  %s12199_s5 = inlined_call_operand.vmem [shape: f32[1,128], index: 5, kind: input, shape index: {}]   ;;  %s12200_s6 = inlined_call_operand.vmem [shape: f32[178,128], index: 6, kind: output, shape index: {}]  }
   0x1   :  { %321 = vmatprep.subr.mxu0 %v7695_v0  ;;  %3728 = vst [vmem:[#allocation2] sm:$0xff] %v7695_v0  ;;  %3729 = vst [vmem:[#allocation2 + $0x8] sm:$0x7] %v7695_v0  ;;  %v5990_v1 = vld [vmem:[%s12194_s2 + $0x178] sm:$0xff]  ;;  %501 = vmatprep.subr.mxu1 %v7695_v0  ;;  %v5989_v3 = vld [vmem:[%s12194_s2 + $0x170] sm:$0xff]  ;;  %vm1948_vm3 = vcmask 1043456  }
   0x2   :  { %3730 = vst [vmem:[#allocation2 + $0xbd] sm:$0xff] %v7695_v0  ;;  %3731 = vst [vmem:[#allocation2 + $0xc5] sm:$0x7] %v7695_v0  ;;  %v84_v2 = vld [vmem:[%s12194_s2 + $0x78] sm:$0xff]  ;;  %322 = vmatpush1.msra.mxu0 %v5990_v1  ;;  %v83_v4 = vld [vmem:[%s12194_s2 + $0x70] sm:$0xff]  ;;  %vm2793_vm4 = vcmask 1042432  }
   0x3   :  { %502 = vmatpush1.msra.mxu1 %v84_v2  ;;  %323 = vmatprep.subr.mxu0 %v7695_v0  ;;  %v5988_v5 = vld [vmem:[%s12194_s2 + $0x168] sm:$0xff]  ;;  %v5987_v7 = vld [vmem:[%s12194_s2 + $0x160] sm:$0xff]  ;;  %v5986_v9 = vld [vmem:[%s12194_s2 + $0x158] sm:$0xff]  ;;  %vm3174_vm5 = vcmask 1041408   ;;  %vm7697_vm6 = vmmov 0  }
   0x4   :  { %503 = vmatprep.subr.mxu1 %v7695_v0  ;;  %v82_v6 = vld [vmem:[%s12194_s2 + $0x68] sm:$0xff]  ;;  %324 = vmatpush1.msra.mxu0 %v5989_v3  ;;  %v81_v8 = vld [vmem:[%s12194_s2 + $0x60] sm:$0xff]  ;;  %v80_v10 = vld [vmem:[%s12194_s2 + $0x58] sm:$0xff] }
   0x5   :  { %504 = vmatpush1.msra.mxu1 %v83_v4  ;;  %325 = vmatprep.subr.mxu0 %v7695_v0  ;;  %v5985_v11 = vld [vmem:[%s12194_s2 + $0x150] sm:$0xff]  ;;  %v5984_v13 = vld [vmem:[%s12194_s2 + $0x148] sm:$0xff]  ;;  %v5983_v15 = vld [vmem:[%s12194_s2 + $0x140] sm:$0xff] }
   0x6   :  { %505 = vmatprep.subr.mxu1 %v7695_v0  ;;  %326 = vmatpush1.msra.mxu0 %v5988_v5  ;;  %v79_v12 = vld [vmem:[%s12194_s2 + $0x50] sm:$0xff]  ;;  %v78_v14 = vld [vmem:[%s12194_s2 + $0x48] sm:$0xff]  ;;  %v77_v16 = vld [vmem:[%s12194_s2 + $0x40] sm:$0xff] }
   0x7   :  { %506 = vmatpush1.msra.mxu1 %v82_v6  ;;  %327 = vmatprep.subr.mxu0 %v7695_v0  ;;  %v5982_v17 = vld [vmem:[%s12194_s2 + $0x138] sm:$0xff]  ;;  %v5981_v19 = vld [vmem:[%s12194_s2 + $0x130] sm:$0xff]  ;;  %v5980_v21 = vld [vmem:[%s12194_s2 + $0x128] sm:$0xff] }
   0x8   :  { %507 = vmatprep.subr.mxu1 %v7695_v0  ;;  %328 = vmatpush1.msra.mxu0 %v5987_v7  ;;  %v76_v18 = vld [vmem:[%s12194_s2 + $0x38] sm:$0xff]  ;;  %v75_v20 = vld [vmem:[%s12194_s2 + $0x30] sm:$0xff]  ;;  %v74_v22 = vld [vmem:[%s12194_s2 + $0x28] sm:$0xff] }
   0x9   :  { %508 = vmatpush1.msra.mxu1 %v81_v8  ;;  %329 = vmatprep.subr.mxu0 %v7695_v0  ;;  %v5979_v23 = vld [vmem:[%s12194_s2 + $0x120] sm:$0xff]  ;;  %v5978_v25 = vld [vmem:[%s12194_s2 + $0x118] sm:$0xff]  ;;  %v5977_v27 = vld [vmem:[%s12194_s2 + $0x110] sm:$0xff] }
   0xa   :  { %509 = vmatprep.subr.mxu1 %v7695_v0  ;;  %330 = vmatpush1.msra.mxu0 %v5986_v9  ;;  %v73_v24 = vld [vmem:[%s12194_s2 + $0x20] sm:$0xff]  ;;  %v72_v26 = vld [vmem:[%s12194_s2 + $0x18] sm:$0xff]  ;;  %v71_v28 = vld [vmem:[%s12194_s2 + $0x10] sm:$0xff] }
   0xb   :  { %510 = vmatpush1.msra.mxu1 %v80_v10  ;;  %331 = vmatprep.subr.mxu0 %v7695_v0  ;;  %v5976_v29 = vld [vmem:[%s12194_s2 + $0x108] sm:$0xff]  ;;  %v5975_v31 = vld [vmem:[%s12194_s2 + $0x100] sm:$0xff]  ;;  %v6006_v33 = vld [vmem:[%s12194_s2 + $0x1f8] sm:$0xff] }
   0xc   :  { %511 = vmatprep.subr.mxu1 %v7695_v0  ;;  %332 = vmatpush1.msra.mxu0 %v5985_v11  ;;  %v70_v30 = vld [vmem:[%s12194_s2 + $0x8] sm:$0xff]  ;;  %v69_v32 = vld [vmem:[%s12194_s2] sm:$0xff]  ;;  %v100_v34 = vld [vmem:[%s12194_s2 + $0xf8] sm:$0xff] }
   0xd   :  { %512 = vmatpush1.msra.mxu1 %v79_v12  ;;  %333 = vmatprep.subr.mxu0 %v7695_v0  ;;  %v6005_v35 = vld [vmem:[%s12194_s2 + $0x1f0] sm:$0xff]  ;;  %v6004_v37 = vld [vmem:[%s12194_s2 + $0x1e8] sm:$0xff]  ;;  %v6003_v39 = vld [vmem:[%s12194_s2 + $0x1e0] sm:$0xff] }
   0xe   :  { %513 = vmatprep.subr.mxu1 %v7695_v0  ;;  %334 = vmatpush1.msra.mxu0 %v5984_v13  ;;  %v99_v36 = vld [vmem:[%s12194_s2 + $0xf0] sm:$0xff]  ;;  %v98_v38 = vld [vmem:[%s12194_s2 + $0xe8] sm:$0xff]  ;;  %v97_v40 = vld [vmem:[%s12194_s2 + $0xe0] sm:$0xff] }
   0xf   :  { %514 = vmatpush1.msra.mxu1 %v78_v14  ;;  %335 = vmatprep.subr.mxu0 %v7695_v0  ;;  %v6002_v41 = vld [vmem:[%s12194_s2 + $0x1d8] sm:$0xff]  ;;  %v6001_v43 = vld [vmem:[%s12194_s2 + $0x1d0] sm:$0xff]  ;;  %v6000_v45 = vld [vmem:[%s12194_s2 + $0x1c8] sm:$0xff] }
  0x10   :  { %515 = vmatprep.subr.mxu1 %v7695_v0  ;;  %336 = vmatpush1.msra.mxu0 %v5983_v15  ;;  %v96_v42 = vld [vmem:[%s12194_s2 + $0xd8] sm:$0xff]  ;;  %v95_v44 = vld [vmem:[%s12194_s2 + $0xd0] sm:$0xff]  ;;  %v94_v46 = vld [vmem:[%s12194_s2 + $0xc8] sm:$0xff] }
  0x11   :  { %516 = vmatpush1.msra.mxu1 %v77_v16  ;;  %337 = vmatprep.subr.mxu0 %v7695_v0  ;;  %v5999_v47 = vld [vmem:[%s12194_s2 + $0x1c0] sm:$0xff]  ;;  %v5998_v49 = vld [vmem:[%s12194_s2 + $0x1b8] sm:$0xff]  ;;  %v5997_v51 = vld [vmem:[%s12194_s2 + $0x1b0] sm:$0xff] }
  0x12   :  { %517 = vmatprep.subr.mxu1 %v7695_v0  ;;  %338 = vmatpush1.msra.mxu0 %v5982_v17  ;;  %v93_v48 = vld [vmem:[%s12194_s2 + $0xc0] sm:$0xff]  ;;  %v92_v50 = vld [vmem:[%s12194_s2 + $0xb8] sm:$0xff]  ;;  %v91_v52 = vld [vmem:[%s12194_s2 + $0xb0] sm:$0xff] }
  0x13   :  { %518 = vmatpush1.msra.mxu1 %v76_v18  ;;  %339 = vmatprep.subr.mxu0 %v7695_v0  ;;  %v5996_v53 = vld [vmem:[%s12194_s2 + $0x1a8] sm:$0xff]  ;;  %v5995_v55 = vld [vmem:[%s12194_s2 + $0x1a0] sm:$0xff]  ;;  %v7962_v57 = vld [vmem:[%s12195_s0 + $0x18] sm:$0xff] }
  0x14   :  { %519 = vmatprep.subr.mxu1 %v7695_v0  ;;  %340 = vmatpush1.msra.mxu0 %v5981_v19  ;;  %v90_v54 = vld [vmem:[%s12194_s2 + $0xa8] sm:$0xff]  ;;  %v89_v56 = vld [vmem:[%s12194_s2 + $0xa0] sm:$0xff]  ;;  %v5994_v59 = vld [vmem:[%s12194_s2 + $0x198] sm:$0xff]  ;;  %v189_v1 = vrot.slane %v7962_v57, 1 }
  0x15   :  { %520 = vmatpush1.msra.mxu1 %v75_v20  ;;  %341 = vmatprep.subr.mxu0 %v7695_v0  ;;  %v102_v58 = vld [vmem:[%s12195_s0 + $0x8] sm:$0xfe]  ;;  %v88_v60 = vld [vmem:[%s12194_s2 + $0x98] sm:$0xff]  ;;  %v7978_v61 = vld [vmem:[%s12195_s0 + $0x10] sm:$0xff] }
  0x16   :  { %521 = vmatprep.subr.mxu1 %v7695_v0  ;;  %342 = vmatpush1.msra.mxu0 %v5980_v21  ;;  %v101_v62 = vld [vmem:[%s12195_s0] sm:$0xfe]  ;;  %v188_v63 = vrot.slane %v102_v58, 1  ;;  %v5993_v2 = vld [vmem:[%s12194_s2 + $0x190] sm:$0xff]  ;;  %v186_v5 = vrot.slane %v7978_v61, 1  ;;  %v7996_v6 = vld [vmem:[%s12195_s0 + $0x28] sm:$0xff] }
  0x17   :  { %522 = vmatpush1.msra.mxu1 %v74_v22  ;;  %343 = vmatprep.subr.mxu0 %v7695_v0  ;;  %v87_v3 = vld [vmem:[%s12194_s2 + $0x90] sm:$0xff]  ;;  %v185_v4 = vrot.slane %v101_v62, 1  ;;  %v5992_v7 = vld [vmem:[%s12194_s2 + $0x188] sm:$0xff]  ;;  %v8009_v9 = vld [vmem:[%s12195_s0 + $0x20] sm:$0xff]  ;;  %v193_v13 = vrot.slane %v7996_v6, 1 }
  0x18   :  { %523 = vmatprep.subr.mxu1 %v7695_v0  ;;  %344 = vmatpush1.msra.mxu0 %v5979_v23  ;;  %v86_v8 = vld [vmem:[%s12194_s2 + $0x88] sm:$0xff]  ;;  %v190_v10 = vsel %vm184_vm0, %v188_v63, %v189_v1  ;;  %v8015_v11 = vld [vmem:[%s12195_s0 + $0x38] sm:$0xff]  ;;  %v5991_v12 = vld [vmem:[%s12194_s2 + $0x180] sm:$0xff]  ;;  %v191_v16 = vrot.slane %v8009_v9, 1 }
  0x19   :  { %524 = vmatpush1.msra.mxu1 %v73_v24  ;;  %345 = vmatprep.subr.mxu0 %v7695_v0  ;;  %v187_v14 = vsel %vm184_vm0, %v185_v4, %v186_v5  ;;  %v85_v15 = vld [vmem:[%s12194_s2 + $0x80] sm:$0xff]  ;;  %v24_v17 = vld [vmem:[%s12195_s0 + $0x8] sm:$0xff]  ;;  %v197_v18 = vrot.slane %v8015_v11, 1  ;;  %v8036_v19 = vld [vmem:[%s12195_s0 + $0x30] sm:$0xff]  ;;  %v194_v23 = vsel %vm184_vm0, %v189_v1, %v193_v13 }
  0x1a   :  { %525 = vmatprep.subr.mxu1 %v7695_v0  ;;  %346 = vmatpush1.msra.mxu0 %v5978_v25  ;;  %v23_v20 = vld [vmem:[%s12195_s0] sm:$0xff]  ;;  %v6022_v21 = vld [vmem:[%s12194_s2 + $0x278] sm:$0xff]  ;;  %v8048_v22 = vld [vmem:[%s12195_s0 + $0x48] sm:$0xff]  ;;  %v192_v24 = vsel %vm184_vm0, %v186_v5, %v191_v16  ;;  %v195_v25 = vrot.slane %v8036_v19, 1 }
  0x1b   :  { %526 = vmatpush1.msra.mxu1 %v72_v26  ;;  %347 = vmatprep.subr.mxu0 %v7695_v0  ;;  %v6021_v26 = vld [vmem:[%s12194_s2 + $0x270] sm:$0xff]  ;;  %v8158_v63 = vld [vmem:[%s12195_s0 + $0x80] sm:$0xff]  ;;  %v8164_v1 = vld [vmem:[%s12195_s0 + $0x98] sm:$0xff] }
  0x1c   :  { %527 = vmatprep.subr.mxu1 %v7695_v0  ;;  %348 = vmatpush1.msra.mxu0 %v5977_v27  ;;  %v198_v27 = vsel %vm184_vm0, %v193_v13, %v197_v18  ;;  %v6013_v62 = vld [vmem:[%s12194_s2 + $0x230] sm:$0xff]  ;;  %v215_v4 = vrot.slane %v8158_v63, 1 }
  0x1d   :  { %528 = vmatpush1.msra.mxu1 %v71_v28  ;;  %349 = vmatprep.subr.mxu0 %v7695_v0  ;;  %v201_v28 = vrot.slane %v8048_v22, 1 }
  0x1e   :  { %529 = vmatprep.subr.mxu1 %v7695_v0  ;;  %350 = vmatpush1.msra.mxu0 %v5976_v29  ;;  %v8062_v29 = vld [vmem:[%s12195_s0 + $0x40] sm:$0xff] }
  0x1f   :  { %530 = vmatpush1.msra.mxu1 %v70_v30  ;;  %351 = vmatprep.subr.mxu0 %v7695_v0  ;;  %v8068_v30 = vld [vmem:[%s12195_s0 + $0x58] sm:$0xff] }
  0x20   :  { %531 = vmatprep.subr.mxu1 %v7695_v0  ;;  %352 = vmatpush1.msra.mxu0 %v5975_v31  ;;  %v6020_v31 = vld [vmem:[%s12194_s2 + $0x268] sm:$0xff] }
  0x21   :  { %532 = vmatpush1.msra.mxu1 %v69_v32  ;;  %353 = vmatprep.subr.mxu0 %v7695_v0  ;;  %v196_v32 = vsel %vm184_vm0, %v191_v16, %v195_v25 }
  0x22   :  { %533 = vmatprep.subr.mxu1 %v7695_v0  ;;  %354 = vmatpush2.msra.mxu0 %v6006_v33  ;;  %v199_v33 = vrot.slane %v8062_v29, 1 }
  0x23   :  { %534 = vmatpush2.msra.mxu1 %v100_v34  ;;  %355 = vmatprep.subr.mxu0 %v7695_v0  ;;  %v6019_v34 = vld [vmem:[%s12194_s2 + $0x260] sm:$0xff] }
  0x24   :  { %535 = vmatprep.subr.mxu1 %v7695_v0  ;;  %356 = vmatpush2.msra.mxu0 %v6005_v35  ;;  %v202_v35 = vsel %vm184_vm0, %v197_v18, %v201_v28 }
  0x25   :  { %536 = vmatpush2.msra.mxu1 %v99_v36  ;;  %357 = vmatprep.subr.mxu0 %v7695_v0  ;;  %v205_v36 = vrot.slane %v8068_v30, 1 }
  0x26   :  { %537 = vmatprep.subr.mxu1 %v7695_v0  ;;  %358 = vmatpush2.msra.mxu0 %v6004_v37  ;;  %v8086_v37 = vld [vmem:[%s12195_s0 + $0x50] sm:$0xff] }
  0x27   :  { %538 = vmatpush2.msra.mxu1 %v98_v38  ;;  %359 = vmatprep.subr.mxu0 %v7695_v0  ;;  %v8092_v38 = vld [vmem:[%s12195_s0 + $0x68] sm:$0xff] }
  0x28   :  { %539 = vmatprep.subr.mxu1 %v7695_v0  ;;  %360 = vmatpush2.msra.mxu0 %v6003_v39  ;;  %v6018_v39 = vld [vmem:[%s12194_s2 + $0x258] sm:$0xff] }
  0x29   :  { %540 = vmatpush2.msra.mxu1 %v97_v40  ;;  %361 = vmatprep.subr.mxu0 %v7695_v0  ;;  %v200_v40 = vsel %vm184_vm0, %v195_v25, %v199_v33 }
  0x2a   :  { %541 = vmatprep.subr.mxu1 %v7695_v0  ;;  %362 = vmatpush2.msra.mxu0 %v6002_v41  ;;  %v203_v41 = vrot.slane %v8086_v37, 1 }
  0x2b   :  { %542 = vmatpush2.msra.mxu1 %v96_v42  ;;  %363 = vmatprep.subr.mxu0 %v7695_v0  ;;  %v206_v42 = vsel %vm184_vm0, %v201_v28, %v205_v36 }
  0x2c   :  { %543 = vmatprep.subr.mxu1 %v7695_v0  ;;  %364 = vmatpush2.msra.mxu0 %v6001_v43  ;;  %v6017_v43 = vld [vmem:[%s12194_s2 + $0x250] sm:$0xff] }
  0x2d   :  { %544 = vmatpush2.msra.mxu1 %v95_v44  ;;  %365 = vmatprep.subr.mxu0 %v7695_v0  ;;  %v209_v44 = vrot.slane %v8092_v38, 1 }
  0x2e   :  { %545 = vmatprep.subr.mxu1 %v7695_v0  ;;  %366 = vmatpush2.msra.mxu0 %v6000_v45  ;;  %v8110_v45 = vld [vmem:[%s12195_s0 + $0x60] sm:$0xff] }
  0x2f   :  { %546 = vmatpush2.msra.mxu1 %v94_v46  ;;  %367 = vmatprep.subr.mxu0 %v7695_v0  ;;  %v8116_v46 = vld [vmem:[%s12195_s0 + $0x78] sm:$0xff] }
  0x30   :  { %547 = vmatprep.subr.mxu1 %v7695_v0  ;;  %368 = vmatpush2.msra.mxu0 %v5999_v47  ;;  %v6016_v47 = vld [vmem:[%s12194_s2 + $0x248] sm:$0xff] }
  0x31   :  { %548 = vmatpush2.msra.mxu1 %v93_v48  ;;  %369 = vmatprep.subr.mxu0 %v7695_v0  ;;  %v204_v48 = vsel %vm184_vm0, %v199_v33, %v203_v41 }
  0x32   :  { %549 = vmatprep.subr.mxu1 %v7695_v0  ;;  %370 = vmatpush2.msra.mxu0 %v5998_v49  ;;  %v207_v49 = vrot.slane %v8110_v45, 1 }
  0x33   :  { %550 = vmatpush2.msra.mxu1 %v92_v50  ;;  %371 = vmatprep.subr.mxu0 %v7695_v0  ;;  %v210_v50 = vsel %vm184_vm0, %v205_v36, %v209_v44 }
  0x34   :  { %551 = vmatprep.subr.mxu1 %v7695_v0  ;;  %372 = vmatpush2.msra.mxu0 %v5997_v51  ;;  %v6015_v51 = vld [vmem:[%s12194_s2 + $0x240] sm:$0xff] }
  0x35   :  { %552 = vmatpush2.msra.mxu1 %v91_v52  ;;  %373 = vmatprep.subr.mxu0 %v7695_v0  ;;  %v213_v52 = vrot.slane %v8116_v46, 1 }
  0x36   :  { %553 = vmatprep.subr.mxu1 %v7695_v0  ;;  %374 = vmatpush2.msra.mxu0 %v5996_v53  ;;  %v8134_v53 = vld [vmem:[%s12195_s0 + $0x70] sm:$0xff] }
  0x37   :  { %554 = vmatpush2.msra.mxu1 %v90_v54  ;;  %375 = vmatprep.subr.mxu0 %v7695_v0  ;;  %v8140_v54 = vld [vmem:[%s12195_s0 + $0x88] sm:$0xff]  ;;  %v211_v58 = vrot.slane %v8134_v53, 1 }
  0x38   :  { %555 = vmatprep.subr.mxu1 %v7695_v0  ;;  %376 = vmatpush2.msra.mxu0 %v5995_v55  ;;  %v6014_v55 = vld [vmem:[%s12194_s2 + $0x238] sm:$0xff] }
  0x39   :  { %556 = vmatpush2.msra.mxu1 %v89_v56  ;;  %377 = vmatprep.subr.mxu0 %v7695_v0  ;;  %v208_v56 = vsel %vm184_vm0, %v203_v41, %v207_v49  ;;  %v216_v13 = vsel %vm184_vm0, %v211_v58, %v215_v4  ;;  %v6050_v41 = vld [vmem:[%s12194_s2 + $0x358] sm:$0xff] }
  0x3a   :  { %557 = vmatprep.subr.mxu1 %v7695_v0  ;;  %378 = vmatpush2.msra.mxu0 %v5994_v59  ;;  %v214_v59 = vsel %vm184_vm0, %v209_v44, %v213_v52 }
  0x3b   :  { %558 = vmatpush2.msra.mxu1 %v88_v60  ;;  %379 = vmatprep.subr.mxu0 %v7695_v0  ;;  %v217_v60 = vrot.slane %v8140_v54, 1 }
  0x3c   :  { %559 = vmatprep.subr.mxu1 %v7695_v0  ;;  %380 = vmatpush2.msra.mxu0 %v5993_v2  ;;  %v6012_v2 = vld [vmem:[%s12194_s2 + $0x228] sm:$0xff] }
  0x3d   :  { %560 = vmatpush2.msra.mxu1 %v87_v3  ;;  %381 = vmatprep.subr.mxu0 %v7695_v0  ;;  %v212_v3 = vsel %vm184_vm0, %v207_v49, %v211_v58  ;;  %v218_v5 = vsel %vm184_vm0, %v213_v52, %v217_v60  ;;  %v8275_v49 = vld [vmem:[%s12195_s0 + $0xd8] sm:$0xff]  ;;  %v6048_v52 = vld [vmem:[%s12194_s2 + $0x348] sm:$0xff] }
  0x3e   :  { %561 = vmatprep.subr.mxu1 %v7695_v0  ;;  %382 = vmatpush2.msra.mxu0 %v5992_v7  ;;  %v221_v7 = vrot.slane %v8164_v1, 1 }
  0x3f   :  { %562 = vmatpush2.msra.mxu1 %v86_v8  ;;  %383 = vmatprep.subr.mxu0 %v7695_v0  ;;  %v6054_v8 = vld [vmem:[%s12194_s2 + $0x378] sm:$0xff] }
  0x40   :  { %385 = vmatprep.mubr.f32.mxu0 %v190_v10  ;;  %384 = vmatpush2.msra.mxu0 %v5991_v12  ;;  %v8182_v10 = vld [vmem:[%s12195_s0 + $0x90] sm:$0xff]  ;;  %v8188_v12 = vld [vmem:[%s12195_s0 + $0xa8] sm:$0xff]  ;;  %v222_v16 = vsel %vm184_vm0, %v217_v60, %v221_v7  ;;  %v6047_v60 = vld [vmem:[%s12194_s2 + $0x340] sm:$0xff] }
  0x41   :  { %563 = vmatprep.subr.mxu1 %v7695_v0  ;;  %386 = vmatmul.mubr.f32.vlgmr.msra.gmra.mxu0 %v187_v14  ;;  %v219_v14 = vrot.slane %v8182_v10, 1  ;;  %v225_v18 = vrot.slane %v8188_v12, 1 }
  0x42   :  { %564 = vmatpush2.msra.mxu1 %v85_v15  ;;  %565 = vmatprep.mubr.f32.mxu1 %v24_v17  ;;  %v6053_v15 = vld [vmem:[%s12194_s2 + $0x370] sm:$0xff]  ;;  %v6011_v17 = vld [vmem:[%s12194_s2 + $0x220] sm:$0xff] }
  0x43   :  { %859 = vmatprep.subr.mxu0 %v7695_v0  ;;  %566 = vmatmul.mubr.f32.vlgmr.msra.gmra.mxu1 %v23_v20  ;;  %v8206_v20 = vld [vmem:[%s12195_s0 + $0xa0] sm:$0xff] }
  0x44   :  { %860 = vmatpush1.msra.mxu0 %v6022_v21  ;;  %390 = vmatprep.mubr.f32.mxu0 %v194_v23  ;;  %v8213_v21 = vld [vmem:[%s12195_s0 + $0xb8] sm:$0xff]  ;;  %v220_v23 = vsel %vm184_vm0, %v215_v4, %v219_v14  ;;  %v223_v25 = vrot.slane %v8206_v20, 1 }
  0x45   :  { %861 = vmatprep.subr.mxu0 %v7695_v0  ;;  %391 = vmatmul.mubr.f32.gmra.mxu0 %v192_v24  ;;  %v6052_v24 = vld [vmem:[%s12194_s2 + $0x368] sm:$0xff]  ;;  %v229_v28 = vrot.slane %v8213_v21, 1  ;;  %v6038_v4 = vld [vmem:[%s12194_s2 + $0x2f8] sm:$0xff] }
  0x46   :  { %570 = vmatprep.mubr.f32.mxu1 %v7962_v57  ;;  %862 = vmatpush1.msra.mxu0 %v6021_v26  ;;  %v226_v26 = vsel %vm184_vm0, %v221_v7, %v225_v18  ;;  %v224_v33 = vsel %vm184_vm0, %v219_v14, %v223_v25  ;;  %v8328_v14 = vld [vmem:[%s12195_s0 + $0xf8] sm:$0xff] }
  0x47   :  { %395 = vmatprep.mubr.f32.mxu0 %v198_v27  ;;  %571 = vmatmul.mubr.f32.gmra.mxu1 %v7978_v61  ;;  %v6010_v27 = vld [vmem:[%s12194_s2 + $0x218] sm:$0xff]  ;;  %v230_v36 = vsel %vm184_vm0, %v225_v18, %v229_v28  ;;  %v8342_v18 = vld [vmem:[%s12195_s0 + $0xf0] sm:$0xff] }
  0x48   :  { %863 = vmatprep.subr.mxu0 %v7695_v0  ;;  %575 = vmatprep.mubr.f32.mxu1 %v7996_v6 }
  0x49   :  { %864 = vmatpush1.msra.mxu0 %v6020_v31  ;;  %1323 = vmatprep.subr.mxu1 %v7695_v0  ;;  %v8230_v31 = vld [vmem:[%s12195_s0 + $0xb0] sm:$0xff] }
  0x4a   :  { %396 = vmatmul.mubr.f32.gmra.mxu0 %v196_v32  ;;  %865 = vmatprep.subr.mxu0 %v7695_v0  ;;  %v6051_v32 = vld [vmem:[%s12194_s2 + $0x360] sm:$0xff] }
  0x4b   :  { %866 = vmatpush1.msra.mxu0 %v6019_v34  ;;  %400 = vmatprep.mubr.f32.mxu0 %v202_v35  ;;  %v227_v34 = vrot.slane %v8230_v31, 1  ;;  %v8242_v35 = vld [vmem:[%s12195_s0 + $0xc8] sm:$0xff] }
  0x4c   :  { %576 = vmatmul.mubr.f32.gmra.mxu1 %v8009_v9  ;;  %867 = vmatprep.subr.mxu0 %v7695_v0 }
  0x4d   :  { %580 = vmatprep.mubr.f32.mxu1 %v8015_v11  ;;  %868 = vmatpush1.msra.mxu0 %v6018_v39  ;;  %v8250_v39 = vld [vmem:[%s12195_s0 + $0xc0] sm:$0xff] }
  0x4e   :  { %401 = vmatmul.mubr.f32.gmra.mxu0 %v200_v40  ;;  %869 = vmatprep.subr.mxu0 %v7695_v0  ;;  %v6009_v40 = vld [vmem:[%s12194_s2 + $0x210] sm:$0xff]  ;;  %v231_v44 = vrot.slane %v8250_v39, 1 }
  0x4f   :  { %405 = vmatprep.mubr.f32.mxu0 %v206_v42  ;;  %870 = vmatpush1.msra.mxu0 %v6017_v43  ;;  %v233_v42 = vrot.slane %v8242_v35, 1  ;;  %v228_v43 = vsel %vm184_vm0, %v223_v25, %v227_v34  ;;  %v245_v25 = vrot.slane %v8328_v14, 1 }
  0x50   :  { %581 = vmatmul.mubr.f32.gmra.mxu1 %v8036_v19  ;;  %871 = vmatprep.subr.mxu0 %v7695_v0 }
  0x51   :  { %585 = vmatprep.mubr.f32.mxu1 %v8048_v22  ;;  %872 = vmatpush1.msra.mxu0 %v6016_v47  ;;  %v6049_v47 = vld [vmem:[%s12194_s2 + $0x350] sm:$0xff] }
  0x52   :  { %406 = vmatmul.mubr.f32.gmra.mxu0 %v204_v48  ;;  %873 = vmatprep.subr.mxu0 %v7695_v0  ;;  %v6008_v48 = vld [vmem:[%s12194_s2 + $0x208] sm:$0xff] }
  0x53   :  { %410 = vmatprep.mubr.f32.mxu0 %v210_v50  ;;  %874 = vmatpush1.msra.mxu0 %v6015_v51  ;;  %v234_v50 = vsel %vm184_vm0, %v229_v28, %v233_v42  ;;  %v8282_v51 = vld [vmem:[%s12195_s0 + $0xd0] sm:$0xff]  ;;  %v6036_v28 = vld [vmem:[%s12194_s2 + $0x2e8] sm:$0xff] }
  0x54   :  { %586 = vmatmul.mubr.f32.gmra.mxu1 %v8062_v29  ;;  %875 = vmatprep.subr.mxu0 %v7695_v0  ;;  %v235_v58 = vrot.slane %v8282_v51, 1 }
  0x55   :  { %590 = vmatprep.mubr.f32.mxu1 %v8068_v30  ;;  %876 = vmatpush1.msra.mxu0 %v6014_v55  ;;  %v232_v55 = vsel %vm184_vm0, %v227_v34, %v231_v44  ;;  %v8370_v34 = vld [vmem:[%s12195_s0 + $0x100] sm:$0xff] }
  0x56   :  { %411 = vmatmul.mubr.f32.gmra.mxu0 %v208_v56  ;;  %877 = vmatprep.subr.mxu0 %v7695_v0  ;;  %v237_v56 = vrot.slane %v8275_v49, 1  ;;  %v236_v7 = vsel %vm184_vm0, %v231_v44, %v235_v58  ;;  %v8388_v44 = vld [vmem:[%s12195_s0 + $0x118] sm:$0xff] }
  0x57   :  { %415 = vmatprep.mubr.f32.mxu0 %v214_v59  ;;  %878 = vmatpush1.msra.mxu0 %v6013_v62  ;;  %v6007_v59 = vld [vmem:[%s12194_s2 + $0x200] sm:$0xff]  ;;  %v8302_v62 = vld [vmem:[%s12195_s0 + $0xe8] sm:$0xff] }
  0x58   :  { %591 = vmatmul.mubr.f32.gmra.mxu1 %v8086_v37  ;;  %879 = vmatprep.subr.mxu0 %v7695_v0 }
  0x59   :  { %595 = vmatprep.mubr.f32.mxu1 %v8092_v38  ;;  %880 = vmatpush1.msra.mxu0 %v6012_v2  ;;  %v8309_v2 = vld [vmem:[%s12195_s0 + $0xe0] sm:$0xff] }
  0x5a   :  { %416 = vmatmul.mubr.f32.gmra.mxu0 %v212_v3  ;;  %1324 = vmatpush1.msra.mxu1 %v6054_v8  ;;  %v238_v3 = vsel %vm184_vm0, %v233_v42, %v237_v56  ;;  %v241_v8 = vrot.slane %v8302_v62, 1  ;;  %v6035_v42 = vld [vmem:[%s12194_s2 + $0x2e0] sm:$0xff] }
  0x5b   :  { %420 = vmatprep.mubr.f32.mxu0 %v218_v5  ;;  %881 = vmatprep.subr.mxu0 %v7695_v0  ;;  %v6046_v5 = vld [vmem:[%s12194_s2 + $0x338] sm:$0xff] }
  0x5c   :  { %596 = vmatmul.mubr.f32.gmra.mxu1 %v8110_v45  ;;  %1325 = vmatprep.subr.mxu1 %v7695_v0 }
  0x5d   :  { %600 = vmatprep.mubr.f32.mxu1 %v8116_v46  ;;  %1326 = vmatpush1.msra.mxu1 %v6053_v15  ;;  %v6045_v15 = vld [vmem:[%s12194_s2 + $0x330] sm:$0xff] }
  0x5e   :  { %421 = vmatmul.mubr.f32.gmra.mxu0 %v216_v13  ;;  %1327 = vmatprep.subr.mxu1 %v7695_v0  ;;  %v239_v13 = vrot.slane %v8309_v2, 1 }
  0x5f   :  { %425 = vmatprep.mubr.f32.mxu0 %v222_v16  ;;  %882 = vmatpush1.msra.mxu0 %v6011_v17  ;;  %v6037_v16 = vld [vmem:[%s12194_s2 + $0x2f0] sm:$0xff]  ;;  %v242_v17 = vsel %vm184_vm0, %v237_v56, %v241_v8 }
  0x60   :  { %601 = vmatmul.mubr.f32.gmra.mxu1 %v8134_v53  ;;  %883 = vmatprep.subr.mxu0 %v7695_v0 }
  0x61   :  { %605 = vmatprep.mubr.f32.mxu1 %v8140_v54  ;;  %1328 = vmatpush1.msra.mxu1 %v6052_v24  ;;  %v240_v24 = vsel %vm184_vm0, %v235_v58, %v239_v13  ;;  %v253_v58 = vrot.slane %v8388_v44, 1 }
  0x62   :  { %426 = vmatmul.mubr.f32.gmra.mxu0 %v220_v23  ;;  %1329 = vmatprep.subr.mxu1 %v7695_v0  ;;  %v6044_v23 = vld [vmem:[%s12194_s2 + $0x328] sm:$0xff] }
  0x63   :  { %430 = vmatprep.mubr.f32.mxu0 %v226_v26  ;;  %884 = vmatpush1.msra.mxu0 %v6010_v27  ;;  %v243_v26 = vrot.slane %v8342_v18, 1  ;;  %v8356_v27 = vld [vmem:[%s12195_s0 + $0x108] sm:$0xff] }
  0x64   :  { %606 = vmatmul.mubr.f32.gmra.mxu1 %v8158_v63  ;;  %885 = vmatprep.subr.mxu0 %v7695_v0 }
  0x65   :  { %610 = vmatprep.mubr.f32.mxu1 %v8164_v1  ;;  %1330 = vmatpush1.msra.mxu1 %v6051_v32  ;;  %v6043_v32 = vld [vmem:[%s12194_s2 + $0x320] sm:$0xff] }
  0x66   :  { %431 = vmatmul.mubr.f32.gmra.mxu0 %v224_v33  ;;  %1331 = vmatprep.subr.mxu1 %v7695_v0  ;;  %v246_v33 = vsel %vm184_vm0, %v241_v8, %v245_v25  ;;  %v6070_v8 = vld [vmem:[%s12194_s2 + $0x3f8] sm:$0xff] }
  0x67   :  { %435 = vmatprep.mubr.f32.mxu0 %v230_v36  ;;  %886 = vmatpush1.msra.mxu0 %v6009_v40  ;;  %v6042_v36 = vld [vmem:[%s12194_s2 + $0x318] sm:$0xff]  ;;  %v249_v40 = vrot.slane %v8356_v27, 1 }
  0x68   :  { %611 = vmatmul.mubr.f32.gmra.mxu1 %v8182_v10  ;;  %887 = vmatprep.subr.mxu0 %v7695_v0 }
  0x69   :  { %1332 = vmatpush1.msra.mxu1 %v6050_v41  ;;  %615 = vmatprep.mubr.f32.mxu1 %v8188_v12  ;;  %v244_v41 = vsel %vm184_vm0, %v239_v13, %v243_v26 }
  0x6a   :  { %436 = vmatmul.mubr.f32.gmra.mxu0 %v228_v43  ;;  %1333 = vmatprep.subr.mxu1 %v7695_v0  ;;  %v247_v43 = vrot.slane %v8370_v34, 1 }
  0x6b   :  { %1334 = vmatpush1.msra.mxu1 %v6049_v47  ;;  %888 = vmatpush1.msra.mxu0 %v6008_v48  ;;  %v6041_v47 = vld [vmem:[%s12194_s2 + $0x310] sm:$0xff]  ;;  %v250_v48 = vsel %vm184_vm0, %v245_v25, %v249_v40 }
  0x6c   :  { %616 = vmatmul.mubr.f32.gmra.mxu1 %v8206_v20  ;;  %1335 = vmatprep.subr.mxu1 %v7695_v0  ;;  %v248_v56 = vsel %vm184_vm0, %v243_v26, %v247_v43  ;;  %v8458_v26 = vld [vmem:[%s12195_s0 + $0x130] sm:$0xff] }
  0x6d   :  { %440 = vmatprep.mubr.f32.mxu0 %v234_v50  ;;  %1336 = vmatpush1.msra.mxu1 %v6048_v52  ;;  %v8398_v50 = vld [vmem:[%s12195_s0 + $0x110] sm:$0xff]  ;;  %v6034_v52 = vld [vmem:[%s12194_s2 + $0x2d8] sm:$0xff] }
  0x6e   :  { %441 = vmatmul.mubr.f32.gmra.mxu0 %v232_v55  ;;  %620 = vmatprep.mubr.f32.mxu1 %v8213_v21  ;;  %v6040_v55 = vld [vmem:[%s12194_s2 + $0x308] sm:$0xff] }
  0x6f   :  { %889 = vmatprep.subr.mxu0 %v7695_v0  ;;  %1337 = vmatprep.subr.mxu1 %v7695_v0 }
  0x70   :  { %621 = vmatmul.mubr.f32.gmra.mxu1 %v8230_v31  ;;  %890 = vmatpush1.msra.mxu0 %v6007_v59  ;;  %v251_v59 = vrot.slane %v8398_v50, 1 }
  0x71   :  { %1338 = vmatpush1.msra.mxu1 %v6047_v60  ;;  %891 = vmatprep.subr.mxu0 %v7695_v0  ;;  %v8416_v60 = vld [vmem:[%s12195_s0 + $0x128] sm:$0xff] }
  0x72   :  { %1339 = vmatprep.subr.mxu1 %v7695_v0  ;;  %445 = vmatprep.mubr.f32.mxu0 %v238_v3  ;;  %v6039_v3 = vld [vmem:[%s12194_s2 + $0x300] sm:$0xff]  ;;  %v252_v13 = vsel %vm184_vm0, %v247_v43, %v251_v59  ;;  %v6030_v43 = vld [vmem:[%s12194_s2 + $0x2b8] sm:$0xff] }
  0x73   :  { %892 = vmatpush2.msra.mxu0 %v6038_v4  ;;  %1340 = vmatpush1.msra.mxu1 %v6046_v5  ;;  %v6033_v4 = vld [vmem:[%s12194_s2 + $0x2d0] sm:$0xff]  ;;  %v254_v5 = vsel %vm184_vm0, %v249_v40, %v253_v58  ;;  %v259_v40 = vrot.slane %v8458_v26, 1 }
  0x74   :  { %446 = vmatmul.mubr.f32.gmra.mxu0 %v236_v7  ;;  %625 = vmatprep.mubr.f32.mxu1 %v8242_v35  ;;  %v8430_v7 = vld [vmem:[%s12195_s0 + $0x120] sm:$0xff] }
  0x75   :  { %1341 = vmatprep.subr.mxu1 %v7695_v0  ;;  %626 = vmatmul.mubr.f32.gmra.mxu1 %v8250_v39 }
  0x76   :  { %893 = vmatprep.subr.mxu0 %v7695_v0  ;;  %1342 = vmatpush1.msra.mxu1 %v6045_v15  ;;  %v257_v15 = vrot.slane %v8416_v60, 1 }
  0x77   :  { %894 = vmatpush2.msra.mxu0 %v6037_v16  ;;  %1343 = vmatprep.subr.mxu1 %v7695_v0  ;;  %v255_v16 = vrot.slane %v8430_v7, 1 }
  0x78   :  { %450 = vmatprep.mubr.f32.mxu0 %v242_v17  ;;  %1344 = vmatpush1.msra.mxu1 %v6044_v23  ;;  %v6032_v17 = vld [vmem:[%s12194_s2 + $0x2c8] sm:$0xff]  ;;  %v6069_v23 = vld [vmem:[%s12194_s2 + $0x3f0] sm:$0xff]  ;;  %v258_v25 = vsel %vm184_vm0, %v253_v58, %v257_v15 }
  0x79   :  { %451 = vmatmul.mubr.f32.gmra.mxu0 %v240_v24  ;;  %630 = vmatprep.mubr.f32.mxu1 %v8275_v49  ;;  %v8450_v24 = vld [vmem:[%s12195_s0 + $0x138] sm:$0xff] }
  0x7a   :  { %895 = vmatprep.subr.mxu0 %v7695_v0  ;;  %1345 = vmatprep.subr.mxu1 %v7695_v0 }
  0x7b   :  { %631 = vmatmul.mubr.f32.gmra.mxu1 %v8282_v51  ;;  %896 = vmatpush2.msra.mxu0 %v6036_v28  ;;  %v6068_v28 = vld [vmem:[%s12194_s2 + $0x3e8] sm:$0xff] }
  0x7c   :  { %1346 = vmatpush1.msra.mxu1 %v6043_v32  ;;  %455 = vmatprep.mubr.f32.mxu0 %v246_v33  ;;  %v256_v32 = vsel %vm184_vm0, %v251_v59, %v255_v16  ;;  %v261_v33 = vrot.slane %v8450_v24, 1  ;;  %v8506_v59 = vld [vmem:[%s12195_s0 + $0x158] sm:$0xff] }
  0x7d   :  { %1347 = vmatprep.subr.mxu1 %v7695_v0  ;;  %897 = vmatprep.subr.mxu0 %v7695_v0 }
  0x7e   :  { %1348 = vmatpush1.msra.mxu1 %v6042_v36  ;;  %456 = vmatmul.mubr.f32.gmra.mxu0 %v244_v41  ;;  %v6031_v36 = vld [vmem:[%s12194_s2 + $0x2c0] sm:$0xff]  ;;  %v8476_v41 = vld [vmem:[%s12195_s0 + $0x148] sm:$0xff] }
  0x7f   :  { %635 = vmatprep.mubr.f32.mxu1 %v8302_v62  ;;  %898 = vmatpush2.msra.mxu0 %v6035_v42  ;;  %v6067_v42 = vld [vmem:[%s12194_s2 + $0x3e0] sm:$0xff] }
  0x80   :  { %1349 = vmatprep.subr.mxu1 %v7695_v0  ;;  %636 = vmatmul.mubr.f32.gmra.mxu1 %v8309_v2 }
  0x81   :  { %899 = vmatprep.subr.mxu0 %v7695_v0  ;;  %1350 = vmatpush1.msra.mxu1 %v6041_v47  ;;  %v8485_v47 = vld [vmem:[#allocation2] sm:$0xff] }
  0x82   :  { %460 = vmatprep.mubr.f32.mxu0 %v250_v48  ;;  %1351 = vmatprep.subr.mxu1 %v7695_v0  ;;  %v8492_v48 = vld [vmem:[%s12195_s0 + $0x140] sm:$0xff] }
  0x83   :  { %900 = vmatpush2.msra.mxu0 %v6034_v52  ;;  %1352 = vmatpush1.msra.mxu1 %v6040_v55  ;;  %v6066_v52 = vld [vmem:[%s12194_s2 + $0x3d8] sm:$0xff]  ;;  %v260_v55 = vsel %vm184_vm0, %v255_v16, %v259_v40  ;;  %v263_v58 = vrot.slane %v8492_v48, 1 }
  0x84   :  { %461 = vmatmul.mubr.f32.gmra.mxu0 %v248_v56  ;;  %640 = vmatprep.mubr.f32.mxu1 %v8328_v14  ;;  %v265_v56 = vrot.slane %v8476_v41, 1 }
  0x85   :  { %1353 = vmatprep.subr.mxu1 %v7695_v0  ;;  %641 = vmatmul.mubr.f32.gmra.mxu1 %v8342_v18  ;;  %v264_v16 = vsel %vm184_vm0, %v259_v40, %v263_v58  ;;  %v6062_v40 = vld [vmem:[%s12194_s2 + $0x3b8] sm:$0xff] }
  0x86   :  { %901 = vmatprep.subr.mxu0 %v7695_v0  ;;  %1354 = vmatpush1.msra.mxu1 %v6039_v3  ;;  %v6029_v3 = vld [vmem:[%s12194_s2 + $0x2b0] sm:$0xff] }
  0x87   :  { %902 = vmatpush2.msra.mxu0 %v6033_v4  ;;  %1355 = vmatprep.subr.mxu1 %v7695_v0  ;;  %v6065_v4 = vld [vmem:[%s12194_s2 + $0x3d0] sm:$0xff] }
  0x88   :  { %465 = vmatprep.mubr.f32.mxu0 %v254_v5  ;;  %1356 = vmatpush2.msra.mxu1 %v6070_v8  ;;  %v266_v5 = vsel %vm184_vm0, %v261_v33, %v265_v56  ;;  %v8520_v8 = vld [vmem:[%s12195_s0 + $0x150] sm:$0xff] }
  0x89   :  { %466 = vmatmul.mubr.f32.gmra.mxu0 %v252_v13  ;;  %645 = vmatprep.mubr.f32.mxu1 %v8356_v27  ;;  %v6064_v13 = vld [vmem:[%s12194_s2 + $0x3c8] sm:$0xff] }
  0x8a   :  { %903 = vmatprep.subr.mxu0 %v7695_v0  ;;  %1357 = vmatprep.subr.mxu1 %v7695_v0 }
  0x8b   :  { %646 = vmatmul.mubr.f32.gmra.mxu1 %v8370_v34  ;;  %904 = vmatpush2.msra.mxu0 %v6032_v17  ;;  %v6028_v17 = vld [vmem:[%s12194_s2 + $0x2a8] sm:$0xff] }
  0x8c   :  { %1358 = vmatpush2.msra.mxu1 %v6069_v23  ;;  %470 = vmatprep.mubr.f32.mxu0 %v258_v25  ;;  %v267_v23 = vrot.slane %v8520_v8, 1  ;;  %v104_v25 = vld [vmem:[%s12195_s0 + $0x168] sm:$0x7] }
  0x8d   :  { %1359 = vmatprep.subr.mxu1 %v7695_v0  ;;  %905 = vmatprep.subr.mxu0 %v7695_v0  ;;  %v262_v0 = vsel %vm184_vm0, %v257_v15, %v261_v33  ;;  %v269_v15 = vrot.slane %v8506_v59, 1  ;;  %v103_v33 = vld [vmem:[%s12195_s0 + $0x160] sm:$0x7] }
  0x8e   :  { %1360 = vmatpush2.msra.mxu1 %v6068_v28  ;;  %471 = vmatmul.mubr.f32.gmra.mxu0 %v256_v32  ;;  %v6063_v28 = vld [vmem:[%s12194_s2 + $0x3c0] sm:$0xff] }
  0x8f   :  { %650 = vmatprep.mubr.f32.mxu1 %v8388_v44  ;;  %906 = vmatpush2.msra.mxu0 %v6031_v36  ;;  %v270_v32 = vsel %vm184_vm0, %v265_v56, %v269_v15  ;;  %v6027_v36 = vld [vmem:[%s12194_s2 + $0x2a0] sm:$0xff] }
  0x90   :  { %1361 = vmatprep.subr.mxu1 %v8485_v47  ;;  %651 = vmatmul.mubr.f32.gmra.mxu1 %v8398_v50 }
  0x91   :  { %907 = vmatprep.subr.mxu0 %v8485_v47  ;;  %1362 = vmatpush2.msra.mxu1 %v6067_v42  ;;  %v268_v42 = vsel %vm184_vm0, %v263_v58, %v267_v23  ;;  %v6060_v58 = vld [vmem:[%s12194_s2 + $0x3a8] sm:$0xff] }
  0x92   :  { %908 = vmatpush2.msra.mxu0 %v6030_v43  ;;  %1363 = vmatprep.subr.mxu1 %v8485_v47  ;;  %v273_v43 = vrot.slane %v104_v25, 1  ;;  %v727_v25 = vrot.slane %v7962_v57, 2  ;;  %v67_v57 = vld [vmem:[%s12195_s0 + $0x160] sm:$0x3] }
  0x93   :  { %475 = vmatprep.mubr.f32.mxu0 %v262_v0  ;;  %1364 = vmatpush2.msra.mxu1 %v6066_v52  ;;  %v271_v0 = vrot.slane %v103_v33, 1  ;;  %v6061_v52 = vld [vmem:[%s12194_s2 + $0x3b0] sm:$0xff] }
  0x94   :  { %476 = vmatmul.mubr.f32.gmra.mxu0 %v260_v55  ;;  %655 = vmatprep.mubr.f32.mxu1 %v8416_v60  ;;  %v6026_v55 = vld [vmem:[%s12194_s2 + $0x298] sm:$0xff]  ;;  %v274_v56 = vsel %vm184_vm0, %v269_v15, %v273_v43  ;;  %v681_v15 = vld [vmem:[%s12195_s0] sm:$0xfc] }
  0x95   :  { %909 = vmatprep.subr.mxu0 %v8485_v47  ;;  %1365 = vmatprep.subr.mxu1 %v8485_v47  ;;  %v723_v33 = vrot.slane %v681_v15, 2  ;;  %v1193_v15 = vrot.slane %v8036_v19, 2  ;;  %v6085_v19 = vld [vmem:[%s12194_s2 + $0x470] sm:$0xff] }
  0x96   :  { %656 = vmatmul.mubr.f32.gmra.mxu1 %v8430_v7  ;;  %910 = vmatpush2.msra.mxu0 %v6029_v3  ;;  %v272_v3 = vsel %vm184_vm0, %v267_v23, %v271_v0 }
  0x97   :  { %1366 = vmatpush2.msra.mxu1 %v6065_v4  ;;  %480 = vmatprep.mubr.f32.mxu0 %v266_v5  ;;  %v6025_v4 = vld [vmem:[%s12194_s2 + $0x290] sm:$0xff]  ;;  %v6059_v5 = vld [vmem:[%s12194_s2 + $0x3a0] sm:$0xff] }
  0x98   :  { %1367 = vmatprep.subr.mxu1 %v8485_v47  ;;  %911 = vmatprep.subr.mxu0 %v8485_v47 }
  0x99   :  { %1368 = vmatpush2.msra.mxu1 %v6064_v13  ;;  %481 = vmatmul.mubr.f32.gmra.mxu0 %v264_v16  ;;  %v682_v13 = vld [vmem:[%s12195_s0 + $0x8] sm:$0xfc]  ;;  %v6058_v16 = vld [vmem:[%s12194_s2 + $0x398] sm:$0xff] }
  0x9a   :  { %660 = vmatprep.mubr.f32.mxu1 %v8450_v24  ;;  %912 = vmatpush2.msra.mxu0 %v6028_v17  ;;  %v68_v17 = vld [vmem:[%s12195_s0 + $0x168] sm:$0x3]  ;;  %v726_v23 = vrot.slane %v682_v13, 2 }
  0x9b   :  { %1369 = vmatprep.subr.mxu1 %v8485_v47  ;;  %661 = vmatmul.mubr.f32.gmra.mxu1 %v8458_v26 }
  0x9c   :  { %913 = vmatprep.subr.mxu0 %v8485_v47  ;;  %1370 = vmatpush2.msra.mxu1 %v6063_v28  ;;  %v1063_v28 = vld [vmem:[%s12195_s0 + $0x18] sm:$0xfc] }
  0x9d   :  { %485 = vmatprep.mubr.f32.mxu0 %v270_v32  ;;  %1371 = vmatprep.subr.mxu1 %v8485_v47  ;;  %v6024_v32 = vld [vmem:[%s12194_s2 + $0x288] sm:$0xff] }
  0x9e   :  { %914 = vmatpush2.msra.mxu0 %v6027_v36  ;;  %1372 = vmatpush2.msra.mxu1 %v6062_v40  ;;  %v724_v36 = vrot.slane %v7978_v61, 2  ;;  %v1062_v40 = vld [vmem:[%s12195_s0 + $0x10] sm:$0xfc]  ;;  %v6023_v61 = vld [vmem:[%s12194_s2 + $0x280] sm:$0xff] }
  0x9f   :  { %486 = vmatmul.mubr.f32.gmra.mxu0 %v268_v42  ;;  %665 = vmatprep.mubr.f32.mxu1 %v8476_v41  ;;  %v6057_v42 = vld [vmem:[%s12194_s2 + $0x390] sm:$0xff] }
  0xa0   :  { %1373 = vmatprep.subr.mxu1 %v8485_v47  ;;  %666 = vmatmul.mubr.f32.gmra.mxu1 %v8492_v48 }
  0xa1   :  { %915 = vmatprep.subr.mxu0 %v8485_v47  ;;  %1374 = vmatpush2.msra.mxu1 %v6061_v52  ;;  %v1191_v52 = vrot.slane %v7996_v6, 2  ;;  %v1195_v6 = vrot.slane %v8015_v11, 2 }
  0xa2   :  { %916 = vmatpush2.msra.mxu0 %v6026_v55  ;;  %1375 = vmatprep.subr.mxu1 %v8485_v47  ;;  %v728_v55 = vsel %vm722_vm1, %v726_v23, %v727_v25 }
  0xa3   :  { %490 = vmatprep.mubr.f32.mxu0 %v274_v56  ;;  %1376 = vmatpush2.msra.mxu1 %v6060_v58  ;;  %v1187_v56 = vrot.slane %v1062_v40, 2  ;;  %v6056_v58 = vld [vmem:[%s12194_s2 + $0x388] sm:$0xff]  ;;  %v732_v11 = vsel %vm722_vm1, %v727_v25, %v1191_v52  ;;  %v1196_v23 = vsel %vm722_vm1, %v1191_v52, %v1195_v6  ;;  %v1197_v25 = vrot.slane %v8062_v29, 2 }
  0xa4   :  { %491 = vmatmul.mubr.f32.gmra.mxu0 %v272_v3  ;;  %670 = vmatprep.mubr.f32.mxu1 %v8506_v59  ;;  %v725_v3 = vsel %vm722_vm1, %v723_v33, %v724_v36  ;;  %v1203_v33 = vrot.slane %v8068_v30, 2  ;;  %v1201_v40 = vrot.slane %v8086_v37, 2  ;;  %v6081_v37 = vld [vmem:[%s12194_s2 + $0x450] sm:$0xff] }
  0xa5   :  { %917 = vmatprep.subr.mxu0 %v8485_v47  ;;  %1377 = vmatprep.subr.mxu1 %v8485_v47  ;;  %v1198_v29 = vsel %vm722_vm1, %v1193_v15, %v1197_v25 }
  0xa6   :  { %671 = vmatmul.mubr.f32.gmra.mxu1 %v8520_v8  ;;  %918 = vmatpush2.msra.mxu0 %v6025_v4 }
  0xa7   :  { %1378 = vmatpush2.msra.mxu1 %v6059_v5  ;;  %495 = vmatprep.mubr.f32.mxu0 %v273_v43  ;;  %v1190_v43 = vrot.slane %v1063_v28, 2  ;;  %v6086_v5 = vld [vmem:[%s12194_s2 + $0x478] sm:$0xff] }
  0xa8   :  { %1379 = vmatprep.subr.mxu1 %v8485_v47  ;;  %919 = vmatprep.subr.mxu0 %v8485_v47 }
  0xa9   :  { %1380 = vmatpush2.msra.mxu1 %v6058_v16  ;;  %496 = vmatmul.mubr.f32.gmra.mxu0 %v271_v0  ;;  %v1188_v0 = vrot.slane %v8009_v9, 2  ;;  %v6055_v9 = vld [vmem:[%s12194_s2 + $0x380] sm:$0xff]  ;;  %v1192_v4 = vsel %vm722_vm1, %v1190_v43, %v1191_v52  ;;  %v1199_v16 = vrot.slane %v8048_v22, 2  ;;  %v6084_v22 = vld [vmem:[%s12194_s2 + $0x468] sm:$0xff]  ;;  %v1205_v43 = vrot.slane %v8110_v45, 2 }
  0xaa   :  { %675 = vmatprep.mubr.f32.mxu1 %v68_v17  ;;  %920 = vmatpush2.msra.mxu0 %v6024_v32  ;;  %v6080_v52 = vld [vmem:[%s12194_s2 + $0x448] sm:$0xff]  ;;  %v6079_v45 = vld [vmem:[%s12194_s2 + $0x440] sm:$0xff] }
  0xab   :  { %1381 = vmatprep.subr.mxu1 %v8485_v47  ;;  %676 = vmatmul.mubr.f32.gmra.mxu1 %v67_v57  ;;  %v1189_v13 = vsel %vm722_vm1, %v1187_v56, %v1188_v0  ;;  %v730_v17 = vsel %vm722_vm1, %v724_v36, %v1188_v0  ;;  %v1194_v28 = vsel %vm722_vm1, %v1188_v0, %v1193_v15  ;;  %v6083_v36 = vld [vmem:[%s12194_s2 + $0x460] sm:$0xff]  ;;  %v6082_v57 = vld [vmem:[%s12194_s2 + $0x458] sm:$0xff]  ;;  %v1209_v0 = vrot.slane %v8134_v53, 2  ;;  %v6077_v53 = vld [vmem:[%s12194_s2 + $0x430] sm:$0xff] }
  0xac   :  { %921 = vmatprep.subr.mxu0 %v8485_v47  ;;  %1382 = vmatpush2.msra.mxu1 %v6057_v42  ;;  %v1200_v32 = vsel %vm722_vm1, %v1195_v6, %v1199_v16  ;;  %v1204_v30 = vsel %vm722_vm1, %v1199_v16, %v1203_v33  ;;  %v1207_v42 = vrot.slane %v8092_v38, 2  ;;  %v1206_v56 = vsel %vm722_vm1, %v1201_v40, %v1205_v43  ;;  %v6117_v16 = vld [vmem:[%s12194_s2 + $0x570] sm:$0xff] }
  0xad   :  { %922 = vmatpush2.msra.mxu0 %v6023_v61  ;;  %1383 = vmatprep.subr.mxu1 %v8485_v47  ;;  %v1202_v61 = vsel %vm722_vm1, %v1197_v25, %v1201_v40  ;;  %v1210_v6 = vsel %vm722_vm1, %v1205_v43, %v1209_v0  ;;  %v1217_v15 = vrot.slane %v8182_v10, 2  ;;  %v6075_v10 = vld [vmem:[%s12194_s2 + $0x420] sm:$0xff]  ;;  %v6074_v25 = vld [vmem:[%s12194_s2 + $0x418] sm:$0xff] }
  0xae   :  { %923 = vmatprep.mubr.f32.mxu0 %v728_v55  ;;  %1384 = vmatpush2.msra.mxu1 %v6056_v58  ;;  %v1208_v38 = vsel %vm722_vm1, %v1203_v33, %v1207_v42  ;;  %v1211_v55 = vrot.slane %v8116_v46, 2  ;;  %v6078_v46 = vld [vmem:[%s12194_s2 + $0x438] sm:$0xff]  ;;  %v1231_v33 = vrot.slane %v8242_v35, 2 }
  0xaf   :  { %924 = vmatmul.mubr.f32.vlgmr.msra.gmra.mxu0 %v725_v3  ;;  %1385 = vmatprep.subr.mxu1 %v8485_v47  ;;  %v1215_v3 = vrot.slane %v8140_v54, 2  ;;  %v1219_v54 = vrot.slane %v8164_v1, 2  ;;  %v6114_v35 = vld [vmem:[%s12194_s2 + $0x558] sm:$0xff] }
  0xb0   :  { %1704 = vmatprep.subr.mxu0 %v8485_v47  ;;  %1386 = vmatpush2.msra.mxu1 %v6055_v9  ;;  %v1212_v58 = vsel %vm722_vm1, %v1207_v42, %v1211_v55  ;;  %v1213_v9 = vrot.slane %v8158_v63, 2  ;;  %v6118_v63 = vld [vmem:[%s12194_s2 + $0x578] sm:$0xff]  ;;  %v1235_v42 = vrot.slane %v8275_v49, 2  ;;  %v6071_v49 = vld [vmem:[%s12194_s2 + $0x400] sm:$0xff] }
  0xb1   :  { %1387 = vmatprep.mubr.f32.mxu1 %v1192_v4  ;;  %1705 = vmatpush1.msra.mxu0 %v6086_v5  ;;  %v1216_v4 = vsel %vm722_vm1, %v1211_v55, %v1215_v3  ;;  %v6076_v5 = vld [vmem:[%s12194_s2 + $0x428] sm:$0xff]  ;;  %v1220_v1 = vsel %vm722_vm1, %v1215_v3, %v1219_v54  ;;  %v6102_v55 = vld [vmem:[%s12194_s2 + $0x4f8] sm:$0xff] }
  0xb2   :  { %1388 = vmatmul.mubr.f32.vlgmr.msra.gmra.mxu1 %v1189_v13  ;;  %928 = vmatprep.mubr.f32.mxu0 %v732_v11  ;;  %v1214_v13 = vsel %vm722_vm1, %v1209_v0, %v1213_v9  ;;  %v1223_v11 = vrot.slane %v8188_v12, 2  ;;  %v1221_v12 = vrot.slane %v8206_v20, 2  ;;  %v1236_v43 = vsel %vm722_vm1, %v1231_v33, %v1235_v42  ;;  %v6109_v0 = vld [vmem:[%s12194_s2 + $0x530] sm:$0xff]  ;;  %v6108_v3 = vld [vmem:[%s12194_s2 + $0x528] sm:$0xff] }
  0xb3   :  { %1706 = vmatprep.subr.mxu0 %v8485_v47  ;;  %929 = vmatmul.mubr.f32.gmra.mxu0 %v730_v17  ;;  %v1218_v17 = vsel %vm722_vm1, %v1213_v9, %v1217_v15  ;;  %v6107_v9 = vld [vmem:[%s12194_s2 + $0x520] sm:$0xff] }
  0xb4   :  { %1392 = vmatprep.mubr.f32.mxu1 %v1196_v23  ;;  %1707 = vmatpush1.msra.mxu0 %v6085_v19  ;;  %v1227_v19 = vrot.slane %v8213_v21, 2  ;;  %v1222_v20 = vsel %vm722_vm1, %v1217_v15, %v1221_v12  ;;  %v1225_v21 = vrot.slane %v8230_v31, 2  ;;  %v6073_v31 = vld [vmem:[%s12194_s2 + $0x410] sm:$0xff] }
  0xb5   :  { %933 = vmatprep.mubr.f32.mxu0 %v1196_v23  ;;  %1708 = vmatprep.subr.mxu0 %v8485_v47  ;;  %v1224_v23 = vsel %vm722_vm1, %v1219_v54, %v1223_v11  ;;  %v6106_v54 = vld [vmem:[%s12194_s2 + $0x518] sm:$0xff] }
  0xb6   :  { %1393 = vmatmul.mubr.f32.gmra.mxu1 %v1194_v28  ;;  %1709 = vmatpush1.msra.mxu0 %v6084_v22  ;;  %v1228_v22 = vsel %vm722_vm1, %v1223_v11, %v1227_v19  ;;  %v1232_v40 = vsel %vm722_vm1, %v1227_v19, %v1231_v33  ;;  %v1249_v11 = vrot.slane %v8398_v50, 2  ;;  %v1253_v19 = vrot.slane %v8430_v7, 2  ;;  %v6131_v33 = vld [vmem:[%s12194_s2 + $0x5e0] sm:$0xff] }
  0xb7   :  { %1397 = vmatprep.mubr.f32.mxu1 %v1200_v32  ;;  %934 = vmatmul.mubr.f32.gmra.mxu0 %v1194_v28  ;;  %v6116_v28 = vld [vmem:[%s12194_s2 + $0x568] sm:$0xff] }
  0xb8   :  { %1710 = vmatprep.subr.mxu0 %v8485_v47  ;;  %938 = vmatprep.mubr.f32.mxu0 %v1200_v32  ;;  %v6115_v32 = vld [vmem:[%s12194_s2 + $0x560] sm:$0xff]  ;;  %v1254_v7 = vsel %vm722_vm1, %v1249_v11, %v1253_v19 }
  0xb9   :  { %1711 = vmatpush1.msra.mxu0 %v6083_v36  ;;  %2085 = vmatprep.subr.mxu1 %v8485_v47  ;;  %v1226_v36 = vsel %vm722_vm1, %v1221_v12, %v1225_v21  ;;  %v1255_v12 = vrot.slane %v8416_v60, 2  ;;  %v6096_v60 = vld [vmem:[%s12194_s2 + $0x4c8] sm:$0xff] }
  0xba   :  { %1398 = vmatmul.mubr.f32.gmra.mxu1 %v1198_v29  ;;  %1712 = vmatprep.subr.mxu0 %v8485_v47 }
  0xbb   :  { %1402 = vmatprep.mubr.f32.mxu1 %v1204_v30  ;;  %1713 = vmatpush1.msra.mxu0 %v6082_v57  ;;  %v6072_v57 = vld [vmem:[%s12194_s2 + $0x408] sm:$0xff] }
  0xbc   :  { %939 = vmatmul.mubr.f32.gmra.mxu0 %v1198_v29  ;;  %1714 = vmatprep.subr.mxu0 %v8485_v47  ;;  %v1229_v29 = vrot.slane %v8250_v39, 2 }
  0xbd   :  { %943 = vmatprep.mubr.f32.mxu0 %v1204_v30  ;;  %1715 = vmatpush1.msra.mxu0 %v6081_v37  ;;  %v6113_v30 = vld [vmem:[%s12194_s2 + $0x550] sm:$0xff]  ;;  %v6112_v37 = vld [vmem:[%s12194_s2 + $0x548] sm:$0xff] }
  0xbe   :  { %1403 = vmatmul.mubr.f32.gmra.mxu1 %v1202_v61  ;;  %1716 = vmatprep.subr.mxu0 %v8485_v47  ;;  %v1230_v39 = vsel %vm722_vm1, %v1225_v21, %v1229_v29  ;;  %v6132_v21 = vld [vmem:[%s12194_s2 + $0x5e8] sm:$0xff] }
  0xbf   :  { %1407 = vmatprep.mubr.f32.mxu1 %v1208_v38  ;;  %1717 = vmatpush1.msra.mxu0 %v6080_v52  ;;  %v1239_v52 = vrot.slane %v8302_v62, 2  ;;  %v6110_v62 = vld [vmem:[%s12194_s2 + $0x538] sm:$0xff] }
  0xc0   :  { %944 = vmatmul.mubr.f32.gmra.mxu0 %v1202_v61  ;;  %1718 = vmatprep.subr.mxu0 %v8485_v47  ;;  %v1233_v61 = vrot.slane %v8282_v51, 2 }
  0xc1   :  { %948 = vmatprep.mubr.f32.mxu0 %v1208_v38  ;;  %1719 = vmatpush1.msra.mxu0 %v6079_v45  ;;  %v6111_v38 = vld [vmem:[%s12194_s2 + $0x540] sm:$0xff]  ;;  %v1237_v45 = vrot.slane %v8309_v2, 2 }
  0xc2   :  { %1408 = vmatmul.mubr.f32.gmra.mxu1 %v1206_v56  ;;  %1720 = vmatprep.subr.mxu0 %v8485_v47  ;;  %v1234_v51 = vsel %vm722_vm1, %v1229_v29, %v1233_v61  ;;  %v6130_v29 = vld [vmem:[%s12194_s2 + $0x5d8] sm:$0xff] }
  0xc3   :  { %1412 = vmatprep.mubr.f32.mxu1 %v1212_v58  ;;  %1721 = vmatpush1.msra.mxu0 %v6078_v46  ;;  %v1238_v2 = vsel %vm722_vm1, %v1233_v61, %v1237_v45  ;;  %v1243_v46 = vrot.slane %v8328_v14, 2  ;;  %v6100_v14 = vld [vmem:[%s12194_s2 + $0x4e8] sm:$0xff] }
  0xc4   :  { %949 = vmatmul.mubr.f32.gmra.mxu0 %v1206_v56  ;;  %1722 = vmatprep.subr.mxu0 %v8485_v47  ;;  %v1240_v56 = vsel %vm722_vm1, %v1235_v42, %v1239_v52  ;;  %v6128_v42 = vld [vmem:[%s12194_s2 + $0x5c8] sm:$0xff] }
  0xc5   :  { %953 = vmatprep.mubr.f32.mxu0 %v1212_v58  ;;  %1723 = vmatpush1.msra.mxu0 %v6077_v53  ;;  %v6101_v58 = vld [vmem:[%s12194_s2 + $0x4f0] sm:$0xff]  ;;  %v1241_v53 = vrot.slane %v8342_v18, 2 }
  0xc6   :  { %1413 = vmatmul.mubr.f32.gmra.mxu1 %v1210_v6  ;;  %1724 = vmatprep.subr.mxu0 %v8485_v47 }
  0xc7   :  { %1417 = vmatprep.mubr.f32.mxu1 %v1216_v4  ;;  %1725 = vmatpush1.msra.mxu0 %v6076_v5  ;;  %v1242_v18 = vsel %vm722_vm1, %v1237_v45, %v1241_v53  ;;  %v1245_v5 = vrot.slane %v8370_v34, 2  ;;  %v1251_v34 = vrot.slane %v8388_v44, 2  ;;  %v6104_v44 = vld [vmem:[%s12194_s2 + $0x508] sm:$0xff]  ;;  %v6127_v45 = vld [vmem:[%s12194_s2 + $0x5c0] sm:$0xff] }
  0xc8   :  { %954 = vmatmul.mubr.f32.gmra.mxu0 %v1210_v6  ;;  %2086 = vmatpush1.msra.mxu1 %v6118_v63  ;;  %v1244_v6 = vsel %vm722_vm1, %v1239_v52, %v1243_v46  ;;  %v8922_v52 = vld [vmem:[%s12195_s0 + $0x160] sm:$0xff] }
  0xc9   :  { %958 = vmatprep.mubr.f32.mxu0 %v1216_v4  ;;  %1726 = vmatprep.subr.mxu0 %v8485_v47  ;;  %v1247_v4 = vrot.slane %v8356_v27, 2  ;;  %v6099_v27 = vld [vmem:[%s12194_s2 + $0x4e0] sm:$0xff]  ;;  %v1246_v15 = vsel %vm722_vm1, %v1241_v53, %v1245_v5  ;;  %v1250_v50 = vsel %vm722_vm1, %v1245_v5, %v1249_v11  ;;  %v1269_v53 = vrot.slane %v8922_v52, 2  ;;  %v6090_v11 = vld [vmem:[%s12194_s2 + $0x498] sm:$0xff] }
  0xca   :  { %1418 = vmatmul.mubr.f32.gmra.mxu1 %v1214_v13  ;;  %2087 = vmatprep.subr.mxu1 %v8485_v47 }
  0xcb   :  { %1422 = vmatprep.mubr.f32.mxu1 %v1220_v1  ;;  %2088 = vmatpush1.msra.mxu1 %v6117_v16  ;;  %v1248_v63 = vsel %vm722_vm1, %v1243_v46, %v1247_v4  ;;  %v1252_v16 = vsel %vm722_vm1, %v1247_v4, %v1251_v34  ;;  %v8955_v4 = vld [vmem:[%s12195_s0 + $0x178] sm:$0xf] }
  0xcc   :  { %959 = vmatmul.mubr.f32.gmra.mxu0 %v1214_v13  ;;  %2089 = vmatprep.subr.mxu1 %v8485_v47  ;;  %v6105_v13 = vld [vmem:[%s12194_s2 + $0x510] sm:$0xff] }
  0xcd   :  { %963 = vmatprep.mubr.f32.mxu0 %v1220_v1  ;;  %1727 = vmatpush1.msra.mxu0 %v6075_v10  ;;  %v6098_v1 = vld [vmem:[%s12194_s2 + $0x4d8] sm:$0xff]  ;;  %v6103_v10 = vld [vmem:[%s12194_s2 + $0x500] sm:$0xff] }
  0xce   :  { %1423 = vmatmul.mubr.f32.gmra.mxu1 %v1218_v17  ;;  %1728 = vmatprep.subr.mxu0 %v8485_v47 }
  0xcf   :  { %1427 = vmatprep.mubr.f32.mxu1 %v1224_v23  ;;  %2090 = vmatpush1.msra.mxu1 %v6116_v28  ;;  %v1256_v28 = vsel %vm722_vm1, %v1251_v34, %v1255_v12 }
  0xd0   :  { %964 = vmatmul.mubr.f32.gmra.mxu0 %v1218_v17  ;;  %2091 = vmatprep.subr.mxu1 %v8485_v47  ;;  %v6097_v17 = vld [vmem:[%s12194_s2 + $0x4d0] sm:$0xff] }
  0xd1   :  { %968 = vmatprep.mubr.f32.mxu0 %v1224_v23  ;;  %1729 = vmatpush1.msra.mxu0 %v6074_v25  ;;  %v6134_v23 = vld [vmem:[%s12194_s2 + $0x5f8] sm:$0xff]  ;;  %v6133_v25 = vld [vmem:[%s12194_s2 + $0x5f0] sm:$0xff] }
  0xd2   :  { %1428 = vmatmul.mubr.f32.gmra.mxu1 %v1222_v20  ;;  %1730 = vmatprep.subr.mxu0 %v8485_v47 }
  0xd3   :  { %1432 = vmatprep.mubr.f32.mxu1 %v1228_v22  ;;  %2092 = vmatpush1.msra.mxu1 %v6115_v32 }
  0xd4   :  { %969 = vmatmul.mubr.f32.gmra.mxu0 %v1222_v20  ;;  %2093 = vmatprep.subr.mxu1 %v8485_v47  ;;  %v1259_v20 = vrot.slane %v8450_v24, 2  ;;  %v6095_v24 = vld [vmem:[%s12194_s2 + $0x4c0] sm:$0xff] }
  0xd5   :  { %973 = vmatprep.mubr.f32.mxu0 %v1228_v22  ;;  %1731 = vmatpush1.msra.mxu0 %v6073_v31  ;;  %v1257_v22 = vrot.slane %v8458_v26, 2  ;;  %v1263_v31 = vrot.slane %v8476_v41, 2  ;;  %v6093_v41 = vld [vmem:[%s12194_s2 + $0x4b0] sm:$0xff] }
  0xd6   :  { %1433 = vmatmul.mubr.f32.gmra.mxu1 %v1226_v36  ;;  %1732 = vmatprep.subr.mxu0 %v8485_v47  ;;  %v1260_v32 = vsel %vm722_vm1, %v1255_v12, %v1259_v20  ;;  %v6124_v12 = vld [vmem:[%s12194_s2 + $0x5a8] sm:$0xff] }
  0xd7   :  { %2094 = vmatpush1.msra.mxu1 %v6114_v35  ;;  %1437 = vmatprep.mubr.f32.mxu1 %v1232_v40  ;;  %v1258_v26 = vsel %vm722_vm1, %v1253_v19, %v1257_v22  ;;  %v1261_v35 = vrot.slane %v8492_v48, 2 }
  0xd8   :  { %974 = vmatmul.mubr.f32.gmra.mxu0 %v1226_v36  ;;  %2095 = vmatprep.subr.mxu1 %v8485_v47  ;;  %v6094_v36 = vld [vmem:[%s12194_s2 + $0x4b8] sm:$0xff] }
  0xd9   :  { %2096 = vmatpush1.msra.mxu1 %v6113_v30  ;;  %1733 = vmatpush1.msra.mxu0 %v6072_v57  ;;  %v6129_v30 = vld [vmem:[%s12194_s2 + $0x5d0] sm:$0xff]  ;;  %v1262_v57 = vsel %vm722_vm1, %v1257_v22, %v1261_v35  ;;  %v6123_v22 = vld [vmem:[%s12194_s2 + $0x5a0] sm:$0xff] }
  0xda   :  { %1438 = vmatmul.mubr.f32.gmra.mxu1 %v1230_v39  ;;  %2097 = vmatprep.subr.mxu1 %v8485_v47 }
  0xdb   :  { %978 = vmatprep.mubr.f32.mxu0 %v1232_v40  ;;  %2098 = vmatpush1.msra.mxu1 %v6112_v37  ;;  %v1264_v40 = vsel %vm722_vm1, %v1259_v20, %v1263_v31  ;;  %v1265_v37 = vrot.slane %v8520_v8, 2  ;;  %v6089_v20 = vld [vmem:[%s12194_s2 + $0x490] sm:$0xff] }
  0xdc   :  { %979 = vmatmul.mubr.f32.gmra.mxu0 %v1230_v39  ;;  %1734 = vmatprep.subr.mxu0 %v8485_v47  ;;  %v8897_v39 = vrot.slane %v8506_v59, 2  ;;  %v8909_v59 = vld [vmem:[%s12195_s0 + $0x168] sm:$0xff] }
  0xdd   :  { %2099 = vmatprep.subr.mxu1 %v8485_v47  ;;  %1442 = vmatprep.mubr.f32.mxu1 %v1236_v43 }
  0xde   :  { %1735 = vmatpush1.msra.mxu0 %v6071_v49  ;;  %2100 = vmatpush1.msra.mxu1 %v6111_v38  ;;  %v6092_v38 = vld [vmem:[%s12194_s2 + $0x4a8] sm:$0xff]  ;;  %v1268_v8 = vsel %vm722_vm1, %v1263_v31, %v8897_v39 }
  0xdf   :  { %1736 = vmatprep.subr.mxu0 %v8485_v47  ;;  %1443 = vmatmul.mubr.f32.gmra.mxu1 %v1234_v51 }
  0xe0   :  { %2101 = vmatprep.subr.mxu1 %v8485_v47  ;;  %983 = vmatprep.mubr.f32.mxu0 %v1236_v43 }
  0xe1   :  { %1737 = vmatpush2.msra.mxu0 %v6102_v55  ;;  %2102 = vmatpush1.msra.mxu1 %v6110_v62  ;;  %v1271_v62 = vrot.slane %v8909_v59, 2  ;;  %v1907_v59 = vld [vmem:[%s12195_s0 + $0x10] sm:$0xf0] }
  0xe2   :  { %984 = vmatmul.mubr.f32.gmra.mxu0 %v1234_v51  ;;  %2103 = vmatprep.subr.mxu1 %v8485_v47 }
  0xe3   :  { %1447 = vmatprep.mubr.f32.mxu1 %v1240_v56  ;;  %1738 = vmatprep.subr.mxu0 %v8485_v47  ;;  %v1272_v5 = vsel %vm722_vm1, %v8897_v39, %v1271_v62 }
  0xe4   :  { %2104 = vmatpush1.msra.mxu1 %v6109_v0  ;;  %1739 = vmatpush2.msra.mxu0 %v6101_v58  ;;  %v1266_v0 = vsel %vm722_vm1, %v1261_v35, %v1265_v37 }
  0xe5   :  { %1448 = vmatmul.mubr.f32.gmra.mxu1 %v1238_v2  ;;  %2105 = vmatprep.subr.mxu1 %v8485_v47 }
  0xe6   :  { %988 = vmatprep.mubr.f32.mxu0 %v1240_v56  ;;  %2106 = vmatpush1.msra.mxu1 %v6108_v3  ;;  %v8932_v56 = vld [vmem:[%s12195_s0 + $0x168] sm:$0xf]  ;;  %v6091_v3 = vld [vmem:[%s12194_s2 + $0x4a0] sm:$0xff] }
  0xe7   :  { %989 = vmatmul.mubr.f32.gmra.mxu0 %v1238_v2  ;;  %1740 = vmatprep.subr.mxu0 %v8485_v47  ;;  %v8939_v2 = vld [vmem:[%s12195_s0 + $0x160] sm:$0xf] }
  0xe8   :  { %2107 = vmatprep.subr.mxu1 %v8485_v47  ;;  %1452 = vmatprep.mubr.f32.mxu1 %v1244_v6 }
  0xe9   :  { %1741 = vmatpush2.msra.mxu0 %v6100_v14  ;;  %2108 = vmatpush1.msra.mxu1 %v6107_v9  ;;  %v6126_v14 = vld [vmem:[%s12194_s2 + $0x5b8] sm:$0xff]  ;;  %v811_v9 = vrot.slane %v8932_v56, 2  ;;  %v1949_v56 = vrot.slane %v1907_v59, 4 }
  0xea   :  { %993 = vmatprep.mubr.f32.mxu0 %v1244_v6  ;;  %1453 = vmatmul.mubr.f32.gmra.mxu1 %v1242_v18 }
  0xeb   :  { %2109 = vmatprep.subr.mxu1 %v8485_v47  ;;  %1742 = vmatprep.subr.mxu0 %v8485_v47 }
  0xec   :  { %2110 = vmatpush1.msra.mxu1 %v6106_v54  ;;  %994 = vmatmul.mubr.f32.gmra.mxu0 %v1242_v18 }
  0xed   :  { %2111 = vmatprep.subr.mxu1 %v8485_v47  ;;  %1743 = vmatpush2.msra.mxu0 %v6099_v27  ;;  %v809_v27 = vrot.slane %v8939_v2, 2 }
  0xee   :  { %1457 = vmatprep.mubr.f32.mxu1 %v1248_v63  ;;  %2112 = vmatpush1.msra.mxu1 %v6105_v13  ;;  %v8967_v13 = vld [vmem:[%s12195_s0 + $0x170] sm:$0xf] }
  0xef   :  { %1744 = vmatprep.subr.mxu0 %v8485_v47  ;;  %1458 = vmatmul.mubr.f32.gmra.mxu1 %v1246_v15  ;;  %v1273_v19 = vrot.slane %v8967_v13, 2 }
  0xf0   :  { %2113 = vmatprep.subr.mxu1 %v8485_v47  ;;  %998 = vmatprep.mubr.f32.mxu0 %v1248_v63  ;;  %v6125_v63 = vld [vmem:[%s12194_s2 + $0x5b0] sm:$0xff] }
  0xf1   :  { %1745 = vmatpush2.msra.mxu0 %v6098_v1  ;;  %2114 = vmatpush1.msra.mxu1 %v6104_v44  ;;  %v1270_v1 = vsel %vm722_vm1, %v1265_v37, %v1269_v53  ;;  %v1275_v44 = vrot.slane %v8955_v4, 2  ;;  %v9072_v4 = vld [vmem:[%s12195_s0 + $0x30] sm:$0xff] }
  0xf2   :  { %999 = vmatmul.mubr.f32.gmra.mxu0 %v1246_v15  ;;  %2115 = vmatprep.subr.mxu1 %v8485_v47 }
  0xf3   :  { %1462 = vmatprep.mubr.f32.mxu1 %v1252_v16  ;;  %1746 = vmatprep.subr.mxu0 %v8485_v47 }
  0xf4   :  { %2116 = vmatpush1.msra.mxu1 %v6103_v10  ;;  %1747 = vmatpush2.msra.mxu0 %v6097_v17  ;;  %v812_v10 = vsel %vm722_vm1, %v8897_v39, %v811_v9 }
  0xf5   :  { %1463 = vmatmul.mubr.f32.gmra.mxu1 %v1250_v50  ;;  %2117 = vmatprep.subr.mxu1 %v8485_v47 }
  0xf6   :  { %1003 = vmatprep.mubr.f32.mxu0 %v1252_v16  ;;  %2118 = vmatpush2.msra.mxu1 %v6134_v23  ;;  %v810_v23 = vsel %vm722_vm1, %v1265_v37, %v809_v27 }
  0xf7   :  { %1004 = vmatmul.mubr.f32.gmra.mxu0 %v1250_v50  ;;  %1748 = vmatprep.subr.mxu0 %v8485_v47 }
  0xf8   :  { %2119 = vmatprep.subr.mxu1 %v8485_v47  ;;  %1467 = vmatprep.mubr.f32.mxu1 %v1256_v28 }
  0xf9   :  { %1749 = vmatpush2.msra.mxu0 %v6096_v60  ;;  %2120 = vmatpush2.msra.mxu1 %v6133_v25  ;;  %v1276_v25 = vsel %vm722_vm1, %v1271_v62, %v1275_v44  ;;  %v6087_v62 = vld [vmem:[%s12194_s2 + $0x480] sm:$0xff] }
  0xfa   :  { %1008 = vmatprep.mubr.f32.mxu0 %v1256_v28  ;;  %1468 = vmatmul.mubr.f32.gmra.mxu1 %v1254_v7 }
  0xfb   :  { %2121 = vmatprep.subr.mxu1 %v8485_v47  ;;  %1750 = vmatprep.subr.mxu0 %v8485_v47 }
  0xfc   :  { %2122 = vmatpush2.msra.mxu1 %v6132_v21  ;;  %1009 = vmatmul.mubr.f32.gmra.mxu0 %v1254_v7  ;;  %v1527_v7 = vld [vmem:[%s12195_s0 + $0x18] sm:$0xf8] }
  0xfd   :  { %2123 = vmatprep.subr.mxu1 %v8485_v47  ;;  %1751 = vmatpush2.msra.mxu0 %v6095_v24  ;;  %v1571_v31 = vrot.slane %v1527_v7, 3 }
  0xfe   :  { %1472 = vmatprep.mubr.f32.mxu1 %v1260_v32  ;;  %1752 = vmatprep.subr.mxu0 %v8485_v47 }
  0xff   :  { %2124 = vmatpush2.msra.mxu1 %v6131_v33  ;;  %1753 = vmatpush2.msra.mxu0 %v6094_v36  ;;  %v1274_v33 = vsel %vm722_vm1, %v1269_v53, %v1273_v19  ;;  %v6122_v36 = vld [vmem:[%s12194_s2 + $0x598] sm:$0xff] }
 0x100   :  { %1473 = vmatmul.mubr.f32.gmra.mxu1 %v1258_v26  ;;  %2125 = vmatprep.subr.mxu1 %v8485_v47 }
 0x101   :  { %1013 = vmatprep.mubr.f32.mxu0 %v1260_v32  ;;  %2126 = vmatpush2.msra.mxu1 %v6130_v29  ;;  %v387_v48 = vpop.f32.mrf.mxu0  ;;  %v9016_v29 = vld [vmem:[%s12195_s0 + $0x28] sm:$0xff] }
 0x102   :  { %1014 = vmatmul.mubr.f32.gmra.mxu0 %v1258_v26  ;;  %1754 = vmatprep.subr.mxu0 %v8485_v47  ;;  %v1526_v26 = vld [vmem:[%s12195_s0 + $0x10] sm:$0xf8]  ;;  %v1572_v35 = vrot.slane %v9016_v29, 3 }
 0x103   :  { %2127 = vmatprep.subr.mxu1 %v8485_v47  ;;  %1477 = vmatprep.mubr.f32.mxu1 %v1264_v40  ;;  %v567_v61 = vpop.f32.mrf.mxu1  ;;  %v389_v43 = vpop.f32.mrf.mxu0 }
 0x104   :  { %1755 = vmatpush2.msra.mxu0 %v6093_v41  ;;  %2128 = vmatpush2.msra.mxu1 %v6129_v30  ;;  %v8911_v49 = vadd.f32 %v567_v61, %v387_v48  ;;  %v1908_v30 = vld [vmem:[%s12195_s0 + $0x18] sm:$0xf0]  ;;  %v6088_v48 = vld [vmem:[%s12194_s2 + $0x488] sm:$0xff] }
 0x105   :  { %1018 = vmatprep.mubr.f32.mxu0 %v1264_v40  ;;  %1478 = vmatmul.mubr.f32.gmra.mxu1 %v1262_v57  ;;  %v569_v51 = vpop.f32.mrf.mxu1  ;;  %v392_v55 = vpop.f32.mrf.mxu0  ;;  %v1952_v52 = vrot.slane %v1908_v30, 4 }
 0x106   :  { %2129 = vmatprep.subr.mxu1 %v8485_v47  ;;  %1756 = vmatprep.subr.mxu0 %v8485_v47  ;;  %v1953_v51 = vrot.slane %v9016_v29, 4  ;;  %v6148_v29 = vld [vmem:[%s12194_s2 + $0x668] sm:$0xff] }
 0x107   :  { %2130 = vmatpush2.msra.mxu1 %v6128_v42  ;;  %1019 = vmatmul.mubr.f32.gmra.mxu0 %v1262_v57  ;;  %v572_v58 = vpop.f32.mrf.mxu1  ;;  %v394_v46 = vpop.f32.mrf.mxu0  ;;  %v1568_v57 = vrot.slane %v1526_v26, 3  ;;  %v9031_v42 = vld [vmem:[%s12195_s0 + $0x20] sm:$0xff] }
 0x108   :  { %2131 = vmatprep.subr.mxu1 %v8485_v47  ;;  %1757 = vmatpush2.msra.mxu0 %v6092_v38  ;;  %v8945_v6 = vadd.f32 %v572_v58, %v392_v55  ;;  %v1569_v37 = vrot.slane %v9031_v42, 3  ;;  %v9037_v38 = vld [vmem:[#allocation2] sm:$0xff]  ;;  %v6120_v58 = vld [vmem:[%s12194_s2 + $0x588] sm:$0xff] }
 0x109   :  { %1482 = vmatprep.mubr.f32.mxu1 %v1268_v8  ;;  %2132 = vmatpush2.msra.mxu1 %v6127_v45  ;;  %v574_v18 = vpop.f32.mrf.mxu1 }
 0x10a   :  { %1758 = vmatprep.subr.mxu0 %v8485_v47  ;;  %v397_v54 = vpop.f32.mrf.mxu0  ;;  %1483 = vmatmul.mubr.f32.gmra.mxu1 %v1266_v0  ;;  %v1570_v46 = vsel %vm1567_vm2, %v1568_v57, %v1569_v37  ;;  %v1574_v18 = vrot.slane %v9072_v4, 3  ;;  %v9130_v57 = vld [vmem:[%s12195_s0 + $0x50] sm:$0xff] }
 0x10b   :  { %2133 = vmatprep.subr.mxu1 %v8485_v47  ;;  %1023 = vmatprep.mubr.f32.mxu0 %v1268_v8  ;;  %v1573_v8 = vsel %vm1567_vm2, %v1571_v31, %v1572_v35 }
 0x10c   :  { %1759 = vmatpush2.msra.mxu0 %v6091_v3  ;;  %v577_v34 = vpop.f32.mrf.mxu1  ;;  %v399_v15 = vpop.f32.mrf.mxu0  ;;  %2134 = vmatpush2.msra.mxu1 %v6126_v14  ;;  %v7630_v3 = vld [vmem:[%s12195_s0 + $0x38] sm:$0xff] }
 0x10d   :  { %1024 = vmatmul.mubr.f32.gmra.mxu0 %v1266_v0  ;;  %v8974_v16 = vadd.f32 %v577_v34, %v397_v54  ;;  %2135 = vmatprep.subr.mxu1 %v8485_v47  ;;  %v1950_v0 = vrot.slane %v9031_v42, 4  ;;  %v1576_v53 = vrot.slane %v7630_v3, 3  ;;  %v1957_v54 = vrot.slane %v7630_v3, 4  ;;  %v9154_v3 = vld [vmem:[%s12195_s0 + $0x60] sm:$0xff] }
 0x10e   :  { %1487 = vmatprep.mubr.f32.mxu1 %v1272_v5  ;;  %v579_v50 = vpop.f32.mrf.mxu1  ;;  %v402_v17 = vpop.f32.mrf.mxu0  ;;  %1760 = vmatprep.subr.mxu0 %v8485_v47  ;;  %v6119_v5 = vld [vmem:[%s12194_s2 + $0x580] sm:$0xff]  ;;  %v1582_v42 = vrot.slane %v9130_v57, 3 }
 0x10f   :  { %2136 = vmatpush2.msra.mxu1 %v6125_v63  ;;  %1761 = vmatpush2.msra.mxu0 %v6090_v11  ;;  %v9082_v63 = vld [vmem:[%s12195_s0 + $0x48] sm:$0xff]  ;;  %v1951_v11 = vsel %vm1948_vm3, %v1949_v56, %v1950_v0  ;;  %v1577_v50 = vsel %vm1567_vm2, %v1572_v35, %v1576_v53 }
 0x110   :  { %1488 = vmatmul.mubr.f32.gmra.mxu1 %v1270_v1  ;;  %v582_v28 = vpop.f32.mrf.mxu1  ;;  %v404_v60 = vpop.f32.mrf.mxu0  ;;  %2137 = vmatprep.subr.mxu1 %v8485_v47  ;;  %v1580_v13 = vrot.slane %v9082_v63, 3  ;;  %v6150_v1 = vld [vmem:[%s12194_s2 + $0x678] sm:$0xff] }
 0x111   :  { %1028 = vmatprep.mubr.f32.mxu0 %v812_v10  ;;  %v8997_v21 = vadd.f32 %v582_v28, %v402_v17  ;;  %2138 = vmatpush2.msra.mxu1 %v6124_v12  ;;  %v1961_v17 = vrot.slane %v9082_v63, 4  ;;  %v1958_v28 = vsel %vm1948_vm3, %v1953_v51, %v1957_v54  ;;  %v9103_v60 = vld [vmem:[%s12195_s0 + $0x40] sm:$0xff]  ;;  %v1967_v63 = vrot.slane %v9154_v3, 4 }
 0x112   :  { %1029 = vmatmul.mubr.f32.gmra.mxu0 %v810_v23  ;;  %v584_v24 = vpop.f32.mrf.mxu1  ;;  %v407_v32 = vpop.f32.mrf.mxu0  ;;  %1762 = vmatprep.subr.mxu0 %v8485_v47  ;;  %v1581_v7 = vsel %vm1567_vm2, %v1576_v53, %v1580_v13  ;;  %v1586_v53 = vrot.slane %v9154_v3, 3 }
 0x113   :  { %2139 = vmatprep.subr.mxu1 %v8485_v47  ;;  %1492 = vmatprep.mubr.f32.mxu1 %v1276_v25  ;;  %v1578_v25 = vrot.slane %v9103_v60, 3  ;;  %v1962_v35 = vsel %vm1948_vm3, %v1957_v54, %v1961_v17 }
 0x114   :  { %1763 = vmatpush2.msra.mxu0 %v6089_v20  ;;  %v587_v40 = vpop.f32.mrf.mxu1  ;;  %v409_v41 = vpop.f32.mrf.mxu0  ;;  %2140 = vmatpush2.msra.mxu1 %v6123_v22  ;;  %v6149_v20 = vld [vmem:[%s12194_s2 + $0x670] sm:$0xff]  ;;  %v9113_v22 = vld [vmem:[%s12195_s0 + $0x58] sm:$0xff] }
 0x115   :  { %1033 = vmatprep.mubr.f32.mxu0 %v811_v9  ;;  %v9022_v39 = vadd.f32 %v587_v40, %v407_v32  ;;  %1493 = vmatmul.mubr.f32.gmra.mxu1 %v1274_v33  ;;  %v1584_v24 = vrot.slane %v9113_v22, 3  ;;  %v1965_v40 = vrot.slane %v9113_v22, 4 }
 0x116   :  { %2141 = vmatprep.subr.mxu1 %v8485_v47  ;;  %v589_v61 = vpop.f32.mrf.mxu1  ;;  %v412_v43 = vpop.f32.mrf.mxu0  ;;  %1764 = vmatprep.subr.mxu0 %v9037_v38  ;;  %v6121_v47 = vld [vmem:[%s12194_s2 + $0x590] sm:$0xff] }
 0x117   :  { %2142 = vmatpush2.msra.mxu1 %v6122_v36  ;;  %1034 = vmatmul.mubr.f32.gmra.mxu0 %v809_v27  ;;  %v1954_v27 = vsel %vm1948_vm3, %v1952_v52, %v1953_v51  ;;  %v1959_v36 = vrot.slane %v9103_v60, 4  ;;  %v1585_v59 = vsel %vm1567_vm2, %v1580_v13, %v1584_v24  ;;  %v7636_v61 = vld [vmem:[%s12195_s0 + $0x68] sm:$0xff]  ;;  %v1963_v51 = vrot.slane %v9130_v57, 4 }
 0x118   :  { %2143 = vmatprep.subr.mxu1 %v9037_v38  ;;  %v592_v55 = vpop.f32.mrf.mxu1  ;;  %v414_v45 = vpop.f32.mrf.mxu0  ;;  %1765 = vmatpush2.msra.mxu0 %v6088_v48  ;;  %v1579_v48 = vsel %vm1567_vm2, %v1574_v18, %v1578_v25  ;;  %v1969_v56 = vrot.slane %v7636_v61, 4 }
 0x119   :  { %1497 = vmatprep.mubr.f32.mxu1 %v1275_v44  ;;  %v9056_v2 = vadd.f32 %v592_v55, %v412_v43  ;;  %2144 = vmatpush2.msra.mxu1 %v6121_v47  ;;  %v1955_v44 = vrot.slane %v9072_v4, 4  ;;  %v1588_v43 = vrot.slane %v7636_v61, 3  ;;  %v1966_v45 = vsel %vm1948_vm3, %v1961_v17, %v1965_v40  ;;  %v7638_v4 = vld [vmem:[%s12195_s0 + $0x78] sm:$0xff]  ;;  %v7639_v17 = vld [vmem:[%s12195_s0 + $0x70] sm:$0xff] }
 0x11a   :  { %1766 = vmatprep.subr.mxu0 %v9037_v38  ;;  %v594_v14 = vpop.f32.mrf.mxu1  ;;  %v417_v9 = vpop.f32.mrf.mxu0  ;;  %1498 = vmatmul.mubr.f32.gmra.mxu1 %v1273_v19  ;;  %v1575_v19 = vsel %vm1567_vm2, %v1569_v37, %v1574_v18  ;;  %v6147_v37 = vld [vmem:[%s12194_s2 + $0x660] sm:$0xff]  ;;  %v1592_v18 = vrot.slane %v7638_v4, 3  ;;  %v1971_v22 = vrot.slane %v7639_v17, 4 }
 0x11b   :  { %2145 = vmatprep.subr.mxu1 %v9037_v38  ;;  %1767 = vmatpush2.msra.mxu0 %v6087_v62  ;;  %v1956_v26 = vsel %vm1948_vm3, %v1950_v0, %v1955_v44  ;;  %v1960_v52 = vsel %vm1948_vm3, %v1955_v44, %v1959_v36  ;;  %v6146_v62 = vld [vmem:[%s12194_s2 + $0x658] sm:$0xff]  ;;  %v1589_v14 = vsel %vm1567_vm2, %v1584_v24, %v1588_v43 }
 0x11c   :  { %1768 = vmatprep.mubr.f32.mxu0 %v1573_v8  ;;  %v597_v34 = vpop.f32.mrf.mxu1  ;;  %v419_v15 = vpop.f32.mrf.mxu0  ;;  %2146 = vmatpush2.msra.mxu1 %v6120_v58  ;;  %v1972_v61 = vsel %vm1948_vm3, %v1967_v63, %v1971_v22 }
 0x11d   :  { %1769 = vmatmul.mubr.f32.vlgmr.msra.gmra.mxu0 %v1570_v46  ;;  %v9090_v10 = vadd.f32 %v597_v34, %v417_v9  ;;  %2147 = vmatprep.subr.mxu1 %v9037_v38  ;;  %v1583_v46 = vsel %vm1567_vm2, %v1578_v25, %v1582_v42  ;;  %v6145_v9 = vld [vmem:[%s12194_s2 + $0x650] sm:$0xff]  ;;  %v1970_v34 = vsel %vm1948_vm3, %v1965_v40, %v1969_v56  ;;  %v6144_v15 = vld [vmem:[%s12194_s2 + $0x648] sm:$0xff]  ;;  %v7641_v40 = vld [vmem:[%s12195_s0 + $0x80] sm:$0xff] }
 0x11e   :  { %2549 = vmatprep.subr.mxu0 %v9037_v38  ;;  %v599_v12 = vpop.f32.mrf.mxu1  ;;  %v422_v23 = vpop.f32.mrf.mxu0  ;;  %2148 = vmatpush2.msra.mxu1 %v6119_v5 }
 0x11f   :  { %2149 = vmatprep.mubr.f32.mxu1 %v1954_v27  ;;  %2550 = vmatpush1.msra.mxu0 %v6150_v1  ;;  %v1964_v27 = vsel %vm1948_vm3, %v1959_v36, %v1963_v51  ;;  %v1973_v1 = vrot.slane %v7638_v4, 4  ;;  %v1590_v12 = vrot.slane %v7639_v17, 3  ;;  %v7646_v17 = vld [vmem:[%s12195_s0 + $0xb8] sm:$0xff] }
 0x120   :  { %2150 = vmatmul.mubr.f32.vlgmr.msra.gmra.mxu1 %v1951_v11  ;;  %v602_v32 = vpop.f32.mrf.mxu1  ;;  %v424_v33 = vpop.f32.mrf.mxu0  ;;  %1773 = vmatprep.mubr.f32.mxu0 %v1577_v50  ;;  %v1587_v50 = vsel %vm1567_vm2, %v1582_v42, %v1586_v53  ;;  %v6141_v42 = vld [vmem:[%s12194_s2 + $0x630] sm:$0xff] }
 0x121   :  { %2551 = vmatprep.subr.mxu0 %v9037_v38  ;;  %v9119_v31 = vadd.f32 %v602_v32, %v422_v23  ;;  %1774 = vmatmul.mubr.f32.gmra.mxu0 %v1575_v19  ;;  %v1593_v23 = vsel %vm1567_vm2, %v1588_v43, %v1592_v18  ;;  %v6143_v19 = vld [vmem:[%s12194_s2 + $0x640] sm:$0xff]  ;;  %v1974_v32 = vsel %vm1948_vm3, %v1969_v56, %v1973_v1  ;;  %v6142_v33 = vld [vmem:[%s12194_s2 + $0x638] sm:$0xff]  ;;  %v1975_v43 = vrot.slane %v7641_v40, 4  ;;  %v7643_v56 = vld [vmem:[%s12195_s0 + $0x90] sm:$0xff] }
 0x122   :  { %2154 = vmatprep.mubr.f32.mxu1 %v1958_v28  ;;  %v604_v41 = vpop.f32.mrf.mxu1  ;;  %v427_v30 = vpop.f32.mrf.mxu0  ;;  %2552 = vmatpush1.msra.mxu0 %v6149_v20  ;;  %v7640_v28 = vld [vmem:[%s12195_s0 + $0x88] sm:$0xff]  ;;  %v1979_v4 = vrot.slane %v7643_v56, 4 }
 0x123   :  { %1778 = vmatprep.mubr.f32.mxu0 %v1581_v7  ;;  %2553 = vmatprep.subr.mxu0 %v9037_v38  ;;  %v1596_v60 = vrot.slane %v7640_v28, 3  ;;  %v1968_v7 = vsel %vm1948_vm3, %v1963_v51, %v1967_v63  ;;  %v1594_v41 = vrot.slane %v7641_v40, 3  ;;  %v6140_v51 = vld [vmem:[%s12194_s2 + $0x628] sm:$0xff] }
 0x124   :  { %2155 = vmatmul.mubr.f32.gmra.mxu1 %v1956_v26  ;;  %v607_v47 = vpop.f32.mrf.mxu1  ;;  %v429_v8 = vpop.f32.mrf.mxu0  ;;  %2554 = vmatpush1.msra.mxu0 %v6148_v29  ;;  %v1977_v26 = vrot.slane %v7640_v28, 4  ;;  %v9264_v40 = vld [vmem:[%s12195_s0 + $0xc8] sm:$0xff] }
 0x125   :  { %2159 = vmatprep.mubr.f32.mxu1 %v1962_v35  ;;  %v9143_v55 = vadd.f32 %v607_v47, %v427_v30  ;;  %1779 = vmatmul.mubr.f32.gmra.mxu0 %v1579_v48  ;;  %v1591_v35 = vsel %vm1567_vm2, %v1586_v53, %v1590_v12  ;;  %v1597_v30 = vsel %vm1567_vm2, %v1592_v18, %v1596_v60  ;;  %v7642_v48 = vld [vmem:[%s12195_s0 + $0x98] sm:$0xff] }
 0x126   :  { %2555 = vmatprep.subr.mxu0 %v9037_v38  ;;  %v609_v0 = vpop.f32.mrf.mxu1  ;;  %v432_v58 = vpop.f32.mrf.mxu0  ;;  %1783 = vmatprep.mubr.f32.mxu0 %v1585_v59  ;;  %v1600_v57 = vrot.slane %v7642_v48, 3  ;;  %v1978_v8 = vsel %vm1948_vm3, %v1973_v1, %v1977_v26  ;;  %v6182_v53 = vld [vmem:[%s12194_s2 + $0x778] sm:$0xff]  ;;  %v6181_v1 = vld [vmem:[%s12194_s2 + $0x770] sm:$0xff] }
 0x127   :  { %2556 = vmatpush1.msra.mxu0 %v6147_v37  ;;  %v1598_v0 = vrot.slane %v7643_v56, 3  ;;  %2930 = vmatprep.subr.mxu1 %v9037_v38  ;;  %v6137_v56 = vld [vmem:[%s12194_s2 + $0x610] sm:$0xff] }
 0x128   :  { %2160 = vmatmul.mubr.f32.gmra.mxu1 %v1960_v52  ;;  %2557 = vmatprep.subr.mxu0 %v9037_v38  ;;  %v612_v54 = vpop.f32.mrf.mxu1  ;;  %v434_v5 = vpop.f32.mrf.mxu0  ;;  %v1981_v52 = vrot.slane %v7642_v48, 4 }
 0x129   :  { %2164 = vmatprep.mubr.f32.mxu1 %v1966_v45  ;;  %2558 = vmatpush1.msra.mxu0 %v6146_v62  ;;  %v9167_v13 = vadd.f32 %v612_v54, %v432_v58  ;;  %v1595_v62 = vsel %vm1567_vm2, %v1590_v12, %v1594_v41  ;;  %v1601_v58 = vsel %vm1567_vm2, %v1596_v60, %v1600_v57  ;;  %v1608_v12 = vrot.slane %v7646_v17, 3 }
 0x12a   :  { %1784 = vmatmul.mubr.f32.gmra.mxu0 %v1583_v46  ;;  %2559 = vmatprep.subr.mxu0 %v9037_v38  ;;  %v614_v11 = vpop.f32.mrf.mxu1  ;;  %v437_v44 = vpop.f32.mrf.mxu0  ;;  %v7644_v46 = vld [vmem:[%s12195_s0 + $0xa8] sm:$0xff]  ;;  %v1982_v18 = vsel %vm1948_vm3, %v1977_v26, %v1981_v52  ;;  %v1599_v63 = vsel %vm1567_vm2, %v1594_v41, %v1598_v0  ;;  %v1612_v41 = vrot.slane %v9264_v40, 3 }
 0x12b   :  { %1788 = vmatprep.mubr.f32.mxu0 %v1589_v14  ;;  %2560 = vmatpush1.msra.mxu0 %v6145_v9  ;;  %v1604_v3 = vrot.slane %v7644_v46, 3  ;;  %v1976_v9 = vsel %vm1948_vm3, %v1971_v22, %v1975_v43  ;;  %v1985_v54 = vrot.slane %v7644_v46, 4  ;;  %v6180_v22 = vld [vmem:[%s12194_s2 + $0x768] sm:$0xff] }
 0x12c   :  { %2165 = vmatmul.mubr.f32.gmra.mxu1 %v1964_v27  ;;  %2561 = vmatprep.subr.mxu0 %v9037_v38  ;;  %v617_v25 = vpop.f32.mrf.mxu1  ;;  %v439_v20 = vpop.f32.mrf.mxu0 }
 0x12d   :  { %2169 = vmatprep.mubr.f32.mxu1 %v1970_v34  ;;  %2562 = vmatpush1.msra.mxu0 %v6144_v15  ;;  %v9187_v24 = vadd.f32 %v617_v25, %v437_v44  ;;  %v7645_v34 = vld [vmem:[%s12195_s0 + $0xa0] sm:$0xff]  ;;  %v1605_v44 = vsel %vm1567_vm2, %v1600_v57, %v1604_v3  ;;  %v1986_v25 = vsel %vm1948_vm3, %v1981_v52, %v1985_v54  ;;  %v1989_v20 = vrot.slane %v7646_v17, 4 }
 0x12e   :  { %1789 = vmatmul.mubr.f32.gmra.mxu0 %v1587_v50  ;;  %2563 = vmatprep.subr.mxu0 %v9037_v38  ;;  %v619_v36 = vpop.f32.mrf.mxu1  ;;  %v442_v29 = vpop.f32.mrf.mxu0  ;;  %v1602_v15 = vrot.slane %v7645_v34, 3  ;;  %v6139_v50 = vld [vmem:[%s12194_s2 + $0x620] sm:$0xff]  ;;  %v1983_v28 = vrot.slane %v7645_v34, 4 }
 0x12f   :  { %1793 = vmatprep.mubr.f32.mxu0 %v1593_v23  ;;  %2564 = vmatpush1.msra.mxu0 %v6143_v19  ;;  %v1980_v19 = vsel %vm1948_vm3, %v1975_v43, %v1979_v4 }
 0x130   :  { %2170 = vmatmul.mubr.f32.gmra.mxu1 %v1968_v7  ;;  %2565 = vmatprep.subr.mxu0 %v9037_v38  ;;  %v622_v37 = vpop.f32.mrf.mxu1  ;;  %v444_v59 = vpop.f32.mrf.mxu0  ;;  %v1603_v7 = vsel %vm1567_vm2, %v1598_v0, %v1602_v15  ;;  %v1984_v48 = vsel %vm1948_vm3, %v1979_v4, %v1983_v28 }
 0x131   :  { %2174 = vmatprep.mubr.f32.mxu1 %v1974_v32  ;;  %2566 = vmatpush1.msra.mxu0 %v6142_v33  ;;  %v9207_v47 = vadd.f32 %v622_v37, %v442_v29  ;;  %v7647_v32 = vld [vmem:[%s12195_s0 + $0xb0] sm:$0xff]  ;;  %v1609_v29 = vsel %vm1567_vm2, %v1604_v3, %v1608_v12  ;;  %v1990_v37 = vsel %vm1948_vm3, %v1985_v54, %v1989_v20  ;;  %v6179_v59 = vld [vmem:[%s12194_s2 + $0x760] sm:$0xff]  ;;  %v6178_v3 = vld [vmem:[%s12194_s2 + $0x758] sm:$0xff] }
 0x132   :  { %1794 = vmatmul.mubr.f32.gmra.mxu0 %v1591_v35  ;;  %2567 = vmatprep.subr.mxu0 %v9037_v38  ;;  %v624_v45 = vpop.f32.mrf.mxu1  ;;  %v1606_v33 = vrot.slane %v7647_v32, 3  ;;  %v6138_v35 = vld [vmem:[%s12194_s2 + $0x618] sm:$0xff]  ;;  %v1987_v57 = vrot.slane %v7647_v32, 4  ;;  %v9308_v54 = vld [vmem:[%s12195_s0 + $0xd0] sm:$0xff]  ;;  %v6135_v32 = vld [vmem:[%s12194_s2 + $0x600] sm:$0xff] }
 0x133   :  { %1798 = vmatprep.mubr.f32.mxu0 %v1597_v30  ;;  %2568 = vmatpush1.msra.mxu0 %v6141_v42  ;;  %v1613_v45 = vsel %vm1567_vm2, %v1608_v12, %v1612_v41 }
 0x134   :  { %2175 = vmatmul.mubr.f32.gmra.mxu1 %v1972_v61  ;;  %2569 = vmatprep.subr.mxu0 %v9037_v38  ;;  %v447_v14 = vpop.f32.mrf.mxu0  ;;  %v1993_v61 = vrot.slane %v9264_v40, 4  ;;  %v1607_v43 = vsel %vm1567_vm2, %v1602_v15, %v1606_v33 }
 0x135   :  { %2179 = vmatprep.mubr.f32.mxu1 %v1978_v8  ;;  %2570 = vmatpush1.msra.mxu0 %v6140_v51  ;;  %v627_v5 = vpop.f32.mrf.mxu1  ;;  %v9280_v8 = vld [vmem:[%s12195_s0 + $0xc0] sm:$0xff] }
 0x136   :  { %1799 = vmatmul.mubr.f32.gmra.mxu0 %v1595_v62  ;;  %v449_v27 = vpop.f32.mrf.mxu0  ;;  %2931 = vmatpush1.msra.mxu1 %v6182_v53  ;;  %v9236_v11 = vadd.f32 %v627_v5, %v447_v14  ;;  %v1610_v52 = vrot.slane %v9280_v8, 3  ;;  %v1988_v62 = vsel %vm1948_vm3, %v1983_v28, %v1987_v57  ;;  %v1991_v0 = vrot.slane %v9280_v8, 4  ;;  %v9298_v14 = vld [vmem:[%s12195_s0 + $0xd8] sm:$0xff] }
 0x137   :  { %1803 = vmatprep.mubr.f32.mxu0 %v1601_v58  ;;  %2571 = vmatprep.subr.mxu0 %v9037_v38  ;;  %v629_v23 = vpop.f32.mrf.mxu1  ;;  %v1994_v53 = vsel %vm1948_vm3, %v1989_v20, %v1993_v61  ;;  %v1614_v5 = vrot.slane %v9308_v54, 3  ;;  %v1995_v28 = vrot.slane %v9308_v54, 4  ;;  %v9368_v8 = vld [vmem:[%s12195_s0 + $0xf8] sm:$0xff] }
 0x138   :  { %2180 = vmatmul.mubr.f32.gmra.mxu1 %v1976_v9  ;;  %2932 = vmatprep.subr.mxu1 %v9037_v38  ;;  %v1616_v9 = vrot.slane %v9298_v14, 3  ;;  %v1992_v15 = vsel %vm1948_vm3, %v1987_v57, %v1991_v0  ;;  %v6176_v23 = vld [vmem:[%s12194_s2 + $0x748] sm:$0xff] }
 0x139   :  { %2184 = vmatprep.mubr.f32.mxu1 %v1982_v18  ;;  %v452_v60 = vpop.f32.mrf.mxu0  ;;  %2933 = vmatpush1.msra.mxu1 %v6181_v1  ;;  %v1611_v18 = vsel %vm1567_vm2, %v1606_v33, %v1610_v52  ;;  %v6136_v1 = vld [vmem:[%s12194_s2 + $0x608] sm:$0xff]  ;;  %v9343_v33 = vld [vmem:[%s12195_s0 + $0xe0] sm:$0xff]  ;;  %v1996_v40 = vsel %vm1948_vm3, %v1991_v0, %v1995_v28  ;;  %v6173_v0 = vld [vmem:[%s12194_s2 + $0x730] sm:$0xff] }
 0x13a   :  { %1804 = vmatmul.mubr.f32.gmra.mxu0 %v1599_v63  ;;  %2934 = vmatprep.subr.mxu1 %v9037_v38  ;;  %v6177_v63 = vld [vmem:[%s12194_s2 + $0x750] sm:$0xff] }
 0x13b   :  { %1808 = vmatprep.mubr.f32.mxu0 %v1605_v44  ;;  %2572 = vmatpush1.msra.mxu0 %v6139_v50  ;;  %v632_v26 = vpop.f32.mrf.mxu1  ;;  %v454_v36 = vpop.f32.mrf.mxu0  ;;  %v1997_v44 = vrot.slane %v9298_v14, 4  ;;  %v1617_v50 = vsel %vm1567_vm2, %v1612_v41, %v1616_v9 }
 0x13c   :  { %2185 = vmatmul.mubr.f32.gmra.mxu1 %v1980_v19  ;;  %v9267_v30 = vadd.f32 %v632_v26, %v452_v60  ;;  %2573 = vmatprep.subr.mxu0 %v9037_v38  ;;  %v1615_v19 = vsel %vm1567_vm2, %v1610_v52, %v1614_v5  ;;  %v1618_v26 = vrot.slane %v9343_v33, 3  ;;  %v1624_v52 = vrot.slane %v9368_v8, 3 }
 0x13d   :  { %2189 = vmatprep.mubr.f32.mxu1 %v1986_v25  ;;  %v634_v42 = vpop.f32.mrf.mxu1  ;;  %2935 = vmatpush1.msra.mxu1 %v6180_v22  ;;  %v9332_v25 = vld [vmem:[%s12195_s0 + $0xe8] sm:$0xff]  ;;  %v1998_v22 = vsel %vm1948_vm3, %v1993_v61, %v1997_v44  ;;  %v6174_v61 = vld [vmem:[%s12194_s2 + $0x738] sm:$0xff] }
 0x13e   :  { %1809 = vmatmul.mubr.f32.gmra.mxu0 %v1603_v7  ;;  %v457_v51 = vpop.f32.mrf.mxu0  ;;  %2936 = vmatprep.subr.mxu1 %v9037_v38  ;;  %v1620_v20 = vrot.slane %v9332_v25, 3  ;;  %v6166_v42 = vld [vmem:[%s12194_s2 + $0x6f8] sm:$0xff] }
 0x13f   :  { %1813 = vmatprep.mubr.f32.mxu0 %v1609_v29  ;;  %2574 = vmatpush1.msra.mxu0 %v6138_v35  ;;  %v6175_v29 = vld [vmem:[%s12194_s2 + $0x740] sm:$0xff]  ;;  %v2001_v35 = vrot.slane %v9332_v25, 4 }
 0x140   :  { %2190 = vmatmul.mubr.f32.gmra.mxu1 %v1984_v48  ;;  %v637_v58 = vpop.f32.mrf.mxu1  ;;  %v459_v46 = vpop.f32.mrf.mxu0  ;;  %2575 = vmatprep.subr.mxu0 %v9037_v38  ;;  %v1621_v57 = vsel %vm1567_vm2, %v1616_v9, %v1620_v20  ;;  %v1625_v14 = vsel %vm1567_vm2, %v1620_v20, %v1624_v52  ;;  %v9392_v9 = vld [vmem:[%s12195_s0 + $0x108] sm:$0xff] }
 0x141   :  { %2194 = vmatprep.mubr.f32.mxu1 %v1990_v37  ;;  %2937 = vmatpush1.msra.mxu1 %v6179_v59  ;;  %v9301_v4 = vadd.f32 %v637_v58, %v457_v51  ;;  %v1999_v37 = vrot.slane %v9343_v33, 4  ;;  %v2009_v25 = vrot.slane %v9392_v9, 4 }
 0x142   :  { %1814 = vmatmul.mubr.f32.gmra.mxu0 %v1607_v43  ;;  %2938 = vmatprep.subr.mxu1 %v9037_v38  ;;  %v639_v27 = vpop.f32.mrf.mxu1  ;;  %v1619_v43 = vsel %vm1567_vm2, %v1614_v5, %v1618_v26 }
 0x143   :  { %1818 = vmatprep.mubr.f32.mxu0 %v1613_v45  ;;  %2576 = vmatpush1.msra.mxu0 %v6137_v56  ;;  %v2002_v45 = vsel %vm1948_vm3, %v1997_v44, %v2001_v35  ;;  %v2000_v46 = vsel %vm1948_vm3, %v1995_v28, %v1999_v37  ;;  %v6172_v27 = vld [vmem:[%s12194_s2 + $0x728] sm:$0xff] }
 0x144   :  { %2195 = vmatmul.mubr.f32.gmra.mxu1 %v1988_v62  ;;  %v462_v34 = vpop.f32.mrf.mxu0  ;;  %2577 = vmatprep.subr.mxu0 %v9037_v38  ;;  %v9376_v62 = vld [vmem:[%s12195_s0 + $0xf0] sm:$0xff] }
 0x145   :  { %2939 = vmatpush1.msra.mxu1 %v6178_v3  ;;  %2199 = vmatprep.mubr.f32.mxu1 %v1994_v53  ;;  %v642_v17 = vpop.f32.mrf.mxu1  ;;  %v1622_v56 = vrot.slane %v9376_v62, 3  ;;  %v6165_v3 = vld [vmem:[%s12194_s2 + $0x6f0] sm:$0xff]  ;;  %v2005_v53 = vrot.slane %v9368_v8, 4 }
 0x146   :  { %1819 = vmatmul.mubr.f32.gmra.mxu0 %v1611_v18  ;;  %2940 = vmatprep.subr.mxu1 %v9037_v38  ;;  %v464_v12 = vpop.f32.mrf.mxu0  ;;  %v9327_v60 = vadd.f32 %v642_v17, %v462_v34  ;;  %v1628_v18 = vrot.slane %v9392_v9, 3  ;;  %v2003_v34 = vrot.slane %v9376_v62, 4  ;;  %v9411_v17 = vld [vmem:[%s12195_s0 + $0x100] sm:$0xff] }
 0x147   :  { %2941 = vmatpush1.msra.mxu1 %v6177_v63  ;;  %2578 = vmatpush1.msra.mxu0 %v6136_v1  ;;  %v644_v7 = vpop.f32.mrf.mxu1  ;;  %v1623_v63 = vsel %vm1567_vm2, %v1618_v26, %v1622_v56  ;;  %v2006_v44 = vsel %vm1948_vm3, %v2001_v35, %v2005_v53  ;;  %v1626_v12 = vrot.slane %v9411_v17, 3  ;;  %v2007_v33 = vrot.slane %v9411_v17, 4  ;;  %v9476_v9 = vld [vmem:[%s12195_s0 + $0x120] sm:$0xff] }
 0x148   :  { %2200 = vmatmul.mubr.f32.gmra.mxu1 %v1992_v15  ;;  %2942 = vmatprep.subr.mxu1 %v9037_v38  ;;  %v1629_v28 = vsel %vm1567_vm2, %v1624_v52, %v1628_v18  ;;  %v2004_v20 = vsel %vm1948_vm3, %v1999_v37, %v2003_v34  ;;  %v6169_v37 = vld [vmem:[%s12194_s2 + $0x710] sm:$0xff] }
 0x149   :  { %1823 = vmatprep.mubr.f32.mxu0 %v1617_v50  ;;  %v467_v36 = vpop.f32.mrf.mxu0  ;;  %2943 = vmatpush1.msra.mxu1 %v6176_v23  ;;  %v6164_v50 = vld [vmem:[%s12194_s2 + $0x6e8] sm:$0xff]  ;;  %v2008_v8 = vsel %vm1948_vm3, %v2003_v34, %v2007_v33  ;;  %v6161_v34 = vld [vmem:[%s12194_s2 + $0x6d0] sm:$0xff] }
 0x14a   :  { %1824 = vmatmul.mubr.f32.gmra.mxu0 %v1615_v19  ;;  %2579 = vmatprep.subr.mxu0 %v9037_v38  ;;  %v6171_v19 = vld [vmem:[%s12194_s2 + $0x720] sm:$0xff] }
 0x14b   :  { %2944 = vmatprep.subr.mxu1 %v9037_v38  ;;  %v647_v41 = vpop.f32.mrf.mxu1  ;;  %v469_v48 = vpop.f32.mrf.mxu0  ;;  %2204 = vmatprep.mubr.f32.mxu1 %v1998_v22 }
 0x14c   :  { %2580 = vmatpush1.msra.mxu0 %v6135_v32  ;;  %v9358_v59 = vadd.f32 %v647_v41, %v467_v36  ;;  %2945 = vmatpush1.msra.mxu1 %v6175_v29  ;;  %v6170_v32 = vld [vmem:[%s12194_s2 + $0x718] sm:$0xff]  ;;  %v1627_v36 = vsel %vm1567_vm2, %v1622_v56, %v1626_v12  ;;  %v6163_v41 = vld [vmem:[%s12194_s2 + $0x6e0] sm:$0xff]  ;;  %v2010_v48 = vsel %vm1948_vm3, %v2005_v53, %v2009_v25 }
 0x14d   :  { %2581 = vmatprep.subr.mxu0 %v9037_v38  ;;  %v649_v51 = vpop.f32.mrf.mxu1  ;;  %2205 = vmatmul.mubr.f32.gmra.mxu1 %v1996_v40  ;;  %v9432_v29 = vld [vmem:[%s12195_s0 + $0x118] sm:$0xff] }
 0x14e   :  { %2946 = vmatprep.subr.mxu1 %v9037_v38  ;;  %1828 = vmatprep.mubr.f32.mxu0 %v1621_v57  ;;  %v472_v58 = vpop.f32.mrf.mxu0  ;;  %v1632_v35 = vrot.slane %v9432_v29, 3  ;;  %v9443_v57 = vld [vmem:[%s12195_s0 + $0x110] sm:$0xff]  ;;  %v6162_v51 = vld [vmem:[%s12194_s2 + $0x6d8] sm:$0xff] }
 0x14f   :  { %2582 = vmatpush2.msra.mxu0 %v6166_v42  ;;  %2947 = vmatpush1.msra.mxu1 %v6174_v61  ;;  %v1630_v42 = vrot.slane %v9443_v57, 3  ;;  %v2013_v61 = vrot.slane %v9432_v29, 4 }
 0x150   :  { %1829 = vmatmul.mubr.f32.gmra.mxu0 %v1619_v43  ;;  %2948 = vmatprep.subr.mxu1 %v9037_v38  ;;  %v652_v54 = vpop.f32.mrf.mxu1  ;;  %v474_v5 = vpop.f32.mrf.mxu0  ;;  %v1633_v52 = vsel %vm1567_vm2, %v1628_v18, %v1632_v35  ;;  %v1634_v18 = vrot.slane %v9476_v9, 3 }
 0x151   :  { %2209 = vmatprep.mubr.f32.mxu1 %v2002_v45  ;;  %2583 = vmatprep.subr.mxu0 %v9037_v38  ;;  %v9401_v15 = vadd.f32 %v652_v54, %v472_v58  ;;  %v2011_v45 = vrot.slane %v9443_v57, 4  ;;  %v1631_v58 = vsel %vm1567_vm2, %v1626_v12, %v1630_v42  ;;  %v6167_v5 = vld [vmem:[%s12194_s2 + $0x700] sm:$0xff] }
 0x152   :  { %2949 = vmatpush1.msra.mxu1 %v6173_v0  ;;  %2584 = vmatpush2.msra.mxu0 %v6165_v3  ;;  %v654_v1 = vpop.f32.mrf.mxu1  ;;  %v6168_v0 = vld [vmem:[%s12194_s2 + $0x708] sm:$0xff] }
 0x153   :  { %2210 = vmatmul.mubr.f32.gmra.mxu1 %v2000_v46  ;;  %2950 = vmatprep.subr.mxu1 %v9037_v38  ;;  %v9466_v46 = vld [vmem:[%s12195_s0 + $0x128] sm:$0xff] }
 0x154   :  { %1833 = vmatprep.mubr.f32.mxu0 %v1625_v14  ;;  %v477_v23 = vpop.f32.mrf.mxu0  ;;  %2951 = vmatpush1.msra.mxu1 %v6172_v27  ;;  %v1636_v3 = vrot.slane %v9466_v46, 3  ;;  %v2014_v14 = vsel %vm1948_vm3, %v2009_v25, %v2013_v61  ;;  %v2017_v1 = vrot.slane %v9466_v46, 4  ;;  %v2015_v25 = vrot.slane %v9476_v9, 4  ;;  %v6195_v46 = vld [vmem:[%s12194_s2 + $0x7e0] sm:$0xff]  ;;  %v6158_v9 = vld [vmem:[%s12194_s2 + $0x6b8] sm:$0xff] }
 0x155   :  { %1834 = vmatmul.mubr.f32.gmra.mxu0 %v1623_v63  ;;  %2585 = vmatprep.subr.mxu0 %v9037_v38  ;;  %v2012_v63 = vsel %vm1948_vm3, %v2007_v33, %v2011_v45  ;;  %v9511_v33 = vld [vmem:[%s12195_s0 + $0x130] sm:$0xff] }
 0x156   :  { %2952 = vmatprep.subr.mxu1 %v9037_v38  ;;  %v657_v7 = vpop.f32.mrf.mxu1  ;;  %v479_v22 = vpop.f32.mrf.mxu0  ;;  %2214 = vmatprep.mubr.f32.mxu1 %v2006_v44  ;;  %v1637_v44 = vsel %vm1567_vm2, %v1632_v35, %v1636_v3  ;;  %v6197_v35 = vld [vmem:[%s12194_s2 + $0x7f0] sm:$0xff] }
 0x157   :  { %2586 = vmatpush2.msra.mxu0 %v6164_v50  ;;  %v9426_v26 = vadd.f32 %v657_v7, %v477_v23  ;;  %2953 = vmatpush1.msra.mxu1 %v6171_v19  ;;  %v9492_v50 = vld [vmem:[%s12195_s0 + $0x138] sm:$0xff]  ;;  %v2018_v22 = vsel %vm1948_vm3, %v2013_v61, %v2017_v1  ;;  %v2019_v61 = vrot.slane %v9511_v33, 4 }
 0x158   :  { %1838 = vmatprep.mubr.f32.mxu0 %v1629_v28  ;;  %v659_v40 = vpop.f32.mrf.mxu1  ;;  %2215 = vmatmul.mubr.f32.gmra.mxu1 %v2004_v20  ;;  %v1640_v17 = vrot.slane %v9492_v50, 3  ;;  %v6198_v19 = vld [vmem:[%s12194_s2 + $0x7f8] sm:$0xff]  ;;  %v1635_v28 = vsel %vm1567_vm2, %v1630_v42, %v1634_v18 }
 0x159   :  { %2954 = vmatprep.subr.mxu1 %v9037_v38  ;;  %2587 = vmatprep.subr.mxu0 %v9037_v38  ;;  %v482_v43 = vpop.f32.mrf.mxu0 }
 0x15a   :  { %2955 = vmatpush1.msra.mxu1 %v6170_v32  ;;  %1839 = vmatmul.mubr.f32.gmra.mxu0 %v1627_v36  ;;  %v6160_v32 = vld [vmem:[%s12194_s2 + $0x6c8] sm:$0xff]  ;;  %v1638_v36 = vrot.slane %v9511_v33, 3  ;;  %v1641_v40 = vsel %vm1567_vm2, %v1636_v3, %v1640_v17 }
 0x15b   :  { %2956 = vmatprep.subr.mxu1 %v9037_v38  ;;  %2588 = vmatpush2.msra.mxu0 %v6163_v41  ;;  %v662_v62 = vpop.f32.mrf.mxu1  ;;  %v484_v56 = vpop.f32.mrf.mxu0  ;;  %v2021_v41 = vrot.slane %v9492_v50, 4 }
 0x15c   :  { %2219 = vmatprep.mubr.f32.mxu1 %v2010_v48  ;;  %2957 = vmatpush1.msra.mxu1 %v6169_v37  ;;  %v9469_v53 = vadd.f32 %v662_v62, %v482_v43  ;;  %v2016_v48 = vsel %vm1948_vm3, %v2011_v45, %v2015_v25  ;;  %v6196_v37 = vld [vmem:[%s12194_s2 + $0x7e8] sm:$0xff]  ;;  %v6159_v62 = vld [vmem:[%s12194_s2 + $0x6c0] sm:$0xff] }
 0x15d   :  { %2589 = vmatprep.subr.mxu0 %v9037_v38  ;;  %2220 = vmatmul.mubr.f32.gmra.mxu1 %v2008_v8  ;;  %v664_v54 = vpop.f32.mrf.mxu1  ;;  %v1639_v8 = vsel %vm1567_vm2, %v1634_v18, %v1638_v36  ;;  %v2022_v56 = vsel %vm1948_vm3, %v2017_v1, %v2021_v41  ;;  %v6194_v1 = vld [vmem:[%s12194_s2 + $0x7d8] sm:$0xff] }
 0x15e   :  { %2958 = vmatprep.subr.mxu1 %v9037_v38  ;;  %1843 = vmatprep.mubr.f32.mxu0 %v1633_v52  ;;  %v9532_v52 = vld [vmem:[%s12195_s0 + $0x148] sm:$0xff] }
 0x15f   :  { %2590 = vmatpush2.msra.mxu0 %v6162_v51  ;;  %v487_v27 = vpop.f32.mrf.mxu0  ;;  %2959 = vmatpush1.msra.mxu1 %v6168_v0  ;;  %v1644_v51 = vrot.slane %v9532_v52, 3  ;;  %v9543_v0 = vld [vmem:[%s12195_s0 + $0x140] sm:$0xff]  ;;  %v2025_v18 = vrot.slane %v9532_v52, 4 }
 0x160   :  { %1844 = vmatmul.mubr.f32.gmra.mxu0 %v1631_v58  ;;  %2960 = vmatprep.subr.mxu1 %v9037_v38  ;;  %v667_v12 = vpop.f32.mrf.mxu1  ;;  %v1642_v58 = vrot.slane %v9543_v0, 3  ;;  %v2023_v50 = vrot.slane %v9543_v0, 4  ;;  %v9614_v52 = vld [vmem:[%s12195_s0 + $0x160] sm:$0xff] }
 0x161   :  { %2224 = vmatprep.mubr.f32.mxu1 %v2014_v14  ;;  %v489_v23 = vpop.f32.mrf.mxu0  ;;  %2591 = vmatprep.subr.mxu0 %v9037_v38  ;;  %v9501_v20 = vadd.f32 %v667_v12, %v487_v27  ;;  %v2020_v14 = vsel %vm1948_vm3, %v2015_v25, %v2019_v61  ;;  %v1645_v54 = vsel %vm1567_vm2, %v1640_v17, %v1644_v51 }
 0x162   :  { %2961 = vmatpush1.msra.mxu1 %v6167_v5  ;;  %2592 = vmatpush2.msra.mxu0 %v6161_v34  ;;  %v669_v7 = vpop.f32.mrf.mxu1  ;;  %v9560_v5 = vld [vmem:[%s12195_s0 + $0x158] sm:$0xff]  ;;  %v2026_v23 = vsel %vm1948_vm3, %v2021_v41, %v2025_v18 }
 0x163   :  { %2225 = vmatmul.mubr.f32.gmra.mxu1 %v2012_v63  ;;  %2962 = vmatprep.subr.mxu1 %v9037_v38  ;;  %v1648_v27 = vrot.slane %v9560_v5, 3  ;;  %v2029_v33 = vrot.slane %v9560_v5, 4 }
 0x164   :  { %1848 = vmatprep.mubr.f32.mxu0 %v1637_v44  ;;  %v492_v29 = vpop.f32.mrf.mxu0  ;;  %2963 = vmatpush2.msra.mxu1 %v6198_v19  ;;  %v1643_v44 = vsel %vm1567_vm2, %v1638_v36, %v1642_v58  ;;  %v6157_v19 = vld [vmem:[%s12194_s2 + $0x6b0] sm:$0xff] }
 0x165   :  { %1849 = vmatmul.mubr.f32.gmra.mxu0 %v1635_v28  ;;  %2593 = vmatprep.subr.mxu0 %v9037_v38  ;;  %v9579_v28 = vld [vmem:[%s12195_s0 + $0x150] sm:$0xff] }
 0x166   :  { %2964 = vmatprep.subr.mxu1 %v9037_v38  ;;  %v672_v57 = vpop.f32.mrf.mxu1  ;;  %v494_v42 = vpop.f32.mrf.mxu0  ;;  %2229 = vmatprep.mubr.f32.mxu1 %v2018_v22  ;;  %v1646_v25 = vrot.slane %v9579_v28, 3  ;;  %v6193_v22 = vld [vmem:[%s12194_s2 + $0x7d0] sm:$0xff]  ;;  %v2027_v41 = vrot.slane %v9579_v28, 4 }
 0x167   :  { %2594 = vmatpush2.msra.mxu0 %v6160_v32  ;;  %v9526_v43 = vadd.f32 %v672_v57, %v492_v29  ;;  %2965 = vmatpush2.msra.mxu1 %v6197_v35  ;;  %v1649_v32 = vsel %vm1567_vm2, %v1644_v51, %v1648_v27  ;;  %v2024_v29 = vsel %vm1948_vm3, %v2019_v61, %v2023_v50  ;;  %v9601_v57 = vld [vmem:[%s12195_s0 + $0x168] sm:$0xff]  ;;  %v1650_v51 = vrot.slane %v9614_v52, 3 }
 0x168   :  { %1853 = vmatprep.mubr.f32.mxu0 %v1641_v40  ;;  %v674_v45 = vpop.f32.mrf.mxu1  ;;  %2230 = vmatmul.mubr.f32.gmra.mxu1 %v2016_v48  ;;  %v6192_v40 = vld [vmem:[%s12194_s2 + $0x7c8] sm:$0xff]  ;;  %v1652_v42 = vrot.slane %v9601_v57, 3  ;;  %v2033_v0 = vrot.slane %v9601_v57, 4 }
 0x169   :  { %2966 = vmatprep.subr.mxu1 %v9037_v38  ;;  %2595 = vmatprep.subr.mxu0 %v9037_v38  ;;  %v497_v3 = vpop.f32.mrf.mxu0  ;;  %v6156_v61 = vld [vmem:[%s12194_s2 + $0x6a8] sm:$0xff]  ;;  %v1651_v5 = vsel %vm1567_vm2, %v1646_v25, %v1650_v51 }
 0x16a   :  { %2967 = vmatpush2.msra.mxu1 %v6196_v37  ;;  %1854 = vmatmul.mubr.f32.gmra.mxu0 %v1639_v8  ;;  %v2030_v8 = vsel %vm1948_vm3, %v2025_v18, %v2029_v33 }
 0x16b   :  { %2968 = vmatprep.subr.mxu1 %v9037_v38  ;;  %2596 = vmatpush2.msra.mxu0 %v6159_v62  ;;  %v677_v63 = vpop.f32.mrf.mxu1  ;;  %v499_v34 = vpop.f32.mrf.mxu0 }
 0x16c   :  { %2234 = vmatprep.mubr.f32.mxu1 %v2022_v56  ;;  %2597 = vmatprep.subr.mxu0 %v9037_v38  ;;  %v9569_v17 = vadd.f32 %v677_v63, %v497_v3  ;;  %v6191_v56 = vld [vmem:[%s12194_s2 + $0x7c0] sm:$0xff]  ;;  %v2028_v3 = vsel %vm1948_vm3, %v2023_v50, %v2027_v41 }
 0x16d   :  { %2969 = vmatpush2.msra.mxu1 %v6195_v46  ;;  %2598 = vmatpush2.msra.mxu0 %v6158_v9  ;;  %v679_v12 = vpop.f32.mrf.mxu1  ;;  %v9644_v34 = vld [vmem:[#allocation2] sm:$0xff] }
 0x16e   :  { %2235 = vmatmul.mubr.f32.gmra.mxu1 %v2020_v14  ;;  %2970 = vmatprep.subr.mxu1 %v9037_v38  ;;  %v9633_v14 = vld [vmem:[%s12195_s0 + $0x170] sm:$0x1f] }
 0x16f   :  { %1858 = vmatprep.mubr.f32.mxu0 %v1645_v54  ;;  %v925_v7 = vpop.f32.mrf.mxu0  ;;  %2971 = vmatpush2.msra.mxu1 %v6194_v1  ;;  %v1653_v54 = vsel %vm1567_vm2, %v1648_v27, %v1652_v42  ;;  %v6190_v1 = vld [vmem:[%s12194_s2 + $0x7b8] sm:$0xff] }
 0x170   :  { %1859 = vmatmul.mubr.f32.gmra.mxu0 %v1643_v44  ;;  %v1039_v36 = vadd.f32 %v925_v7, %v8911_v49  ;;  %2599 = vmatprep.subr.mxu0 %v9037_v38  ;;  %v1647_v49 = vsel %vm1567_vm2, %v1642_v58, %v1646_v25  ;;  %v9625_v58 = vld [vmem:[%s12195_s0 + $0x178] sm:$0x1f]  ;;  %v6189_v25 = vld [vmem:[%s12194_s2 + $0x7b0] sm:$0xff] }
 0x171   :  { %2972 = vmatprep.subr.mxu1 %v9037_v38  ;;  %v927_v35 = vpop.f32.mrf.mxu0  ;;  %2239 = vmatprep.mubr.f32.mxu1 %v2026_v23  ;;  %v1656_v27 = vrot.slane %v9625_v58, 3  ;;  %v9655_v44 = vld [vmem:[%s12195_s0 + $0x178] sm:$0x3f]  ;;  %v2034_v23 = vsel %vm1948_vm3, %v2029_v33, %v2033_v0  ;;  %v9667_v7 = vld [vmem:[%s12195_s0 + $0x170] sm:$0x3f] }
 0x172   :  { %2600 = vmatpush2.msra.mxu0 %v6157_v19  ;;  %v1389_v48 = vpop.f32.mrf.mxu1  ;;  %2973 = vmatpush2.msra.mxu1 %v6193_v22  ;;  %v1654_v19 = vrot.slane %v9633_v14, 3  ;;  %v2035_v57 = vrot.slane %v9667_v7, 4  ;;  %v9793_v7 = vld [vmem:[%s12195_s0 + $0x50] sm:$0xff] }
 0x173   :  { %1863 = vmatprep.mubr.f32.mxu0 %v1649_v32  ;;  %v9604_v37 = vadd.f32 %v1389_v48, %v1039_v36  ;;  %2240 = vmatmul.mubr.f32.gmra.mxu1 %v2024_v29  ;;  %v930_v45 = vpop.f32.mrf.mxu0  ;;  %v2037_v36 = vrot.slane %v9655_v44, 4  ;;  %v1657_v35 = vsel %vm1567_vm2, %v1652_v42, %v1656_v27  ;;  %v6184_v44 = vld [vmem:[%s12194_s2 + $0x788] sm:$0xff] }
 0x174   :  { %2974 = vmatprep.subr.mxu1 %v9037_v38  ;;  %v1391_v62 = vpop.f32.mrf.mxu1  ;;  %2601 = vmatprep.subr.mxu0 %v9037_v38  ;;  %v1040_v46 = vadd.f32 %v930_v45, %v8945_v6  ;;  %v6155_v6 = vld [vmem:[%s12194_s2 + $0x6a0] sm:$0xff]  ;;  %v6153_v45 = vld [vmem:[%s12194_s2 + $0x690] sm:$0xff] }
 0x175   :  { %2975 = vmatpush2.msra.mxu1 %v6192_v40  ;;  %1864 = vmatmul.mubr.f32.gmra.mxu0 %v1647_v49  ;;  %v932_v9 = vpop.f32.mrf.mxu0  ;;  %v1655_v49 = vsel %vm1567_vm2, %v1650_v51, %v1654_v19  ;;  %v2289_v51 = vld [vmem:[%s12195_s0 + $0x28] sm:$0xf0] }
 0x176   :  { %2976 = vmatprep.subr.mxu1 %v9037_v38  ;;  %v1394_v18 = vpop.f32.mrf.mxu1  ;;  %2602 = vmatpush2.msra.mxu0 %v6156_v61  ;;  %v2031_v38 = vrot.slane %v9614_v52, 4  ;;  %v2038_v52 = vsel %vm1948_vm3, %v2033_v0, %v2037_v36  ;;  %v9718_v9 = vld [vmem:[%s12195_s0 + $0x30] sm:$0xff] }
 0x177   :  { %2244 = vmatprep.mubr.f32.mxu1 %v2030_v8  ;;  %v9642_v63 = vadd.f32 %v1394_v18, %v1040_v46  ;;  %2977 = vmatpush2.msra.mxu1 %v6191_v56  ;;  %v935_v50 = vpop.f32.mrf.mxu0  ;;  %v6187_v56 = vld [vmem:[%s12194_s2 + $0x7a0] sm:$0xff] }
 0x178   :  { %2603 = vmatprep.subr.mxu0 %v9644_v34  ;;  %v1396_v12 = vpop.f32.mrf.mxu1  ;;  %2245 = vmatmul.mubr.f32.gmra.mxu1 %v2028_v3  ;;  %v1041_v28 = vadd.f32 %v935_v50, %v8974_v16  ;;  %v2032_v33 = vsel %vm1948_vm3, %v2027_v41, %v2031_v38  ;;  %v6154_v16 = vld [vmem:[%s12194_s2 + $0x698] sm:$0xff]  ;;  %v6188_v41 = vld [vmem:[%s12194_s2 + $0x7a8] sm:$0xff]  ;;  %v2036_v46 = vsel %vm1948_vm3, %v2031_v38, %v2035_v57  ;;  %v2288_v3 = vld [vmem:[%s12195_s0 + $0x20] sm:$0xf0] }
 0x179   :  { %2978 = vmatprep.subr.mxu1 %v9644_v34  ;;  %1868 = vmatprep.mubr.f32.mxu0 %v1653_v54  ;;  %v937_v22 = vpop.f32.mrf.mxu0  ;;  %v6186_v54 = vld [vmem:[%s12194_s2 + $0x798] sm:$0xff]  ;;  %v2753_v50 = vld [vmem:[%s12195_s0 + $0x28] sm:$0xe0] }
 0x17a   :  { %2604 = vmatpush2.msra.mxu0 %v6155_v6  ;;  %v1399_v32 = vpop.f32.mrf.mxu1  ;;  %2979 = vmatpush2.msra.mxu1 %v6190_v1  ;;  %v2416_v6 = vrot.slane %v2289_v51, 4 }
 0x17b   :  { %1869 = vmatmul.mubr.f32.gmra.mxu0 %v1651_v5  ;;  %v9674_v29 = vadd.f32 %v1399_v32, %v1041_v28  ;;  %2980 = vmatprep.subr.mxu1 %v9644_v34  ;;  %v2414_v28 = vrot.slane %v9718_v9, 4  ;;  %v6185_v32 = vld [vmem:[%s12194_s2 + $0x790] sm:$0xff] }
 0x17c   :  { %2249 = vmatprep.mubr.f32.mxu1 %v2034_v23  ;;  %v940_v40 = vpop.f32.mrf.mxu0  ;;  %v1401_v48 = vpop.f32.mrf.mxu1  ;;  %2605 = vmatprep.subr.mxu0 %v9644_v34  ;;  %v2413_v23 = vrot.slane %v2288_v3, 4 }
 0x17d   :  { %2981 = vmatpush2.msra.mxu1 %v6189_v25  ;;  %v1042_v61 = vadd.f32 %v940_v40, %v8997_v21  ;;  %2606 = vmatpush2.msra.mxu0 %v6154_v16  ;;  %v9700_v21 = vld [vmem:[%s12195_s0 + $0x38] sm:$0xff]  ;;  %v2797_v40 = vrot.slane %v2753_v50, 5 }
 0x17e   :  { %2250 = vmatmul.mubr.f32.gmra.mxu1 %v2032_v33  ;;  %v942_v42 = vpop.f32.mrf.mxu0  ;;  %v1404_v8 = vpop.f32.mrf.mxu1  ;;  %2982 = vmatprep.subr.mxu1 %v9644_v34  ;;  %v2417_v38 = vrot.slane %v9700_v21, 4  ;;  %v9745_v33 = vld [vmem:[%s12195_s0 + $0x48] sm:$0xff]  ;;  %v2798_v48 = vrot.slane %v9700_v21, 5  ;;  %v6213_v21 = vld [vmem:[%s12194_s2 + $0x870] sm:$0xff] }
 0x17f   :  { %1873 = vmatprep.mubr.f32.mxu0 %v1657_v35  ;;  %v9702_v62 = vadd.f32 %v1404_v8, %v1042_v61  ;;  %2983 = vmatpush2.msra.mxu1 %v6188_v41  ;;  %v9758_v41 = vld [vmem:[%s12195_s0 + $0x40] sm:$0xff]  ;;  %v9769_v42 = vld [vmem:[%s12195_s0 + $0x58] sm:$0xff] }
 0x180   :  { %1874 = vmatmul.mubr.f32.gmra.mxu0 %v1655_v49  ;;  %v945_v0 = vpop.f32.mrf.mxu0  ;;  %v1406_v58 = vpop.f32.mrf.mxu1  ;;  %2607 = vmatprep.subr.mxu0 %v9644_v34  ;;  %v2418_v35 = vsel %vm1948_vm3, %v2416_v6, %v2417_v38  ;;  %v2799_v3 = vsel %vm2793_vm4, %v2797_v40, %v2798_v48  ;;  %v2800_v6 = vrot.slane %v9758_v41, 5 }
 0x181   :  { %2984 = vmatprep.subr.mxu1 %v9644_v34  ;;  %v1043_v18 = vadd.f32 %v945_v0, %v9022_v39  ;;  %2254 = vmatprep.mubr.f32.mxu1 %v2038_v52  ;;  %v6152_v39 = vld [vmem:[%s12194_s2 + $0x688] sm:$0xff]  ;;  %v2421_v52 = vrot.slane %v9745_v33, 4  ;;  %v2802_v0 = vrot.slane %v9745_v33, 5 }
 0x182   :  { %2608 = vmatpush2.msra.mxu0 %v6153_v45  ;;  %v947_v1 = vpop.f32.mrf.mxu0  ;;  %v1409_v5 = vpop.f32.mrf.mxu1  ;;  %2985 = vmatpush2.msra.mxu1 %v6187_v56  ;;  %v2419_v56 = vrot.slane %v9758_v41, 4  ;;  %v9833_v41 = vld [vmem:[%s12195_s0 + $0x78] sm:$0xff] }
 0x183   :  { %1878 = vmatprep.mubr.f32.mxu0 %v1656_v27  ;;  %v9728_v12 = vadd.f32 %v1409_v5, %v1043_v18  ;;  %2255 = vmatmul.mubr.f32.gmra.mxu1 %v2036_v46  ;;  %v2752_v27 = vld [vmem:[%s12195_s0 + $0x20] sm:$0xe0]  ;;  %v9803_v1 = vld [vmem:[%s12195_s0 + $0x68] sm:$0xff]  ;;  %v2422_v50 = vsel %vm1948_vm3, %v2417_v38, %v2421_v52 }
 0x184   :  { %2986 = vmatprep.subr.mxu1 %v9644_v34  ;;  %v950_v25 = vpop.f32.mrf.mxu0  ;;  %v1411_v22 = vpop.f32.mrf.mxu1  ;;  %2609 = vmatprep.subr.mxu0 %v9644_v34  ;;  %v2794_v14 = vrot.slane %v2752_v27, 5  ;;  %v6183_v46 = vld [vmem:[%s12194_s2 + $0x780] sm:$0xff] }
 0x185   :  { %2987 = vmatpush2.msra.mxu1 %v6186_v54  ;;  %v1044_v16 = vadd.f32 %v950_v25, %v9056_v2  ;;  %1879 = vmatmul.mubr.f32.gmra.mxu0 %v1654_v19  ;;  %v6151_v2 = vld [vmem:[%s12194_s2 + $0x680] sm:$0xff]  ;;  %v2795_v19 = vrot.slane %v9718_v9, 5  ;;  %v2425_v9 = vrot.slane %v9769_v42, 4  ;;  %v2420_v25 = vsel %vm1948_vm3, %v2414_v28, %v2419_v56 }
 0x186   :  { %2988 = vmatprep.subr.mxu1 %v9644_v34  ;;  %v952_v49 = vpop.f32.mrf.mxu0  ;;  %v1414_v61 = vpop.f32.mrf.mxu1  ;;  %2610 = vmatpush2.msra.mxu0 %v6152_v39  ;;  %v2806_v39 = vrot.slane %v9769_v42, 5  ;;  %v2803_v22 = vsel %vm2793_vm4, %v2798_v48, %v2802_v0  ;;  %v2804_v48 = vrot.slane %v9793_v7, 5 }
 0x187   :  { %2259 = vmatprep.mubr.f32.mxu1 %v2037_v36  ;;  %v9771_v8 = vadd.f32 %v1414_v61, %v1044_v16  ;;  %2989 = vmatpush2.msra.mxu1 %v6185_v32  ;;  %v2415_v36 = vsel %vm1948_vm3, %v2413_v23, %v2414_v28  ;;  %v2796_v54 = vsel %vm2793_vm4, %v2794_v14, %v2795_v19  ;;  %v2423_v32 = vrot.slane %v9793_v7, 4  ;;  %v9825_v28 = vld [vmem:[%s12195_s0 + $0x60] sm:$0xff]  ;;  %v6212_v61 = vld [vmem:[%s12194_s2 + $0x868] sm:$0xff] }
 0x188   :  { %2611 = vmatprep.subr.mxu0 %v9644_v34  ;;  %v955_v45 = vpop.f32.mrf.mxu0  ;;  %v1416_v51 = vpop.f32.mrf.mxu1  ;;  %2260 = vmatmul.mubr.f32.gmra.mxu1 %v2035_v57  ;;  %v2426_v38 = vsel %vm1948_vm3, %v2421_v52, %v2425_v9  ;;  %v2429_v16 = vrot.slane %v9803_v1, 4  ;;  %v2810_v14 = vrot.slane %v9803_v1, 5  ;;  %v9861_v7 = vld [vmem:[%s12195_s0 + $0x88] sm:$0xff] }
 0x189   :  { %2990 = vmatprep.subr.mxu1 %v9644_v34  ;;  %v1045_v58 = vadd.f32 %v955_v45, %v9090_v10  ;;  %2612 = vmatpush2.msra.mxu0 %v6151_v2  ;;  %v6214_v10 = vld [vmem:[%s12194_s2 + $0x878] sm:$0xff]  ;;  %v2807_v2 = vsel %vm2793_vm4, %v2802_v0, %v2806_v39  ;;  %v6211_v45 = vld [vmem:[%s12194_s2 + $0x860] sm:$0xff]  ;;  %v2433_v0 = vrot.slane %v9833_v41, 4 }
 0x18a   :  { %2613 = vmatprep.mubr.f32.mxu0 %v2418_v35  ;;  %v957_v57 = vpop.f32.mrf.mxu0  ;;  %v1419_v18 = vpop.f32.mrf.mxu1  ;;  %2991 = vmatpush2.msra.mxu1 %v6184_v44  ;;  %v2424_v44 = vsel %vm1948_vm3, %v2419_v56, %v2423_v32  ;;  %v2430_v51 = vsel %vm1948_vm3, %v2425_v9, %v2429_v16 }
 0x18b   :  { %2614 = vmatmul.mubr.f32.vlgmr.msra.gmra.mxu0 %v2415_v36  ;;  %v9805_v5 = vadd.f32 %v1419_v18, %v1045_v58  ;;  %2992 = vmatprep.subr.mxu1 %v9644_v34  ;;  %v2427_v36 = vrot.slane %v9825_v28, 4  ;;  %v9854_v58 = vld [vmem:[%s12195_s0 + $0x70] sm:$0xff]  ;;  %v2811_v57 = vsel %vm2793_vm4, %v2806_v39, %v2810_v14  ;;  %v6210_v18 = vld [vmem:[%s12194_s2 + $0x858] sm:$0xff]  ;;  %v2434_v39 = vsel %vm1948_vm3, %v2429_v16, %v2433_v0 }
 0x18c   :  { %3311 = vmatprep.subr.mxu0 %v9644_v34  ;;  %v960_v23 = vpop.f32.mrf.mxu0  ;;  %v1421_v27 = vpop.f32.mrf.mxu1  ;;  %2993 = vmatpush2.msra.mxu1 %v6183_v46 }
 0x18d   :  { %2994 = vmatprep.mubr.f32.mxu1 %v2799_v3  ;;  %v1046_v33 = vadd.f32 %v960_v23, %v9119_v31  ;;  %3312 = vmatpush1.msra.mxu0 %v6214_v10  ;;  %v2801_v31 = vsel %vm2793_vm4, %v2795_v19, %v2800_v6  ;;  %v2808_v3 = vrot.slane %v9825_v28, 5  ;;  %v2814_v10 = vrot.slane %v9833_v41, 5  ;;  %v6209_v27 = vld [vmem:[%s12194_s2 + $0x850] sm:$0xff] }
 0x18e   :  { %2995 = vmatmul.mubr.f32.vlgmr.msra.gmra.mxu1 %v2796_v54  ;;  %v962_v35 = vpop.f32.mrf.mxu0  ;;  %v1424_v40 = vpop.f32.mrf.mxu1  ;;  %2618 = vmatprep.mubr.f32.mxu0 %v2422_v50  ;;  %v2428_v1 = vsel %vm1948_vm3, %v2423_v32, %v2427_v36  ;;  %v2431_v50 = vrot.slane %v9854_v58, 4 }
 0x18f   :  { %3313 = vmatprep.subr.mxu0 %v9644_v34  ;;  %v9835_v49 = vadd.f32 %v1424_v40, %v1046_v33  ;;  %2619 = vmatmul.mubr.f32.gmra.mxu0 %v2420_v25  ;;  %v2437_v25 = vrot.slane %v9861_v7, 4  ;;  %v2815_v28 = vsel %vm2793_vm4, %v2810_v14, %v2814_v10  ;;  %v6208_v35 = vld [vmem:[%s12194_s2 + $0x848] sm:$0xff]  ;;  %v2818_v40 = vrot.slane %v9861_v7, 5 }
 0x190   :  { %2999 = vmatprep.mubr.f32.mxu1 %v2803_v22  ;;  %v965_v19 = vpop.f32.mrf.mxu0  ;;  %v1426_v42 = vpop.f32.mrf.mxu1  ;;  %3314 = vmatpush1.msra.mxu0 %v6213_v21  ;;  %v9883_v22 = vld [vmem:[%s12195_s0 + $0x80] sm:$0xff]  ;;  %v2812_v21 = vrot.slane %v9854_v58, 5  ;;  %v2432_v41 = vsel %vm1948_vm3, %v2427_v36, %v2431_v50 }
 0x191   :  { %2623 = vmatprep.mubr.f32.mxu0 %v2426_v38  ;;  %v1047_v52 = vadd.f32 %v965_v19, %v9143_v55  ;;  %3315 = vmatprep.subr.mxu0 %v9644_v34  ;;  %v2805_v55 = vsel %vm2793_vm4, %v2800_v6, %v2804_v48  ;;  %v9890_v38 = vld [vmem:[%s12195_s0 + $0x98] sm:$0xff]  ;;  %v2438_v14 = vsel %vm1948_vm3, %v2433_v0, %v2437_v25  ;;  %v6207_v19 = vld [vmem:[%s12194_s2 + $0x840] sm:$0xff] }
 0x192   :  { %3000 = vmatmul.mubr.f32.gmra.mxu1 %v2801_v31  ;;  %v967_v56 = vpop.f32.mrf.mxu0  ;;  %v1429_v46 = vpop.f32.mrf.mxu1  ;;  %3316 = vmatpush1.msra.mxu0 %v6212_v61  ;;  %v2435_v61 = vrot.slane %v9883_v22, 4  ;;  %v2441_v42 = vrot.slane %v9890_v38, 4  ;;  %v2819_v58 = vsel %vm2793_vm4, %v2814_v10, %v2818_v40 }
 0x193   :  { %3004 = vmatprep.mubr.f32.mxu1 %v2807_v2  ;;  %v9863_v9 = vadd.f32 %v1429_v46, %v1047_v52  ;;  %2624 = vmatmul.mubr.f32.gmra.mxu0 %v2424_v44  ;;  %v9912_v44 = vld [vmem:[%s12195_s0 + $0x90] sm:$0xff]  ;;  %v6206_v56 = vld [vmem:[%s12194_s2 + $0x838] sm:$0xff]  ;;  %v2822_v46 = vrot.slane %v9890_v38, 5 }
 0x194   :  { %3317 = vmatprep.subr.mxu0 %v9644_v34  ;;  %v970_v54 = vpop.f32.mrf.mxu0  ;;  %v1431_v6 = vpop.f32.mrf.mxu1  ;;  %2628 = vmatprep.mubr.f32.mxu0 %v2430_v51  ;;  %v9919_v51 = vld [vmem:[%s12195_s0 + $0xa8] sm:$0xff]  ;;  %v2436_v7 = vsel %vm1948_vm3, %v2431_v50, %v2435_v61  ;;  %v2442_v10 = vsel %vm1948_vm3, %v2437_v25, %v2441_v42 }
 0x195   :  { %3318 = vmatpush1.msra.mxu0 %v6211_v45  ;;  %v1048_v23 = vadd.f32 %v970_v54, %v9167_v13  ;;  %v2809_v13 = vsel %vm2793_vm4, %v2804_v48, %v2808_v3  ;;  %v2816_v45 = vrot.slane %v9883_v22, 5  ;;  %v2445_v54 = vrot.slane %v9919_v51, 4  ;;  %v6205_v6 = vld [vmem:[%s12194_s2 + $0x830] sm:$0xff]  ;;  %v6204_v22 = vld [vmem:[%s12194_s2 + $0x828] sm:$0xff] }
 0x196   :  { %3005 = vmatmul.mubr.f32.gmra.mxu1 %v2805_v55  ;;  %3319 = vmatprep.subr.mxu0 %v9644_v34  ;;  %v972_v32 = vpop.f32.mrf.mxu0  ;;  %v1434_v33 = vpop.f32.mrf.mxu1  ;;  %v2826_v25 = vrot.slane %v9919_v51, 5 }
 0x197   :  { %3009 = vmatprep.mubr.f32.mxu1 %v2811_v57  ;;  %3320 = vmatpush1.msra.mxu0 %v6210_v18  ;;  %v9892_v16 = vadd.f32 %v1434_v33, %v1048_v23  ;;  %v2439_v57 = vrot.slane %v9912_v44, 4  ;;  %v2820_v23 = vrot.slane %v9912_v44, 5  ;;  %v2446_v38 = vsel %vm1948_vm3, %v2441_v42, %v2445_v54  ;;  %v6202_v44 = vld [vmem:[%s12194_s2 + $0x818] sm:$0xff] }
 0x198   :  { %2629 = vmatmul.mubr.f32.gmra.mxu0 %v2428_v1  ;;  %3321 = vmatprep.subr.mxu0 %v9644_v34  ;;  %v975_v31 = vpop.f32.mrf.mxu0  ;;  %v1436_v48 = vpop.f32.mrf.mxu1  ;;  %v9941_v1 = vld [vmem:[%s12195_s0 + $0xa0] sm:$0xff] }
 0x199   :  { %2633 = vmatprep.mubr.f32.mxu0 %v2434_v39  ;;  %3322 = vmatpush1.msra.mxu0 %v6209_v27  ;;  %v1049_v2 = vadd.f32 %v975_v31, %v9187_v24  ;;  %v2813_v24 = vsel %vm2793_vm4, %v2808_v3, %v2812_v21  ;;  %v9948_v39 = vld [vmem:[%s12195_s0 + $0xb8] sm:$0xff]  ;;  %v2823_v27 = vsel %vm2793_vm4, %v2818_v40, %v2822_v46  ;;  %v6203_v40 = vld [vmem:[%s12194_s2 + $0x820] sm:$0xff] }
 0x19a   :  { %3010 = vmatmul.mubr.f32.gmra.mxu1 %v2809_v13  ;;  %3323 = vmatprep.subr.mxu0 %v9644_v34  ;;  %v977_v36 = vpop.f32.mrf.mxu0  ;;  %v1439_v52 = vpop.f32.mrf.mxu1  ;;  %v2440_v33 = vsel %vm1948_vm3, %v2435_v61, %v2439_v57  ;;  %v2443_v13 = vrot.slane %v9941_v1, 4  ;;  %v2824_v61 = vrot.slane %v9941_v1, 5  ;;  %v2830_v42 = vrot.slane %v9948_v39, 5 }
 0x19b   :  { %3014 = vmatprep.mubr.f32.mxu1 %v2815_v28  ;;  %3324 = vmatpush1.msra.mxu0 %v6208_v35  ;;  %v9921_v0 = vadd.f32 %v1439_v52, %v1049_v2  ;;  %v2449_v28 = vrot.slane %v9948_v39, 4  ;;  %v9966_v35 = vld [vmem:[%s12195_s0 + $0xb0] sm:$0xff]  ;;  %v9976_v2 = vld [vmem:[%s12195_s0 + $0xc8] sm:$0xff] }
 0x19c   :  { %2634 = vmatmul.mubr.f32.gmra.mxu0 %v2432_v41  ;;  %3325 = vmatprep.subr.mxu0 %v9644_v34  ;;  %v980_v55 = vpop.f32.mrf.mxu0  ;;  %v1441_v3 = vpop.f32.mrf.mxu1  ;;  %v2821_v41 = vsel %vm2793_vm4, %v2816_v45, %v2820_v23  ;;  %v2444_v52 = vsel %vm1948_vm3, %v2439_v57, %v2443_v13  ;;  %v2453_v51 = vrot.slane %v9976_v2, 4 }
 0x19d   :  { %2638 = vmatprep.mubr.f32.mxu0 %v2438_v14  ;;  %3326 = vmatpush1.msra.mxu0 %v6207_v19  ;;  %v1050_v18 = vadd.f32 %v980_v55, %v9207_v47  ;;  %v2817_v47 = vsel %vm2793_vm4, %v2812_v21, %v2816_v45  ;;  %v2827_v19 = vsel %vm2793_vm4, %v2822_v46, %v2826_v25  ;;  %v2828_v3 = vrot.slane %v9966_v35, 5 }
 0x19e   :  { %3015 = vmatmul.mubr.f32.gmra.mxu1 %v2813_v24  ;;  %3327 = vmatprep.subr.mxu0 %v9644_v34  ;;  %v982_v50 = vpop.f32.mrf.mxu0  ;;  %v2447_v24 = vrot.slane %v9966_v35, 4  ;;  %v2825_v55 = vsel %vm2793_vm4, %v2820_v23, %v2824_v61  ;;  %v2454_v39 = vsel %vm1948_vm3, %v2449_v28, %v2453_v51  ;;  %v6230_v35 = vld [vmem:[%s12194_s2 + $0x8f8] sm:$0xff] }
 0x19f   :  { %3019 = vmatprep.mubr.f32.mxu1 %v2819_v58  ;;  %3328 = vmatpush1.msra.mxu0 %v6206_v56  ;;  %v1444_v32 = vpop.f32.mrf.mxu1  ;;  %v9993_v58 = vld [vmem:[%s12195_s0 + $0xc0] sm:$0xff]  ;;  %v6201_v56 = vld [vmem:[%s12194_s2 + $0x810] sm:$0xff] }
 0x1a0   :  { %2639 = vmatmul.mubr.f32.gmra.mxu0 %v2436_v7  ;;  %3329 = vmatprep.subr.mxu0 %v9644_v34  ;;  %v9958_v21 = vadd.f32 %v1444_v32, %v1050_v18  ;;  %v10005_v7 = vld [vmem:[%s12195_s0 + $0xd8] sm:$0xff]  ;;  %v2448_v50 = vsel %vm1948_vm3, %v2443_v13, %v2447_v24  ;;  %v2832_v32 = vrot.slane %v9993_v58, 5 }
 0x1a1   :  { %2643 = vmatprep.mubr.f32.mxu0 %v2442_v10  ;;  %3330 = vmatpush1.msra.mxu0 %v6205_v6  ;;  %v1446_v48 = vpop.f32.mrf.mxu1  ;;  %v2831_v10 = vsel %vm2793_vm4, %v2826_v25, %v2830_v42  ;;  %v6200_v6 = vld [vmem:[%s12194_s2 + $0x808] sm:$0xff]  ;;  %v10021_v25 = vld [vmem:[%s12195_s0 + $0xd0] sm:$0xff] }
 0x1a2   :  { %3020 = vmatmul.mubr.f32.gmra.mxu1 %v2817_v47  ;;  %3331 = vmatprep.subr.mxu0 %v9644_v34  ;;  %v985_v31 = vpop.f32.mrf.mxu0  ;;  %v2451_v47 = vrot.slane %v9993_v58, 4  ;;  %v2455_v48 = vrot.slane %v10021_v25, 4 }
 0x1a3   :  { %3024 = vmatprep.mubr.f32.mxu1 %v2823_v27  ;;  %3332 = vmatpush1.msra.mxu0 %v6204_v22  ;;  %v1051_v14 = vadd.f32 %v985_v31, %v9236_v11  ;;  %v2450_v11 = vsel %vm1948_vm3, %v2445_v54, %v2449_v28  ;;  %v2834_v54 = vrot.slane %v9976_v2, 5  ;;  %v2457_v27 = vrot.slane %v10005_v7, 4 }
 0x1a4   :  { %2644 = vmatmul.mubr.f32.gmra.mxu0 %v2440_v33  ;;  %3333 = vmatprep.subr.mxu0 %v9644_v34  ;;  %v987_v36 = vpop.f32.mrf.mxu0  ;;  %v2829_v22 = vsel %vm2793_vm4, %v2824_v61, %v2828_v3  ;;  %v10032_v33 = vld [vmem:[%s12195_s0 + $0xe8] sm:$0xff]  ;;  %v2838_v28 = vrot.slane %v10005_v7, 5  ;;  %v2452_v31 = vsel %vm1948_vm3, %v2447_v24, %v2451_v47  ;;  %v10061_v24 = vld [vmem:[%s12195_s0 + $0xf8] sm:$0xff] }
 0x1a5   :  { %2648 = vmatprep.mubr.f32.mxu0 %v2446_v38  ;;  %3334 = vmatpush1.msra.mxu0 %v6203_v40  ;;  %v1449_v45 = vpop.f32.mrf.mxu1  ;;  %v2835_v38 = vsel %vm2793_vm4, %v2830_v42, %v2834_v54  ;;  %v2458_v2 = vsel %vm1948_vm3, %v2453_v51, %v2457_v27  ;;  %v6229_v42 = vld [vmem:[%s12194_s2 + $0x8f0] sm:$0xff]  ;;  %v2833_v36 = vsel %vm2793_vm4, %v2828_v3, %v2832_v32  ;;  %v2842_v51 = vrot.slane %v10032_v33, 5 }
 0x1a6   :  { %3025 = vmatmul.mubr.f32.gmra.mxu1 %v2821_v41  ;;  %3335 = vmatprep.subr.mxu0 %v9644_v34  ;;  %v9998_v46 = vadd.f32 %v1449_v45, %v1051_v14  ;;  %v2461_v14 = vrot.slane %v10032_v33, 4 }
 0x1a7   :  { %3029 = vmatprep.mubr.f32.mxu1 %v2827_v19  ;;  %3336 = vmatpush1.msra.mxu0 %v6202_v44  ;;  %v990_v57 = vpop.f32.mrf.mxu0  ;;  %v1451_v18 = vpop.f32.mrf.mxu1  ;;  %v10049_v19 = vld [vmem:[%s12195_s0 + $0xe0] sm:$0xff] }
 0x1a8   :  { %2649 = vmatmul.mubr.f32.gmra.mxu0 %v2444_v52  ;;  %3337 = vmatprep.subr.mxu0 %v9644_v34  ;;  %v1052_v1 = vadd.f32 %v990_v57, %v9267_v30  ;;  %v6199_v30 = vld [vmem:[%s12194_s2 + $0x800] sm:$0xff]  ;;  %v2836_v52 = vrot.slane %v10021_v25, 5  ;;  %v2459_v3 = vrot.slane %v10049_v19, 4  ;;  %v2462_v18 = vsel %vm1948_vm3, %v2457_v27, %v2461_v14 }
 0x1a9   :  { %2653 = vmatprep.mubr.f32.mxu0 %v2450_v11  ;;  %3338 = vmatpush1.msra.mxu0 %v6201_v56  ;;  %v992_v23 = vpop.f32.mrf.mxu0  ;;  %v2839_v11 = vsel %vm2793_vm4, %v2834_v54, %v2838_v28  ;;  %v10078_v54 = vld [vmem:[%s12195_s0 + $0xf0] sm:$0xff] }
 0x1aa   :  { %3030 = vmatmul.mubr.f32.gmra.mxu1 %v2825_v55  ;;  %3339 = vmatprep.subr.mxu0 %v9644_v34  ;;  %v1454_v13 = vpop.f32.mrf.mxu1  ;;  %v2456_v55 = vsel %vm1948_vm3, %v2451_v47, %v2455_v48  ;;  %v2837_v47 = vsel %vm2793_vm4, %v2832_v32, %v2836_v52  ;;  %v2840_v23 = vrot.slane %v10049_v19, 5  ;;  %v6226_v32 = vld [vmem:[%s12194_s2 + $0x8d8] sm:$0xff] }
 0x1ab   :  { %3034 = vmatprep.mubr.f32.mxu1 %v2831_v10  ;;  %3340 = vmatpush1.msra.mxu0 %v6200_v6  ;;  %v10040_v40 = vadd.f32 %v1454_v13, %v1052_v1  ;;  %v2465_v10 = vrot.slane %v10061_v24, 4  ;;  %v6227_v6 = vld [vmem:[%s12194_s2 + $0x8e0] sm:$0xff] }
 0x1ac   :  { %2654 = vmatmul.mubr.f32.gmra.mxu0 %v2448_v50  ;;  %3341 = vmatprep.subr.mxu0 %v9644_v34  ;;  %v995_v41 = vpop.f32.mrf.mxu0  ;;  %v1456_v61 = vpop.f32.mrf.mxu1 }
 0x1ad   :  { %2658 = vmatprep.mubr.f32.mxu0 %v2454_v39  ;;  %3342 = vmatpush1.msra.mxu0 %v6199_v30  ;;  %v1053_v44 = vadd.f32 %v995_v41, %v9301_v4  ;;  %v6228_v4 = vld [vmem:[%s12194_s2 + $0x8e8] sm:$0xff]  ;;  %v2843_v30 = vsel %vm2793_vm4, %v2838_v28, %v2842_v51  ;;  %v10105_v41 = vld [vmem:[%s12195_s0 + $0x100] sm:$0xff] }
 0x1ae   :  { %3035 = vmatmul.mubr.f32.gmra.mxu1 %v2829_v22  ;;  %3343 = vmatprep.subr.mxu0 %v9644_v34  ;;  %v997_v45 = vpop.f32.mrf.mxu0  ;;  %v10089_v39 = vld [vmem:[%s12195_s0 + $0x108] sm:$0xff]  ;;  %v2846_v22 = vrot.slane %v10061_v24, 5 }
 0x1af   :  { %3039 = vmatprep.mubr.f32.mxu1 %v2835_v38  ;;  %3344 = vmatpush2.msra.mxu0 %v6230_v35  ;;  %v1459_v56 = vpop.f32.mrf.mxu1  ;;  %v2460_v38 = vsel %vm1948_vm3, %v2455_v48, %v2459_v3  ;;  %v2463_v35 = vrot.slane %v10078_v54, 4  ;;  %v2469_v28 = vrot.slane %v10089_v39, 4  ;;  %v6225_v48 = vld [vmem:[%s12194_s2 + $0x8d0] sm:$0xff] }
 0x1b0   :  { %2659 = vmatmul.mubr.f32.gmra.mxu0 %v2452_v31  ;;  %3345 = vmatprep.subr.mxu0 %v9644_v34  ;;  %v10071_v57 = vadd.f32 %v1459_v56, %v1053_v44  ;;  %v2847_v45 = vsel %vm2793_vm4, %v2842_v51, %v2846_v22 }
 0x1b1   :  { %2663 = vmatprep.mubr.f32.mxu0 %v2458_v2  ;;  %3346 = vmatpush2.msra.mxu0 %v6229_v42  ;;  %v1461_v50 = vpop.f32.mrf.mxu1  ;;  %v2841_v2 = vsel %vm2793_vm4, %v2836_v52, %v2840_v23  ;;  %v10118_v42 = vld [vmem:[%s12195_s0 + $0x118] sm:$0xff]  ;;  %v6224_v52 = vld [vmem:[%s12194_s2 + $0x8c8] sm:$0xff]  ;;  %v2464_v56 = vsel %vm1948_vm3, %v2459_v3, %v2463_v35  ;;  %v2470_v51 = vsel %vm1948_vm3, %v2465_v10, %v2469_v28 }
 0x1b2   :  { %3040 = vmatmul.mubr.f32.gmra.mxu1 %v2833_v36  ;;  %3347 = vmatprep.subr.mxu0 %v9644_v34  ;;  %v1000_v1 = vpop.f32.mrf.mxu0  ;;  %v2848_v50 = vrot.slane %v10105_v41, 5 }
 0x1b3   :  { %3044 = vmatprep.mubr.f32.mxu1 %v2839_v11  ;;  %3348 = vmatpush2.msra.mxu0 %v6228_v4  ;;  %v1054_v27 = vadd.f32 %v1000_v1, %v9327_v60  ;;  %v2466_v60 = vsel %vm1948_vm3, %v2461_v14, %v2465_v10  ;;  %v2844_v14 = vrot.slane %v10078_v54, 5  ;;  %v2850_v11 = vrot.slane %v10089_v39, 5  ;;  %v10134_v1 = vld [vmem:[%s12195_s0 + $0x110] sm:$0xff]  ;;  %v10145_v10 = vld [vmem:[%s12195_s0 + $0x128] sm:$0xff] }
 0x1b4   :  { %2664 = vmatmul.mubr.f32.gmra.mxu0 %v2456_v55  ;;  %3349 = vmatprep.subr.mxu0 %v9644_v34  ;;  %v1002_v13 = vpop.f32.mrf.mxu0  ;;  %v2467_v55 = vrot.slane %v10105_v41, 4 }
 0x1b5   :  { %2668 = vmatprep.mubr.f32.mxu0 %v2462_v18  ;;  %3350 = vmatpush2.msra.mxu0 %v6227_v6  ;;  %v1464_v31 = vpop.f32.mrf.mxu1  ;;  %v2473_v6 = vrot.slane %v10118_v42, 4  ;;  %v2845_v3 = vsel %vm2793_vm4, %v2840_v23, %v2844_v14  ;;  %v6222_v23 = vld [vmem:[%s12194_s2 + $0x8b8] sm:$0xff] }
 0x1b6   :  { %3045 = vmatmul.mubr.f32.gmra.mxu1 %v2837_v47  ;;  %3351 = vmatprep.subr.mxu0 %v9644_v34  ;;  %v10111_v61 = vadd.f32 %v1464_v31, %v1054_v27  ;;  %v2851_v27 = vsel %vm2793_vm4, %v2846_v22, %v2850_v11  ;;  %v2468_v13 = vsel %vm1948_vm3, %v2463_v35, %v2467_v55  ;;  %v6221_v35 = vld [vmem:[%s12194_s2 + $0x8b0] sm:$0xff] }
 0x1b7   :  { %3049 = vmatprep.mubr.f32.mxu1 %v2843_v30  ;;  %3352 = vmatpush2.msra.mxu0 %v6226_v32  ;;  %v1005_v44 = vpop.f32.mrf.mxu0  ;;  %v1466_v36 = vpop.f32.mrf.mxu1  ;;  %v2854_v30 = vrot.slane %v10118_v42, 5  ;;  %v2474_v22 = vsel %vm1948_vm3, %v2469_v28, %v2473_v6  ;;  %v2852_v28 = vrot.slane %v10134_v1, 5 }
 0x1b8   :  { %2669 = vmatmul.mubr.f32.gmra.mxu0 %v2460_v38  ;;  %3353 = vmatprep.subr.mxu0 %v9644_v34  ;;  %v1055_v4 = vadd.f32 %v1005_v44, %v9358_v59  ;;  %v6223_v59 = vld [vmem:[%s12194_s2 + $0x8c0] sm:$0xff]  ;;  %v2471_v38 = vrot.slane %v10134_v1, 4  ;;  %v2849_v36 = vsel %vm2793_vm4, %v2844_v14, %v2848_v50 }
 0x1b9   :  { %2673 = vmatprep.mubr.f32.mxu0 %v2466_v60  ;;  %3354 = vmatpush2.msra.mxu0 %v6225_v48  ;;  %v1007_v18 = vpop.f32.mrf.mxu0  ;;  %v2477_v48 = vrot.slane %v10145_v10, 4 }
 0x1ba   :  { %3050 = vmatmul.mubr.f32.gmra.mxu1 %v2841_v2  ;;  %3355 = vmatprep.subr.mxu0 %v9644_v34  ;;  %v1469_v47 = vpop.f32.mrf.mxu1  ;;  %v10162_v2 = vld [vmem:[%s12195_s0 + $0x120] sm:$0xff]  ;;  %v2472_v18 = vsel %vm1948_vm3, %v2467_v55, %v2471_v38 }
 0x1bb   :  { %3054 = vmatprep.mubr.f32.mxu1 %v2847_v45  ;;  %3356 = vmatpush2.msra.mxu0 %v6224_v52  ;;  %v10153_v32 = vadd.f32 %v1469_v47, %v1055_v4  ;;  %v10174_v45 = vld [vmem:[%s12195_s0 + $0x138] sm:$0xff]  ;;  %v2855_v4 = vsel %vm2793_vm4, %v2850_v11, %v2854_v30  ;;  %v2478_v11 = vsel %vm1948_vm3, %v2473_v6, %v2477_v48  ;;  %v10191_v47 = vld [vmem:[%s12195_s0 + $0x130] sm:$0xff]  ;;  %v6219_v55 = vld [vmem:[%s12194_s2 + $0x8a0] sm:$0xff]  ;;  %v2856_v6 = vrot.slane %v10162_v2, 5 }
 0x1bc   :  { %2674 = vmatmul.mubr.f32.gmra.mxu0 %v2464_v56  ;;  %3357 = vmatprep.subr.mxu0 %v9644_v34  ;;  %v1010_v31 = vpop.f32.mrf.mxu0  ;;  %v1471_v60 = vpop.f32.mrf.mxu1  ;;  %v2858_v56 = vrot.slane %v10145_v10, 5 }
 0x1bd   :  { %2678 = vmatprep.mubr.f32.mxu0 %v2470_v51  ;;  %3358 = vmatpush2.msra.mxu0 %v6223_v59  ;;  %v1056_v44 = vadd.f32 %v1010_v31, %v9401_v15  ;;  %v6220_v15 = vld [vmem:[%s12194_s2 + $0x8a8] sm:$0xff]  ;;  %v2475_v51 = vrot.slane %v10162_v2, 4 }
 0x1be   :  { %3055 = vmatmul.mubr.f32.gmra.mxu1 %v2845_v3  ;;  %3359 = vmatprep.subr.mxu0 %v9644_v34  ;;  %v1012_v52 = vpop.f32.mrf.mxu0  ;;  %v2481_v3 = vrot.slane %v10174_v45, 4  ;;  %v10202_v31 = vld [vmem:[%s12195_s0 + $0x148] sm:$0xff] }
 0x1bf   :  { %3059 = vmatprep.mubr.f32.mxu1 %v2851_v27  ;;  %3360 = vmatpush2.msra.mxu0 %v6222_v23  ;;  %v2479_v52 = vrot.slane %v10191_v47, 4 }
 0x1c0   :  { %2679 = vmatmul.mubr.f32.gmra.mxu0 %v2468_v13  ;;  %3361 = vmatprep.subr.mxu0 %v9644_v34  ;;  %v1474_v14 = vpop.f32.mrf.mxu1  ;;  %v2853_v13 = vsel %vm2793_vm4, %v2848_v50, %v2852_v28  ;;  %v6218_v50 = vld [vmem:[%s12194_s2 + $0x898] sm:$0xff] }
 0x1c1   :  { %2683 = vmatprep.mubr.f32.mxu0 %v2474_v22  ;;  %3362 = vmatpush2.msra.mxu0 %v6221_v35  ;;  %v10184_v59 = vadd.f32 %v1474_v14, %v1056_v44  ;;  %v2859_v22 = vsel %vm2793_vm4, %v2854_v30, %v2858_v56  ;;  %v2862_v35 = vrot.slane %v10174_v45, 5  ;;  %v2485_v30 = vrot.slane %v10202_v31, 4 }
 0x1c2   :  { %3060 = vmatmul.mubr.f32.gmra.mxu1 %v2849_v36  ;;  %3363 = vmatprep.subr.mxu0 %v9644_v34  ;;  %v1015_v27 = vpop.f32.mrf.mxu0  ;;  %v1476_v23 = vpop.f32.mrf.mxu1  ;;  %v2476_v36 = vsel %vm1948_vm3, %v2471_v38, %v2475_v51  ;;  %v6217_v38 = vld [vmem:[%s12194_s2 + $0x890] sm:$0xff]  ;;  %v2857_v14 = vsel %vm2793_vm4, %v2852_v28, %v2856_v6  ;;  %v6216_v28 = vld [vmem:[%s12194_s2 + $0x888] sm:$0xff] }
 0x1c3   :  { %12204 = vst [vmem:[#allocation3_spill] sm:$0xff] %v10184_v59  ;;  %3064 = vmatprep.mubr.f32.mxu1 %v2855_v4  ;;  %3364 = vmatpush2.msra.mxu0 %v6220_v15  ;;  %v1057_v60 = vadd.f32 %v1015_v27, %v9426_v26  ;;  %v2482_v26 = vsel %vm1948_vm3, %v2477_v48, %v2481_v3  ;;  %v10218_v4 = vld [vmem:[%s12195_s0 + $0x140] sm:$0xff]  ;;  %v10229_v48 = vld [vmem:[%s12195_s0 + $0x158] sm:$0xff]  ;;  %v2866_v27 = vrot.slane %v10202_v31, 5 }
 0x1c4   :  { %2684 = vmatmul.mubr.f32.gmra.mxu0 %v2472_v18  ;;  %3365 = vmatprep.subr.mxu0 %v9644_v34  ;;  %v1017_v44 = vpop.f32.mrf.mxu0  ;;  %v2860_v18 = vrot.slane %v10191_v47, 5 }
 0x1c5   :  { %2688 = vmatprep.mubr.f32.mxu0 %v2478_v11  ;;  %3366 = vmatpush2.msra.mxu0 %v6219_v55  ;;  %v1479_v15 = vpop.f32.mrf.mxu1  ;;  %v2863_v55 = vsel %vm2793_vm4, %v2858_v56, %v2862_v35  ;;  %v2486_v56 = vsel %vm1948_vm3, %v2481_v3, %v2485_v30  ;;  %v2864_v3 = vrot.slane %v10218_v4, 5 }
 0x1c6   :  { %3065 = vmatmul.mubr.f32.gmra.mxu1 %v2853_v13  ;;  %3367 = vmatprep.subr.mxu0 %v9644_v34  ;;  %v10231_v11 = vadd.f32 %v1479_v15, %v1057_v60  ;;  %v2483_v60 = vrot.slane %v10218_v4, 4  ;;  %v10249_v15 = vld [vmem:[#allocation2] sm:$0xff] }
 0x1c7   :  { %3069 = vmatprep.mubr.f32.mxu1 %v2859_v22  ;;  %3368 = vmatpush2.msra.mxu0 %v6218_v50  ;;  %v1020_v23 = vpop.f32.mrf.mxu0  ;;  %v1481_v13 = vpop.f32.mrf.mxu1  ;;  %v2480_v22 = vsel %vm1948_vm3, %v2475_v51, %v2479_v52  ;;  %v2489_v50 = vrot.slane %v10229_v48, 4  ;;  %v2861_v51 = vsel %vm2793_vm4, %v2856_v6, %v2860_v18  ;;  %v3567_v6 = vld [vmem:[%s12196_s1] sm:$0xff] }
 0x1c8   :  { %12205 = vst [vmem:[#allocation4_spill] sm:$0xff] %v10231_v11  ;;  %2689 = vmatmul.mubr.f32.gmra.mxu0 %v2476_v36  ;;  %3369 = vmatprep.subr.mxu0 %v9644_v34  ;;  %v1058_v44 = vadd.f32 %v1020_v23, %v9469_v53  ;;  %v10247_v34 = vld [vmem:[%s12195_s0 + $0x150] sm:$0xff]  ;;  %v6215_v53 = vld [vmem:[%s12194_s2 + $0x880] sm:$0xff]  ;;  %v2870_v23 = vrot.slane %v10229_v48, 5 }
 0x1c9   :  { %2693 = vmatprep.mubr.f32.mxu0 %v2482_v26  ;;  %3370 = vmatpush2.msra.mxu0 %v6217_v38  ;;  %12206 = vst [vmem:[#allocation5_spill] sm:$0xff] %v10247_v34  ;;  %v1022_v36 = vpop.f32.mrf.mxu0  ;;  %v10260_v26 = vld [vmem:[%s12195_s0 + $0x168] sm:$0xff] }
 0x1ca   :  { %3070 = vmatmul.mubr.f32.gmra.mxu1 %v2857_v14  ;;  %3371 = vmatprep.subr.mxu0 %v10249_v15  ;;  %v1484_v38 = vpop.f32.mrf.mxu1  ;;  %v2867_v14 = vsel %vm2793_vm4, %v2862_v35, %v2866_v27  ;;  %v2487_v36 = vrot.slane %v10247_v34, 4  ;;  %v2490_v35 = vsel %vm1948_vm3, %v2485_v30, %v2489_v50  ;;  %v2868_v30 = vrot.slane %v10247_v34, 5 }
 0x1cb   :  { %3074 = vmatprep.mubr.f32.mxu1 %v2863_v55  ;;  %3372 = vmatpush2.msra.mxu0 %v6216_v28  ;;  %v10264_v13 = vadd.f32 %v1484_v38, %v1058_v44  ;;  %v2484_v55 = vsel %vm1948_vm3, %v2479_v52, %v2483_v60  ;;  %v10277_v44 = vld [vmem:[%s12195_s0 + $0x160] sm:$0xff]  ;;  %v3569_v52 = vld [vmem:[%s12196_s1 + $0x10] sm:$0xff] }
 0x1cc   :  { %2694 = vmatmul.mubr.f32.gmra.mxu0 %v2480_v22  ;;  %3373 = vmatprep.subr.mxu0 %v10249_v15  ;;  %v1486_v28 = vpop.f32.mrf.mxu1  ;;  %v2493_v22 = vrot.slane %v10260_v26, 4  ;;  %12208 = vst [vmem:[#allocation7_spill] sm:$0xff] %v10277_v44  ;;  %v2491_v59 = vrot.slane %v10277_v44, 4 }
 0x1cd   :  { %12207 = vst [vmem:[#allocation6_spill] sm:$0xff] %v10264_v13  ;;  %2698 = vmatprep.mubr.f32.mxu0 %v2486_v56  ;;  %v1025_v11 = vpop.f32.mrf.mxu0  ;;  %3374 = vmatpush2.msra.mxu0 %v6215_v53  ;;  %v7696_v56 = vmov 0   ;;  %v2865_v53 = vsel %vm2793_vm4, %v2860_v18, %v2864_v3  ;;  %v2488_v18 = vsel %vm1948_vm3, %v2483_v60, %v2487_v36  ;;  %v3570_v60 = vld [vmem:[%s12196_s1 + $0x18] sm:$0xff] }
 0x1ce   :  { %3075 = vmatmul.mubr.f32.gmra.mxu1 %v2861_v51  ;;  %v1059_v38 = vadd.f32 %v1025_v11, %v9501_v20  ;;  %7624 = vset.pattern.permute.xlu0 %v7696_v56  ;;  %v10288_v51 = vld [vmem:[%s12195_s0 + $0x178] sm:$0xff]  ;;  %v2871_v20 = vsel %vm2793_vm4, %v2866_v27, %v2870_v23  ;;  %v2874_v11 = vrot.slane %v10260_v26, 5 }
 0x1cf   :  { %3079 = vmatprep.mubr.f32.mxu1 %v2867_v14  ;;  %12209 = vst [vmem:[#allocation8_spill] sm:$0xff] %v10288_v51  ;;  %v1027_v28 = vpop.f32.mrf.mxu0  ;;  %3592 = vperm.xlu0 %7624, %v3567_v6   ;;  %v3568_v14 = vld [vmem:[%s12196_s1 + $0x8] sm:$0xff]  ;;  %v2494_v6 = vsel %vm1948_vm3, %v2489_v50, %v2493_v22  ;;  %v2497_v27 = vrot.slane %v10288_v51, 4  ;;  %v2872_v50 = vrot.slane %v10277_v44, 5 }
 0x1d0   :  { %2699 = vmatmul.mubr.f32.gmra.mxu0 %v2484_v55  ;;  %v1489_v13 = vpop.f32.mrf.mxu1  ;;  %7625 = vset.pattern.permute.xlu1 %v7696_v56  ;;  %v10304_v55 = vld [vmem:[%s12195_s0 + $0x170] sm:$0xff] }
 0x1d1   :  { %2703 = vmatprep.mubr.f32.mxu0 %v2490_v35  ;;  %v10297_v34 = vadd.f32 %v1489_v13, %v1059_v38  ;;  %3602 = vperm.xlu1 %7625, %v3569_v52   ;;  %v2869_v13 = vsel %vm2793_vm4, %v2864_v3, %v2868_v30  ;;  %v10315_v35 = vld [vmem:[%s12195_s0 + $0x188] sm:$0x3f]  ;;  %v2875_v52 = vsel %vm2793_vm4, %v2870_v23, %v2874_v11  ;;  %v3571_v3 = vld [vmem:[%s12196_s1 + $0x20] sm:$0xff] }
 0x1d2   :  { %3080 = vmatmul.mubr.f32.gmra.mxu1 %v2865_v53  ;;  %v1030_v28 = vpop.f32.mrf.mxu0  ;;  %v1491_v56 = vpop.f32.mrf.mxu1  ;;  %6712 = vmatprep.subr.mxu1 %v10249_v15  ;;  %v2878_v53 = vrot.slane %v10288_v51, 5  ;;  %v2498_v23 = vsel %vm1948_vm3, %v2493_v22, %v2497_v27 }
 0x1d3   :  { %12210 = vst [vmem:[#allocation9_spill] sm:$0xff] %v10297_v34  ;;  %3084 = vmatprep.mubr.f32.mxu1 %v2871_v20  ;;  %v1060_v38 = vadd.f32 %v1030_v28, %v9526_v43  ;;  %3597 = vperm.xlu0 %7624, %v3568_v14   ;;  %v2492_v20 = vsel %vm1948_vm3, %v2487_v36, %v2491_v59  ;;  %v2495_v34 = vrot.slane %v10304_v55, 4  ;;  %v10329_v43 = vld [vmem:[%s12195_s0 + $0x188] sm:$0x7f]  ;;  %v2501_v14 = vrot.slane %v10315_v35, 4 }
 0x1d4   :  { %2704 = vmatmul.mubr.f32.gmra.mxu0 %v2488_v18  ;;  %v1032_v56 = vpop.f32.mrf.mxu0  ;;  %6813 = vmatprep.subr.mxu0 %v10249_v15  ;;  %v10336_v18 = vld [vmem:[%s12195_s0 + $0x180] sm:$0x3f]  ;;  %v3572_v36 = vld [vmem:[%s12196_s1 + $0x28] sm:$0xff]  ;;  %v2873_v28 = vsel %vm2793_vm4, %v2868_v30, %v2872_v50  ;;  %v2879_v22 = vsel %vm2793_vm4, %v2874_v11, %v2878_v53  ;;  %v2882_v35 = vrot.slane %v10329_v43, 5  ;;  %v3573_v30 = vld [vmem:[%s12196_s1 + $0x30] sm:$0xff] }
 0x1d5   :  { %2708 = vmatprep.mubr.f32.mxu0 %v2494_v6  ;;  %3607 = vperm.xlu1 %7625, %v3570_v60   ;;  %v1494_v6 = vpop.f32.mrf.mxu1  ;;  %v2876_v60 = vrot.slane %v10304_v55, 5  ;;  %v10350_v56 = vld [vmem:[%s12195_s0 + $0x180] sm:$0x7f] }
 0x1d6   :  { %3085 = vmatmul.mubr.f32.gmra.mxu1 %v2869_v13  ;;  %v10343_v13 = vadd.f32 %v1494_v6, %v1060_v38  ;;  %v2496_v38 = vsel %vm1948_vm3, %v2491_v59, %v2495_v34  ;;  %v3134_v59 = vld [vmem:[%s12195_s0 + $0x28] sm:$0xc0] }
 0x1d7   :  { %3089 = vmatprep.mubr.f32.mxu1 %v2875_v52  ;;  %3612 = vperm.xlu0 %7624, %v3571_v3   ;;  %v1035_v51 = vpop.f32.mrf.mxu0  ;;  %v1496_v44 = vpop.f32.mrf.mxu1  ;;  %v2499_v52 = vrot.slane %v10336_v18, 4  ;;  %v2502_v3 = vsel %vm1948_vm3, %v2497_v27, %v2501_v14  ;;  %v2877_v43 = vsel %vm2793_vm4, %v2872_v50, %v2876_v60  ;;  %v3575_v27 = vld [vmem:[%s12196_s1 + $0x40] sm:$0xff] }
 0x1d8   :  { %2709 = vmatmul.mubr.f32.gmra.mxu0 %v2492_v20  ;;  %v1061_v11 = vadd.f32 %v1035_v51, %v9569_v17  ;;  %v3574_v44 = vld [vmem:[%s12196_s1 + $0x38] sm:$0xff]  ;;  %v2883_v17 = vsel %vm2793_vm4, %v2878_v53, %v2882_v35 }
 0x1d9   :  { %2713 = vmatprep.mubr.f32.mxu0 %v2498_v23  ;;  %3617 = vperm.xlu1 %7625, %v3572_v36   ;;  %v1037_v20 = vpop.f32.mrf.mxu0  ;;  %v2880_v23 = vrot.slane %v10350_v56, 5  ;;  %v2500_v50 = vsel %vm1948_vm3, %v2495_v34, %v2499_v52  ;;  %v7672_v53 = vld [vmem:[%s12195_s0 + $0x38] sm:$0xff] }
 0x1da   :  { %3090 = vmatmul.mubr.f32.gmra.mxu1 %v2873_v28  ;;  %v1499_v18 = vpop.f32.mrf.mxu1  ;;  %v6247_v28 = vld [vmem:[%s12197_s3 + $0xf8] sm:$0xff]  ;;  %v3179_v56 = vrot.slane %v7672_v53, 6 }
 0x1db   :  { %3094 = vmatprep.mubr.f32.mxu1 %v2879_v22  ;;  %3622 = vperm.xlu0 %7624, %v3573_v30   ;;  %v10368_v51 = vadd.f32 %v1499_v18, %v1061_v11  ;;  %v3178_v22 = vrot.slane %v3134_v59, 6  ;;  %v3133_v30 = vld [vmem:[%s12195_s0 + $0x20] sm:$0xc0]  ;;  %v2881_v11 = vsel %vm2793_vm4, %v2876_v60, %v2880_v23  ;;  %v6246_v60 = vld [vmem:[%s12197_s3 + $0xf0] sm:$0xff] }
 0x1dc   :  { %2714 = vmatmul.mubr.f32.gmra.mxu0 %v2496_v38  ;;  %v1501_v6 = vpop.f32.mrf.mxu1  ;;  %v3576_v38 = vld [vmem:[%s12196_s1 + $0x48] sm:$0xff]  ;;  %6713 = vmatpush3.msra.mxu1 %v6247_v28 }
 0x1dd   :  { %2718 = vmatprep.mubr.f32.mxu0 %v2502_v3  ;;  %v1770_v36 = vpop.f32.mrf.mxu0  ;;  %3627 = vperm.xlu1 %7625, %v3574_v44   ;;  %v3577_v44 = vld [vmem:[%s12196_s1 + $0x50] sm:$0xff] }
 0x1de   :  { %3095 = vmatmul.mubr.f32.gmra.mxu1 %v2877_v43  ;;  %v1884_v34 = vadd.f32 %v1770_v36, %v9604_v37  ;;  %v3175_v43 = vrot.slane %v3133_v30, 6  ;;  %v7673_v37 = vld [vmem:[%s12195_s0 + $0x30] sm:$0xff]  ;;  %v3578_v36 = vld [vmem:[%s12196_s1 + $0x58] sm:$0xff]  ;;  %6714 = vmatprep.subr.mxu1 %v10249_v15  ;;  %v3579_v30 = vld [vmem:[%s12196_s1 + $0x60] sm:$0xff] }
 0x1df   :  { %3099 = vmatprep.mubr.f32.mxu1 %v2883_v17  ;;  %v1772_v3 = vpop.f32.mrf.mxu0  ;;  %3632 = vperm.xlu0 %7624, %v3575_v27   ;;  %v3176_v59 = vrot.slane %v7673_v37, 6  ;;  %v3180_v17 = vsel %vm3174_vm5, %v3178_v22, %v3179_v56 }
 0x1e0   :  { %2719 = vmatmul.mubr.f32.gmra.mxu0 %v2500_v50  ;;  %v2151_v20 = vpop.f32.mrf.mxu1  ;;  %6715 = vmatpush3.msra.mxu1 %v6246_v60 }
 0x1e1   :  { %2723 = vmatprep.mubr.f32.mxu0 %v2501_v14  ;;  %v10394_v18 = vadd.f32 %v2151_v20, %v1884_v34  ;;  %3637 = vperm.xlu1 %7625, %v3576_v38   ;;  %v7674_v14 = vld [vmem:[%s12195_s0 + $0x48] sm:$0xff]  ;;  %v1775_v50 = vpop.f32.mrf.mxu0  ;;  %v3177_v34 = vsel %vm3174_vm5, %v3175_v43, %v3176_v59  ;;  %v7675_v38 = vld [vmem:[%s12195_s0 + $0x40] sm:$0xff] }
 0x1e2   :  { %3100 = vmatmul.mubr.f32.gmra.mxu1 %v2881_v11  ;;  %v3183_v27 = vrot.slane %v7674_v14, 6  ;;  %v2153_v6 = vpop.f32.mrf.mxu1  ;;  %v1885_v28 = vadd.f32 %v1775_v50, %v9642_v63  ;;  %v3181_v11 = vrot.slane %v7675_v38, 6  ;;  %v3580_v43 = vld [vmem:[%s12196_s1 + $0x68] sm:$0xff]  ;;  %6716 = vmatprep.subr.mxu1 %v10249_v15 }
 0x1e3   :  { %3104 = vmatprep.mubr.f32.mxu1 %v2882_v35  ;;  %3642 = vperm.xlu0 %7624, %v3577_v44   ;;  %v1777_v53 = vpop.f32.mrf.mxu0 }
 0x1e4   :  { %2724 = vmatmul.mubr.f32.gmra.mxu0 %v2499_v52  ;;  %v2156_v22 = vpop.f32.mrf.mxu1  ;;  %v3184_v63 = vsel %vm3174_vm5, %v3179_v56, %v3183_v27  ;;  %v7676_v52 = vld [vmem:[%s12195_s0 + $0x58] sm:$0xff]  ;;  %v3182_v14 = vsel %vm3174_vm5, %v3176_v59, %v3181_v11 }
 0x1e5   :  { %3375 = vmatprep.mubr.f32.mxu0 %v3180_v17  ;;  %v10415_v35 = vadd.f32 %v2156_v22, %v1885_v28  ;;  %3647 = vperm.xlu1 %7625, %v3578_v36   ;;  %v3187_v3 = vrot.slane %v7676_v52, 6  ;;  %v1780_v20 = vpop.f32.mrf.mxu0  ;;  %v3581_v17 = vld [vmem:[%s12196_s1 + $0x70] sm:$0xff]  ;;  %v7678_v28 = vld [vmem:[%s12195_s0 + $0x68] sm:$0xff]  ;;  %v3582_v59 = vld [vmem:[%s12196_s1 + $0x78] sm:$0xff] }
 0x1e6   :  { %3105 = vmatmul.mubr.f32.gmra.mxu1 %v2880_v23  ;;  %v2158_v44 = vpop.f32.mrf.mxu1  ;;  %v1886_v37 = vadd.f32 %v1780_v20, %v9674_v29  ;;  %v6245_v23 = vld [vmem:[%s12197_s3 + $0xe8] sm:$0xff]  ;;  %v7677_v29 = vld [vmem:[%s12195_s0 + $0x50] sm:$0xff]  ;;  %v3191_v53 = vrot.slane %v7678_v28, 6  ;;  %v7679_v20 = vld [vmem:[%s12195_s0 + $0x60] sm:$0xff] }
 0x1e7   :  { %3652 = vperm.xlu0 %7624, %v3579_v30   ;;  %v1782_v56 = vpop.f32.mrf.mxu0  ;;  %6717 = vmatpush3.msra.mxu1 %v6245_v23  ;;  %v3185_v50 = vrot.slane %v7677_v29, 6  ;;  %v3188_v36 = vsel %vm3174_vm5, %v3183_v27, %v3187_v3  ;;  %v3583_v27 = vld [vmem:[%s12196_s1 + $0x80] sm:$0xff]  ;;  %v3189_v44 = vrot.slane %v7679_v20, 6  ;;  %v7680_v23 = vld [vmem:[%s12195_s0 + $0x78] sm:$0xff] }
 0x1e8   :  { %3376 = vmatmul.mubr.f32.vlgmr.msra.gmra.mxu0 %v3177_v34  ;;  %v2161_v60 = vpop.f32.mrf.mxu1  ;;  %6718 = vmatprep.subr.mxu1 %v10249_v15  ;;  %v3195_v56 = vrot.slane %v7680_v23, 6 }
 0x1e9   :  { %3380 = vmatprep.mubr.f32.mxu0 %v3184_v63  ;;  %v10436_v6 = vadd.f32 %v2161_v60, %v1886_v37  ;;  %3657 = vperm.xlu1 %7625, %v3580_v43   ;;  %v3186_v52 = vsel %vm3174_vm5, %v3181_v11, %v3185_v50  ;;  %v3192_v37 = vsel %vm3174_vm5, %v3187_v3, %v3191_v53 }
 0x1ea   :  { %v1785_v22 = vpop.f32.mrf.mxu0  ;;  %v2163_v30 = vpop.f32.mrf.mxu1  ;;  %v3190_v28 = vsel %vm3174_vm5, %v3185_v50, %v3189_v44  ;;  %6744 = vmatprep.mubr.msk.f32.mxu1 %vm7697_vm6, %v10249_v15 }
 0x1eb   :  { %v1887_v34 = vadd.f32 %v1785_v22, %v9702_v62  ;;  %3662 = vperm.xlu0 %7624, %v3581_v17   ;;  %v6244_v62 = vld [vmem:[%s12197_s3 + $0xe0] sm:$0xff]  ;;  %v3584_v17 = vld [vmem:[%s12196_s1 + $0x88] sm:$0xff]  ;;  %v7681_v22 = vld [vmem:[%s12195_s0 + $0x70] sm:$0xff] }
 0x1ec   :  { %3381 = vmatmul.mubr.f32.gmra.mxu0 %v3182_v14  ;;  %v1787_v38 = vpop.f32.mrf.mxu0  ;;  %v2166_v63 = vpop.f32.mrf.mxu1  ;;  %6719 = vmatpush3.msra.mxu1 %v6244_v62  ;;  %v3193_v30 = vrot.slane %v7681_v22, 6  ;;  %v6242_v22 = vld [vmem:[%s12197_s3 + $0xd0] sm:$0xff] }
 0x1ed   :  { %3385 = vmatprep.mubr.f32.mxu0 %v3188_v36  ;;  %v10454_v43 = vadd.f32 %v2166_v63, %v1887_v34  ;;  %3667 = vperm.xlu1 %7625, %v3582_v59   ;;  %v3585_v36 = vld [vmem:[%s12196_s1 + $0x90] sm:$0xff]  ;;  %v3196_v34 = vsel %vm3174_vm5, %v3191_v53, %v3195_v56  ;;  %v7682_v38 = vld [vmem:[%s12195_s0 + $0x88] sm:$0xff] }
 0x1ee   :  { %v1790_v11 = vpop.f32.mrf.mxu0  ;;  %v2168_v60 = vpop.f32.mrf.mxu1  ;;  %6720 = vmatprep.subr.mxu1 %v10249_v15  ;;  %v3199_v63 = vrot.slane %v7682_v38, 6  ;;  %v3194_v23 = vsel %vm3174_vm5, %v3189_v44, %v3193_v30  ;;  %v3588_v44 = vld [vmem:[%s12196_s1 + $0xa8] sm:$0xff] }
 0x1ef   :  { %v1888_v14 = vadd.f32 %v1790_v11, %v9728_v12  ;;  %3672 = vperm.xlu0 %7624, %v3583_v27   ;;  %v6243_v12 = vld [vmem:[%s12197_s3 + $0xd8] sm:$0xff]  ;;  %v7683_v11 = vld [vmem:[%s12195_s0 + $0x80] sm:$0xff] }
 0x1f0   :  { %3386 = vmatmul.mubr.f32.gmra.mxu0 %v3186_v52  ;;  %v1792_v29 = vpop.f32.mrf.mxu0  ;;  %v2171_v3 = vpop.f32.mrf.mxu1  ;;  %v3586_v52 = vld [vmem:[%s12196_s1 + $0x98] sm:$0xff]  ;;  %6721 = vmatpush3.msra.mxu1 %v6243_v12  ;;  %v3197_v60 = vrot.slane %v7683_v11, 6 }
 0x1f1   :  { %3390 = vmatprep.mubr.f32.mxu0 %v3192_v37  ;;  %v10475_v59 = vadd.f32 %v2171_v3, %v1888_v14  ;;  %3677 = vperm.xlu1 %7625, %v3584_v17   ;;  %v3587_v37 = vld [vmem:[%s12196_s1 + $0xa0] sm:$0xff]  ;;  %v7684_v14 = vld [vmem:[%s12195_s0 + $0x98] sm:$0xff] }
 0x1f2   :  { %v1795_v50 = vpop.f32.mrf.mxu0  ;;  %v2173_v27 = vpop.f32.mrf.mxu1  ;;  %6722 = vmatprep.subr.mxu1 %v10249_v15  ;;  %v3203_v29 = vrot.slane %v7684_v14, 6  ;;  %v3198_v38 = vsel %vm3174_vm5, %v3193_v30, %v3197_v60 }
 0x1f3   :  { %v1889_v20 = vadd.f32 %v1795_v50, %v9771_v8  ;;  %3682 = vperm.xlu0 %7624, %v3585_v36   ;;  %v3200_v8 = vsel %vm3174_vm5, %v3195_v56, %v3199_v63  ;;  %6723 = vmatpush3.msra.mxu1 %v6242_v22 }
 0x1f4   :  { %3391 = vmatmul.mubr.f32.gmra.mxu0 %v3190_v28  ;;  %v1797_v62 = vpop.f32.mrf.mxu0  ;;  %v2176_v53 = vpop.f32.mrf.mxu1  ;;  %6724 = vmatprep.subr.mxu1 %v10249_v15 }
 0x1f5   :  { %3395 = vmatprep.mubr.f32.mxu0 %v3196_v34  ;;  %v10496_v17 = vadd.f32 %v2176_v53, %v1889_v20  ;;  %3687 = vperm.xlu1 %7625, %v3586_v52   ;;  %v3589_v34 = vld [vmem:[%s12196_s1 + $0xb0] sm:$0x3]  ;;  %v3204_v52 = vsel %vm3174_vm5, %v3199_v63, %v3203_v29  ;;  %v7686_v20 = vld [vmem:[%s12195_s0 + $0xa8] sm:$0xff]  ;;  %v7687_v63 = vld [vmem:[%s12195_s0 + $0xa0] sm:$0xff] }
 0x1f6   :  { %v1800_v3 = vpop.f32.mrf.mxu0  ;;  %v2178_v36 = vpop.f32.mrf.mxu1  ;;  %v3207_v62 = vrot.slane %v7686_v20, 6  ;;  %v3205_v14 = vrot.slane %v7687_v63, 6  ;;  %v3213_v63 = vrot.slane %v9993_v58, 6  ;;  %v3217_v58 = vrot.slane %v10021_v25, 6 }
 0x1f7   :  { %v1890_v28 = vadd.f32 %v1800_v3, %v9805_v5  ;;  %3692 = vperm.xlu0 %7624, %v3587_v37   ;;  %v7685_v5 = vld [vmem:[%s12195_s0 + $0x90] sm:$0xff]  ;;  %v6241_v36 = vld [vmem:[%s12197_s3 + $0xc8] sm:$0xff] }
 0x1f8   :  { %3396 = vmatmul.mubr.f32.gmra.mxu0 %v3194_v23  ;;  %v1802_v56 = vpop.f32.mrf.mxu0  ;;  %v2181_v12 = vpop.f32.mrf.mxu1  ;;  %v3201_v50 = vrot.slane %v7685_v5, 6  ;;  %6725 = vmatpush3.msra.mxu1 %v6241_v36  ;;  %v3218_v25 = vsel %vm3174_vm5, %v3213_v63, %v3217_v58 }
 0x1f9   :  { %3400 = vmatprep.mubr.f32.mxu0 %v3200_v8  ;;  %v10516_v27 = vadd.f32 %v2181_v12, %v1890_v28  ;;  %3697 = vperm.xlu1 %7625, %v3588_v44   ;;  %v7688_v44 = vld [vmem:[%s12195_s0 + $0xb8] sm:$0xff] }
 0x1fa   :  { %v1805_v53 = vpop.f32.mrf.mxu0  ;;  %v2183_v37 = vpop.f32.mrf.mxu1  ;;  %v3202_v8 = vsel %vm3174_vm5, %v3197_v60, %v3201_v50  ;;  %v3211_v28 = vrot.slane %v7688_v44, 6  ;;  %6726 = vmatprep.subr.mxu1 %v10249_v15 }
 0x1fb   :  { %v1891_v30 = vadd.f32 %v1805_v53, %v9835_v49  ;;  %3702 = vperm.xlu0 %7624, %v3589_v34   ;;  %v3208_v49 = vsel %vm3174_vm5, %v3203_v29, %v3207_v62  ;;  %v7689_v29 = vld [vmem:[%s12195_s0 + $0xb0] sm:$0xff] }
 0x1fc   :  { %3401 = vmatmul.mubr.f32.gmra.mxu0 %v3198_v38  ;;  %v1807_v23 = vpop.f32.mrf.mxu0  ;;  %v2186_v11 = vpop.f32.mrf.mxu1  ;;  %v3206_v38 = vsel %vm3174_vm5, %v3201_v50, %v3205_v14  ;;  %v3209_v5 = vrot.slane %v7689_v29, 6  ;;  %v3212_v20 = vsel %vm3174_vm5, %v3207_v62, %v3211_v28  ;;  %v6240_v50 = vld [vmem:[%s12197_s3 + $0xc0] sm:$0xff] }
 0x1fd   :  { %3405 = vmatprep.mubr.f32.mxu0 %v3204_v52  ;;  %v10528_v3 = vadd.f32 %v2186_v11, %v1891_v30  ;;  %6727 = vmatpush3.msra.mxu1 %v6240_v50 }
 0x1fe   :  { %v1810_v22 = vpop.f32.mrf.mxu0  ;;  %v2188_v60 = vpop.f32.mrf.mxu1  ;;  %v3210_v62 = vsel %vm3174_vm5, %v3205_v14, %v3209_v5  ;;  %6728 = vmatprep.subr.mxu1 %v10249_v15  ;;  %v3214_v14 = vsel %vm3174_vm5, %v3209_v5, %v3213_v63 }
 0x1ff   :  { %v1892_v56 = vadd.f32 %v1810_v22, %v9863_v9  ;;  %v7690_v9 = vld [vmem:[%s12195_s0 + $0xc8] sm:$0xff] }
 0x200   :  { %3406 = vmatmul.mubr.f32.gmra.mxu0 %v3202_v8  ;;  %v1812_v12 = vpop.f32.mrf.mxu0  ;;  %v2191_v34 = vpop.f32.mrf.mxu1  ;;  %v3215_v53 = vrot.slane %v7690_v9, 6  ;;  %v3221_v9 = vrot.slane %v10049_v19, 6  ;;  %v3225_v19 = vrot.slane %v10078_v54, 6 }
 0x201   :  { %3410 = vmatprep.mubr.f32.mxu0 %v3208_v49  ;;  %v10543_v52 = vadd.f32 %v2191_v34, %v1892_v56 }
 0x202   :  { %v1815_v37 = vpop.f32.mrf.mxu0  ;;  %v2193_v30 = vpop.f32.mrf.mxu1  ;;  %v3216_v49 = vsel %vm3174_vm5, %v3211_v28, %v3215_v53  ;;  %v6239_v28 = vld [vmem:[%s12197_s3 + $0xb8] sm:$0xff] }
 0x203   :  { %v1893_v23 = vadd.f32 %v1815_v37, %v9892_v16  ;;  %v3219_v16 = vrot.slane %v10005_v7, 6  ;;  %6729 = vmatpush3.msra.mxu1 %v6239_v28 }
 0x204   :  { %3411 = vmatmul.mubr.f32.gmra.mxu0 %v3206_v38  ;;  %v1817_v11 = vpop.f32.mrf.mxu0  ;;  %v2196_v8 = vpop.f32.mrf.mxu1  ;;  %v3223_v38 = vrot.slane %v10032_v33, 6  ;;  %6730 = vmatprep.subr.mxu1 %v10249_v15 }
 0x205   :  { %3415 = vmatprep.mubr.f32.mxu0 %v3212_v20  ;;  %v10555_v36 = vadd.f32 %v2196_v8, %v1893_v23  ;;  %v3220_v7 = vsel %vm3174_vm5, %v3215_v53, %v3219_v16  ;;  %v3227_v53 = vrot.slane %v10061_v24, 6  ;;  %v3222_v11 = vsel %vm3174_vm5, %v3217_v58, %v3221_v9 }
 0x206   :  { %v1820_v44 = vpop.f32.mrf.mxu0  ;;  %v2198_v22 = vpop.f32.mrf.mxu1  ;;  %v3224_v37 = vsel %vm3174_vm5, %v3219_v16, %v3223_v38 }
 0x207   :  { %v1894_v60 = vadd.f32 %v1820_v44, %v9921_v0  ;;  %v3228_v24 = vsel %vm3174_vm5, %v3223_v38, %v3227_v53  ;;  %v3226_v44 = vsel %vm3174_vm5, %v3221_v9, %v3225_v19  ;;  %v3229_v22 = vrot.slane %v10105_v41, 6  ;;  %v3792_v41 = vld [vmem:[%s12197_s3 + $0x70] sm:$0xff] }
 0x208   :  { %3416 = vmatmul.mubr.f32.gmra.mxu0 %v3210_v62  ;;  %v1822_v56 = vpop.f32.mrf.mxu0  ;;  %v2201_v12 = vpop.f32.mrf.mxu1  ;;  %v3231_v62 = vrot.slane %v10089_v39, 6  ;;  %v3793_v39 = vld [vmem:[%s12197_s3 + $0x78] sm:$0xff] }
 0x209   :  { %3420 = vmatprep.mubr.f32.mxu0 %v3216_v49  ;;  %v10563_v34 = vadd.f32 %v2201_v12, %v1894_v60  ;;  %v3235_v12 = vrot.slane %v10118_v42, 6  ;;  %6814 = vmatpush3.msra.mxu0 %v3793_v39  ;;  %v3230_v28 = vsel %vm3174_vm5, %v3225_v19, %v3229_v22 }
 0x20a   :  { %v1825_v29 = vpop.f32.mrf.mxu0  ;;  %v2203_v0 = vpop.f32.mrf.mxu1  ;;  %v3232_v56 = vsel %vm3174_vm5, %v3227_v53, %v3231_v62  ;;  %6815 = vmatprep.subr.mxu0 %v10249_v15 }
 0x20b   :  { %v1895_v20 = vadd.f32 %v1825_v29, %v9958_v21  ;;  %v6238_v21 = vld [vmem:[%s12197_s3 + $0xb0] sm:$0xff]  ;;  %6816 = vmatpush3.msra.mxu0 %v3792_v41  ;;  %v3236_v38 = vsel %vm3174_vm5, %v3231_v62, %v3235_v12  ;;  %v3239_v29 = vrot.slane %v10145_v10, 6 }
 0x20c   :  { %3421 = vmatmul.mubr.f32.gmra.mxu0 %v3214_v14  ;;  %v1827_v5 = vpop.f32.mrf.mxu0  ;;  %6731 = vmatpush3.msra.mxu1 %v6238_v21  ;;  %v3243_v21 = vrot.slane %v10174_v45, 6  ;;  %v3788_v45 = vld [vmem:[%s12197_s3 + $0x50] sm:$0xff] }
 0x20d   :  { %3425 = vmatprep.mubr.f32.mxu0 %v3220_v7  ;;  %v2206_v30 = vpop.f32.mrf.mxu1  ;;  %6732 = vmatprep.subr.mxu1 %v10249_v15  ;;  %v3233_v7 = vrot.slane %v10134_v1, 6  ;;  %v6236_v1 = vld [vmem:[%s12197_s3 + $0xa0] sm:$0xff] }
 0x20e   :  { %v10576_v33 = vadd.f32 %v2206_v30, %v1895_v20  ;;  %6817 = vmatprep.subr.mxu0 %v10249_v15  ;;  %v3240_v30 = vsel %vm3174_vm5, %v3235_v12, %v3239_v29 }
 0x20f   :  { %v2208_v50 = vpop.f32.mrf.mxu1  ;;  %v3234_v10 = vsel %vm3174_vm5, %v3229_v22, %v3233_v7  ;;  %v3787_v22 = vld [vmem:[%s12197_s3 + $0x48] sm:$0xff] }
 0x210   :  { %3426 = vmatmul.mubr.f32.gmra.mxu0 %v3218_v25  ;;  %v1830_v23 = vpop.f32.mrf.mxu0  ;;  %v3790_v25 = vld [vmem:[%s12197_s3 + $0x60] sm:$0xff] }
 0x211   :  { %3430 = vmatprep.mubr.f32.mxu0 %v3224_v37  ;;  %v1896_v8 = vadd.f32 %v1830_v23, %v9998_v46  ;;  %v6237_v46 = vld [vmem:[%s12197_s3 + $0xa8] sm:$0xff]  ;;  %v3237_v37 = vrot.slane %v10162_v2, 6  ;;  %v6235_v2 = vld [vmem:[%s12197_s3 + $0x98] sm:$0xff] }
 0x212   :  { %v1832_v63 = vpop.f32.mrf.mxu0  ;;  %6733 = vmatpush3.msra.mxu1 %v6237_v46 }
 0x213   :  { %v2211_v49 = vpop.f32.mrf.mxu1  ;;  %6734 = vmatprep.subr.mxu1 %v10249_v15  ;;  %v3244_v63 = vsel %vm3174_vm5, %v3239_v29, %v3243_v21  ;;  %v3255_v29 = vrot.slane %v10260_v26, 6 }
 0x214   :  { %3431 = vmatmul.mubr.f32.gmra.mxu0 %v3222_v11  ;;  %v10587_v16 = vadd.f32 %v2211_v49, %v1896_v8  ;;  %6735 = vmatpush3.msra.mxu1 %v6236_v1  ;;  %v3238_v8 = vsel %vm3174_vm5, %v3233_v7, %v3237_v37  ;;  %v3247_v49 = vrot.slane %v10202_v31, 6 }
 0x215   :  { %3435 = vmatprep.mubr.f32.mxu0 %v3228_v24  ;;  %v1835_v60 = vpop.f32.mrf.mxu0  ;;  %v2213_v54 = vpop.f32.mrf.mxu1  ;;  %6736 = vmatprep.subr.mxu1 %v10249_v15  ;;  %v3241_v24 = vrot.slane %v10191_v47, 6 }
 0x216   :  { %v1897_v14 = vadd.f32 %v1835_v60, %v10040_v40  ;;  %v3791_v40 = vld [vmem:[%s12197_s3 + $0x68] sm:$0xff]  ;;  %6737 = vmatpush3.msra.mxu1 %v6235_v2  ;;  %v3245_v54 = vrot.slane %v10218_v4, 6  ;;  %v3248_v12 = vsel %vm3174_vm5, %v3243_v21, %v3247_v49  ;;  %v3785_v4 = vld [vmem:[%s12197_s3 + $0x38] sm:$0xff] }
 0x217   :  { %v1837_v58 = vpop.f32.mrf.mxu0  ;;  %6818 = vmatpush3.msra.mxu0 %v3791_v40  ;;  %6738 = vmatprep.subr.mxu1 %v10249_v15  ;;  %v3242_v31 = vsel %vm3174_vm5, %v3237_v37, %v3241_v24  ;;  %v12213_v37 = vld [vmem:[#allocation7_spill] sm:$0xff] }
 0x218   :  { %3436 = vmatmul.mubr.f32.gmra.mxu0 %v3226_v44  ;;  %v2216_v42 = vpop.f32.mrf.mxu1  ;;  %6819 = vmatprep.subr.mxu0 %v10249_v15 }
 0x219   :  { %3440 = vmatprep.mubr.f32.mxu0 %v3232_v56  ;;  %v10612_v0 = vadd.f32 %v2216_v42, %v1897_v14  ;;  %6820 = vmatpush3.msra.mxu0 %v3790_v25  ;;  %v6234_v56 = vld [vmem:[%s12197_s3 + $0x90] sm:$0xff]  ;;  %v3251_v14 = vrot.slane %v10229_v48, 6  ;;  %v12212_v25 = vld [vmem:[#allocation3_spill] sm:$0xff] }
 0x21a   :  { %v1840_v20 = vpop.f32.mrf.mxu0  ;;  %v2218_v5 = vpop.f32.mrf.mxu1  ;;  %6821 = vmatprep.subr.mxu0 %v10249_v15  ;;  %6739 = vmatpush3.msra.mxu1 %v6234_v56  ;;  %v3784_v48 = vld [vmem:[%s12197_s3 + $0x30] sm:$0xff] }
 0x21b   :  { %v1898_v9 = vadd.f32 %v1840_v20, %v10071_v57  ;;  %v3789_v57 = vld [vmem:[%s12197_s3 + $0x58] sm:$0xff]  ;;  %6740 = vmatprep.subr.mxu1 %v10249_v15  ;;  %v3252_v40 = vsel %vm3174_vm5, %v3247_v49, %v3251_v14  ;;  %v3783_v20 = vld [vmem:[%s12197_s3 + $0x28] sm:$0xff]  ;;  %v3256_v21 = vsel %vm3174_vm5, %v3251_v14, %v3255_v29  ;;  %v12215_v49 = vld [vmem:[#allocation4_spill] sm:$0xff] }
 0x21c   :  { %3441 = vmatmul.mubr.f32.gmra.mxu0 %v3230_v28  ;;  %v1842_v53 = vpop.f32.mrf.mxu0  ;;  %v12211_v28 = vld [vmem:[#allocation5_spill] sm:$0xff] }
 0x21d   :  { %3445 = vmatprep.mubr.f32.mxu0 %v3236_v38  ;;  %v2221_v23 = vpop.f32.mrf.mxu1  ;;  %6822 = vmatpush3.msra.mxu0 %v3789_v57  ;;  %v3249_v7 = vrot.slane %v12211_v28, 6  ;;  %v3253_v53 = vrot.slane %v12213_v37, 6  ;;  %v12214_v57 = vld [vmem:[#allocation8_spill] sm:$0xff]  ;;  %v3778_v28 = vld [vmem:[%s12197_s3] sm:$0xff]  ;;  %v6263_v37 = vld [vmem:[%s12197_s3 + $0x178] sm:$0xff] }
 0x21e   :  { %v10631_v50 = vadd.f32 %v2221_v23, %v1898_v9  ;;  %6823 = vmatprep.subr.mxu0 %v10249_v15  ;;  %v3259_v2 = vrot.slane %v12214_v57, 6 }
 0x21f   :  { %v2223_v19 = vpop.f32.mrf.mxu1  ;;  %6824 = vmatpush3.msra.mxu0 %v3788_v45  ;;  %v3250_v26 = vsel %vm3174_vm5, %v3245_v54, %v3249_v7  ;;  %v6233_v45 = vld [vmem:[%s12197_s3 + $0x88] sm:$0xff] }
 0x220   :  { %3446 = vmatmul.mubr.f32.gmra.mxu0 %v3234_v10  ;;  %v1845_v11 = vpop.f32.mrf.mxu0  ;;  %6825 = vmatprep.subr.mxu0 %v10249_v15  ;;  %v3782_v10 = vld [vmem:[%s12197_s3 + $0x20] sm:$0xff]  ;;  %v3136_v19 = vld [vmem:[%s12195_s0 + $0x188] sm:$0xff] }
 0x221   :  { %3450 = vmatprep.mubr.f32.mxu0 %v3240_v30  ;;  %v1899_v62 = vadd.f32 %v1845_v11, %v10111_v61  ;;  %v3786_v61 = vld [vmem:[%s12197_s3 + $0x40] sm:$0xff]  ;;  %6826 = vmatpush3.msra.mxu0 %v3787_v22  ;;  %v3257_v22 = vrot.slane %v10304_v55, 6  ;;  %v3780_v55 = vld [vmem:[%s12197_s3 + $0x10] sm:$0xff] }
 0x222   :  { %v1847_v44 = vpop.f32.mrf.mxu0  ;;  %6827 = vmatprep.subr.mxu0 %v10249_v15  ;;  %6741 = vmatpush3.msra.mxu1 %v6233_v45 }
 0x223   :  { %v2226_v60 = vpop.f32.mrf.mxu1  ;;  %6828 = vmatpush3.msra.mxu0 %v3786_v61  ;;  %v3260_v61 = vsel %vm3174_vm5, %v3255_v29, %v3259_v2  ;;  %6742 = vmatprep.subr.mxu1 %v10249_v15  ;;  %v3258_v14 = vsel %vm3174_vm5, %v3253_v53, %v3257_v22 }
 0x224   :  { %3451 = vmatmul.mubr.f32.gmra.mxu0 %v3238_v8  ;;  %v10650_v47 = vadd.f32 %v2226_v60, %v1899_v62  ;;  %6829 = vmatprep.subr.mxu0 %v10249_v15  ;;  %v3781_v8 = vld [vmem:[%s12197_s3 + $0x18] sm:$0xff]  ;;  %v6232_v60 = vld [vmem:[%s12197_s3 + $0x80] sm:$0xff] }
 0x225   :  { %3455 = vmatprep.mubr.f32.mxu0 %v3244_v63  ;;  %v1850_v46 = vpop.f32.mrf.mxu0  ;;  %v2228_v39 = vpop.f32.mrf.mxu1  ;;  %6830 = vmatpush3.msra.mxu0 %v3785_v4  ;;  %v3254_v63 = vsel %vm3174_vm5, %v3249_v7, %v3253_v53  ;;  %v12216_v7 = vld [vmem:[#allocation6_spill] sm:$0xff] }
 0x226   :  { %v1900_v58 = vadd.f32 %v1850_v46, %v10153_v32  ;;  %v3246_v32 = vsel %vm3174_vm5, %v3241_v24, %v3245_v54  ;;  %6831 = vmatprep.subr.mxu0 %v10249_v15  ;;  %v3263_v54 = vrot.slane %v3136_v19, 6  ;;  %v3135_v46 = vld [vmem:[%s12195_s0 + $0x180] sm:$0xff]  ;;  %6743 = vmatpush3.msra.mxu1 %v6232_v60 }
 0x227   :  { %v1852_v41 = vpop.f32.mrf.mxu0  ;;  %6832 = vmatpush3.msra.mxu0 %v3784_v48  ;;  %v3794_v39 = vld [vmem:[#allocation2 + $0x1] sm:$0xff]  ;;  %v3261_v4 = vrot.slane %v3135_v46, 6  ;;  %6914 = vmatprep.subr.mxu1 %v10249_v15 }
 0x228   :  { %3456 = vmatmul.mubr.f32.gmra.mxu0 %v3242_v31  ;;  %v2231_v42 = vpop.f32.mrf.mxu1  ;;  %6833 = vmatprep.subr.mxu0 %v10249_v15  ;;  %v3264_v41 = vsel %vm3174_vm5, %v3259_v2, %v3263_v54 }
 0x229   :  { %3460 = vmatprep.mubr.f32.mxu0 %v3248_v12  ;;  %v10676_v38 = vadd.f32 %v2231_v42, %v1900_v58  ;;  %6834 = vmatpush3.msra.mxu0 %v3783_v20  ;;  %v3779_v12 = vld [vmem:[%s12197_s3 + $0x8] sm:$0xff]  ;;  %v3262_v29 = vsel %vm3174_vm5, %v3257_v22, %v3261_v4 }
 0x22a   :  { %v1855_v5 = vpop.f32.mrf.mxu0  ;;  %v2233_v1 = vpop.f32.mrf.mxu1  ;;  %6835 = vmatprep.subr.mxu0 %v10249_v15  ;;  %6745 = vmatmul.mubr.f32.vlgmr.msra.gmra.mxu1 %v3794_v39 }
 0x22b   :  { %v1901_v9 = vadd.f32 %v1855_v5, %v12212_v25  ;;  %6836 = vmatpush3.msra.mxu0 %v3782_v10  ;;  %6747 = vmatprep.mubr.msk.f32.mxu1 %vm7697_vm6, %v10249_v15 }
 0x22c   :  { %3461 = vmatmul.mubr.f32.gmra.mxu0 %v3246_v32  ;;  %v1857_v30 = vpop.f32.mrf.mxu0  ;;  %6837 = vmatprep.subr.mxu0 %v10249_v15 }
 0x22d   :  { %3465 = vmatprep.mubr.f32.mxu0 %v3252_v40  ;;  %6838 = vmatpush3.msra.mxu0 %v3781_v8  ;;  %v6262_v8 = vld [vmem:[%s12197_s3 + $0x170] sm:$0xff] }
 0x22e   :  { %v2236_v23 = vpop.f32.mrf.mxu1  ;;  %6839 = vmatprep.subr.mxu0 %v10249_v15  ;;  %6915 = vmatpush3.msra.mxu1 %v6263_v37 }
 0x22f   :  { %v10693_v11 = vadd.f32 %v2236_v23, %v1901_v9  ;;  %6840 = vmatpush3.msra.mxu0 %v3780_v55  ;;  %v12217_v9 = vld [vmem:[#allocation9_spill] sm:$0xff] }
 0x230   :  { %3466 = vmatmul.mubr.f32.gmra.mxu0 %v3250_v26  ;;  %v1860_v24 = vpop.f32.mrf.mxu0  ;;  %v2238_v62 = vpop.f32.mrf.mxu1  ;;  %6841 = vmatprep.subr.mxu0 %v10249_v15 }
 0x231   :  { %3470 = vmatprep.mubr.f32.mxu0 %v3256_v21  ;;  %v1902_v44 = vadd.f32 %v1860_v24, %v12215_v49  ;;  %6842 = vmatpush3.msra.mxu0 %v3779_v12  ;;  %v10748_v21 = vld [vmem:[#allocation2] sm:$0xff] }
 0x232   :  { %v1862_v31 = vpop.f32.mrf.mxu0  ;;  %6843 = vmatprep.subr.mxu0 %v10249_v15  ;;  %6916 = vmatprep.subr.mxu1 %v10748_v21  ;;  %v6260_v12 = vld [vmem:[%s12197_s3 + $0x160] sm:$0xff] }
 0x233   :  { %v2241_v56 = vpop.f32.mrf.mxu1  ;;  %6844 = vmatpush3.msra.mxu0 %v3778_v28  ;;  %6917 = vmatpush3.msra.mxu1 %v6262_v8  ;;  %v6259_v28 = vld [vmem:[%s12197_s3 + $0x158] sm:$0xff] }
 0x234   :  { %3471 = vmatmul.mubr.f32.gmra.mxu0 %v3254_v63  ;;  %v10726_v58 = vadd.f32 %v2241_v56, %v1902_v44  ;;  %7015 = vmatprep.subr.mxu0 %v10249_v15  ;;  %v6261_v44 = vld [vmem:[%s12197_s3 + $0x168] sm:$0xff] }
 0x235   :  { %3475 = vmatprep.mubr.f32.mxu0 %v3260_v61  ;;  %v1865_v48 = vpop.f32.mrf.mxu0  ;;  %v2243_v32 = vpop.f32.mrf.mxu1  ;;  %6918 = vmatprep.subr.mxu1 %v10748_v21 }
 0x236   :  { %v1903_v42 = vadd.f32 %v1865_v48, %v12216_v7  ;;  %6919 = vmatpush3.msra.mxu1 %v6261_v44 }
 0x237   :  { %v1867_v40 = vpop.f32.mrf.mxu0  ;;  %6920 = vmatprep.subr.mxu1 %v10748_v21 }
 0x238   :  { %3476 = vmatmul.mubr.f32.gmra.mxu0 %v3258_v14  ;;  %v2246_v20 = vpop.f32.mrf.mxu1  ;;  %6921 = vmatpush3.msra.mxu1 %v6260_v12 }
 0x239   :  { %3480 = vmatprep.mubr.f32.mxu0 %v3264_v41  ;;  %v10737_v5 = vadd.f32 %v2246_v20, %v1903_v42  ;;  %6922 = vmatprep.subr.mxu1 %v10748_v21 }
 0x23a   :  { %v2248_v25 = vpop.f32.mrf.mxu1  ;;  %6923 = vmatpush3.msra.mxu1 %v6259_v28 }
 0x23b   :  { %v1870_v1 = vpop.f32.mrf.mxu0  ;;  %6924 = vmatprep.subr.mxu1 %v10748_v21 }
 0x23c   :  { %3481 = vmatmul.mubr.f32.gmra.mxu0 %v3262_v29  ;;  %v1904_v10 = vadd.f32 %v1870_v1, %v12217_v9  ;;  %v6258_v1 = vld [vmem:[%s12197_s3 + $0x150] sm:$0xff] }
 0x23d   :  { %3485 = vmatprep.mubr.f32.mxu0 %v3263_v54  ;;  %v1872_v26 = vpop.f32.mrf.mxu0  ;;  %6925 = vmatpush3.msra.mxu1 %v6258_v1 }
 0x23e   :  { %v2251_v53 = vpop.f32.mrf.mxu1  ;;  %6926 = vmatprep.subr.mxu1 %v10748_v21 }
 0x23f   :  { %v10746_v30 = vadd.f32 %v2251_v53, %v1904_v10 }
 0x240   :  { %3486 = vmatmul.mubr.f32.gmra.mxu0 %v3261_v4  ;;  %v1875_v15 = vpop.f32.mrf.mxu0  ;;  %v2253_v23 = vpop.f32.mrf.mxu1 }
 0x241   :  { %v1905_v57 = vadd.f32 %v1875_v15, %v10343_v13  ;;  %6845 = vmatprep.mubr.msk.f32.mxu0 %vm7697_vm6, %v10748_v21 }
 0x242   :  { %v1877_v2 = vpop.f32.mrf.mxu0 }
 0x243   :  { %v2256_v19 = vpop.f32.mrf.mxu1 }
 0x244   :  { %6846 = vmatmul.mubr.f32.vlgmr.msra.gmra.mxu0 %v10748_v21  ;;  %v10755_v45 = vadd.f32 %v2256_v19, %v1905_v57  ;;  %v6257_v19 = vld [vmem:[%s12197_s3 + $0x148] sm:$0xff] }
 0x245   :  { %6848 = vmatprep.mubr.msk.f32.mxu0 %vm7697_vm6, %v10748_v21  ;;  %v1880_v24 = vpop.f32.mrf.mxu0  ;;  %v2258_v62 = vpop.f32.mrf.mxu1  ;;  %6927 = vmatpush3.msra.mxu1 %v6257_v19 }
 0x246   :  { %v1906_v13 = vadd.f32 %v1880_v24, %v10368_v51  ;;  %6928 = vmatprep.subr.mxu1 %v10748_v21 }
 0x247   :  { %v1882_v63 = vpop.f32.mrf.mxu0 }
 0x248   :  { %v2261_v49 = vpop.f32.mrf.mxu1 }
 0x249   :  { %v10767_v22 = vadd.f32 %v2261_v49, %v1906_v13  ;;  %v6256_v49 = vld [vmem:[%s12197_s3 + $0x140] sm:$0xff] }
 0x24a   :  { %v2263_v60 = vpop.f32.mrf.mxu1  ;;  %6929 = vmatpush3.msra.mxu1 %v6256_v49  ;;  %v6252_v49 = vld [vmem:[%s12197_s3 + $0x120] sm:$0xff] }
 0x24b   :  { %v2615_v61 = vpop.f32.mrf.mxu0  ;;  %6930 = vmatprep.subr.mxu1 %v10748_v21 }
 0x24c   :  { %v2729_v31 = vadd.f32 %v2615_v61, %v10394_v18 }
 0x24d   :  { %v2617_v54 = vpop.f32.mrf.mxu0 }
 0x24e   :  { %v2996_v46 = vpop.f32.mrf.mxu1 }
 0x24f   :  { %v10771_v51 = vadd.f32 %v2996_v46, %v2729_v31  ;;  %v2620_v55 = vpop.f32.mrf.mxu0 }
 0x250   :  { %v2998_v39 = vpop.f32.mrf.mxu1  ;;  %v2730_v56 = vadd.f32 %v2620_v55, %v10415_v35 }
 0x251   :  { %v2622_v14 = vpop.f32.mrf.mxu0 }
 0x252   :  { %v3001_v4 = vpop.f32.mrf.mxu1  ;;  %v6255_v14 = vld [vmem:[%s12197_s3 + $0x138] sm:$0xff] }
 0x253   :  { %v10777_v41 = vadd.f32 %v3001_v4, %v2730_v56  ;;  %v2625_v18 = vpop.f32.mrf.mxu0  ;;  %6931 = vmatpush3.msra.mxu1 %v6255_v14 }
 0x254   :  { %v3003_v48 = vpop.f32.mrf.mxu1  ;;  %v2731_v32 = vadd.f32 %v2625_v18, %v10436_v6  ;;  %6932 = vmatprep.subr.mxu1 %v10748_v21 }
 0x255   :  { %v2627_v35 = vpop.f32.mrf.mxu0 }
 0x256   :  { %v3006_v7 = vpop.f32.mrf.mxu1  ;;  %v6254_v35 = vld [vmem:[%s12197_s3 + $0x130] sm:$0xff] }
 0x257   :  { %v10784_v42 = vadd.f32 %v3006_v7, %v2731_v32  ;;  %6933 = vmatpush3.msra.mxu1 %v6254_v35 }
 0x258   :  { %v2630_v40 = vpop.f32.mrf.mxu0  ;;  %v3008_v29 = vpop.f32.mrf.mxu1  ;;  %6934 = vmatprep.subr.mxu1 %v10748_v21 }
 0x259   :  { %v2732_v20 = vadd.f32 %v2630_v40, %v10454_v43 }
 0x25a   :  { %v2632_v6 = vpop.f32.mrf.mxu0  ;;  %v3011_v25 = vpop.f32.mrf.mxu1 }
 0x25b   :  { %v10791_v9 = vadd.f32 %v3011_v25, %v2732_v20  ;;  %v6277_v25 = vld [vmem:[%s12197_s3 + $0x1e8] sm:$0xff] }
 0x25c   :  { %v2635_v10 = vpop.f32.mrf.mxu0  ;;  %v3013_v26 = vpop.f32.mrf.mxu1 }
 0x25d   :  { %v2733_v37 = vadd.f32 %v2635_v10, %v10475_v59 }
 0x25e   :  { %v2637_v53 = vpop.f32.mrf.mxu0  ;;  %v3016_v15 = vpop.f32.mrf.mxu1 }
 0x25f   :  { %v10795_v23 = vadd.f32 %v3016_v15, %v2733_v37  ;;  %v6276_v53 = vld [vmem:[%s12197_s3 + $0x1e0] sm:$0xff] }
 0x260   :  { %v2640_v43 = vpop.f32.mrf.mxu0  ;;  %v3018_v57 = vpop.f32.mrf.mxu1 }
 0x261   :  { %v2734_v2 = vadd.f32 %v2640_v43, %v10496_v17  ;;  %v6253_v57 = vld [vmem:[%s12197_s3 + $0x128] sm:$0xff] }
 0x262   :  { %v2642_v8 = vpop.f32.mrf.mxu0  ;;  %v3021_v24 = vpop.f32.mrf.mxu1  ;;  %6935 = vmatpush3.msra.mxu1 %v6253_v57  ;;  %v6248_v57 = vld [vmem:[%s12197_s3 + $0x100] sm:$0xff] }
 0x263   :  { %v10801_v62 = vadd.f32 %v3021_v24, %v2734_v2  ;;  %v6275_v2 = vld [vmem:[%s12197_s3 + $0x1d8] sm:$0xff]  ;;  %6936 = vmatprep.subr.mxu1 %v10748_v21 }
 0x264   :  { %v2645_v59 = vpop.f32.mrf.mxu0  ;;  %v3023_v13 = vpop.f32.mrf.mxu1  ;;  %6937 = vmatpush3.msra.mxu1 %v6252_v49 }
 0x265   :  { %v2735_v63 = vadd.f32 %v2645_v59, %v10516_v27  ;;  %6938 = vmatprep.subr.mxu1 %v10748_v21 }
 0x266   :  { %v2647_v17 = vpop.f32.mrf.mxu0  ;;  %v3026_v44 = vpop.f32.mrf.mxu1 }
 0x267   :  { %v10808_v60 = vadd.f32 %v3026_v44, %v2735_v63  ;;  %v6273_v17 = vld [vmem:[%s12197_s3 + $0x1c8] sm:$0xff] }
 0x268   :  { %v2650_v61 = vpop.f32.mrf.mxu0  ;;  %v3028_v31 = vpop.f32.mrf.mxu1 }
 0x269   :  { %v2736_v54 = vadd.f32 %v2650_v61, %v10528_v3 }
 0x26a   :  { %v2652_v46 = vpop.f32.mrf.mxu0  ;;  %v3031_v55 = vpop.f32.mrf.mxu1 }
 0x26b   :  { %v10812_v39 = vadd.f32 %v3031_v55, %v2736_v54 }
 0x26c   :  { %v2655_v27 = vpop.f32.mrf.mxu0  ;;  %v3033_v56 = vpop.f32.mrf.mxu1 }
 0x26d   :  { %v2737_v12 = vadd.f32 %v2655_v27, %v10543_v52  ;;  %v6279_v52 = vld [vmem:[%s12197_s3 + $0x1f8] sm:$0xff] }
 0x26e   :  { %v2657_v4 = vpop.f32.mrf.mxu0  ;;  %v3036_v18 = vpop.f32.mrf.mxu1  ;;  %7016 = vmatpush3.msra.mxu0 %v6279_v52  ;;  %v6251_v27 = vld [vmem:[%s12197_s3 + $0x118] sm:$0xff] }
 0x26f   :  { %v10818_v48 = vadd.f32 %v3036_v18, %v2737_v12  ;;  %7017 = vmatprep.subr.mxu0 %v10748_v21  ;;  %v6271_v56 = vld [vmem:[%s12197_s3 + $0x1b8] sm:$0xff]  ;;  %6939 = vmatpush3.msra.mxu1 %v6251_v27 }
 0x270   :  { %v2660_v3 = vpop.f32.mrf.mxu0  ;;  %v3038_v32 = vpop.f32.mrf.mxu1  ;;  %6940 = vmatprep.subr.mxu1 %v10748_v21 }
 0x271   :  { %v2738_v28 = vadd.f32 %v2660_v3, %v10555_v36  ;;  %v6278_v36 = vld [vmem:[%s12197_s3 + $0x1f0] sm:$0xff] }
 0x272   :  { %v2662_v7 = vpop.f32.mrf.mxu0  ;;  %v3041_v40 = vpop.f32.mrf.mxu1  ;;  %7018 = vmatpush3.msra.mxu0 %v6278_v36 }
 0x273   :  { %v10828_v29 = vadd.f32 %v3041_v40, %v2738_v28  ;;  %7019 = vmatprep.subr.mxu0 %v10748_v21  ;;  %v6269_v28 = vld [vmem:[%s12197_s3 + $0x1a8] sm:$0xff]  ;;  %v6268_v40 = vld [vmem:[%s12197_s3 + $0x1a0] sm:$0xff] }
 0x274   :  { %v2665_v20 = vpop.f32.mrf.mxu0  ;;  %v3043_v1 = vpop.f32.mrf.mxu1  ;;  %7020 = vmatpush3.msra.mxu0 %v6277_v25  ;;  %v6267_v25 = vld [vmem:[%s12197_s3 + $0x198] sm:$0xff] }
 0x275   :  { %v2739_v6 = vadd.f32 %v2665_v20, %v10563_v34  ;;  %7021 = vmatprep.subr.mxu0 %v10748_v21  ;;  %v6250_v1 = vld [vmem:[%s12197_s3 + $0x110] sm:$0xff] }
 0x276   :  { %v2667_v10 = vpop.f32.mrf.mxu0  ;;  %v3046_v26 = vpop.f32.mrf.mxu1  ;;  %7022 = vmatpush3.msra.mxu0 %v6276_v53  ;;  %6941 = vmatpush3.msra.mxu1 %v6250_v1 }
 0x277   :  { %v10840_v37 = vadd.f32 %v3046_v26, %v2739_v6  ;;  %7023 = vmatprep.subr.mxu0 %v10748_v21  ;;  %v6249_v6 = vld [vmem:[%s12197_s3 + $0x108] sm:$0xff]  ;;  %6942 = vmatprep.subr.mxu1 %v10748_v21 }
 0x278   :  { %v2670_v15 = vpop.f32.mrf.mxu0  ;;  %v3048_v43 = vpop.f32.mrf.mxu1  ;;  %7024 = vmatpush3.msra.mxu0 %v6275_v2  ;;  %6943 = vmatpush3.msra.mxu1 %v6249_v6  ;;  %v6265_v2 = vld [vmem:[%s12197_s3 + $0x188] sm:$0xff] }
 0x279   :  { %v2740_v34 = vadd.f32 %v2670_v15, %v10576_v33  ;;  %7025 = vmatprep.subr.mxu0 %v10748_v21  ;;  %v6274_v33 = vld [vmem:[%s12197_s3 + $0x1d0] sm:$0xff]  ;;  %6944 = vmatprep.subr.mxu1 %v10748_v21 }
 0x27a   :  { %v2672_v19 = vpop.f32.mrf.mxu0  ;;  %v3051_v8 = vpop.f32.mrf.mxu1  ;;  %7026 = vmatpush3.msra.mxu0 %v6274_v33  ;;  %6945 = vmatpush3.msra.mxu1 %v6248_v57 }
 0x27b   :  { %v10854_v24 = vadd.f32 %v3051_v8, %v2740_v34  ;;  %7027 = vmatprep.subr.mxu0 %v10748_v21  ;;  %7116 = vmatprep.subr.mxu1 %v10748_v21 }
 0x27c   :  { %v2675_v59 = vpop.f32.mrf.mxu0  ;;  %v3053_v13 = vpop.f32.mrf.mxu1  ;;  %7028 = vmatpush3.msra.mxu0 %v6273_v17 }
 0x27d   :  { %v2741_v63 = vadd.f32 %v2675_v59, %v10587_v16  ;;  %7029 = vmatprep.subr.mxu0 %v10748_v21  ;;  %v6272_v16 = vld [vmem:[%s12197_s3 + $0x1c0] sm:$0xff] }
 0x27e   :  { %v2677_v44 = vpop.f32.mrf.mxu0  ;;  %v3056_v61 = vpop.f32.mrf.mxu1  ;;  %7030 = vmatpush3.msra.mxu0 %v6272_v16 }
 0x27f   :  { %v10869_v31 = vadd.f32 %v3056_v61, %v2741_v63  ;;  %7031 = vmatprep.subr.mxu0 %v10748_v21 }
 0x280   :  { %v2680_v54 = vpop.f32.mrf.mxu0  ;;  %v3058_v46 = vpop.f32.mrf.mxu1  ;;  %7032 = vmatpush3.msra.mxu0 %v6271_v56 }
 0x281   :  { %v2742_v55 = vadd.f32 %v2680_v54, %v10612_v0  ;;  %7033 = vmatprep.subr.mxu0 %v10748_v21  ;;  %v6270_v0 = vld [vmem:[%s12197_s3 + $0x1b0] sm:$0xff] }
 0x282   :  { %v2682_v12 = vpop.f32.mrf.mxu0  ;;  %v3061_v14 = vpop.f32.mrf.mxu1  ;;  %7034 = vmatpush3.msra.mxu0 %v6270_v0 }
 0x283   :  { %v10884_v4 = vadd.f32 %v3061_v14, %v2742_v55  ;;  %7035 = vmatprep.subr.mxu0 %v10748_v21 }
 0x284   :  { %v2685_v18 = vpop.f32.mrf.mxu0  ;;  %v3063_v3 = vpop.f32.mrf.mxu1  ;;  %7036 = vmatpush3.msra.mxu0 %v6269_v28 }
 0x285   :  { %v2743_v32 = vadd.f32 %v2685_v18, %v10631_v50  ;;  %7037 = vmatprep.subr.mxu0 %v10748_v21 }
 0x286   :  { %v2687_v35 = vpop.f32.mrf.mxu0  ;;  %v3066_v52 = vpop.f32.mrf.mxu1  ;;  %7038 = vmatpush3.msra.mxu0 %v6268_v40 }
 0x287   :  { %v10896_v7 = vadd.f32 %v3066_v52, %v2743_v32  ;;  %7039 = vmatprep.subr.mxu0 %v10748_v21 }
 0x288   :  { %v2690_v36 = vpop.f32.mrf.mxu0  ;;  %v3068_v20 = vpop.f32.mrf.mxu1  ;;  %7040 = vmatpush3.msra.mxu0 %v6267_v25 }
 0x289   :  { %v2744_v50 = vadd.f32 %v2690_v36, %v10650_v47  ;;  %v6266_v47 = vld [vmem:[%s12197_s3 + $0x190] sm:$0xff]  ;;  %7041 = vmatprep.subr.mxu0 %v10748_v21 }
 0x28a   :  { %v2692_v10 = vpop.f32.mrf.mxu0  ;;  %v3071_v26 = vpop.f32.mrf.mxu1  ;;  %7042 = vmatpush3.msra.mxu0 %v6266_v47 }
 0x28b   :  { %v10916_v53 = vadd.f32 %v3071_v26, %v2744_v50  ;;  %7043 = vmatprep.subr.mxu0 %v10748_v21 }
 0x28c   :  { %v2695_v15 = vpop.f32.mrf.mxu0  ;;  %v3073_v43 = vpop.f32.mrf.mxu1  ;;  %7044 = vmatpush3.msra.mxu0 %v6265_v2 }
 0x28d   :  { %v2745_v34 = vadd.f32 %v2695_v15, %v10676_v38  ;;  %v6264_v38 = vld [vmem:[%s12197_s3 + $0x180] sm:$0xff]  ;;  %7045 = vmatprep.subr.mxu0 %v10748_v21 }
 0x28e   :  { %v2697_v19 = vpop.f32.mrf.mxu0  ;;  %v3076_v8 = vpop.f32.mrf.mxu1  ;;  %7046 = vmatpush3.msra.mxu0 %v6264_v38  ;;  %v10958_v43 = vld [vmem:[%s12198_s4] ss:$0 sm:$0xff] }
 0x28f   :  { %v10932_v33 = vadd.f32 %v3076_v8, %v2745_v34  ;;  %7217 = vmatprep.subr.mxu0 %v10748_v21  ;;  %v3593_v19 = vpop.permute.xlu0 %3592 }
 0x290   :  { %v2700_v59 = vpop.f32.mrf.mxu0  ;;  %v3078_v13 = vpop.f32.mrf.mxu1 }
 0x291   :  { %v2746_v63 = vadd.f32 %v2700_v59, %v10693_v11 }
 0x292   :  { %v2702_v49 = vpop.f32.mrf.mxu0  ;;  %v3081_v17 = vpop.f32.mrf.mxu1 }
 0x293   :  { %v10938_v44 = vadd.f32 %v3081_v17, %v2746_v63 }
 0x294   :  { %v2705_v61 = vpop.f32.mrf.mxu0  ;;  %v3083_v16 = vpop.f32.mrf.mxu1 }
 0x295   :  { %v2747_v54 = vadd.f32 %v2705_v61, %v10726_v58  ;;  %v3598_v16 = vpop.permute.xlu0 %3597 }
 0x296   :  { %v2707_v46 = vpop.f32.mrf.mxu0  ;;  %v3086_v55 = vpop.f32.mrf.mxu1 }
 0x297   :  { %v10941_v27 = vadd.f32 %v3086_v55, %v2747_v54  ;;  %v3603_v55 = vpop.permute.xlu1 %3602 }
 0x298   :  { %v2710_v56 = vpop.f32.mrf.mxu0  ;;  %v3088_v12 = vpop.f32.mrf.mxu1 }
 0x299   :  { %v2748_v14 = vadd.f32 %v2710_v56, %v10737_v5 }
 0x29a   :  { %v2712_v0 = vpop.f32.mrf.mxu0  ;;  %v3091_v11 = vpop.f32.mrf.mxu1 }
 0x29b   :  { %v10944_v18 = vadd.f32 %v3091_v11, %v2748_v14 }
 0x29c   :  { %v2715_v3 = vpop.f32.mrf.mxu0  ;;  %v3093_v32 = vpop.f32.mrf.mxu1 }
 0x29d   :  { %v2749_v28 = vadd.f32 %v2715_v3, %v10746_v30 }
 0x29e   :  { %v2717_v35 = vpop.f32.mrf.mxu0  ;;  %v3096_v52 = vpop.f32.mrf.mxu1 }
 0x29f   :  { %v10947_v40 = vadd.f32 %v3096_v52, %v2749_v28  ;;  %v3608_v52 = vpop.permute.xlu1 %3607 }
 0x2a0   :  { %v2720_v58 = vpop.f32.mrf.mxu0  ;;  %v3098_v36 = vpop.f32.mrf.mxu1 }
 0x2a1   :  { %v2750_v20 = vadd.f32 %v2720_v58, %v10755_v45 }
 0x2a2   :  { %v2722_v50 = vpop.f32.mrf.mxu0  ;;  %v3101_v1 = vpop.f32.mrf.mxu1 }
 0x2a3   :  { %v10950_v6 = vadd.f32 %v3101_v1, %v2750_v20 }
 0x2a4   :  { %v2725_v5 = vpop.f32.mrf.mxu0  ;;  %v3103_v25 = vpop.f32.mrf.mxu1 }
 0x2a5   :  { %v2751_v10 = vadd.f32 %v2725_v5, %v10767_v22  ;;  %v3613_v25 = vpop.permute.xlu0 %3612 }
 0x2a6   :  { %v2727_v26 = vpop.f32.mrf.mxu0  ;;  %v3106_v47 = vpop.f32.mrf.mxu1 }
 0x2a7   :  { %v10953_v15 = vadd.f32 %v3106_v47, %v2751_v10 }
 0x2a8   :  { %v3377_v30 = vpop.f32.mrf.mxu0  ;;  %v3108_v34 = vpop.f32.mrf.mxu1 }
 0x2a9   :  { %v3491_v45 = vadd.f32 %v3377_v30, %v10771_v51 }
 0x2aa   :  { %v3379_v57 = vpop.f32.mrf.mxu0 }
 0x2ab   :  { %v3521_v2 = vadd.f32 %v10958_v43, %v3491_v45 }
 0x2ac   :  { %v3382_v8 = vpop.f32.mrf.mxu0 }
 0x2ad   :  { %v3544_v38 = vmax.f32 %v3521_v2, 0.0  ;;  %v3492_v22 = vadd.f32 %v3382_v8, %v10777_v41  ;;  %v3618_v2 = vpop.permute.xlu1 %3617 }
 0x2ae   :  { %v3384_v59 = vpop.f32.mrf.mxu0 }
 0x2af   :  { %v3705_v13 = vmul.f32 %v3593_v19, %v3544_v38  ;;  %v3522_v63 = vadd.f32 %v10958_v43, %v3492_v22 }
 0x2b0   :  { %v3387_v49 = vpop.f32.mrf.mxu0 }
 0x2b1   :  { %3732 = vst [vmem:[#allocation2 + $0xb] sm:$0xff] %v3705_v13  ;;  %v3545_v17 = vmax.f32 %v3522_v63, 0.0  ;;  %v3493_v61 = vadd.f32 %v3387_v49, %v10784_v42  ;;  %v3623_v49 = vpop.permute.xlu0 %3622 }
 0x2b2   :  { %v3389_v54 = vpop.f32.mrf.mxu0 }
 0x2b3   :  { %v3706_v51 = vmul.f32 %v3598_v16, %v3545_v17  ;;  %v3523_v46 = vadd.f32 %v10958_v43, %v3493_v61 }
 0x2b4   :  { %v3392_v56 = vpop.f32.mrf.mxu0 }
 0x2b5   :  { %3733 = vst [vmem:[#allocation2 + $0x13] sm:$0xff] %v3706_v51  ;;  %v3546_v12 = vmax.f32 %v3523_v46, 0.0  ;;  %v3494_v41 = vadd.f32 %v3392_v56, %v10791_v9  ;;  %v3628_v56 = vpop.permute.xlu1 %3627 }
 0x2b6   :  { %v3394_v14 = vpop.f32.mrf.mxu0 }
 0x2b7   :  { %v3707_v0 = vmul.f32 %v3603_v55, %v3546_v12  ;;  %v3524_v11 = vadd.f32 %v10958_v43, %v3494_v41 }
 0x2b8   :  { %v3397_v3 = vpop.f32.mrf.mxu0  ;;  %v3795_v32 = vld [vmem:[#allocation2 + $0x9] sm:$0xff] }
 0x2b9   :  { %v3756_v28 = vld [vmem:[#allocation2 + $0x8] sm:$0xff]  ;;  %3734 = vst [vmem:[#allocation2 + $0x1b] sm:$0xff] %v3707_v0  ;;  %v3547_v42 = vmax.f32 %v3524_v11, 0.0  ;;  %v3495_v35 = vadd.f32 %v3397_v3, %v10795_v23  ;;  %6748 = vmatmul.mubr.f32.gmra.mxu1 %v3795_v32 }
 0x2ba   :  { %6849 = vmatmul.mubr.f32.gmra.mxu0 %v3756_v28  ;;  %v3399_v58 = vpop.f32.mrf.mxu0  ;;  %6750 = vmatprep.mubr.msk.f32.mxu1 %vm7697_vm6, %v10748_v21  ;;  %v3633_v28 = vpop.permute.xlu0 %3632 }
 0x2bb   :  { %6851 = vmatprep.mubr.msk.f32.mxu0 %vm7697_vm6, %v10748_v21  ;;  %v3708_v9 = vmul.f32 %v3608_v52, %v3547_v42  ;;  %v3525_v36 = vadd.f32 %v10958_v43, %v3495_v35 }
 0x2bc   :  { %v3402_v20 = vpop.f32.mrf.mxu0  ;;  %v3796_v50 = vld [vmem:[#allocation2 + $0x11] sm:$0xff] }
 0x2bd   :  { %v3757_v1 = vld [vmem:[#allocation2 + $0x10] sm:$0xff]  ;;  %3735 = vst [vmem:[#allocation2 + $0x23] sm:$0xff] %v3708_v9  ;;  %v3548_v5 = vmax.f32 %v3525_v36, 0.0  ;;  %v3496_v23 = vadd.f32 %v3402_v20, %v10801_v62  ;;  %6751 = vmatmul.mubr.f32.gmra.mxu1 %v3796_v50  ;;  %v3638_v50 = vpop.permute.xlu1 %3637 }
 0x2be   :  { %6852 = vmatmul.mubr.f32.gmra.mxu0 %v3757_v1  ;;  %v3404_v10 = vpop.f32.mrf.mxu0  ;;  %6753 = vmatprep.mubr.msk.f32.mxu1 %vm7697_vm6, %v10748_v21 }
 0x2bf   :  { %6854 = vmatprep.mubr.msk.f32.mxu0 %vm7697_vm6, %v10748_v21  ;;  %v3709_v26 = vmul.f32 %v3613_v25, %v3548_v5  ;;  %v3526_v47 = vadd.f32 %v10958_v43, %v3496_v23 }
 0x2c0   :  { %v3407_v30 = vpop.f32.mrf.mxu0  ;;  %v3797_v34 = vld [vmem:[#allocation2 + $0x19] sm:$0xff] }
 0x2c1   :  { %v3758_v45 = vld [vmem:[#allocation2 + $0x18] sm:$0xff]  ;;  %3736 = vst [vmem:[#allocation2 + $0x2b] sm:$0xff] %v3709_v26  ;;  %v3549_v57 = vmax.f32 %v3526_v47, 0.0  ;;  %v3497_v62 = vadd.f32 %v3407_v30, %v10808_v60  ;;  %6754 = vmatmul.mubr.f32.gmra.mxu1 %v3797_v34  ;;  %v3643_v30 = vpop.permute.xlu0 %3642 }
 0x2c2   :  { %6855 = vmatmul.mubr.f32.gmra.mxu0 %v3758_v45  ;;  %v3409_v19 = vpop.f32.mrf.mxu0  ;;  %6756 = vmatprep.mubr.msk.f32.mxu1 %vm7697_vm6, %v10748_v21 }
 0x2c3   :  { %6857 = vmatprep.mubr.msk.f32.mxu0 %vm7697_vm6, %v10748_v21  ;;  %v3710_v8 = vmul.f32 %v3618_v2, %v3549_v57  ;;  %v3527_v38 = vadd.f32 %v10958_v43, %v3497_v62 }
 0x2c4   :  { %v3412_v22 = vpop.f32.mrf.mxu0  ;;  %v3798_v59 = vld [vmem:[#allocation2 + $0x21] sm:$0xff] }
 0x2c5   :  { %v3759_v13 = vld [vmem:[#allocation2 + $0x20] sm:$0xff]  ;;  %3737 = vst [vmem:[#allocation2 + $0x33] sm:$0xff] %v3710_v8  ;;  %v3550_v63 = vmax.f32 %v3527_v38, 0.0  ;;  %v3498_v60 = vadd.f32 %v3412_v22, %v10812_v39  ;;  %6757 = vmatmul.mubr.f32.gmra.mxu1 %v3798_v59  ;;  %v3648_v38 = vpop.permute.xlu1 %3647 }
 0x2c6   :  { %6858 = vmatmul.mubr.f32.gmra.mxu0 %v3759_v13  ;;  %v3414_v17 = vpop.f32.mrf.mxu0  ;;  %6759 = vmatprep.mubr.msk.f32.mxu1 %vm7697_vm6, %v10748_v21 }
 0x2c7   :  { %6860 = vmatprep.mubr.msk.f32.mxu0 %vm7697_vm6, %v10748_v21  ;;  %v3711_v61 = vmul.f32 %v3623_v49, %v3550_v63  ;;  %v3528_v16 = vadd.f32 %v10958_v43, %v3498_v60 }
 0x2c8   :  { %v3417_v54 = vpop.f32.mrf.mxu0  ;;  %v3799_v51 = vld [vmem:[#allocation2 + $0x29] sm:$0xff] }
 0x2c9   :  { %v3760_v46 = vld [vmem:[#allocation2 + $0x28] sm:$0xff]  ;;  %3738 = vst [vmem:[#allocation2 + $0x3b] sm:$0xff] %v3711_v61  ;;  %v3551_v55 = vmax.f32 %v3528_v16, 0.0  ;;  %v3499_v39 = vadd.f32 %v3417_v54, %v10818_v48  ;;  %6760 = vmatmul.mubr.f32.gmra.mxu1 %v3799_v51  ;;  %v3653_v61 = vpop.permute.xlu0 %3652 }
 0x2ca   :  { %6861 = vmatmul.mubr.f32.gmra.mxu0 %v3760_v46  ;;  %v3419_v12 = vpop.f32.mrf.mxu0  ;;  %6762 = vmatprep.mubr.msk.f32.mxu1 %vm7697_vm6, %v10748_v21 }
 0x2cb   :  { %6863 = vmatprep.mubr.msk.f32.mxu0 %vm7697_vm6, %v10748_v21  ;;  %v3712_v41 = vmul.f32 %v3628_v56, %v3551_v55  ;;  %v3529_v14 = vadd.f32 %v10958_v43, %v3499_v39  ;;  %v3658_v12 = vpop.permute.xlu1 %3657 }
 0x2cc   :  { %v3422_v0 = vpop.f32.mrf.mxu0  ;;  %v3800_v11 = vld [vmem:[#allocation2 + $0x31] sm:$0xff] }
 0x2cd   :  { %v3761_v3 = vld [vmem:[#allocation2 + $0x30] sm:$0xff]  ;;  %3739 = vst [vmem:[#allocation2 + $0x43] sm:$0xff] %v3712_v41  ;;  %v3552_v32 = vmax.f32 %v3529_v14, 0.0  ;;  %v3500_v48 = vadd.f32 %v3422_v0, %v10828_v29  ;;  %6763 = vmatmul.mubr.f32.gmra.mxu1 %v3800_v11 }
 0x2ce   :  { %6864 = vmatmul.mubr.f32.gmra.mxu0 %v3761_v3  ;;  %v3424_v42 = vpop.f32.mrf.mxu0  ;;  %6765 = vmatprep.mubr.msk.f32.mxu1 %vm7697_vm6, %v10748_v21 }
 0x2cf   :  { %6866 = vmatprep.mubr.msk.f32.mxu0 %vm7697_vm6, %v10748_v21  ;;  %v3713_v35 = vmul.f32 %v3633_v28, %v3552_v32  ;;  %v3530_v52 = vadd.f32 %v10958_v43, %v3500_v48  ;;  %v3663_v28 = vpop.permute.xlu0 %3662 }
 0x2d0   :  { %v3427_v58 = vpop.f32.mrf.mxu0  ;;  %v3801_v9 = vld [vmem:[#allocation2 + $0x39] sm:$0xff] }
 0x2d1   :  { %v3762_v36 = vld [vmem:[#allocation2 + $0x38] sm:$0xff]  ;;  %3740 = vst [vmem:[#allocation2 + $0x4b] sm:$0xff] %v3713_v35  ;;  %v3553_v20 = vmax.f32 %v3530_v52, 0.0  ;;  %v3501_v29 = vadd.f32 %v3427_v58, %v10840_v37  ;;  %6766 = vmatmul.mubr.f32.gmra.mxu1 %v3801_v9 }
 0x2d2   :  { %6867 = vmatmul.mubr.f32.gmra.mxu0 %v3762_v36  ;;  %v3429_v1 = vpop.f32.mrf.mxu0  ;;  %6768 = vmatprep.mubr.msk.f32.mxu1 %vm7697_vm6, %v10748_v21 }
 0x2d3   :  { %6869 = vmatprep.mubr.msk.f32.mxu0 %vm7697_vm6, %v10748_v21  ;;  %v3714_v5 = vmul.f32 %v3638_v50, %v3553_v20  ;;  %v3531_v23 = vadd.f32 %v10958_v43, %v3501_v29  ;;  %v3668_v29 = vpop.permute.xlu1 %3667 }
 0x2d4   :  { %v3432_v25 = vpop.f32.mrf.mxu0  ;;  %v3802_v10 = vld [vmem:[#allocation2 + $0x41] sm:$0xff] }
 0x2d5   :  { %v3763_v26 = vld [vmem:[#allocation2 + $0x40] sm:$0xff]  ;;  %3741 = vst [vmem:[#allocation2 + $0x53] sm:$0xff] %v3714_v5  ;;  %v3554_v47 = vmax.f32 %v3531_v23, 0.0  ;;  %v3502_v37 = vadd.f32 %v3432_v25, %v10854_v24  ;;  %6769 = vmatmul.mubr.f32.gmra.mxu1 %v3802_v10 }
 0x2d6   :  { %6870 = vmatmul.mubr.f32.gmra.mxu0 %v3763_v26  ;;  %v3434_v34 = vpop.f32.mrf.mxu0  ;;  %6771 = vmatprep.mubr.msk.f32.mxu1 %vm7697_vm6, %v10748_v21 }
 0x2d7   :  { %6872 = vmatprep.mubr.msk.f32.mxu0 %vm7697_vm6, %v10748_v21  ;;  %v3715_v45 = vmul.f32 %v3643_v30, %v3554_v47  ;;  %v3532_v57 = vadd.f32 %v10958_v43, %v3502_v37  ;;  %v3673_v47 = vpop.permute.xlu0 %3672 }
 0x2d8   :  { %v3437_v62 = vpop.f32.mrf.mxu0  ;;  %v3803_v2 = vld [vmem:[#allocation2 + $0x49] sm:$0xff] }
 0x2d9   :  { %v3764_v19 = vld [vmem:[#allocation2 + $0x48] sm:$0xff]  ;;  %3742 = vst [vmem:[#allocation2 + $0x5b] sm:$0xff] %v3715_v45  ;;  %v3555_v8 = vmax.f32 %v3532_v57, 0.0  ;;  %v3503_v24 = vadd.f32 %v3437_v62, %v10869_v31  ;;  %6772 = vmatmul.mubr.f32.gmra.mxu1 %v3803_v2 }
 0x2da   :  { %6873 = vmatmul.mubr.f32.gmra.mxu0 %v3764_v19  ;;  %v3439_v22 = vpop.f32.mrf.mxu0  ;;  %6774 = vmatprep.mubr.msk.f32.mxu1 %vm7697_vm6, %v10748_v21  ;;  %v3678_v19 = vpop.permute.xlu1 %3677 }
 0x2db   :  { %6875 = vmatprep.mubr.msk.f32.mxu0 %vm7697_vm6, %v10748_v21  ;;  %v3716_v59 = vmul.f32 %v3648_v38, %v3555_v8  ;;  %v3533_v13 = vadd.f32 %v10958_v43, %v3503_v24 }
 0x2dc   :  { %v3442_v63 = vpop.f32.mrf.mxu0  ;;  %v3804_v60 = vld [vmem:[#allocation2 + $0x51] sm:$0xff] }
 0x2dd   :  { %v3765_v49 = vld [vmem:[#allocation2 + $0x50] sm:$0xff]  ;;  %3743 = vst [vmem:[#allocation2 + $0x63] sm:$0xff] %v3716_v59  ;;  %v3556_v17 = vmax.f32 %v3533_v13, 0.0  ;;  %v3504_v31 = vadd.f32 %v3442_v63, %v10884_v4  ;;  %6775 = vmatmul.mubr.f32.gmra.mxu1 %v3804_v60  ;;  %v3683_v63 = vpop.permute.xlu0 %3682 }
 0x2de   :  { %6876 = vmatmul.mubr.f32.gmra.mxu0 %v3765_v49  ;;  %v3444_v16 = vpop.f32.mrf.mxu0  ;;  %6777 = vmatprep.mubr.msk.f32.mxu1 %vm7697_vm6, %v10748_v21 }
 0x2df   :  { %6878 = vmatprep.mubr.msk.f32.mxu0 %vm7697_vm6, %v10748_v21  ;;  %v3717_v54 = vmul.f32 %v3653_v61, %v3556_v17  ;;  %v3534_v51 = vadd.f32 %v10958_v43, %v3504_v31 }
 0x2e0   :  { %v3447_v46 = vpop.f32.mrf.mxu0  ;;  %v3805_v55 = vld [vmem:[#allocation2 + $0x59] sm:$0xff] }
 0x2e1   :  { %v3766_v39 = vld [vmem:[#allocation2 + $0x58] sm:$0xff]  ;;  %3744 = vst [vmem:[#allocation2 + $0x6b] sm:$0xff] %v3717_v54  ;;  %v3557_v56 = vmax.f32 %v3534_v51, 0.0  ;;  %v3505_v4 = vadd.f32 %v3447_v46, %v10896_v7  ;;  %6778 = vmatmul.mubr.f32.gmra.mxu1 %v3805_v55 }
 0x2e2   :  { %6879 = vmatmul.mubr.f32.gmra.mxu0 %v3766_v39  ;;  %v3449_v41 = vpop.f32.mrf.mxu0  ;;  %6780 = vmatprep.mubr.msk.f32.mxu1 %vm7697_vm6, %v10748_v21  ;;  %v3688_v39 = vpop.permute.xlu1 %3687 }
 0x2e3   :  { %6881 = vmatprep.mubr.msk.f32.mxu0 %vm7697_vm6, %v10748_v21  ;;  %v3718_v14 = vmul.f32 %v3658_v12, %v3557_v56  ;;  %v3535_v0 = vadd.f32 %v10958_v43, %v3505_v4  ;;  %v11065_v4 = vld [vmem:[#allocation2] sm:$0xff] }
 0x2e4   :  { %v3452_v11 = vpop.f32.mrf.mxu0  ;;  %v3806_v3 = vld [vmem:[#allocation2 + $0x61] sm:$0xff] }
 0x2e5   :  { %v3767_v32 = vld [vmem:[#allocation2 + $0x60] sm:$0xff]  ;;  %3745 = vst [vmem:[#allocation2 + $0x73] sm:$0xff] %v3718_v14  ;;  %v3558_v48 = vmax.f32 %v3535_v0, 0.0  ;;  %v3506_v7 = vadd.f32 %v3452_v11, %v10916_v53  ;;  %6781 = vmatmul.mubr.f32.gmra.mxu1 %v3806_v3  ;;  %v3693_v3 = vpop.permute.xlu0 %3692 }
 0x2e6   :  { %6882 = vmatmul.mubr.f32.gmra.mxu0 %v3767_v32  ;;  %v3454_v42 = vpop.f32.mrf.mxu0  ;;  %6783 = vmatprep.mubr.msk.f32.mxu1 %vm7697_vm6, %v10748_v21 }
 0x2e7   :  { %6884 = vmatprep.mubr.msk.f32.mxu0 %vm7697_vm6, %v10748_v21  ;;  %v3719_v35 = vmul.f32 %v3663_v28, %v3558_v48  ;;  %v3536_v52 = vadd.f32 %v10958_v43, %v3506_v7 }
 0x2e8   :  { %v3457_v58 = vpop.f32.mrf.mxu0  ;;  %v3807_v9 = vld [vmem:[#allocation2 + $0x69] sm:$0xff] }
 0x2e9   :  { %v3768_v36 = vld [vmem:[#allocation2 + $0x68] sm:$0xff]  ;;  %3746 = vst [vmem:[#allocation2 + $0x7b] sm:$0xff] %v3719_v35  ;;  %v3559_v20 = vmax.f32 %v3536_v52, 0.0  ;;  %v3507_v53 = vadd.f32 %v3457_v58, %v10932_v33  ;;  %6784 = vmatmul.mubr.f32.gmra.mxu1 %v3807_v9  ;;  %v3698_v58 = vpop.permute.xlu1 %3697 }
 0x2ea   :  { %6885 = vmatmul.mubr.f32.gmra.mxu0 %v3768_v36  ;;  %v3459_v50 = vpop.f32.mrf.mxu0  ;;  %6786 = vmatprep.mubr.msk.f32.mxu1 %vm7697_vm6, %v10748_v21  ;;  %v3900_v17 = vpop.f32.mrf.mxu1 }
 0x2eb   :  { %6887 = vmatprep.mubr.msk.f32.mxu0 %vm7697_vm6, %v10748_v21  ;;  %v3720_v1 = vmul.f32 %v3668_v29, %v3559_v20  ;;  %v3537_v5 = vadd.f32 %v10958_v43, %v3507_v53 }
 0x2ec   :  { %v3462_v23 = vpop.f32.mrf.mxu0  ;;  %v3808_v25 = vld [vmem:[#allocation2 + $0x71] sm:$0xff]  ;;  %v6746_v46 = vpop.f32.mrf.mxu1 }
 0x2ed   :  { %v3769_v10 = vld [vmem:[#allocation2 + $0x70] sm:$0xff]  ;;  %3747 = vst [vmem:[#allocation2 + $0x83] sm:$0xff] %v3720_v1  ;;  %v3560_v26 = vmax.f32 %v3537_v5, 0.0  ;;  %v3508_v33 = vadd.f32 %v3462_v23, %v10938_v44  ;;  %6787 = vmatmul.mubr.f32.gmra.mxu1 %v3808_v25  ;;  %v3703_v5 = vpop.permute.xlu0 %3702 }
 0x2ee   :  { %6888 = vmatmul.mubr.f32.gmra.mxu0 %v3769_v10  ;;  %v3464_v37 = vpop.f32.mrf.mxu0  ;;  %6789 = vmatprep.mubr.msk.f32.mxu1 %vm7697_vm6, %v10748_v21  ;;  %v4445_v46 = vld [vmem:[#allocation2 + $0x4a] sm:$0xff] }
 0x2ef   :  { %6890 = vmatprep.mubr.msk.f32.mxu0 %vm7697_vm6, %v10748_v21  ;;  %v3721_v30 = vmul.f32 %v3673_v47, %v3560_v26  ;;  %v3538_v34 = vadd.f32 %v10958_v43, %v3508_v33  ;;  %v4194_v47 = vld [vmem:[#allocation2 + $0x2] sm:$0xff]  ;;  %v6295_v37 = vld [vmem:[%s12197_s3 + $0x278] sm:$0xff] }
 0x2f0   :  { %v3467_v45 = vpop.f32.mrf.mxu0  ;;  %v3809_v57 = vld [vmem:[#allocation2 + $0x79] sm:$0xff] }
 0x2f1   :  { %v3770_v62 = vld [vmem:[#allocation2 + $0x78] sm:$0xff]  ;;  %3748 = vst [vmem:[#allocation2 + $0x8b] sm:$0xff] %v3721_v30  ;;  %v3561_v2 = vmax.f32 %v3538_v34, 0.0  ;;  %v3509_v44 = vadd.f32 %v3467_v45, %v10941_v27  ;;  %6790 = vmatmul.mubr.f32.gmra.mxu1 %v3809_v57  ;;  %v4437_v30 = vld [vmem:[#allocation2 + $0xa] sm:$0xff] }
 0x2f2   :  { %6891 = vmatmul.mubr.f32.gmra.mxu0 %v3770_v62  ;;  %v3469_v8 = vpop.f32.mrf.mxu0  ;;  %6792 = vmatprep.mubr.msk.f32.mxu1 %vm7697_vm6, %v10748_v21  ;;  %v6294_v34 = vld [vmem:[%s12197_s3 + $0x270] sm:$0xff]  ;;  %v6311_v45 = vld [vmem:[%s12197_s3 + $0x2f8] sm:$0xff]  ;;  %v6293_v62 = vld [vmem:[%s12197_s3 + $0x268] sm:$0xff] }
 0x2f3   :  { %6893 = vmatprep.mubr.msk.f32.mxu0 %vm7697_vm6, %v10748_v21  ;;  %v3722_v24 = vmul.f32 %v3678_v19, %v3561_v2  ;;  %v3539_v38 = vadd.f32 %v10958_v43, %v3509_v44  ;;  %v4438_v57 = vld [vmem:[#allocation2 + $0x12] sm:$0xff]  ;;  %v4439_v44 = vld [vmem:[#allocation2 + $0x1a] sm:$0xff]  ;;  %v6309_v8 = vld [vmem:[%s12197_s3 + $0x2e8] sm:$0xff] }
 0x2f4   :  { %v3472_v22 = vpop.f32.mrf.mxu0  ;;  %v3810_v59 = vld [vmem:[#allocation2 + $0x81] sm:$0xff]  ;;  %v6310_v2 = vld [vmem:[%s12197_s3 + $0x2f0] sm:$0xff] }
 0x2f5   :  { %v3771_v13 = vld [vmem:[#allocation2 + $0x80] sm:$0xff]  ;;  %3749 = vst [vmem:[#allocation2 + $0x93] sm:$0xff] %v3722_v24  ;;  %v3562_v60 = vmax.f32 %v3539_v38, 0.0  ;;  %v3510_v27 = vadd.f32 %v3472_v22, %v10944_v18  ;;  %6793 = vmatmul.mubr.f32.gmra.mxu1 %v3810_v59  ;;  %v6291_v38 = vld [vmem:[%s12197_s3 + $0x258] sm:$0xff]  ;;  %v4441_v59 = vld [vmem:[#allocation2 + $0x2a] sm:$0xff] }
 0x2f6   :  { %6894 = vmatmul.mubr.f32.gmra.mxu0 %v3771_v13  ;;  %v3474_v49 = vpop.f32.mrf.mxu0  ;;  %6795 = vmatprep.mubr.msk.f32.mxu1 %vm7697_vm6, %v10748_v21  ;;  %v6292_v19 = vld [vmem:[%s12197_s3 + $0x260] sm:$0xff]  ;;  %v6290_v13 = vld [vmem:[%s12197_s3 + $0x250] sm:$0xff] }
 0x2f7   :  { %6896 = vmatprep.mubr.msk.f32.mxu0 %vm7697_vm6, %v10748_v21  ;;  %v3723_v31 = vmul.f32 %v3683_v63, %v3562_v60  ;;  %v3540_v61 = vadd.f32 %v10958_v43, %v3510_v27  ;;  %v4440_v24 = vld [vmem:[#allocation2 + $0x22] sm:$0xff]  ;;  %v6307_v63 = vld [vmem:[%s12197_s3 + $0x2d8] sm:$0xff]  ;;  %v6306_v49 = vld [vmem:[%s12197_s3 + $0x2d0] sm:$0xff] }
 0x2f8   :  { %v3477_v16 = vpop.f32.mrf.mxu0  ;;  %v3811_v54 = vld [vmem:[#allocation2 + $0x89] sm:$0xff]  ;;  %v6308_v22 = vld [vmem:[%s12197_s3 + $0x2e0] sm:$0xff]  ;;  %v4442_v60 = vld [vmem:[#allocation2 + $0x32] sm:$0xff] }
 0x2f9   :  { %v3772_v51 = vld [vmem:[#allocation2 + $0x88] sm:$0xff]  ;;  %3750 = vst [vmem:[#allocation2 + $0x9b] sm:$0xff] %v3723_v31  ;;  %v3563_v55 = vmax.f32 %v3540_v61, 0.0  ;;  %v3511_v18 = vadd.f32 %v3477_v16, %v10947_v40  ;;  %6796 = vmatmul.mubr.f32.gmra.mxu1 %v3811_v54  ;;  %v6288_v31 = vld [vmem:[%s12197_s3 + $0x240] sm:$0xff]  ;;  %v6287_v54 = vld [vmem:[%s12197_s3 + $0x238] sm:$0xff] }
 0x2fa   :  { %6897 = vmatmul.mubr.f32.gmra.mxu0 %v3772_v51  ;;  %v3479_v56 = vpop.f32.mrf.mxu0  ;;  %6798 = vmatprep.mubr.msk.f32.mxu1 %vm7697_vm6, %v11065_v4  ;;  %v6289_v27 = vld [vmem:[%s12197_s3 + $0x248] sm:$0xff]  ;;  %v6304_v51 = vld [vmem:[%s12197_s3 + $0x2c0] sm:$0xff] }
 0x2fb   :  { %6899 = vmatprep.mubr.msk.f32.mxu0 %vm7697_vm6, %v11065_v4  ;;  %v3724_v21 = vmul.f32 %v3688_v39, %v3563_v55  ;;  %v3541_v12 = vadd.f32 %v10958_v43, %v3511_v18  ;;  %v6305_v61 = vld [vmem:[%s12197_s3 + $0x2c8] sm:$0xff]  ;;  %v6286_v55 = vld [vmem:[%s12197_s3 + $0x230] sm:$0xff]  ;;  %v6303_v18 = vld [vmem:[%s12197_s3 + $0x2b8] sm:$0xff] }
 0x2fc   :  { %v3482_v41 = vpop.f32.mrf.mxu0  ;;  %v3812_v14 = vld [vmem:[#allocation2 + $0x91] sm:$0xff]  ;;  %v4444_v16 = vld [vmem:[#allocation2 + $0x42] sm:$0xff] }
 0x2fd   :  { %v3773_v0 = vld [vmem:[#allocation2 + $0x90] sm:$0xff]  ;;  %3751 = vst [vmem:[#allocation2 + $0xa3] sm:$0xff] %v3724_v21  ;;  %v3564_v40 = vmax.f32 %v3541_v12, 0.0  ;;  %v3512_v11 = vadd.f32 %v3482_v41, %v10950_v6  ;;  %6799 = vmatmul.mubr.f32.gmra.mxu1 %v3812_v14  ;;  %v6285_v56 = vld [vmem:[%s12197_s3 + $0x228] sm:$0xff]  ;;  %v4447_v12 = vld [vmem:[#allocation2 + $0x5a] sm:$0xff] }
 0x2fe   :  { %6900 = vmatmul.mubr.f32.gmra.mxu0 %v3773_v0  ;;  %v3484_v32 = vpop.f32.mrf.mxu0  ;;  %6801 = vmatprep.mubr.msk.f32.mxu1 %vm7697_vm6, %v11065_v4  ;;  %v4446_v39 = vld [vmem:[#allocation2 + $0x52] sm:$0xff]  ;;  %v6284_v41 = vld [vmem:[%s12197_s3 + $0x220] sm:$0xff]  ;;  %v6301_v14 = vld [vmem:[%s12197_s3 + $0x2a8] sm:$0xff] }
 0x2ff   :  { %6902 = vmatprep.mubr.msk.f32.mxu0 %vm7697_vm6, %v11065_v4  ;;  %v3725_v48 = vmul.f32 %v3693_v3, %v3564_v40  ;;  %v3542_v7 = vadd.f32 %v10958_v43, %v3512_v11  ;;  %v6302_v21 = vld [vmem:[%s12197_s3 + $0x2b0] sm:$0xff]  ;;  %v4448_v0 = vld [vmem:[#allocation2 + $0x62] sm:$0xff]  ;;  %v6283_v40 = vld [vmem:[%s12197_s3 + $0x218] sm:$0xff] }
 0x300   :  { %v3487_v28 = vpop.f32.mrf.mxu0  ;;  %v3813_v42 = vld [vmem:[#allocation2 + $0x99] sm:$0xff]  ;;  %v4449_v3 = vld [vmem:[#allocation2 + $0x6a] sm:$0xff] }
 0x301   :  { %v3774_v35 = vld [vmem:[#allocation2 + $0x98] sm:$0xff]  ;;  %3752 = vst [vmem:[#allocation2 + $0xab] sm:$0xff] %v3725_v48  ;;  %v3565_v52 = vmax.f32 %v3542_v7, 0.0  ;;  %v3513_v6 = vadd.f32 %v3487_v28, %v10953_v15  ;;  %6802 = vmatmul.mubr.f32.gmra.mxu1 %v3813_v42  ;;  %v6300_v11 = vld [vmem:[%s12197_s3 + $0x2a0] sm:$0xff]  ;;  %v6282_v32 = vld [vmem:[%s12197_s3 + $0x210] sm:$0xff] }
 0x302   :  { %6903 = vmatmul.mubr.f32.gmra.mxu0 %v3774_v35  ;;  %6804 = vmatprep.mubr.msk.f32.mxu1 %vm7697_vm6, %v11065_v4  ;;  %v3489_v9 = vpop.f32.mrf.mxu0  ;;  %v6299_v48 = vld [vmem:[%s12197_s3 + $0x298] sm:$0xff]  ;;  %v6281_v28 = vld [vmem:[%s12197_s3 + $0x208] sm:$0xff]  ;;  %v6298_v42 = vld [vmem:[%s12197_s3 + $0x290] sm:$0xff] }
 0x303   :  { %6905 = vmatprep.mubr.msk.f32.mxu0 %vm7697_vm6, %v11065_v4  ;;  %v3726_v36 = vmul.f32 %v3698_v58, %v3565_v52  ;;  %v3543_v20 = vadd.f32 %v10958_v43, %v3513_v6  ;;  %v4450_v7 = vld [vmem:[#allocation2 + $0x72] sm:$0xff]  ;;  %v4451_v35 = vld [vmem:[#allocation2 + $0x7a] sm:$0xff]  ;;  %v6297_v6 = vld [vmem:[%s12197_s3 + $0x288] sm:$0xff] }
 0x304   :  { %v3814_v53 = vld [vmem:[#allocation2 + $0xa1] sm:$0xff]  ;;  %v4080_v50 = vpop.f32.mrf.mxu0 }
 0x305   :  { %v3775_v29 = vld [vmem:[#allocation2 + $0xa0] sm:$0xff]  ;;  %3753 = vst [vmem:[#allocation2 + $0xb3] sm:$0xff] %v3726_v36  ;;  %v3566_v1 = vmax.f32 %v3543_v20, 0.0  ;;  %6805 = vmatmul.mubr.f32.gmra.mxu1 %v3814_v53  ;;  %v11084_v15 = vadd.f32 %v4080_v50, %v3900_v17  ;;  %v4453_v36 = vld [vmem:[#allocation2 + $0x8a] sm:$0xff]  ;;  %v4454_v20 = vld [vmem:[#allocation2 + $0x92] sm:$0xff] }
 0x306   :  { %6906 = vmatmul.mubr.f32.gmra.mxu0 %v3775_v29  ;;  %6807 = vmatprep.mubr.msk.f32.mxu1 %vm7697_vm6, %v11065_v4  ;;  %v6847_v23 = vpop.f32.mrf.mxu0  ;;  %v4443_v17 = vld [vmem:[#allocation2 + $0x3a] sm:$0xff]  ;;  %v4452_v58 = vld [vmem:[#allocation2 + $0x82] sm:$0xff] }
 0x307   :  { %6908 = vmatprep.mubr.msk.f32.mxu0 %vm7697_vm6, %v11065_v4  ;;  %v3727_v25 = vmul.f32 %v3703_v5, %v3566_v1  ;;  %v6280_v52 = vld [vmem:[%s12197_s3 + $0x200] sm:$0xff] }
 0x308   :  { %v3815_v10 = vld [vmem:[#allocation2 + $0xa9] sm:$0xff]  ;;  %v3816_v26 = vld [vmem:[#allocation2 + $0xb1] sm:$0x3]  ;;  %v6296_v9 = vld [vmem:[%s12197_s3 + $0x280] sm:$0xff] }
 0x309   :  { %v3776_v43 = vld [vmem:[#allocation2 + $0xa8] sm:$0xff]  ;;  %3754 = vst [vmem:[#allocation2 + $0xbb] sm:$0x3] %v3727_v25  ;;  %6808 = vmatmul.mubr.f32.gmra.mxu1 %v3815_v10  ;;  %v3777_v33 = vld [vmem:[#allocation2 + $0xb0] sm:$0x3]  ;;  %v4455_v53 = vld [vmem:[#allocation2 + $0x9a] sm:$0xff] }
 0x30a   :  { %6909 = vmatmul.mubr.f32.gmra.mxu0 %v3776_v43  ;;  %6810 = vmatprep.mubr.msk.f32.mxu1 %vm7697_vm6, %v11065_v4  ;;  %v4456_v29 = vld [vmem:[#allocation2 + $0xa2] sm:$0xff]  ;;  %v4457_v50 = vld [vmem:[#allocation2 + $0xaa] sm:$0xff]  ;;  %v6327_v25 = vld [vmem:[%s12197_s3 + $0x378] sm:$0xff] }
 0x30b   :  { %6911 = vmatprep.mubr.msk.f32.mxu0 %vm7697_vm6, %v11065_v4  ;;  %v4680_v10 = vld [vmem:[#allocation2 + $0xb] sm:$0xff] }
 0x30c   :  { %v4458_v1 = vld [vmem:[#allocation2 + $0xb2] sm:$0xff] }
 0x30d   :  { %6811 = vmatmul.mubr.f32.gmra.mxu1 %v3816_v26  ;;  %v4216_v5 = vld [vmem:[#allocation2 + $0xb2] sm:$0x3] }
 0x30e   :  { %6912 = vmatmul.mubr.f32.gmra.mxu0 %v3777_v33  ;;  %6946 = vmatprep.mubr.msk.f32.mxu1 %vm7697_vm6, %v11065_v4  ;;  %v4923_v43 = vld [vmem:[#allocation2 + $0xc] sm:$0xff]  ;;  %v6343_v33 = vld [vmem:[%s12197_s3 + $0x3f8] sm:$0xff] }
 0x30f   :  { %7047 = vmatprep.mubr.msk.f32.mxu0 %vm7697_vm6, %v11065_v4  ;;  %v6326_v26 = vld [vmem:[%s12197_s3 + $0x370] sm:$0xff] }
 0x310   :  { %v4459_v23 = vld [vmem:[#allocation2 + $0xba] sm:$0x3] }
 0x311   :  { %6947 = vmatmul.mubr.f32.vlgmr.msra.gmra.mxu1 %v4194_v47  ;;  %v4681_v47 = vld [vmem:[#allocation2 + $0x13] sm:$0xff] }
 0x312   :  { %7048 = vmatmul.mubr.f32.vlgmr.msra.gmra.mxu0 %v4437_v30  ;;  %7117 = vmatpush3.msra.mxu1 %v6295_v37  ;;  %v11332_v37 = vld [vmem:[#allocation2 + $0x14] sm:$0xff] }
 0x313   :  { %6949 = vmatprep.mubr.msk.f32.mxu1 %vm7697_vm6, %v11065_v4  ;;  %7050 = vmatprep.mubr.msk.f32.mxu0 %vm7697_vm6, %v11065_v4 }
 0x314   :  { %7118 = vmatprep.subr.mxu1 %v11065_v4  ;;  %7218 = vmatpush3.msra.mxu0 %v6311_v45  ;;  %v4682_v45 = vld [vmem:[#allocation2 + $0x1b] sm:$0xff] }
 0x315   :  { %7119 = vmatpush3.msra.mxu1 %v6294_v34  ;;  %7219 = vmatprep.subr.mxu0 %v11065_v4  ;;  %v6342_v34 = vld [vmem:[%s12197_s3 + $0x3f0] sm:$0xff] }
 0x316   :  { %6950 = vmatmul.mubr.f32.gmra.mxu1 %v4437_v30  ;;  %7051 = vmatmul.mubr.f32.gmra.mxu0 %v4438_v57  ;;  %v6325_v30 = vld [vmem:[%s12197_s3 + $0x368] sm:$0xff] }
 0x317   :  { %6952 = vmatprep.mubr.msk.f32.mxu1 %vm7697_vm6, %v11065_v4  ;;  %7053 = vmatprep.mubr.msk.f32.mxu0 %vm7697_vm6, %v11065_v4 }
 0x318   :  { %7120 = vmatprep.subr.mxu1 %v11065_v4  ;;  %7220 = vmatpush3.msra.mxu0 %v6310_v2  ;;  %v6341_v2 = vld [vmem:[%s12197_s3 + $0x3e8] sm:$0xff] }
 0x319   :  { %7121 = vmatpush3.msra.mxu1 %v6293_v62  ;;  %7221 = vmatprep.subr.mxu0 %v11065_v4  ;;  %v6324_v62 = vld [vmem:[%s12197_s3 + $0x360] sm:$0xff] }
 0x31a   :  { %6953 = vmatmul.mubr.f32.gmra.mxu1 %v4438_v57  ;;  %7054 = vmatmul.mubr.f32.gmra.mxu0 %v4439_v44  ;;  %v11347_v57 = vld [vmem:[#allocation2 + $0x1c] sm:$0xff] }
 0x31b   :  { %6955 = vmatprep.mubr.msk.f32.mxu1 %vm7697_vm6, %v11065_v4  ;;  %7056 = vmatprep.mubr.msk.f32.mxu0 %vm7697_vm6, %v11065_v4 }
 0x31c   :  { %7122 = vmatprep.subr.mxu1 %v11065_v4  ;;  %7222 = vmatpush3.msra.mxu0 %v6309_v8 }
 0x31d   :  { %7123 = vmatpush3.msra.mxu1 %v6292_v19  ;;  %7223 = vmatprep.subr.mxu0 %v11065_v4  ;;  %v11362_v19 = vld [vmem:[#allocation2 + $0x24] sm:$0xff] }
 0x31e   :  { %6956 = vmatmul.mubr.f32.gmra.mxu1 %v4439_v44  ;;  %7057 = vmatmul.mubr.f32.gmra.mxu0 %v4440_v24  ;;  %v4683_v44 = vld [vmem:[#allocation2 + $0x23] sm:$0xff] }
 0x31f   :  { %6958 = vmatprep.mubr.msk.f32.mxu1 %vm7697_vm6, %v11065_v4  ;;  %7059 = vmatprep.mubr.msk.f32.mxu0 %vm7697_vm6, %v11065_v4 }
 0x320   :  { %7124 = vmatprep.subr.mxu1 %v11065_v4  ;;  %7224 = vmatpush3.msra.mxu0 %v6308_v22  ;;  %v6340_v22 = vld [vmem:[%s12197_s3 + $0x3e0] sm:$0xff] }
 0x321   :  { %7125 = vmatpush3.msra.mxu1 %v6291_v38  ;;  %7225 = vmatprep.subr.mxu0 %v11065_v4  ;;  %v6323_v38 = vld [vmem:[%s12197_s3 + $0x358] sm:$0xff] }
 0x322   :  { %6959 = vmatmul.mubr.f32.gmra.mxu1 %v4440_v24  ;;  %7060 = vmatmul.mubr.f32.gmra.mxu0 %v4441_v59 }
 0x323   :  { %6961 = vmatprep.mubr.msk.f32.mxu1 %vm7697_vm6, %v11065_v4  ;;  %7062 = vmatprep.mubr.msk.f32.mxu0 %vm7697_vm6, %v11065_v4 }
 0x324   :  { %7126 = vmatprep.subr.mxu1 %v11065_v4  ;;  %7226 = vmatpush3.msra.mxu0 %v6307_v63 }
 0x325   :  { %7127 = vmatpush3.msra.mxu1 %v6290_v13  ;;  %7227 = vmatprep.subr.mxu0 %v11065_v4 }
 0x326   :  { %6962 = vmatmul.mubr.f32.gmra.mxu1 %v4441_v59  ;;  %7063 = vmatmul.mubr.f32.gmra.mxu0 %v4442_v60 }
 0x327   :  { %6964 = vmatprep.mubr.msk.f32.mxu1 %vm7697_vm6, %v11065_v4  ;;  %7065 = vmatprep.mubr.msk.f32.mxu0 %vm7697_vm6, %v11065_v4 }
 0x328   :  { %7128 = vmatprep.subr.mxu1 %v11065_v4  ;;  %7228 = vmatpush3.msra.mxu0 %v6306_v49 }
 0x329   :  { %7129 = vmatpush3.msra.mxu1 %v6289_v27  ;;  %7229 = vmatprep.subr.mxu0 %v11065_v4  ;;  %v11379_v27 = vld [vmem:[#allocation2 + $0x2c] sm:$0xff] }
 0x32a   :  { %6965 = vmatmul.mubr.f32.gmra.mxu1 %v4442_v60  ;;  %7066 = vmatmul.mubr.f32.gmra.mxu0 %v4443_v17  ;;  %v4684_v60 = vld [vmem:[#allocation2 + $0x2b] sm:$0xff] }
 0x32b   :  { %6967 = vmatprep.mubr.msk.f32.mxu1 %vm7697_vm6, %v11065_v4  ;;  %7068 = vmatprep.mubr.msk.f32.mxu0 %vm7697_vm6, %v11065_v4 }
 0x32c   :  { %7130 = vmatprep.subr.mxu1 %v11065_v4  ;;  %7230 = vmatpush3.msra.mxu0 %v6305_v61  ;;  %v6339_v61 = vld [vmem:[%s12197_s3 + $0x3d8] sm:$0xff] }
 0x32d   :  { %7131 = vmatpush3.msra.mxu1 %v6288_v31  ;;  %7231 = vmatprep.subr.mxu0 %v11065_v4  ;;  %v6322_v31 = vld [vmem:[%s12197_s3 + $0x350] sm:$0xff] }
 0x32e   :  { %6968 = vmatmul.mubr.f32.gmra.mxu1 %v4443_v17  ;;  %7069 = vmatmul.mubr.f32.gmra.mxu0 %v4444_v16 }
 0x32f   :  { %6970 = vmatprep.mubr.msk.f32.mxu1 %vm7697_vm6, %v11065_v4  ;;  %7071 = vmatprep.mubr.msk.f32.mxu0 %vm7697_vm6, %v11065_v4 }
 0x330   :  { %7132 = vmatprep.subr.mxu1 %v11065_v4  ;;  %7232 = vmatpush3.msra.mxu0 %v6304_v51 }
 0x331   :  { %7133 = vmatpush3.msra.mxu1 %v6287_v54  ;;  %7233 = vmatprep.subr.mxu0 %v11065_v4 }
 0x332   :  { %6971 = vmatmul.mubr.f32.gmra.mxu1 %v4444_v16  ;;  %7072 = vmatmul.mubr.f32.gmra.mxu0 %v4445_v46 }
 0x333   :  { %6973 = vmatprep.mubr.msk.f32.mxu1 %vm7697_vm6, %v11065_v4  ;;  %7074 = vmatprep.mubr.msk.f32.mxu0 %vm7697_vm6, %v11065_v4 }
 0x334   :  { %7134 = vmatprep.subr.mxu1 %v11065_v4  ;;  %7234 = vmatpush3.msra.mxu0 %v6303_v18 }
 0x335   :  { %7135 = vmatpush3.msra.mxu1 %v6286_v55  ;;  %7235 = vmatprep.subr.mxu0 %v11065_v4  ;;  %v11396_v55 = vld [vmem:[#allocation2 + $0x34] sm:$0xff] }
 0x336   :  { %6974 = vmatmul.mubr.f32.gmra.mxu1 %v4445_v46  ;;  %7075 = vmatmul.mubr.f32.gmra.mxu0 %v4446_v39  ;;  %v4685_v46 = vld [vmem:[#allocation2 + $0x33] sm:$0xff] }
 0x337   :  { %6976 = vmatprep.mubr.msk.f32.mxu1 %vm7697_vm6, %v11065_v4  ;;  %7077 = vmatprep.mubr.msk.f32.mxu0 %vm7697_vm6, %v11065_v4 }
 0x338   :  { %7136 = vmatprep.subr.mxu1 %v11065_v4  ;;  %7236 = vmatpush3.msra.mxu0 %v6302_v21  ;;  %v6338_v21 = vld [vmem:[%s12197_s3 + $0x3d0] sm:$0xff] }
 0x339   :  { %7137 = vmatpush3.msra.mxu1 %v6285_v56  ;;  %7237 = vmatprep.subr.mxu0 %v11065_v4  ;;  %v6321_v56 = vld [vmem:[%s12197_s3 + $0x348] sm:$0xff] }
 0x33a   :  { %6977 = vmatmul.mubr.f32.gmra.mxu1 %v4446_v39  ;;  %7078 = vmatmul.mubr.f32.gmra.mxu0 %v4447_v12 }
 0x33b   :  { %6979 = vmatprep.mubr.msk.f32.mxu1 %vm7697_vm6, %v11065_v4  ;;  %7080 = vmatprep.mubr.msk.f32.mxu0 %vm7697_vm6, %v11065_v4 }
 0x33c   :  { %7138 = vmatprep.subr.mxu1 %v11065_v4  ;;  %7238 = vmatpush3.msra.mxu0 %v6301_v14 }
 0x33d   :  { %7139 = vmatpush3.msra.mxu1 %v6284_v41  ;;  %7239 = vmatprep.subr.mxu0 %v11065_v4 }
 0x33e   :  { %6980 = vmatmul.mubr.f32.gmra.mxu1 %v4447_v12  ;;  %7081 = vmatmul.mubr.f32.gmra.mxu0 %v4448_v0 }
 0x33f   :  { %6982 = vmatprep.mubr.msk.f32.mxu1 %vm7697_vm6, %v11065_v4  ;;  %7083 = vmatprep.mubr.msk.f32.mxu0 %vm7697_vm6, %v11065_v4 }
 0x340   :  { %7140 = vmatprep.subr.mxu1 %v11065_v4  ;;  %7240 = vmatpush3.msra.mxu0 %v6300_v11 }
 0x341   :  { %7141 = vmatpush3.msra.mxu1 %v6283_v40  ;;  %7241 = vmatprep.subr.mxu0 %v11065_v4  ;;  %v11413_v40 = vld [vmem:[#allocation2 + $0x3c] sm:$0xff] }
 0x342   :  { %6983 = vmatmul.mubr.f32.gmra.mxu1 %v4448_v0  ;;  %7084 = vmatmul.mubr.f32.gmra.mxu0 %v4449_v3  ;;  %v4686_v0 = vld [vmem:[#allocation2 + $0x3b] sm:$0xff] }
 0x343   :  { %6985 = vmatprep.mubr.msk.f32.mxu1 %vm7697_vm6, %v11065_v4  ;;  %7086 = vmatprep.mubr.msk.f32.mxu0 %vm7697_vm6, %v11065_v4 }
 0x344   :  { %7142 = vmatprep.subr.mxu1 %v11065_v4  ;;  %7242 = vmatpush3.msra.mxu0 %v6299_v48  ;;  %v6337_v48 = vld [vmem:[%s12197_s3 + $0x3c8] sm:$0xff] }
 0x345   :  { %7143 = vmatpush3.msra.mxu1 %v6282_v32  ;;  %7243 = vmatprep.subr.mxu0 %v11065_v4  ;;  %v6320_v32 = vld [vmem:[%s12197_s3 + $0x340] sm:$0xff] }
 0x346   :  { %6986 = vmatmul.mubr.f32.gmra.mxu1 %v4449_v3  ;;  %7087 = vmatmul.mubr.f32.gmra.mxu0 %v4450_v7 }
 0x347   :  { %6988 = vmatprep.mubr.msk.f32.mxu1 %vm7697_vm6, %v11065_v4  ;;  %7089 = vmatprep.mubr.msk.f32.mxu0 %vm7697_vm6, %v11065_v4 }
 0x348   :  { %7144 = vmatprep.subr.mxu1 %v11065_v4  ;;  %7244 = vmatpush3.msra.mxu0 %v6298_v42 }
 0x349   :  { %7145 = vmatpush3.msra.mxu1 %v6281_v28  ;;  %7245 = vmatprep.subr.mxu0 %v11065_v4 }
 0x34a   :  { %6989 = vmatmul.mubr.f32.gmra.mxu1 %v4450_v7  ;;  %7090 = vmatmul.mubr.f32.gmra.mxu0 %v4451_v35 }
 0x34b   :  { %6991 = vmatprep.mubr.msk.f32.mxu1 %vm7697_vm6, %v11065_v4  ;;  %7092 = vmatprep.mubr.msk.f32.mxu0 %vm7697_vm6, %v11065_v4 }
 0x34c   :  { %7146 = vmatprep.subr.mxu1 %v11065_v4  ;;  %7246 = vmatpush3.msra.mxu0 %v6297_v6 }
 0x34d   :  { %7147 = vmatpush3.msra.mxu1 %v6280_v52  ;;  %7247 = vmatprep.subr.mxu0 %v11065_v4  ;;  %v11430_v52 = vld [vmem:[#allocation2 + $0x44] sm:$0xff] }
 0x34e   :  { %6992 = vmatmul.mubr.f32.gmra.mxu1 %v4451_v35  ;;  %7093 = vmatmul.mubr.f32.gmra.mxu0 %v4452_v58  ;;  %v4687_v35 = vld [vmem:[#allocation2 + $0x43] sm:$0xff] }
 0x34f   :  { %6994 = vmatprep.mubr.msk.f32.mxu1 %vm7697_vm6, %v11065_v4  ;;  %7095 = vmatprep.mubr.msk.f32.mxu0 %vm7697_vm6, %v11065_v4 }
 0x350   :  { %7318 = vmatprep.subr.mxu1 %v11065_v4  ;;  %7248 = vmatpush3.msra.mxu0 %v6296_v9  ;;  %v6319_v9 = vld [vmem:[%s12197_s3 + $0x338] sm:$0xff] }
 0x351   :  { %7419 = vmatprep.subr.mxu0 %v11065_v4 }
 0x352   :  { %6995 = vmatmul.mubr.f32.gmra.mxu1 %v4452_v58  ;;  %7096 = vmatmul.mubr.f32.gmra.mxu0 %v4453_v36 }
 0x353   :  { %6997 = vmatprep.mubr.msk.f32.mxu1 %vm7697_vm6, %v11065_v4  ;;  %7098 = vmatprep.mubr.msk.f32.mxu0 %vm7697_vm6, %v11065_v4 }
 0x356   :  { %6998 = vmatmul.mubr.f32.gmra.mxu1 %v4453_v36  ;;  %7099 = vmatmul.mubr.f32.gmra.mxu0 %v4454_v20  ;;  %v6336_v36 = vld [vmem:[%s12197_s3 + $0x3c0] sm:$0xff] }
 0x357   :  { %7000 = vmatprep.mubr.msk.f32.mxu1 %vm7697_vm6, %v11065_v4  ;;  %7101 = vmatprep.mubr.msk.f32.mxu0 %vm7697_vm6, %v11065_v4 }
 0x35a   :  { %7001 = vmatmul.mubr.f32.gmra.mxu1 %v4454_v20  ;;  %7102 = vmatmul.mubr.f32.gmra.mxu0 %v4455_v53 }
 0x35b   :  { %7003 = vmatprep.mubr.msk.f32.mxu1 %vm7697_vm6, %v11065_v4  ;;  %7104 = vmatprep.mubr.msk.f32.mxu0 %vm7697_vm6, %v11065_v4 }
 0x35e   :  { %7004 = vmatmul.mubr.f32.gmra.mxu1 %v4455_v53  ;;  %7105 = vmatmul.mubr.f32.gmra.mxu0 %v4456_v29 }
 0x35f   :  { %7006 = vmatprep.mubr.msk.f32.mxu1 %vm7697_vm6, %v11065_v4  ;;  %7107 = vmatprep.mubr.msk.f32.mxu0 %vm7697_vm6, %v11065_v4 }
 0x362   :  { %7007 = vmatmul.mubr.f32.gmra.mxu1 %v4456_v29  ;;  %7108 = vmatmul.mubr.f32.gmra.mxu0 %v4457_v50 }
 0x363   :  { %7009 = vmatprep.mubr.msk.f32.mxu1 %vm7697_vm6, %v11065_v4  ;;  %7110 = vmatprep.mubr.msk.f32.mxu0 %vm7697_vm6, %v11065_v4 }
 0x366   :  { %7010 = vmatmul.mubr.f32.gmra.mxu1 %v4457_v50  ;;  %7111 = vmatmul.mubr.f32.gmra.mxu0 %v4458_v1  ;;  %v4688_v50 = vld [vmem:[#allocation2 + $0x4b] sm:$0xff] }
 0x367   :  { %7012 = vmatprep.mubr.msk.f32.mxu1 %vm7697_vm6, %v11065_v4  ;;  %7113 = vmatprep.mubr.msk.f32.mxu0 %vm7697_vm6, %v11065_v4  ;;  %v11447_v1 = vld [vmem:[#allocation2 + $0x4c] sm:$0xff] }
 0x36a   :  { %7013 = vmatmul.mubr.f32.gmra.mxu1 %v4216_v5  ;;  %7114 = vmatmul.mubr.f32.gmra.mxu0 %v4459_v23 }
 0x36b   :  { %7148 = vmatprep.mubr.msk.f32.mxu1 %vm7697_vm6, %v11065_v4  ;;  %7249 = vmatprep.mubr.msk.f32.mxu0 %vm7697_vm6, %v11065_v4 }
 0x36e   :  { %7149 = vmatmul.mubr.f32.vlgmr.msra.gmra.mxu1 %v4680_v10  ;;  %7250 = vmatmul.mubr.f32.vlgmr.msra.gmra.mxu0 %v4923_v43  ;;  %v6335_v10 = vld [vmem:[%s12197_s3 + $0x3b8] sm:$0xff] }
 0x36f   :  { %7319 = vmatpush3.msra.mxu1 %v6327_v25  ;;  %7151 = vmatprep.mubr.msk.f32.mxu1 %vm7697_vm6, %v11065_v4  ;;  %v6318_v25 = vld [vmem:[%s12197_s3 + $0x330] sm:$0xff] }
 0x370   :  { %7252 = vmatprep.mubr.msk.f32.mxu0 %vm7697_vm6, %v11065_v4  ;;  %7320 = vmatprep.subr.mxu1 %v11065_v4 }
 0x371   :  { %7321 = vmatpush3.msra.mxu1 %v6326_v26  ;;  %7420 = vmatpush3.msra.mxu0 %v6343_v33 }
 0x372   :  { %7152 = vmatmul.mubr.f32.gmra.mxu1 %v4681_v47  ;;  %7253 = vmatmul.mubr.f32.gmra.mxu0 %v11332_v37  ;;  %v4689_v47 = vld [vmem:[#allocation2 + $0x53] sm:$0xff] }
 0x373   :  { %7154 = vmatprep.mubr.msk.f32.mxu1 %vm7697_vm6, %v11065_v4  ;;  %7255 = vmatprep.mubr.msk.f32.mxu0 %vm7697_vm6, %v11065_v4 }
 0x374   :  { %7322 = vmatprep.subr.mxu1 %v11065_v4  ;;  %7421 = vmatprep.subr.mxu0 %v11065_v4 }
 0x375   :  { %7323 = vmatpush3.msra.mxu1 %v6325_v30  ;;  %7422 = vmatpush3.msra.mxu0 %v6342_v34  ;;  %v11464_v30 = vld [vmem:[#allocation2 + $0x54] sm:$0xff] }
 0x376   :  { %7155 = vmatmul.mubr.f32.gmra.mxu1 %v4682_v45  ;;  %7256 = vmatmul.mubr.f32.gmra.mxu0 %v11347_v57 }
 0x377   :  { %7157 = vmatprep.mubr.msk.f32.mxu1 %vm7697_vm6, %v11065_v4  ;;  %7258 = vmatprep.mubr.msk.f32.mxu0 %vm7697_vm6, %v11065_v4 }
 0x378   :  { %7324 = vmatprep.subr.mxu1 %v11065_v4  ;;  %7423 = vmatprep.subr.mxu0 %v11065_v4 }
 0x379   :  { %7325 = vmatpush3.msra.mxu1 %v6324_v62  ;;  %7424 = vmatpush3.msra.mxu0 %v6341_v2  ;;  %v3905_v8 = vpop.f32.mrf.mxu1  ;;  %v6317_v62 = vld [vmem:[%s12197_s3 + $0x328] sm:$0xff]  ;;  %v6334_v2 = vld [vmem:[%s12197_s3 + $0x3b0] sm:$0xff] }
 0x37a   :  { %v4085_v24 = vpop.f32.mrf.mxu0  ;;  %7158 = vmatmul.mubr.f32.gmra.mxu1 %v4683_v44  ;;  %7259 = vmatmul.mubr.f32.gmra.mxu0 %v11362_v19 }
 0x37b   :  { %v11371_v59 = vadd.f32 %v4085_v24, %v3905_v8  ;;  %7160 = vmatprep.mubr.msk.f32.mxu1 %vm7697_vm6, %v11065_v4  ;;  %7261 = vmatprep.mubr.msk.f32.mxu0 %vm7697_vm6, %v11065_v4  ;;  %v6749_v13 = vpop.f32.mrf.mxu1 }
 0x37c   :  { %v6850_v63 = vpop.f32.mrf.mxu0  ;;  %7326 = vmatprep.subr.mxu1 %v11065_v4  ;;  %7425 = vmatprep.subr.mxu0 %v11065_v4 }
 0x37d   :  { %7327 = vmatpush3.msra.mxu1 %v6323_v38  ;;  %7426 = vmatpush3.msra.mxu0 %v6340_v22  ;;  %v3910_v49 = vpop.f32.mrf.mxu1  ;;  %v4690_v38 = vld [vmem:[#allocation2 + $0x5b] sm:$0xff] }
 0x37e   :  { %v4090_v17 = vpop.f32.mrf.mxu0  ;;  %7161 = vmatmul.mubr.f32.gmra.mxu1 %v4684_v60  ;;  %7262 = vmatmul.mubr.f32.gmra.mxu0 %v11379_v27  ;;  %v11481_v22 = vld [vmem:[#allocation2 + $0x5c] sm:$0xff] }
 0x37f   :  { %v11388_v16 = vadd.f32 %v4090_v17, %v3910_v49  ;;  %7163 = vmatprep.mubr.msk.f32.mxu1 %vm7697_vm6, %v11065_v4  ;;  %7264 = vmatprep.mubr.msk.f32.mxu0 %vm7697_vm6, %v11065_v4  ;;  %v6752_v54 = vpop.f32.mrf.mxu1  ;;  %v6316_v60 = vld [vmem:[%s12197_s3 + $0x320] sm:$0xff]  ;;  %v6333_v49 = vld [vmem:[%s12197_s3 + $0x3a8] sm:$0xff] }
 0x380   :  { %v6853_v51 = vpop.f32.mrf.mxu0  ;;  %7328 = vmatprep.subr.mxu1 %v11065_v4  ;;  %7427 = vmatprep.subr.mxu0 %v11065_v4  ;;  %v4691_v54 = vld [vmem:[#allocation2 + $0x63] sm:$0xff] }
 0x381   :  { %7329 = vmatpush3.msra.mxu1 %v6322_v31  ;;  %7428 = vmatpush3.msra.mxu0 %v6339_v61  ;;  %v3915_v18 = vpop.f32.mrf.mxu1  ;;  %v11498_v51 = vld [vmem:[#allocation2 + $0x64] sm:$0xff] }
 0x382   :  { %v4095_v39 = vpop.f32.mrf.mxu0  ;;  %7164 = vmatmul.mubr.f32.gmra.mxu1 %v4685_v46  ;;  %7265 = vmatmul.mubr.f32.gmra.mxu0 %v11396_v55 }
 0x383   :  { %v11405_v12 = vadd.f32 %v4095_v39, %v3915_v18  ;;  %7166 = vmatprep.mubr.msk.f32.mxu1 %vm7697_vm6, %v11065_v4  ;;  %7267 = vmatprep.mubr.msk.f32.mxu0 %vm7697_vm6, %v11065_v4  ;;  %v6755_v41 = vpop.f32.mrf.mxu1  ;;  %v6315_v39 = vld [vmem:[%s12197_s3 + $0x318] sm:$0xff] }
 0x384   :  { %v6856_v14 = vpop.f32.mrf.mxu0  ;;  %7330 = vmatprep.subr.mxu1 %v11065_v4  ;;  %7429 = vmatprep.subr.mxu0 %v11065_v4 }
 0x385   :  { %7331 = vmatpush3.msra.mxu1 %v6321_v56  ;;  %7430 = vmatpush3.msra.mxu0 %v6338_v21  ;;  %v3920_v11 = vpop.f32.mrf.mxu1  ;;  %v6332_v56 = vld [vmem:[%s12197_s3 + $0x3a0] sm:$0xff] }
 0x386   :  { %v4100_v3 = vpop.f32.mrf.mxu0  ;;  %7167 = vmatmul.mubr.f32.gmra.mxu1 %v4686_v0  ;;  %7268 = vmatmul.mubr.f32.gmra.mxu0 %v11413_v40  ;;  %v4692_v0 = vld [vmem:[#allocation2 + $0x6b] sm:$0xff] }
 0x387   :  { %v11422_v7 = vadd.f32 %v4100_v3, %v3920_v11  ;;  %7169 = vmatprep.mubr.msk.f32.mxu1 %vm7697_vm6, %v11065_v4  ;;  %7270 = vmatprep.mubr.msk.f32.mxu0 %vm7697_vm6, %v11065_v4  ;;  %v6758_v28 = vpop.f32.mrf.mxu1  ;;  %v11515_v11 = vld [vmem:[#allocation2 + $0x6c] sm:$0xff] }
 0x388   :  { %v6859_v42 = vpop.f32.mrf.mxu0  ;;  %7332 = vmatprep.subr.mxu1 %v11065_v4  ;;  %7431 = vmatprep.subr.mxu0 %v11065_v4  ;;  %v6331_v28 = vld [vmem:[%s12197_s3 + $0x398] sm:$0xff] }
 0x389   :  { %7333 = vmatpush3.msra.mxu1 %v6320_v32  ;;  %7432 = vmatpush3.msra.mxu0 %v6337_v48  ;;  %v3925_v6 = vpop.f32.mrf.mxu1  ;;  %v6314_v48 = vld [vmem:[%s12197_s3 + $0x310] sm:$0xff] }
 0x38a   :  { %v4105_v58 = vpop.f32.mrf.mxu0  ;;  %7170 = vmatmul.mubr.f32.gmra.mxu1 %v4687_v35  ;;  %7271 = vmatmul.mubr.f32.gmra.mxu0 %v11430_v52 }
 0x38b   :  { %v11439_v20 = vadd.f32 %v4105_v58, %v3925_v6  ;;  %7172 = vmatprep.mubr.msk.f32.mxu1 %vm7697_vm6, %v11065_v4  ;;  %7273 = vmatprep.mubr.msk.f32.mxu0 %vm7697_vm6, %v11065_v4  ;;  %v6761_v53 = vpop.f32.mrf.mxu1  ;;  %v4693_v58 = vld [vmem:[#allocation2 + $0x73] sm:$0xff] }
 0x38c   :  { %v6862_v29 = vpop.f32.mrf.mxu0  ;;  %7334 = vmatprep.subr.mxu1 %v11065_v4  ;;  %7433 = vmatprep.subr.mxu0 %v11065_v4 }
 0x38d   :  { %7335 = vmatpush3.msra.mxu1 %v6319_v9  ;;  %7434 = vmatpush3.msra.mxu0 %v6336_v36  ;;  %v3930_v5 = vpop.f32.mrf.mxu1  ;;  %v11532_v9 = vld [vmem:[#allocation2 + $0x74] sm:$0xff]  ;;  %v6313_v29 = vld [vmem:[%s12197_s3 + $0x308] sm:$0xff] }
 0x38e   :  { %v4110_v23 = vpop.f32.mrf.mxu0  ;;  %7173 = vmatmul.mubr.f32.gmra.mxu1 %v4688_v50  ;;  %7274 = vmatmul.mubr.f32.gmra.mxu0 %v11447_v1  ;;  %v6330_v50 = vld [vmem:[%s12197_s3 + $0x390] sm:$0xff] }
 0x38f   :  { %v11456_v43 = vadd.f32 %v4110_v23, %v3930_v5  ;;  %7175 = vmatprep.mubr.msk.f32.mxu1 %vm7697_vm6, %v11065_v4  ;;  %7276 = vmatprep.mubr.msk.f32.mxu0 %vm7697_vm6, %v11065_v4  ;;  %v6764_v26 = vpop.f32.mrf.mxu1 }
 0x390   :  { %v6865_v33 = vpop.f32.mrf.mxu0  ;;  %7336 = vmatprep.subr.mxu1 %v11065_v4  ;;  %7435 = vmatprep.subr.mxu0 %v11065_v4  ;;  %v11549_v26 = vld [vmem:[#allocation2 + $0x7c] sm:$0xff] }
 0x391   :  { %7337 = vmatpush3.msra.mxu1 %v6318_v25  ;;  %7436 = vmatpush3.msra.mxu0 %v6335_v10  ;;  %v3935_v34 = vpop.f32.mrf.mxu1  ;;  %v4694_v10 = vld [vmem:[#allocation2 + $0x7b] sm:$0xff] }
 0x392   :  { %v4115_v45 = vpop.f32.mrf.mxu0  ;;  %7176 = vmatmul.mubr.f32.gmra.mxu1 %v4689_v47  ;;  %7277 = vmatmul.mubr.f32.gmra.mxu0 %v11464_v30 }
 0x393   :  { %v11473_v44 = vadd.f32 %v4115_v45, %v3935_v34  ;;  %7178 = vmatprep.mubr.msk.f32.mxu1 %vm7697_vm6, %v11065_v4  ;;  %7279 = vmatprep.mubr.msk.f32.mxu0 %vm7697_vm6, %v11065_v4  ;;  %v6767_v8 = vpop.f32.mrf.mxu1  ;;  %v6312_v34 = vld [vmem:[%s12197_s3 + $0x300] sm:$0xff]  ;;  %v6329_v45 = vld [vmem:[%s12197_s3 + $0x388] sm:$0xff] }
 0x394   :  { %v6868_v24 = vpop.f32.mrf.mxu0  ;;  %7338 = vmatprep.subr.mxu1 %v11065_v4  ;;  %7437 = vmatprep.subr.mxu0 %v11065_v4 }
 0x395   :  { %7339 = vmatpush3.msra.mxu1 %v6317_v62  ;;  %7438 = vmatpush3.msra.mxu0 %v6334_v2  ;;  %v3940_v13 = vpop.f32.mrf.mxu1  ;;  %v4695_v24 = vld [vmem:[#allocation2 + $0x83] sm:$0xff] }
 0x396   :  { %v4120_v63 = vpop.f32.mrf.mxu0  ;;  %7179 = vmatmul.mubr.f32.gmra.mxu1 %v4690_v38  ;;  %7280 = vmatmul.mubr.f32.gmra.mxu0 %v11481_v22  ;;  %v11566_v38 = vld [vmem:[#allocation2 + $0x84] sm:$0xff] }
 0x397   :  { %v11490_v17 = vadd.f32 %v4120_v63, %v3940_v13  ;;  %7181 = vmatprep.mubr.msk.f32.mxu1 %vm7697_vm6, %v11065_v4  ;;  %7282 = vmatprep.mubr.msk.f32.mxu0 %vm7697_vm6, %v11065_v4  ;;  %v6770_v31 = vpop.f32.mrf.mxu1 }
 0x398   :  { %v6871_v61 = vpop.f32.mrf.mxu0  ;;  %7340 = vmatprep.subr.mxu1 %v11065_v4  ;;  %7439 = vmatprep.subr.mxu0 %v11065_v4  ;;  %v11574_v31 = vld [vmem:[#allocation2] sm:$0xff] }
 0x399   :  { %7341 = vmatpush3.msra.mxu1 %v6316_v60  ;;  %7440 = vmatpush3.msra.mxu0 %v6333_v49  ;;  %v3945_v46 = vpop.f32.mrf.mxu1  ;;  %v6328_v60 = vld [vmem:[%s12197_s3 + $0x380] sm:$0xff] }
 0x39a   :  { %v4125_v18 = vpop.f32.mrf.mxu0  ;;  %7182 = vmatmul.mubr.f32.gmra.mxu1 %v4691_v54  ;;  %7283 = vmatmul.mubr.f32.gmra.mxu0 %v11498_v51  ;;  %v4696_v54 = vld [vmem:[#allocation2 + $0x8b] sm:$0xff] }
 0x39b   :  { %v11507_v21 = vadd.f32 %v4125_v18, %v3945_v46  ;;  %7184 = vmatprep.mubr.msk.f32.mxu1 %vm7697_vm6, %v11065_v4  ;;  %7285 = vmatprep.mubr.msk.f32.mxu0 %vm7697_vm6, %v11065_v4  ;;  %v6773_v41 = vpop.f32.mrf.mxu1  ;;  %v11582_v46 = vld [vmem:[#allocation2 + $0x8c] sm:$0xff] }
 0x39c   :  { %v6874_v14 = vpop.f32.mrf.mxu0  ;;  %7342 = vmatprep.subr.mxu1 %v11065_v4  ;;  %7441 = vmatprep.subr.mxu0 %v11065_v4 }
 0x39d   :  { %7343 = vmatpush3.msra.mxu1 %v6315_v39  ;;  %7442 = vmatpush3.msra.mxu0 %v6332_v56  ;;  %v3950_v3 = vpop.f32.mrf.mxu1 }
 0x39e   :  { %v4130_v32 = vpop.f32.mrf.mxu0  ;;  %7185 = vmatmul.mubr.f32.gmra.mxu1 %v4692_v0  ;;  %7286 = vmatmul.mubr.f32.gmra.mxu0 %v11515_v11  ;;  %v4697_v0 = vld [vmem:[#allocation2 + $0x93] sm:$0xff] }
 0x39f   :  { %v11524_v42 = vadd.f32 %v4130_v32, %v3950_v3  ;;  %7187 = vmatprep.mubr.msk.f32.mxu1 %vm7697_vm6, %v11065_v4  ;;  %7288 = vmatprep.mubr.msk.f32.mxu0 %vm7697_vm6, %v11065_v4  ;;  %v6776_v35 = vpop.f32.mrf.mxu1  ;;  %v11591_v3 = vld [vmem:[#allocation2 + $0x94] sm:$0xff] }
 0x3a0   :  { %v6877_v6 = vpop.f32.mrf.mxu0  ;;  %7344 = vmatprep.subr.mxu1 %v11065_v4  ;;  %7443 = vmatprep.subr.mxu0 %v11065_v4 }
 0x3a1   :  { %7345 = vmatpush3.msra.mxu1 %v6314_v48  ;;  %7444 = vmatpush3.msra.mxu0 %v6331_v28  ;;  %v3955_v36 = vpop.f32.mrf.mxu1 }
 0x3a2   :  { %v4135_v53 = vpop.f32.mrf.mxu0  ;;  %7188 = vmatmul.mubr.f32.gmra.mxu1 %v4693_v58  ;;  %7289 = vmatmul.mubr.f32.gmra.mxu0 %v11532_v9  ;;  %v4698_v58 = vld [vmem:[#allocation2 + $0x9b] sm:$0xff] }
 0x3a3   :  { %v11541_v5 = vadd.f32 %v4135_v53, %v3955_v36  ;;  %7190 = vmatprep.mubr.msk.f32.mxu1 %vm7697_vm6, %v11065_v4  ;;  %7291 = vmatprep.mubr.msk.f32.mxu0 %vm7697_vm6, %v11065_v4  ;;  %v6779_v23 = vpop.f32.mrf.mxu1  ;;  %v11600_v36 = vld [vmem:[#allocation2 + $0x9c] sm:$0xff] }
 0x3a4   :  { %v6880_v25 = vpop.f32.mrf.mxu0  ;;  %7346 = vmatprep.subr.mxu1 %v11065_v4  ;;  %7445 = vmatprep.subr.mxu0 %v11065_v4 }
 0x3a5   :  { %7347 = vmatpush3.msra.mxu1 %v6313_v29  ;;  %7446 = vmatpush3.msra.mxu0 %v6330_v50  ;;  %v3960_v33 = vpop.f32.mrf.mxu1 }
 0x3a6   :  { %v4140_v47 = vpop.f32.mrf.mxu0  ;;  %7191 = vmatmul.mubr.f32.gmra.mxu1 %v4694_v10  ;;  %7292 = vmatmul.mubr.f32.gmra.mxu0 %v11549_v26  ;;  %v4699_v10 = vld [vmem:[#allocation2 + $0xa3] sm:$0xff] }
 0x3a7   :  { %v11558_v62 = vadd.f32 %v4140_v47, %v3960_v33  ;;  %7193 = vmatprep.mubr.msk.f32.mxu1 %vm7697_vm6, %v11065_v4  ;;  %7294 = vmatprep.mubr.msk.f32.mxu0 %vm7697_vm6, %v11065_v4  ;;  %v6782_v2 = vpop.f32.mrf.mxu1  ;;  %v11609_v33 = vld [vmem:[#allocation2 + $0xa4] sm:$0xff] }
 0x3a8   :  { %v6883_v8 = vpop.f32.mrf.mxu0  ;;  %7348 = vmatprep.subr.mxu1 %v11065_v4  ;;  %7447 = vmatprep.subr.mxu0 %v11065_v4 }
 0x3a9   :  { %7349 = vmatpush3.msra.mxu1 %v6312_v34  ;;  %7448 = vmatpush3.msra.mxu0 %v6329_v45  ;;  %v3965_v13 = vpop.f32.mrf.mxu1 }
 0x3aa   :  { %v4145_v63 = vpop.f32.mrf.mxu0  ;;  %7194 = vmatmul.mubr.f32.gmra.mxu1 %v4695_v24  ;;  %7295 = vmatmul.mubr.f32.gmra.mxu0 %v11566_v38  ;;  %v4700_v24 = vld [vmem:[#allocation2 + $0xab] sm:$0xff] }
 0x3ab   :  { %v11572_v49 = vadd.f32 %v4145_v63, %v3965_v13  ;;  %7196 = vmatprep.mubr.msk.f32.mxu1 %vm7697_vm6, %v11574_v31  ;;  %7297 = vmatprep.mubr.msk.f32.mxu0 %vm7697_vm6, %v11574_v31  ;;  %v6785_v4 = vpop.f32.mrf.mxu1  ;;  %v11618_v13 = vld [vmem:[#allocation2 + $0xac] sm:$0xff] }
 0x3ac   :  { %v6886_v61 = vpop.f32.mrf.mxu0  ;;  %7449 = vmatprep.subr.mxu0 %v11574_v31  ;;  %7520 = vmatprep.subr.mxu1 %v11574_v31 }
 0x3ad   :  { %7450 = vmatpush3.msra.mxu0 %v6328_v60  ;;  %v3970_v18 = vpop.f32.mrf.mxu1 }
 0x3ae   :  { %v4150_v39 = vpop.f32.mrf.mxu0  ;;  %7197 = vmatmul.mubr.f32.gmra.mxu1 %v4696_v54  ;;  %7298 = vmatmul.mubr.f32.gmra.mxu0 %v11582_v46 }
 0x3af   :  { %v11585_v56 = vadd.f32 %v4150_v39, %v3970_v18  ;;  %7199 = vmatprep.mubr.msk.f32.mxu1 %vm7697_vm6, %v11574_v31  ;;  %7300 = vmatprep.mubr.msk.f32.mxu0 %vm7697_vm6, %v11574_v31  ;;  %v6788_v41 = vpop.f32.mrf.mxu1  ;;  %v4701_v18 = vld [vmem:[#allocation2 + $0xb3] sm:$0xff] }
 0x3b0   :  { %v6889_v14 = vpop.f32.mrf.mxu0  ;;  %v11627_v39 = vld [vmem:[#allocation2 + $0xb4] sm:$0xff] }
 0x3b1   :  { %v3975_v32 = vpop.f32.mrf.mxu1 }
 0x3b2   :  { %v4155_v48 = vpop.f32.mrf.mxu0  ;;  %7200 = vmatmul.mubr.f32.gmra.mxu1 %v4697_v0  ;;  %7301 = vmatmul.mubr.f32.gmra.mxu0 %v11591_v3 }
 0x3b3   :  { %v11594_v28 = vadd.f32 %v4155_v48, %v3975_v32  ;;  %7202 = vmatprep.mubr.msk.f32.mxu1 %vm7697_vm6, %v11574_v31  ;;  %7303 = vmatprep.mubr.msk.f32.mxu0 %vm7697_vm6, %v11574_v31  ;;  %v6791_v35 = vpop.f32.mrf.mxu1 }
 0x3b4   :  { %v6892_v6 = vpop.f32.mrf.mxu0  ;;  %v4702_v35 = vld [vmem:[#allocation2 + $0xbb] sm:$0x3] }
 0x3b5   :  { %v3980_v53 = vpop.f32.mrf.mxu1  ;;  %v4945_v6 = vld [vmem:[#allocation2 + $0xbc] sm:$0x3] }
 0x3b6   :  { %v4160_v29 = vpop.f32.mrf.mxu0  ;;  %7203 = vmatmul.mubr.f32.gmra.mxu1 %v4698_v58  ;;  %7304 = vmatmul.mubr.f32.gmra.mxu0 %v11600_v36 }
 0x3b7   :  { %v11603_v50 = vadd.f32 %v4160_v29, %v3980_v53  ;;  %7205 = vmatprep.mubr.msk.f32.mxu1 %vm7697_vm6, %v11574_v31  ;;  %7306 = vmatprep.mubr.msk.f32.mxu0 %vm7697_vm6, %v11574_v31  ;;  %v6794_v23 = vpop.f32.mrf.mxu1 }
 0x3b8   :  { %v6895_v25 = vpop.f32.mrf.mxu0 }
 0x3b9   :  { %v3985_v47 = vpop.f32.mrf.mxu1 }
 0x3ba   :  { %v4165_v34 = vpop.f32.mrf.mxu0  ;;  %7206 = vmatmul.mubr.f32.gmra.mxu1 %v4699_v10  ;;  %7307 = vmatmul.mubr.f32.gmra.mxu0 %v11609_v33  ;;  %v6359_v10 = vld [vmem:[%s12197_s3 + $0x478] sm:$0xff] }
 0x3bb   :  { %v11612_v45 = vadd.f32 %v4165_v34, %v3985_v47  ;;  %7208 = vmatprep.mubr.msk.f32.mxu1 %vm7697_vm6, %v11574_v31  ;;  %7309 = vmatprep.mubr.msk.f32.mxu0 %vm7697_vm6, %v11574_v31  ;;  %v6797_v2 = vpop.f32.mrf.mxu1  ;;  %v5409_v47 = vld [vmem:[#allocation2 + $0x15] sm:$0xff] }
 0x3bc   :  { %v6898_v8 = vpop.f32.mrf.mxu0 }
 0x3bd   :  { %v3990_v63 = vpop.f32.mrf.mxu1  ;;  %v6358_v8 = vld [vmem:[%s12197_s3 + $0x470] sm:$0xff] }
 0x3be   :  { %v4170_v60 = vpop.f32.mrf.mxu0  ;;  %7209 = vmatmul.mubr.f32.gmra.mxu1 %v4700_v24  ;;  %7310 = vmatmul.mubr.f32.gmra.mxu0 %v11618_v13 }
 0x3bf   :  { %v11621_v4 = vadd.f32 %v4170_v60, %v3990_v63  ;;  %7211 = vmatprep.mubr.msk.f32.mxu1 %vm7697_vm6, %v11574_v31  ;;  %7312 = vmatprep.mubr.msk.f32.mxu0 %vm7697_vm6, %v11574_v31  ;;  %v6800_v61 = vpop.f32.mrf.mxu1 }
 0x3c0   :  { %v6901_v54 = vpop.f32.mrf.mxu0  ;;  %v5410_v61 = vld [vmem:[#allocation2 + $0x1d] sm:$0xff] }
 0x3c1   :  { %v3995_v41 = vpop.f32.mrf.mxu1 }
 0x3c2   :  { %v4175_v14 = vpop.f32.mrf.mxu0  ;;  %7212 = vmatmul.mubr.f32.gmra.mxu1 %v4701_v18  ;;  %7313 = vmatmul.mubr.f32.gmra.mxu0 %v11627_v39  ;;  %v6357_v18 = vld [vmem:[%s12197_s3 + $0x468] sm:$0xff] }
 0x3c3   :  { %v11630_v0 = vadd.f32 %v4175_v14, %v3995_v41  ;;  %7214 = vmatprep.mubr.msk.f32.mxu1 %vm7697_vm6, %v11574_v31  ;;  %7315 = vmatprep.mubr.msk.f32.mxu0 %vm7697_vm6, %v11574_v31  ;;  %v6803_v32 = vpop.f32.mrf.mxu1 }
 0x3c4   :  { %v6904_v48 = vpop.f32.mrf.mxu0 }
 0x3c5   :  { %v4000_v58 = vpop.f32.mrf.mxu1  ;;  %v5411_v48 = vld [vmem:[#allocation2 + $0x25] sm:$0xff] }
 0x3c6   :  { %v4180_v53 = vpop.f32.mrf.mxu0  ;;  %7215 = vmatmul.mubr.f32.gmra.mxu1 %v4702_v35  ;;  %7316 = vmatmul.mubr.f32.gmra.mxu0 %v4945_v6  ;;  %v6356_v6 = vld [vmem:[%s12197_s3 + $0x460] sm:$0xff] }
 0x3c7   :  { %v11636_v29 = vadd.f32 %v4180_v53, %v4000_v58  ;;  %7350 = vmatprep.mubr.msk.f32.mxu1 %vm7697_vm6, %v11574_v31  ;;  %7451 = vmatprep.mubr.msk.f32.mxu0 %vm7697_vm6, %v11574_v31  ;;  %v6806_v23 = vpop.f32.mrf.mxu1 }
 0x3c8   :  { %v6907_v25 = vpop.f32.mrf.mxu0 }
 0x3c9   :  { %v4005_v34 = vpop.f32.mrf.mxu1 }
 0x3ca   :  { %v4185_v2 = vpop.f32.mrf.mxu0  ;;  %7351 = vmatmul.mubr.f32.vlgmr.msra.gmra.mxu1 %v11332_v37  ;;  %7452 = vmatmul.mubr.f32.vlgmr.msra.gmra.mxu0 %v5409_v47 }
 0x3cb   :  { %v11649_v24 = vadd.f32 %v4185_v2, %v4005_v34  ;;  %7521 = vmatpush3.msra.mxu1 %v6359_v10  ;;  %7353 = vmatprep.mubr.msk.f32.mxu1 %vm7697_vm6, %v11574_v31  ;;  %v6809_v63 = vpop.f32.mrf.mxu1 }
 0x3cc   :  { %v6910_v60 = vpop.f32.mrf.mxu0  ;;  %7454 = vmatprep.mubr.msk.f32.mxu0 %vm7697_vm6, %v11574_v31  ;;  %7522 = vmatprep.subr.mxu1 %v11574_v31 }
 0x3cd   :  { %7523 = vmatpush3.msra.mxu1 %v6358_v8  ;;  %v4010_v37 = vpop.f32.mrf.mxu1 }
 0x3ce   :  { %v4190_v54 = vpop.f32.mrf.mxu0  ;;  %7354 = vmatmul.mubr.f32.gmra.mxu1 %v11347_v57  ;;  %7455 = vmatmul.mubr.f32.gmra.mxu0 %v5410_v61 }
 0x3cf   :  { %v11660_v41 = vadd.f32 %v4190_v54, %v4010_v37  ;;  %7356 = vmatprep.mubr.msk.f32.mxu1 %vm7697_vm6, %v11574_v31  ;;  %7457 = vmatprep.mubr.msk.f32.mxu0 %vm7697_vm6, %v11574_v31  ;;  %v6812_v14 = vpop.f32.mrf.mxu1 }
 0x3d0   :  { %v6913_v32 = vpop.f32.mrf.mxu0  ;;  %7524 = vmatprep.subr.mxu1 %v11574_v31 }
 0x3d1   :  { %7525 = vmatpush3.msra.mxu1 %v6357_v18  ;;  %v4300_v57 = vpop.f32.mrf.mxu1 }
 0x3d2   :  { %v4543_v35 = vpop.f32.mrf.mxu0  ;;  %7357 = vmatmul.mubr.f32.gmra.mxu1 %v11362_v19  ;;  %7458 = vmatmul.mubr.f32.gmra.mxu0 %v5411_v48  ;;  %v4414_v58 = vadd.f32 %v4300_v57, %v11084_v15  ;;  %v5412_v19 = vld [vmem:[#allocation2 + $0x2d] sm:$0xff]  ;;  %v6355_v15 = vld [vmem:[%s12197_s3 + $0x458] sm:$0xff] }
 0x3d3   :  { %7359 = vmatprep.mubr.msk.f32.mxu1 %vm7697_vm6, %v11574_v31  ;;  %7460 = vmatprep.mubr.msk.f32.mxu0 %vm7697_vm6, %v11574_v31  ;;  %v6948_v53 = vpop.f32.mrf.mxu1 }
 0x3d4   :  { %v7049_v23 = vpop.f32.mrf.mxu0  ;;  %7526 = vmatprep.subr.mxu1 %v11574_v31  ;;  %v11677_v25 = vadd.f32 %v4543_v35, %v4414_v58 }
 0x3d5   :  { %7527 = vmatpush3.msra.mxu1 %v6356_v6 }
 0x3d6   :  { %v4305_v10 = vpop.f32.mrf.mxu1  ;;  %v4548_v47 = vpop.f32.mrf.mxu0  ;;  %7360 = vmatmul.mubr.f32.gmra.mxu1 %v11379_v27  ;;  %7461 = vmatmul.mubr.f32.gmra.mxu0 %v5412_v19  ;;  %v5413_v27 = vld [vmem:[#allocation2 + $0x35] sm:$0xff] }
 0x3d7   :  { %v4415_v34 = vadd.f32 %v4305_v10, %v11371_v59  ;;  %7362 = vmatprep.mubr.msk.f32.mxu1 %vm7697_vm6, %v11574_v31  ;;  %7463 = vmatprep.mubr.msk.f32.mxu0 %vm7697_vm6, %v11574_v31  ;;  %v6354_v59 = vld [vmem:[%s12197_s3 + $0x450] sm:$0xff] }
 0x3d8   :  { %v6951_v2 = vpop.f32.mrf.mxu1  ;;  %v7052_v8 = vpop.f32.mrf.mxu0  ;;  %7528 = vmatprep.subr.mxu1 %v11574_v31 }
 0x3d9   :  { %v11689_v63 = vadd.f32 %v4548_v47, %v4415_v34  ;;  %7529 = vmatpush3.msra.mxu1 %v6355_v15 }
 0x3da   :  { %v4310_v60 = vpop.f32.mrf.mxu1  ;;  %v4553_v61 = vpop.f32.mrf.mxu0  ;;  %7363 = vmatmul.mubr.f32.gmra.mxu1 %v11396_v55  ;;  %7464 = vmatmul.mubr.f32.gmra.mxu0 %v5413_v27  ;;  %v5414_v55 = vld [vmem:[#allocation2 + $0x3d] sm:$0xff] }
 0x3db   :  { %v4416_v37 = vadd.f32 %v4310_v60, %v11388_v16  ;;  %7365 = vmatprep.mubr.msk.f32.mxu1 %vm7697_vm6, %v11574_v31  ;;  %7466 = vmatprep.mubr.msk.f32.mxu0 %vm7697_vm6, %v11574_v31  ;;  %v6353_v16 = vld [vmem:[%s12197_s3 + $0x448] sm:$0xff] }
 0x3dc   :  { %v6954_v54 = vpop.f32.mrf.mxu1  ;;  %v7055_v18 = vpop.f32.mrf.mxu0  ;;  %7530 = vmatprep.subr.mxu1 %v11574_v31 }
 0x3dd   :  { %v11701_v14 = vadd.f32 %v4553_v61, %v4416_v37  ;;  %7531 = vmatpush3.msra.mxu1 %v6354_v59 }
 0x3de   :  { %v4315_v32 = vpop.f32.mrf.mxu1  ;;  %v4558_v48 = vpop.f32.mrf.mxu0  ;;  %7366 = vmatmul.mubr.f32.gmra.mxu1 %v11413_v40  ;;  %7467 = vmatmul.mubr.f32.gmra.mxu0 %v5414_v55  ;;  %v5415_v40 = vld [vmem:[#allocation2 + $0x45] sm:$0xff] }
 0x3df   :  { %v4417_v57 = vadd.f32 %v4315_v32, %v11405_v12  ;;  %7368 = vmatprep.mubr.msk.f32.mxu1 %vm7697_vm6, %v11574_v31  ;;  %7469 = vmatprep.mubr.msk.f32.mxu0 %vm7697_vm6, %v11574_v31  ;;  %v6352_v12 = vld [vmem:[%s12197_s3 + $0x440] sm:$0xff] }
 0x3e0   :  { %v6957_v35 = vpop.f32.mrf.mxu1  ;;  %v7058_v6 = vpop.f32.mrf.mxu0  ;;  %7532 = vmatprep.subr.mxu1 %v11574_v31 }
 0x3e1   :  { %v11713_v58 = vadd.f32 %v4558_v48, %v4417_v57  ;;  %7533 = vmatpush3.msra.mxu1 %v6353_v16 }
 0x3e2   :  { %v4320_v53 = vpop.f32.mrf.mxu1  ;;  %v4563_v23 = vpop.f32.mrf.mxu0  ;;  %7369 = vmatmul.mubr.f32.gmra.mxu1 %v11430_v52  ;;  %7470 = vmatmul.mubr.f32.gmra.mxu0 %v5415_v40  ;;  %v5416_v52 = vld [vmem:[#allocation2 + $0x4d] sm:$0xff] }
 0x3e3   :  { %v4418_v19 = vadd.f32 %v4320_v53, %v11422_v7  ;;  %7371 = vmatprep.mubr.msk.f32.mxu1 %vm7697_vm6, %v11574_v31  ;;  %7472 = vmatprep.mubr.msk.f32.mxu0 %vm7697_vm6, %v11574_v31  ;;  %v6351_v7 = vld [vmem:[%s12197_s3 + $0x438] sm:$0xff] }
 0x3e4   :  { %v6960_v10 = vpop.f32.mrf.mxu1  ;;  %v7061_v47 = vpop.f32.mrf.mxu0  ;;  %7534 = vmatprep.subr.mxu1 %v11574_v31 }
 0x3e5   :  { %v11725_v15 = vadd.f32 %v4563_v23, %v4418_v19  ;;  %7535 = vmatpush3.msra.mxu1 %v6352_v12 }
 0x3e6   :  { %v4325_v34 = vpop.f32.mrf.mxu1  ;;  %v4568_v2 = vpop.f32.mrf.mxu0  ;;  %7372 = vmatmul.mubr.f32.gmra.mxu1 %v11447_v1  ;;  %7473 = vmatmul.mubr.f32.gmra.mxu0 %v5416_v52  ;;  %v5417_v1 = vld [vmem:[#allocation2 + $0x55] sm:$0xff] }
 0x3e7   :  { %v4419_v8 = vadd.f32 %v4325_v34, %v11439_v20  ;;  %7374 = vmatprep.mubr.msk.f32.mxu1 %vm7697_vm6, %v11574_v31  ;;  %7475 = vmatprep.mubr.msk.f32.mxu0 %vm7697_vm6, %v11574_v31  ;;  %v6350_v20 = vld [vmem:[%s12197_s3 + $0x430] sm:$0xff] }
 0x3e8   :  { %v6963_v27 = vpop.f32.mrf.mxu1  ;;  %v7064_v60 = vpop.f32.mrf.mxu0  ;;  %7536 = vmatprep.subr.mxu1 %v11574_v31 }
 0x3e9   :  { %v11737_v61 = vadd.f32 %v4568_v2, %v4419_v8  ;;  %7537 = vmatpush3.msra.mxu1 %v6351_v7 }
 0x3ea   :  { %v4330_v59 = vpop.f32.mrf.mxu1  ;;  %v4573_v37 = vpop.f32.mrf.mxu0  ;;  %7375 = vmatmul.mubr.f32.gmra.mxu1 %v11464_v30  ;;  %7476 = vmatmul.mubr.f32.gmra.mxu0 %v5417_v1  ;;  %v5418_v30 = vld [vmem:[#allocation2 + $0x5d] sm:$0xff] }
 0x3eb   :  { %v4420_v54 = vadd.f32 %v4330_v59, %v11456_v43  ;;  %7377 = vmatprep.mubr.msk.f32.mxu1 %vm7697_vm6, %v11574_v31  ;;  %7478 = vmatprep.mubr.msk.f32.mxu0 %vm7697_vm6, %v11574_v31  ;;  %v6349_v43 = vld [vmem:[%s12197_s3 + $0x428] sm:$0xff] }
 0x3ec   :  { %v6966_v18 = vpop.f32.mrf.mxu1  ;;  %v7067_v55 = vpop.f32.mrf.mxu0  ;;  %7538 = vmatprep.subr.mxu1 %v11574_v31 }
 0x3ed   :  { %v11749_v32 = vadd.f32 %v4573_v37, %v4420_v54  ;;  %7539 = vmatpush3.msra.mxu1 %v6350_v20 }
 0x3ee   :  { %v4335_v48 = vpop.f32.mrf.mxu1  ;;  %v4578_v16 = vpop.f32.mrf.mxu0  ;;  %7378 = vmatmul.mubr.f32.gmra.mxu1 %v11481_v22  ;;  %7479 = vmatmul.mubr.f32.gmra.mxu0 %v5418_v30  ;;  %v5419_v22 = vld [vmem:[#allocation2 + $0x65] sm:$0xff] }
 0x3ef   :  { %v4421_v57 = vadd.f32 %v4335_v48, %v11473_v44  ;;  %7380 = vmatprep.mubr.msk.f32.mxu1 %vm7697_vm6, %v11574_v31  ;;  %7481 = vmatprep.mubr.msk.f32.mxu0 %vm7697_vm6, %v11574_v31  ;;  %v6348_v44 = vld [vmem:[%s12197_s3 + $0x420] sm:$0xff] }
 0x3f0   :  { %v6969_v35 = vpop.f32.mrf.mxu1  ;;  %v7070_v6 = vpop.f32.mrf.mxu0  ;;  %7540 = vmatprep.subr.mxu1 %v11574_v31 }
 0x3f1   :  { %v11761_v40 = vadd.f32 %v4578_v16, %v4421_v57  ;;  %7541 = vmatpush3.msra.mxu1 %v6349_v43 }
 0x3f2   :  { %v4340_v53 = vpop.f32.mrf.mxu1  ;;  %v4583_v23 = vpop.f32.mrf.mxu0  ;;  %7381 = vmatmul.mubr.f32.gmra.mxu1 %v11498_v51  ;;  %7482 = vmatmul.mubr.f32.gmra.mxu0 %v5419_v22  ;;  %v5420_v51 = vld [vmem:[#allocation2 + $0x6d] sm:$0xff] }
 0x3f3   :  { %v4422_v12 = vadd.f32 %v4340_v53, %v11490_v17  ;;  %7383 = vmatprep.mubr.msk.f32.mxu1 %vm7697_vm6, %v11574_v31  ;;  %7484 = vmatprep.mubr.msk.f32.mxu0 %vm7697_vm6, %v11574_v31  ;;  %v6347_v17 = vld [vmem:[%s12197_s3 + $0x418] sm:$0xff] }
 0x3f4   :  { %v6972_v19 = vpop.f32.mrf.mxu1  ;;  %v7073_v10 = vpop.f32.mrf.mxu0  ;;  %7542 = vmatprep.subr.mxu1 %v11574_v31 }
 0x3f5   :  { %v11773_v47 = vadd.f32 %v4583_v23, %v4422_v12  ;;  %7543 = vmatpush3.msra.mxu1 %v6348_v44 }
 0x3f6   :  { %v4345_v52 = vpop.f32.mrf.mxu1  ;;  %v4588_v34 = vpop.f32.mrf.mxu0  ;;  %7384 = vmatmul.mubr.f32.gmra.mxu1 %v11515_v11  ;;  %7485 = vmatmul.mubr.f32.gmra.mxu0 %v5420_v51  ;;  %v5421_v11 = vld [vmem:[#allocation2 + $0x75] sm:$0xff] }
 0x3f7   :  { %v4423_v2 = vadd.f32 %v4345_v52, %v11507_v21  ;;  %7386 = vmatprep.mubr.msk.f32.mxu1 %vm7697_vm6, %v11574_v31  ;;  %7487 = vmatprep.mubr.msk.f32.mxu0 %vm7697_vm6, %v11574_v31  ;;  %v6346_v21 = vld [vmem:[%s12197_s3 + $0x410] sm:$0xff] }
 0x3f8   :  { %v6975_v7 = vpop.f32.mrf.mxu1  ;;  %v7076_v8 = vpop.f32.mrf.mxu0  ;;  %7544 = vmatprep.subr.mxu1 %v11574_v31  ;;  %v5425_v52 = vld [vmem:[#allocation2 + $0x95] sm:$0xff] }
 0x3f9   :  { %v11785_v27 = vadd.f32 %v4588_v34, %v4423_v2  ;;  %7545 = vmatpush3.msra.mxu1 %v6347_v17  ;;  %v5426_v8 = vld [vmem:[#allocation2 + $0x9d] sm:$0xff] }
 0x3fa   :  { %v4350_v60 = vpop.f32.mrf.mxu1  ;;  %v4593_v1 = vpop.f32.mrf.mxu0  ;;  %7387 = vmatmul.mubr.f32.gmra.mxu1 %v11532_v9  ;;  %7488 = vmatmul.mubr.f32.gmra.mxu0 %v5421_v11  ;;  %v5422_v9 = vld [vmem:[#allocation2 + $0x7d] sm:$0xff] }
 0x3fb   :  { %v4424_v59 = vadd.f32 %v4350_v60, %v11524_v42  ;;  %7389 = vmatprep.mubr.msk.f32.mxu1 %vm7697_vm6, %v11574_v31  ;;  %7490 = vmatprep.mubr.msk.f32.mxu0 %vm7697_vm6, %v11574_v31  ;;  %v6345_v42 = vld [vmem:[%s12197_s3 + $0x408] sm:$0xff] }
 0x3fc   :  { %v6978_v37 = vpop.f32.mrf.mxu1  ;;  %v7079_v20 = vpop.f32.mrf.mxu0  ;;  %7546 = vmatprep.subr.mxu1 %v11574_v31 }
 0x3fd   :  { %v11797_v54 = vadd.f32 %v4593_v1, %v4424_v59  ;;  %7547 = vmatpush3.msra.mxu1 %v6346_v21  ;;  %v5427_v59 = vld [vmem:[#allocation2 + $0xa5] sm:$0xff] }
 0x3fe   :  { %v4355_v18 = vpop.f32.mrf.mxu1  ;;  %v4598_v55 = vpop.f32.mrf.mxu0  ;;  %7390 = vmatmul.mubr.f32.gmra.mxu1 %v11549_v26  ;;  %7491 = vmatmul.mubr.f32.gmra.mxu0 %v5422_v9  ;;  %v5423_v26 = vld [vmem:[#allocation2 + $0x85] sm:$0xff] }
 0x3ff   :  { %v4425_v30 = vadd.f32 %v4355_v18, %v11541_v5  ;;  %7392 = vmatprep.mubr.msk.f32.mxu1 %vm7697_vm6, %v11574_v31  ;;  %7493 = vmatprep.mubr.msk.f32.mxu0 %vm7697_vm6, %v11574_v31  ;;  %v6344_v5 = vld [vmem:[%s12197_s3 + $0x400] sm:$0xff] }
 0x400   :  { %v6981_v48 = vpop.f32.mrf.mxu1  ;;  %v7082_v16 = vpop.f32.mrf.mxu0  ;;  %7548 = vmatprep.subr.mxu1 %v11574_v31 }
 0x401   :  { %v11809_v43 = vadd.f32 %v4598_v55, %v4425_v30  ;;  %7549 = vmatpush3.msra.mxu1 %v6345_v42  ;;  %v5428_v55 = vld [vmem:[#allocation2 + $0xad] sm:$0xff] }
 0x402   :  { %v4360_v57 = vpop.f32.mrf.mxu1  ;;  %v4603_v35 = vpop.f32.mrf.mxu0  ;;  %7393 = vmatmul.mubr.f32.gmra.mxu1 %v11566_v38  ;;  %7494 = vmatmul.mubr.f32.gmra.mxu0 %v5423_v26  ;;  %v5424_v38 = vld [vmem:[#allocation2 + $0x8d] sm:$0xff]  ;;  %v5429_v26 = vld [vmem:[#allocation2 + $0xb5] sm:$0xff] }
 0x403   :  { %v4426_v6 = vadd.f32 %v4360_v57, %v11558_v62  ;;  %7395 = vmatprep.mubr.msk.f32.mxu1 %vm7697_vm6, %v11574_v31  ;;  %7496 = vmatprep.mubr.msk.f32.mxu0 %vm7697_vm6, %v11574_v31 }
 0x404   :  { %v6984_v22 = vpop.f32.mrf.mxu1  ;;  %v7085_v53 = vpop.f32.mrf.mxu0  ;;  %7550 = vmatprep.subr.mxu1 %v11574_v31 }
 0x405   :  { %v11821_v23 = vadd.f32 %v4603_v35, %v4426_v6  ;;  %7551 = vmatpush3.msra.mxu1 %v6344_v5  ;;  %v5187_v22 = vld [vmem:[#allocation2 + $0xbc] sm:$0xff] }
 0x406   :  { %v4365_v44 = vpop.f32.mrf.mxu1  ;;  %v4608_v12 = vpop.f32.mrf.mxu0  ;;  %7396 = vmatmul.mubr.f32.gmra.mxu1 %v11582_v46  ;;  %7497 = vmatmul.mubr.f32.gmra.mxu0 %v5424_v38 }
 0x407   :  { %v4427_v62 = vadd.f32 %v4365_v44, %v11572_v49  ;;  %7398 = vmatprep.mubr.msk.f32.mxu1 %vm7697_vm6, %v11574_v31  ;;  %7499 = vmatprep.mubr.msk.f32.mxu0 %vm7697_vm6, %v11574_v31  ;;  %v5431_v44 = vld [vmem:[#allocation2 + $0xc5] sm:$0x3] }
 0x408   :  { %v6987_v19 = vpop.f32.mrf.mxu1  ;;  %v7088_v10 = vpop.f32.mrf.mxu0 }
 0x409   :  { %v11829_v51 = vadd.f32 %v4608_v12, %v4427_v62 }
 0x40a   :  { %v4370_v34 = vpop.f32.mrf.mxu1  ;;  %v4613_v17 = vpop.f32.mrf.mxu0  ;;  %7399 = vmatmul.mubr.f32.gmra.mxu1 %v11591_v3  ;;  %7500 = vmatmul.mubr.f32.gmra.mxu0 %v5425_v52 }
 0x40b   :  { %v4428_v46 = vadd.f32 %v4370_v34, %v11585_v56  ;;  %7401 = vmatprep.mubr.msk.f32.mxu1 %vm7697_vm6, %v11574_v31  ;;  %7502 = vmatprep.mubr.msk.f32.mxu0 %vm7697_vm6, %v11574_v31 }
 0x40c   :  { %v6990_v49 = vpop.f32.mrf.mxu1  ;;  %v7091_v2 = vpop.f32.mrf.mxu0 }
 0x40d   :  { %v11837_v7 = vadd.f32 %v4613_v17, %v4428_v46  ;;  %v5652_v49 = vld [vmem:[#allocation2 + $0x16] sm:$0xff] }
 0x40e   :  { %v4375_v11 = vpop.f32.mrf.mxu1  ;;  %v4618_v60 = vpop.f32.mrf.mxu0  ;;  %7402 = vmatmul.mubr.f32.gmra.mxu1 %v11600_v36  ;;  %7503 = vmatmul.mubr.f32.gmra.mxu0 %v5426_v8 }
 0x40f   :  { %v4429_v3 = vadd.f32 %v4375_v11, %v11594_v28  ;;  %7404 = vmatprep.mubr.msk.f32.mxu1 %vm7697_vm6, %v11574_v31  ;;  %7505 = vmatprep.mubr.msk.f32.mxu0 %vm7697_vm6, %v11574_v31 }
 0x410   :  { %v6993_v56 = vpop.f32.mrf.mxu1  ;;  %v7094_v1 = vpop.f32.mrf.mxu0 }
 0x411   :  { %v11845_v21 = vadd.f32 %v4618_v60, %v4429_v3 }
 0x412   :  { %v4380_v37 = vpop.f32.mrf.mxu1  ;;  %v4623_v20 = vpop.f32.mrf.mxu0  ;;  %7405 = vmatmul.mubr.f32.gmra.mxu1 %v11609_v33  ;;  %7506 = vmatmul.mubr.f32.gmra.mxu0 %v5427_v59 }
 0x413   :  { %v4430_v36 = vadd.f32 %v4380_v37, %v11603_v50  ;;  %7407 = vmatprep.mubr.msk.f32.mxu1 %vm7697_vm6, %v11574_v31  ;;  %7508 = vmatprep.mubr.msk.f32.mxu0 %vm7697_vm6, %v11574_v31 }
 0x414   :  { %v6996_v28 = vpop.f32.mrf.mxu1  ;;  %v7097_v9 = vpop.f32.mrf.mxu0 }
 0x415   :  { %v11853_v18 = vadd.f32 %v4623_v20, %v4430_v36 }
 0x416   :  { %v4385_v42 = vpop.f32.mrf.mxu1  ;;  %v4628_v30 = vpop.f32.mrf.mxu0  ;;  %7408 = vmatmul.mubr.f32.gmra.mxu1 %v11618_v13  ;;  %7509 = vmatmul.mubr.f32.gmra.mxu0 %v5428_v55 }
 0x417   :  { %v4431_v33 = vadd.f32 %v4385_v42, %v11612_v45  ;;  %7410 = vmatprep.mubr.msk.f32.mxu1 %vm7697_vm6, %v11574_v31  ;;  %7511 = vmatprep.mubr.msk.f32.mxu0 %vm7697_vm6, %v11574_v31 }
 0x418   :  { %v6999_v50 = vpop.f32.mrf.mxu1  ;;  %v7100_v48 = vpop.f32.mrf.mxu0 }
 0x419   :  { %v11861_v16 = vadd.f32 %v4628_v30, %v4431_v33 }
 0x41a   :  { %v4390_v57 = vpop.f32.mrf.mxu1  ;;  %v4633_v35 = vpop.f32.mrf.mxu0  ;;  %7411 = vmatmul.mubr.f32.gmra.mxu1 %v11627_v39  ;;  %7512 = vmatmul.mubr.f32.gmra.mxu0 %v5429_v26 }
 0x41b   :  { %v4432_v13 = vadd.f32 %v4390_v57, %v11621_v4  ;;  %7413 = vmatprep.mubr.msk.f32.mxu1 %vm7697_vm6, %v11574_v31  ;;  %7514 = vmatprep.mubr.msk.f32.mxu0 %vm7697_vm6, %v11574_v31  ;;  %v5188_v4 = vld [vmem:[#allocation2 + $0xc4] sm:$0x3] }
 0x41c   :  { %v7002_v45 = vpop.f32.mrf.mxu1  ;;  %v7103_v5 = vpop.f32.mrf.mxu0 }
 0x41d   :  { %v11869_v6 = vadd.f32 %v4633_v35, %v4432_v13 }
 0x41e   :  { %v4395_v53 = vpop.f32.mrf.mxu1  ;;  %v4638_v38 = vpop.f32.mrf.mxu0  ;;  %7414 = vmatmul.mubr.f32.gmra.mxu1 %v5187_v22  ;;  %7515 = vmatmul.mubr.f32.gmra.mxu0 %v11574_v31 }
 0x41f   :  { %v4433_v39 = vadd.f32 %v4395_v53, %v11630_v0  ;;  %7416 = vmatprep.mubr.msk.f32.mxu1 %vm7697_vm6, %v11574_v31  ;;  %7517 = vmatprep.mubr.msk.f32.mxu0 %vm7697_vm6, %v11574_v31 }
 0x420   :  { %v7005_v12 = vpop.f32.mrf.mxu1  ;;  %v7106_v62 = vpop.f32.mrf.mxu0 }
 0x421   :  { %v11877_v19 = vadd.f32 %v4638_v38, %v4433_v39 }
 0x422   :  { %v4400_v10 = vpop.f32.mrf.mxu1  ;;  %v4643_v52 = vpop.f32.mrf.mxu0  ;;  %7417 = vmatmul.mubr.f32.gmra.mxu1 %v5188_v4  ;;  %7518 = vmatmul.mubr.f32.gmra.mxu0 %v5431_v44 }
 0x423   :  { %v4434_v34 = vadd.f32 %v4400_v10, %v11636_v29  ;;  %7552 = vmatprep.mubr.msk.f32.mxu1 %vm7697_vm6, %v11574_v31  ;;  %v5653_v29 = vld [vmem:[#allocation2 + $0x1e] sm:$0xff] }
 0x424   :  { %v7008_v0 = vpop.f32.mrf.mxu1  ;;  %v7109_v17 = vpop.f32.mrf.mxu0 }
 0x425   :  { %v11882_v46 = vadd.f32 %v4643_v52, %v4434_v34 }
 0x426   :  { %v4405_v2 = vpop.f32.mrf.mxu1  ;;  %v4648_v8 = vpop.f32.mrf.mxu0  ;;  %7553 = vmatmul.mubr.f32.vlgmr.msra.gmra.mxu1 %v5652_v49 }
 0x427   :  { %v4435_v11 = vadd.f32 %v4405_v2, %v11649_v24  ;;  %7555 = vmatprep.mubr.msk.f32.mxu1 %vm7697_vm6, %v11574_v31  ;;  %v5654_v24 = vld [vmem:[#allocation2 + $0x26] sm:$0xff] }
 0x428   :  { %v7011_v60 = vpop.f32.mrf.mxu1  ;;  %v7112_v3 = vpop.f32.mrf.mxu0 }
 0x429   :  { %v11887_v56 = vadd.f32 %v4648_v8, %v4435_v11 }
 0x42a   :  { %v4410_v1 = vpop.f32.mrf.mxu1  ;;  %v4653_v59 = vpop.f32.mrf.mxu0  ;;  %7556 = vmatmul.mubr.f32.gmra.mxu1 %v5653_v29 }
 0x42b   :  { %v4436_v37 = vadd.f32 %v4410_v1, %v11660_v41  ;;  %7558 = vmatprep.mubr.msk.f32.mxu1 %vm7697_vm6, %v11574_v31  ;;  %v5655_v41 = vld [vmem:[#allocation2 + $0x2e] sm:$0xff] }
 0x42c   :  { %v7014_v20 = vpop.f32.mrf.mxu1  ;;  %v7115_v36 = vpop.f32.mrf.mxu0 }
 0x42d   :  { %v11892_v28 = vadd.f32 %v4653_v59, %v4436_v37 }
 0x42e   :  { %v4786_v9 = vpop.f32.mrf.mxu1  ;;  %v5029_v55 = vpop.f32.mrf.mxu0  ;;  %7559 = vmatmul.mubr.f32.gmra.mxu1 %v5654_v24 }
 0x42f   :  { %v4900_v42 = vadd.f32 %v4786_v9, %v11677_v25  ;;  %7561 = vmatprep.mubr.msk.f32.mxu1 %vm7697_vm6, %v11574_v31  ;;  %v5656_v25 = vld [vmem:[#allocation2 + $0x36] sm:$0xff] }
 0x430   :  { %v7150_v30 = vpop.f32.mrf.mxu1  ;;  %v7251_v33 = vpop.f32.mrf.mxu0 }
 0x431   :  { %v11897_v50 = vadd.f32 %v5029_v55, %v4900_v42 }
 0x432   :  { %v4791_v48 = vpop.f32.mrf.mxu1  ;;  %v5034_v26 = vpop.f32.mrf.mxu0  ;;  %7562 = vmatmul.mubr.f32.gmra.mxu1 %v5655_v41 }
 0x433   :  { %v4901_v57 = vadd.f32 %v4791_v48, %v11689_v63  ;;  %7564 = vmatprep.mubr.msk.f32.mxu1 %vm7697_vm6, %v11574_v31  ;;  %v5657_v63 = vld [vmem:[#allocation2 + $0x3e] sm:$0xff] }
 0x434   :  { %v7153_v35 = vpop.f32.mrf.mxu1  ;;  %v7254_v13 = vpop.f32.mrf.mxu0 }
 0x435   :  { %v11902_v45 = vadd.f32 %v5034_v26, %v4901_v57 }
 0x436   :  { %v4796_v5 = vpop.f32.mrf.mxu1  ;;  %v5039_v22 = vpop.f32.mrf.mxu0  ;;  %7565 = vmatmul.mubr.f32.gmra.mxu1 %v5656_v25 }
 0x437   :  { %v4902_v53 = vadd.f32 %v4796_v5, %v11701_v14  ;;  %7567 = vmatprep.mubr.msk.f32.mxu1 %vm7697_vm6, %v11574_v31  ;;  %v5658_v14 = vld [vmem:[#allocation2 + $0x46] sm:$0xff] }
 0x438   :  { %v7156_v38 = vpop.f32.mrf.mxu1  ;;  %v7257_v39 = vpop.f32.mrf.mxu0 }
 0x439   :  { %v11907_v4 = vadd.f32 %v5039_v22, %v4902_v53 }
 0x43a   :  { %v4801_v44 = vpop.f32.mrf.mxu1  ;;  %v5044_v12 = vpop.f32.mrf.mxu0  ;;  %7568 = vmatmul.mubr.f32.gmra.mxu1 %v5657_v63 }
 0x43b   :  { %v4903_v62 = vadd.f32 %v4801_v44, %v11713_v58  ;;  %7570 = vmatprep.mubr.msk.f32.mxu1 %vm7697_vm6, %v11574_v31  ;;  %v5659_v58 = vld [vmem:[#allocation2 + $0x4e] sm:$0xff] }
 0x43c   :  { %v7159_v10 = vpop.f32.mrf.mxu1  ;;  %v7260_v52 = vpop.f32.mrf.mxu0 }
 0x43d   :  { %v11912_v34 = vadd.f32 %v5044_v12, %v4903_v62 }
 0x43e   :  { %v4806_v0 = vpop.f32.mrf.mxu1  ;;  %v5049_v17 = vpop.f32.mrf.mxu0  ;;  %7571 = vmatmul.mubr.f32.gmra.mxu1 %v5658_v14 }
 0x43f   :  { %v4904_v49 = vadd.f32 %v4806_v0, %v11725_v15  ;;  %7573 = vmatprep.mubr.msk.f32.mxu1 %vm7697_vm6, %v11574_v31  ;;  %v5660_v15 = vld [vmem:[#allocation2 + $0x56] sm:$0xff] }
 0x440   :  { %v7162_v2 = vpop.f32.mrf.mxu1  ;;  %v7263_v8 = vpop.f32.mrf.mxu0 }
 0x441   :  { %v11917_v11 = vadd.f32 %v5049_v17, %v4904_v49 }
 0x442   :  { %v4811_v60 = vpop.f32.mrf.mxu1  ;;  %v5054_v3 = vpop.f32.mrf.mxu0  ;;  %7574 = vmatmul.mubr.f32.gmra.mxu1 %v5659_v58 }
 0x443   :  { %v4905_v29 = vadd.f32 %v4811_v60, %v11737_v61  ;;  %7576 = vmatprep.mubr.msk.f32.mxu1 %vm7697_vm6, %v11574_v31  ;;  %v5661_v61 = vld [vmem:[#allocation2 + $0x5e] sm:$0xff] }
 0x444   :  { %v7165_v1 = vpop.f32.mrf.mxu1  ;;  %v7266_v59 = vpop.f32.mrf.mxu0 }
 0x445   :  { %v11922_v37 = vadd.f32 %v5054_v3, %v4905_v29 }
 0x446   :  { %v4816_v20 = vpop.f32.mrf.mxu1  ;;  %v5059_v36 = vpop.f32.mrf.mxu0  ;;  %7577 = vmatmul.mubr.f32.gmra.mxu1 %v5660_v15 }
 0x447   :  { %v4906_v24 = vadd.f32 %v4816_v20, %v11749_v32  ;;  %7579 = vmatprep.mubr.msk.f32.mxu1 %vm7697_vm6, %v11574_v31  ;;  %v5662_v32 = vld [vmem:[#allocation2 + $0x66] sm:$0xff] }
 0x448   :  { %v7168_v9 = vpop.f32.mrf.mxu1  ;;  %v7269_v55 = vpop.f32.mrf.mxu0  ;;  %v11955_v20 = vld [vmem:[#allocation2] sm:$0xff] }
 0x449   :  { %v11927_v42 = vadd.f32 %v5059_v36, %v4906_v24 }
 0x44a   :  { %v4821_v30 = vpop.f32.mrf.mxu1  ;;  %v5064_v33 = vpop.f32.mrf.mxu0  ;;  %7580 = vmatmul.mubr.f32.gmra.mxu1 %v5661_v61 }
 0x44b   :  { %v4907_v41 = vadd.f32 %v4821_v30, %v11761_v40  ;;  %7582 = vmatprep.mubr.msk.f32.mxu1 %vm7697_vm6, %v11574_v31  ;;  %v5663_v40 = vld [vmem:[#allocation2 + $0x6e] sm:$0xff] }
 0x44c   :  { %v7171_v48 = vpop.f32.mrf.mxu1  ;;  %v7272_v26 = vpop.f32.mrf.mxu0 }
 0x44d   :  { %v11932_v57 = vadd.f32 %v5064_v33, %v4907_v41  ;;  %v5668_v41 = vld [vmem:[#allocation2 + $0x96] sm:$0xff] }
 0x44e   :  { %v4826_v35 = vpop.f32.mrf.mxu1  ;;  %v5069_v13 = vpop.f32.mrf.mxu0  ;;  %7583 = vmatmul.mubr.f32.gmra.mxu1 %v5662_v32 }
 0x44f   :  { %v4908_v25 = vadd.f32 %v4826_v35, %v11773_v47  ;;  %7585 = vmatprep.mubr.msk.f32.mxu1 %vm7697_vm6, %v11574_v31  ;;  %v5664_v47 = vld [vmem:[#allocation2 + $0x76] sm:$0xff] }
 0x450   :  { %v7174_v5 = vpop.f32.mrf.mxu1  ;;  %v7275_v22 = vpop.f32.mrf.mxu0 }
 0x451   :  { %v11937_v53 = vadd.f32 %v5069_v13, %v4908_v25 }
 0x452   :  { %v4831_v38 = vpop.f32.mrf.mxu1  ;;  %v5074_v39 = vpop.f32.mrf.mxu0  ;;  %7586 = vmatmul.mubr.f32.gmra.mxu1 %v5663_v40 }
 0x453   :  { %v4909_v63 = vadd.f32 %v4831_v38, %v11785_v27  ;;  %7588 = vmatprep.mubr.msk.f32.mxu1 %vm7697_vm6, %v11574_v31  ;;  %v5665_v27 = vld [vmem:[#allocation2 + $0x7e] sm:$0xff] }
 0x454   :  { %v7177_v44 = vpop.f32.mrf.mxu1  ;;  %v7278_v12 = vpop.f32.mrf.mxu0 }
 0x455   :  { %v11942_v62 = vadd.f32 %v5074_v39, %v4909_v63 }
 0x456   :  { %v4836_v10 = vpop.f32.mrf.mxu1  ;;  %v5079_v52 = vpop.f32.mrf.mxu0  ;;  %7589 = vmatmul.mubr.f32.gmra.mxu1 %v5664_v47 }
 0x457   :  { %v4910_v14 = vadd.f32 %v4836_v10, %v11797_v54  ;;  %7591 = vmatprep.mubr.msk.f32.mxu1 %vm7697_vm6, %v11574_v31  ;;  %v5666_v54 = vld [vmem:[#allocation2 + $0x86] sm:$0xff] }
 0x458   :  { %v7180_v0 = vpop.f32.mrf.mxu1  ;;  %v7281_v17 = vpop.f32.mrf.mxu0 }
 0x459   :  { %v11947_v49 = vadd.f32 %v5079_v52, %v4910_v14 }
 0x45a   :  { %v4841_v2 = vpop.f32.mrf.mxu1  ;;  %v5084_v8 = vpop.f32.mrf.mxu0  ;;  %7592 = vmatmul.mubr.f32.gmra.mxu1 %v5665_v27 }
 0x45b   :  { %v4911_v58 = vadd.f32 %v4841_v2, %v11809_v43  ;;  %7594 = vmatprep.mubr.msk.f32.mxu1 %vm7697_vm6, %v11574_v31  ;;  %v5667_v31 = vld [vmem:[#allocation2 + $0x8e] sm:$0xff] }
 0x45c   :  { %v7183_v60 = vpop.f32.mrf.mxu1  ;;  %v7284_v3 = vpop.f32.mrf.mxu0 }
 0x45d   :  { %v11952_v29 = vadd.f32 %v5084_v8, %v4911_v58 }
 0x45e   :  { %v4846_v1 = vpop.f32.mrf.mxu1  ;;  %v5089_v59 = vpop.f32.mrf.mxu0  ;;  %7595 = vmatmul.mubr.f32.gmra.mxu1 %v5666_v54 }
 0x45f   :  { %v4912_v15 = vadd.f32 %v4846_v1, %v11821_v23  ;;  %7597 = vmatprep.mubr.msk.f32.mxu1 %vm7697_vm6, %v11955_v20  ;;  %v5673_v1 = vld [vmem:[#allocation2 + $0xbe] sm:$0xff] }
 0x460   :  { %v7186_v36 = vpop.f32.mrf.mxu1  ;;  %v7287_v43 = vpop.f32.mrf.mxu0 }
 0x461   :  { %v11959_v24 = vadd.f32 %v5089_v59, %v4912_v15 }
 0x462   :  { %v4851_v9 = vpop.f32.mrf.mxu1  ;;  %v5094_v55 = vpop.f32.mrf.mxu0  ;;  %7598 = vmatmul.mubr.f32.gmra.mxu1 %v5667_v31 }
 0x463   :  { %v4913_v61 = vadd.f32 %v4851_v9, %v11829_v51  ;;  %7600 = vmatprep.mubr.msk.f32.mxu1 %vm7697_vm6, %v11955_v20  ;;  %v5669_v51 = vld [vmem:[#allocation2 + $0x9e] sm:$0xff]  ;;  %v5674_v9 = vld [vmem:[#allocation2 + $0xc6] sm:$0x3] }
 0x464   :  { %v7189_v30 = vpop.f32.mrf.mxu1  ;;  %v7290_v23 = vpop.f32.mrf.mxu0 }
 0x465   :  { %v11964_v33 = vadd.f32 %v5094_v55, %v4913_v61 }
 0x466   :  { %v4856_v48 = vpop.f32.mrf.mxu1  ;;  %v5099_v26 = vpop.f32.mrf.mxu0  ;;  %7601 = vmatmul.mubr.f32.gmra.mxu1 %v5668_v41 }
 0x467   :  { %v4914_v32 = vadd.f32 %v4856_v48, %v11837_v7  ;;  %7603 = vmatprep.mubr.msk.f32.mxu1 %vm7697_vm6, %v11955_v20  ;;  %v5670_v7 = vld [vmem:[#allocation2 + $0xa6] sm:$0xff] }
 0x468   :  { %v7192_v35 = vpop.f32.mrf.mxu1  ;;  %v7293_v13 = vpop.f32.mrf.mxu0 }
 0x469   :  { %v11969_v25 = vadd.f32 %v5099_v26, %v4914_v32 }
 0x46a   :  { %v4861_v5 = vpop.f32.mrf.mxu1  ;;  %v5104_v22 = vpop.f32.mrf.mxu0  ;;  %7604 = vmatmul.mubr.f32.gmra.mxu1 %v5669_v51 }
 0x46b   :  { %v4915_v40 = vadd.f32 %v4861_v5, %v11845_v21  ;;  %7606 = vmatprep.mubr.msk.f32.mxu1 %vm7697_vm6, %v11955_v20  ;;  %v5671_v21 = vld [vmem:[#allocation2 + $0xae] sm:$0xff] }
 0x46c   :  { %v7195_v38 = vpop.f32.mrf.mxu1  ;;  %v7296_v39 = vpop.f32.mrf.mxu0 }
 0x46d   :  { %v11974_v63 = vadd.f32 %v5104_v22, %v4915_v40 }
 0x46e   :  { %v4866_v44 = vpop.f32.mrf.mxu1  ;;  %v5109_v12 = vpop.f32.mrf.mxu0  ;;  %7607 = vmatmul.mubr.f32.gmra.mxu1 %v5670_v7 }
 0x46f   :  { %v4916_v47 = vadd.f32 %v4866_v44, %v11853_v18  ;;  %7609 = vmatprep.mubr.msk.f32.mxu1 %vm7697_vm6, %v11955_v20  ;;  %v5672_v18 = vld [vmem:[#allocation2 + $0xb6] sm:$0xff] }
 0x470   :  { %v7198_v10 = vpop.f32.mrf.mxu1  ;;  %v7299_v52 = vpop.f32.mrf.mxu0 }
 0x471   :  { %v11979_v14 = vadd.f32 %v5109_v12, %v4916_v47 }
 0x472   :  { %v4871_v0 = vpop.f32.mrf.mxu1  ;;  %v5114_v17 = vpop.f32.mrf.mxu0  ;;  %7610 = vmatmul.mubr.f32.gmra.mxu1 %v5671_v21 }
 0x473   :  { %v4917_v27 = vadd.f32 %v4871_v0, %v11861_v16  ;;  %7612 = vmatprep.mubr.msk.f32.mxu1 %vm7697_vm6, %v11955_v20 }
 0x474   :  { %v7201_v2 = vpop.f32.mrf.mxu1  ;;  %v7302_v8 = vpop.f32.mrf.mxu0 }
 0x475   :  { %v11984_v58 = vadd.f32 %v5114_v17, %v4917_v27 }
 0x476   :  { %v4876_v60 = vpop.f32.mrf.mxu1  ;;  %v5119_v3 = vpop.f32.mrf.mxu0  ;;  %7613 = vmatmul.mubr.f32.gmra.mxu1 %v5672_v18 }
 0x477   :  { %v4918_v54 = vadd.f32 %v4876_v60, %v11869_v6  ;;  %7615 = vmatprep.mubr.msk.f32.mxu1 %vm7697_vm6, %v11955_v20 }
 0x478   :  { %v7204_v59 = vpop.f32.mrf.mxu1  ;;  %v7305_v15 = vpop.f32.mrf.mxu0 }
 0x479   :  { %v11989_v16 = vadd.f32 %v5119_v3, %v4918_v54 }
 0x47a   :  { %v4881_v36 = vpop.f32.mrf.mxu1  ;;  %v5124_v43 = vpop.f32.mrf.mxu0  ;;  %7616 = vmatmul.mubr.f32.gmra.mxu1 %v5673_v1 }
 0x47b   :  { %v4919_v31 = vadd.f32 %v4881_v36, %v11877_v19  ;;  %7618 = vmatprep.mubr.msk.f32.mxu1 %vm7697_vm6, %v11955_v20 }
 0x47c   :  { %v7207_v55 = vpop.f32.mrf.mxu1  ;;  %v7308_v61 = vpop.f32.mrf.mxu0 }
 0x47d   :  { %v11994_v6 = vadd.f32 %v5124_v43, %v4919_v31 }
 0x47e   :  { %v4886_v30 = vpop.f32.mrf.mxu1  ;;  %v5129_v23 = vpop.f32.mrf.mxu0  ;;  %7619 = vmatmul.mubr.f32.gmra.mxu1 %v5674_v9 }
 0x47f   :  { %v4920_v41 = vadd.f32 %v4886_v30, %v11882_v46 }
 0x480   :  { %v7210_v48 = vpop.f32.mrf.mxu1  ;;  %v7311_v26 = vpop.f32.mrf.mxu0 }
 0x481   :  { %v11997_v32 = vadd.f32 %v5129_v23, %v4920_v41 }
 0x482   :  { %v4891_v35 = vpop.f32.mrf.mxu1  ;;  %v5134_v13 = vpop.f32.mrf.mxu0 }
 0x483   :  { %v4921_v19 = vadd.f32 %v4891_v35, %v11887_v56 }
 0x484   :  { %v7213_v51 = vpop.f32.mrf.mxu1  ;;  %v7314_v20 = vpop.f32.mrf.mxu0 }
 0x485   :  { %v12000_v5 = vadd.f32 %v5134_v13, %v4921_v19 }
 0x486   :  { %v4896_v22 = vpop.f32.mrf.mxu1  ;;  %v5139_v40 = vpop.f32.mrf.mxu0 }
 0x487   :  { %v4922_v38 = vadd.f32 %v4896_v22, %v11892_v28 }
 0x488   :  { %v7216_v39 = vpop.f32.mrf.mxu1  ;;  %v7317_v7 = vpop.f32.mrf.mxu0 }
 0x489   :  { %v12003_v44 = vadd.f32 %v5139_v40, %v4922_v38 }
 0x48a   :  { %v5272_v46 = vpop.f32.mrf.mxu1  ;;  %v5515_v12 = vpop.f32.mrf.mxu0 }
 0x48b   :  { %v5386_v47 = vadd.f32 %v5272_v46, %v11897_v50 }
 0x48c   :  { %v7352_v10 = vpop.f32.mrf.mxu1  ;;  %v7453_v52 = vpop.f32.mrf.mxu0 }
 0x48d   :  { %v12006_v21 = vadd.f32 %v5515_v12, %v5386_v47 }
 0x48e   :  { %v5277_v56 = vpop.f32.mrf.mxu1  ;;  %v5520_v0 = vpop.f32.mrf.mxu0 }
 0x48f   :  { %v5387_v17 = vadd.f32 %v5277_v56, %v11902_v45 }
 0x490   :  { %v7355_v27 = vpop.f32.mrf.mxu1  ;;  %v7456_v2 = vpop.f32.mrf.mxu0 }
 0x491   :  { %v12009_v8 = vadd.f32 %v5520_v0, %v5387_v17 }
 0x492   :  { %v5282_v28 = vpop.f32.mrf.mxu1  ;;  %v5525_v18 = vpop.f32.mrf.mxu0 }
 0x493   :  { %v5388_v60 = vadd.f32 %v5282_v28, %v11907_v4 }
 0x494   :  { %v7358_v3 = vpop.f32.mrf.mxu1  ;;  %v7459_v54 = vpop.f32.mrf.mxu0 }
 0x495   :  { %v12012_v1 = vadd.f32 %v5525_v18, %v5388_v60 }
 0x496   :  { %v5287_v50 = vpop.f32.mrf.mxu1  ;;  %v5530_v59 = vpop.f32.mrf.mxu0 }
 0x497   :  { %v5389_v15 = vadd.f32 %v5287_v50, %v11912_v34 }
 0x498   :  { %v7361_v36 = vpop.f32.mrf.mxu1  ;;  %v7462_v43 = vpop.f32.mrf.mxu0 }
 0x499   :  { %v12015_v31 = vadd.f32 %v5530_v59, %v5389_v15 }
 0x49a   :  { %v5292_v45 = vpop.f32.mrf.mxu1  ;;  %v5535_v9 = vpop.f32.mrf.mxu0 }
 0x49b   :  { %v5390_v55 = vadd.f32 %v5292_v45, %v11917_v11 }
 0x49c   :  { %v7364_v61 = vpop.f32.mrf.mxu1  ;;  %v7465_v30 = vpop.f32.mrf.mxu0 }
 0x49d   :  { %v12018_v23 = vadd.f32 %v5535_v9, %v5390_v55 }
 0x49e   :  { %v5297_v4 = vpop.f32.mrf.mxu1  ;;  %v5540_v41 = vpop.f32.mrf.mxu0 }
 0x49f   :  { %v5391_v48 = vadd.f32 %v5297_v4, %v11922_v37 }
 0x4a0   :  { %v7367_v26 = vpop.f32.mrf.mxu1  ;;  %v7468_v35 = vpop.f32.mrf.mxu0 }
 0x4a1   :  { %v12021_v13 = vadd.f32 %v5540_v41, %v5391_v48 }
 0x4a2   :  { %v5302_v34 = vpop.f32.mrf.mxu1  ;;  %v5545_v19 = vpop.f32.mrf.mxu0 }
 0x4a3   :  { %v5392_v51 = vadd.f32 %v5302_v34, %v11927_v42 }
 0x4a4   :  { %v7370_v20 = vpop.f32.mrf.mxu1  ;;  %v7471_v22 = vpop.f32.mrf.mxu0 }
 0x4a5   :  { %v12024_v40 = vadd.f32 %v5545_v19, %v5392_v51 }
 0x4a6   :  { %v5307_v11 = vpop.f32.mrf.mxu1  ;;  %v5550_v38 = vpop.f32.mrf.mxu0 }
 0x4a7   :  { %v5393_v39 = vadd.f32 %v5307_v11, %v11932_v57 }
 0x4a8   :  { %v7373_v7 = vpop.f32.mrf.mxu1  ;;  %v7474_v46 = vpop.f32.mrf.mxu0 }
 0x4a9   :  { %v12027_v12 = vadd.f32 %v5550_v38, %v5393_v39 }
 0x4aa   :  { %v5312_v37 = vpop.f32.mrf.mxu1  ;;  %v5555_v47 = vpop.f32.mrf.mxu0 }
 0x4ab   :  { %v5394_v10 = vadd.f32 %v5312_v37, %v11937_v53 }
 0x4ac   :  { %v7376_v52 = vpop.f32.mrf.mxu1  ;;  %v7477_v56 = vpop.f32.mrf.mxu0 }
 0x4ad   :  { %v12030_v0 = vadd.f32 %v5555_v47, %v5394_v10 }
 0x4ae   :  { %v5317_v42 = vpop.f32.mrf.mxu1  ;;  %v5560_v17 = vpop.f32.mrf.mxu0 }
 0x4af   :  { %v5395_v27 = vadd.f32 %v5317_v42, %v11942_v62 }
 0x4b0   :  { %v7379_v2 = vpop.f32.mrf.mxu1  ;;  %v7480_v28 = vpop.f32.mrf.mxu0 }
 0x4b1   :  { %v12033_v18 = vadd.f32 %v5560_v17, %v5395_v27 }
 0x4b2   :  { %v5322_v57 = vpop.f32.mrf.mxu1  ;;  %v5565_v60 = vpop.f32.mrf.mxu0 }
 0x4b3   :  { %v5396_v3 = vadd.f32 %v5322_v57, %v11947_v49 }
 0x4b4   :  { %v7382_v54 = vpop.f32.mrf.mxu1  ;;  %v7483_v50 = vpop.f32.mrf.mxu0 }
 0x4b5   :  { %v12036_v59 = vadd.f32 %v5565_v60, %v5396_v3 }
 0x4b6   :  { %v5327_v53 = vpop.f32.mrf.mxu1  ;;  %v5570_v15 = vpop.f32.mrf.mxu0 }
 0x4b7   :  { %v5397_v36 = vadd.f32 %v5327_v53, %v11952_v29 }
 0x4b8   :  { %v7385_v43 = vpop.f32.mrf.mxu1  ;;  %v7486_v45 = vpop.f32.mrf.mxu0 }
 0x4b9   :  { %v12039_v9 = vadd.f32 %v5570_v15, %v5397_v36 }
 0x4ba   :  { %v5332_v62 = vpop.f32.mrf.mxu1  ;;  %v5575_v55 = vpop.f32.mrf.mxu0 }
 0x4bb   :  { %v5398_v61 = vadd.f32 %v5332_v62, %v11959_v24 }
 0x4bc   :  { %v7388_v30 = vpop.f32.mrf.mxu1  ;;  %v7489_v4 = vpop.f32.mrf.mxu0 }
 0x4bd   :  { %v12042_v41 = vadd.f32 %v5575_v55, %v5398_v61 }
 0x4be   :  { %v5337_v49 = vpop.f32.mrf.mxu1  ;;  %v5580_v48 = vpop.f32.mrf.mxu0 }
 0x4bf   :  { %v5399_v26 = vadd.f32 %v5337_v49, %v11964_v33 }
 0x4c0   :  { %v7391_v35 = vpop.f32.mrf.mxu1  ;;  %v7492_v34 = vpop.f32.mrf.mxu0 }
 0x4c1   :  { %v12045_v19 = vadd.f32 %v5580_v48, %v5399_v26 }
 0x4c2   :  { %v5342_v29 = vpop.f32.mrf.mxu1  ;;  %v5585_v51 = vpop.f32.mrf.mxu0 }
 0x4c3   :  { %v5400_v20 = vadd.f32 %v5342_v29, %v11969_v25 }
 0x4c4   :  { %v7394_v22 = vpop.f32.mrf.mxu1  ;;  %v7495_v11 = vpop.f32.mrf.mxu0 }
 0x4c5   :  { %v12048_v38 = vadd.f32 %v5585_v51, %v5400_v20 }
 0x4c6   :  { %v5347_v24 = vpop.f32.mrf.mxu1  ;;  %v5590_v39 = vpop.f32.mrf.mxu0 }
 0x4c7   :  { %v5401_v7 = vadd.f32 %v5347_v24, %v11974_v63 }
 0x4c8   :  { %v7397_v46 = vpop.f32.mrf.mxu1  ;;  %v7498_v37 = vpop.f32.mrf.mxu0 }
 0x4c9   :  { %v12051_v47 = vadd.f32 %v5590_v39, %v5401_v7  ;;  %v12077_v7 = vld [vmem:[%s12199_s5] ss:$0 sm:$0xff] }
 0x4ca   :  { %v5352_v33 = vpop.f32.mrf.mxu1  ;;  %v5595_v10 = vpop.f32.mrf.mxu0 }
 0x4cb   :  { %v5402_v52 = vadd.f32 %v5352_v33, %v11979_v14 }
 0x4cc   :  { %v7400_v56 = vpop.f32.mrf.mxu1  ;;  %v7501_v42 = vpop.f32.mrf.mxu0 }
 0x4cd   :  { %v12054_v17 = vadd.f32 %v5595_v10, %v5402_v52 }
 0x4ce   :  { %v5357_v25 = vpop.f32.mrf.mxu1  ;;  %v5600_v27 = vpop.f32.mrf.mxu0 }
 0x4cf   :  { %v5403_v2 = vadd.f32 %v5357_v25, %v11984_v58 }
 0x4d0   :  { %v7403_v28 = vpop.f32.mrf.mxu1  ;;  %v7504_v57 = vpop.f32.mrf.mxu0 }
 0x4d1   :  { %v12057_v60 = vadd.f32 %v5600_v27, %v5403_v2 }
 0x4d2   :  { %v5362_v63 = vpop.f32.mrf.mxu1  ;;  %v5605_v3 = vpop.f32.mrf.mxu0 }
 0x4d3   :  { %v5404_v54 = vadd.f32 %v5362_v63, %v11989_v16 }
 0x4d4   :  { %v7406_v50 = vpop.f32.mrf.mxu1  ;;  %v7507_v53 = vpop.f32.mrf.mxu0 }
 0x4d5   :  { %v12060_v15 = vadd.f32 %v5605_v3, %v5404_v54 }
 0x4d6   :  { %v5367_v14 = vpop.f32.mrf.mxu1  ;;  %v5610_v36 = vpop.f32.mrf.mxu0 }
 0x4d7   :  { %v5405_v43 = vadd.f32 %v5367_v14, %v11994_v6 }
 0x4d8   :  { %v7409_v45 = vpop.f32.mrf.mxu1  ;;  %v7510_v62 = vpop.f32.mrf.mxu0 }
 0x4d9   :  { %v12063_v55 = vadd.f32 %v5610_v36, %v5405_v43 }
 0x4da   :  { %v5372_v58 = vpop.f32.mrf.mxu1  ;;  %v5615_v61 = vpop.f32.mrf.mxu0 }
 0x4db   :  { %v5406_v30 = vadd.f32 %v5372_v58, %v11997_v32 }
 0x4dc   :  { %v7412_v4 = vpop.f32.mrf.mxu1  ;;  %v7513_v49 = vpop.f32.mrf.mxu0 }
 0x4dd   :  { %v12066_v48 = vadd.f32 %v5615_v61, %v5406_v30 }
 0x4de   :  { %v5377_v16 = vpop.f32.mrf.mxu1  ;;  %v5620_v26 = vpop.f32.mrf.mxu0 }
 0x4df   :  { %v5407_v35 = vadd.f32 %v5377_v16, %v12000_v5 }
 0x4e0   :  { %v7415_v34 = vpop.f32.mrf.mxu1  ;;  %v7516_v29 = vpop.f32.mrf.mxu0 }
 0x4e1   :  { %v12069_v51 = vadd.f32 %v5620_v26, %v5407_v35 }
 0x4e2   :  { %v5382_v6 = vpop.f32.mrf.mxu1  ;;  %v5625_v20 = vpop.f32.mrf.mxu0 }
 0x4e3   :  { %v5408_v22 = vadd.f32 %v5382_v6, %v12003_v44 }
 0x4e4   :  { %v7418_v11 = vpop.f32.mrf.mxu1  ;;  %v7519_v24 = vpop.f32.mrf.mxu0 }
 0x4e5   :  { %v12072_v39 = vadd.f32 %v5625_v20, %v5408_v22 }
 0x4e6   :  { %v5758_v32 = vpop.f32.mrf.mxu1 }
 0x4e7   :  { %v5872_v5 = vadd.f32 %v5758_v32, %v12006_v21 }
 0x4e8   :  { %v7554_v46 = vpop.f32.mrf.mxu1 }
 0x4e9   :  { %v5902_v37 = vadd.f32 %v12077_v7, %v5872_v5 }
 0x4ea   :  { %v5763_v33 = vpop.f32.mrf.mxu1 }
 0x4eb   :  { %v5925_v10 = vmax.f32 %v5902_v37, 0.0  ;;  %v5873_v52 = vadd.f32 %v5763_v33, %v12009_v8 }
 0x4ec   :  { %v7557_v44 = vpop.f32.mrf.mxu1 }
 0x4ed   :  { %5948 = vst [vmem:[%s12200_s6] sm:$0xff] %v5925_v10  ;;  %v5903_v56 = vadd.f32 %v12077_v7, %v5873_v52 }
 0x4ee   :  { %v5768_v42 = vpop.f32.mrf.mxu1 }
 0x4ef   :  { %v5926_v25 = vmax.f32 %v5903_v56, 0.0  ;;  %v5874_v27 = vadd.f32 %v5768_v42, %v12012_v1 }
 0x4f0   :  { %v7560_v2 = vpop.f32.mrf.mxu1 }
 0x4f1   :  { %5949 = vst [vmem:[%s12200_s6 + $0x8] sm:$0xff] %v5926_v25  ;;  %v5904_v21 = vadd.f32 %v12077_v7, %v5874_v27 }
 0x4f2   :  { %v5773_v28 = vpop.f32.mrf.mxu1 }
 0x4f3   :  { %v5927_v8 = vmax.f32 %v5904_v21, 0.0  ;;  %v5875_v57 = vadd.f32 %v5773_v28, %v12015_v31 }
 0x4f4   :  { %v7563_v63 = vpop.f32.mrf.mxu1 }
 0x4f5   :  { %5950 = vst [vmem:[%s12200_s6 + $0x10] sm:$0xff] %v5927_v8  ;;  %v5905_v3 = vadd.f32 %v12077_v7, %v5875_v57 }
 0x4f6   :  { %v5778_v54 = vpop.f32.mrf.mxu1 }
 0x4f7   :  { %v5928_v1 = vmax.f32 %v5905_v3, 0.0  ;;  %v5876_v50 = vadd.f32 %v5778_v54, %v12018_v23 }
 0x4f8   :  { %v7566_v53 = vpop.f32.mrf.mxu1 }
 0x4f9   :  { %5951 = vst [vmem:[%s12200_s6 + $0x18] sm:$0xff] %v5928_v1  ;;  %v5906_v14 = vadd.f32 %v12077_v7, %v5876_v50 }
 0x4fa   :  { %v5783_v36 = vpop.f32.mrf.mxu1 }
 0x4fb   :  { %v5929_v31 = vmax.f32 %v5906_v14, 0.0  ;;  %v5877_v43 = vadd.f32 %v5783_v36, %v12021_v13 }
 0x4fc   :  { %v7569_v45 = vpop.f32.mrf.mxu1 }
 0x4fd   :  { %5952 = vst [vmem:[%s12200_s6 + $0x20] sm:$0xff] %v5929_v31  ;;  %v5907_v62 = vadd.f32 %v12077_v7, %v5877_v43 }
 0x4fe   :  { %v5788_v58 = vpop.f32.mrf.mxu1 }
 0x4ff   :  { %v5930_v23 = vmax.f32 %v5907_v62, 0.0  ;;  %v5878_v61 = vadd.f32 %v5788_v58, %v12024_v40 }
 0x500   :  { %v7572_v30 = vpop.f32.mrf.mxu1 }
 0x501   :  { %5953 = vst [vmem:[%s12200_s6 + $0x28] sm:$0xff] %v5930_v23  ;;  %v5908_v4 = vadd.f32 %v12077_v7, %v5878_v61 }
 0x502   :  { %v5793_v49 = vpop.f32.mrf.mxu1 }
 0x503   :  { %v5931_v13 = vmax.f32 %v5908_v4, 0.0  ;;  %v5879_v16 = vadd.f32 %v5793_v49, %v12027_v12 }
 0x504   :  { %v7575_v26 = vpop.f32.mrf.mxu1 }
 0x505   :  { %5954 = vst [vmem:[%s12200_s6 + $0x30] sm:$0xff] %v5931_v13  ;;  %v5909_v35 = vadd.f32 %v12077_v7, %v5879_v16 }
 0x506   :  { %v5798_v34 = vpop.f32.mrf.mxu1 }
 0x507   :  { %v5932_v40 = vmax.f32 %v5909_v35, 0.0  ;;  %v5880_v29 = vadd.f32 %v5798_v34, %v12030_v0 }
 0x508   :  { %v7578_v6 = vpop.f32.mrf.mxu1 }
 0x509   :  { %5955 = vst [vmem:[%s12200_s6 + $0x38] sm:$0xff] %v5932_v40  ;;  %v5910_v20 = vadd.f32 %v12077_v7, %v5880_v29 }
 0x50a   :  { %v5803_v22 = vpop.f32.mrf.mxu1 }
 0x50b   :  { %v5933_v12 = vmax.f32 %v5910_v20, 0.0  ;;  %v5881_v11 = vadd.f32 %v5803_v22, %v12033_v18 }
 0x50c   :  { %v7581_v24 = vpop.f32.mrf.mxu1 }
 0x50d   :  { %5956 = vst [vmem:[%s12200_s6 + $0x40] sm:$0xff] %v5933_v12  ;;  %v5911_v32 = vadd.f32 %v12077_v7, %v5881_v11 }
 0x50e   :  { %v5808_v5 = vpop.f32.mrf.mxu1 }
 0x50f   :  { %v5934_v0 = vmax.f32 %v5911_v32, 0.0  ;;  %v5882_v46 = vadd.f32 %v5808_v5, %v12036_v59 }
 0x510   :  { %v7584_v37 = vpop.f32.mrf.mxu1 }
 0x511   :  { %5957 = vst [vmem:[%s12200_s6 + $0x48] sm:$0xff] %v5934_v0  ;;  %v5912_v33 = vadd.f32 %v12077_v7, %v5882_v46 }
 0x512   :  { %v5813_v10 = vpop.f32.mrf.mxu1 }
 0x513   :  { %v5935_v18 = vmax.f32 %v5912_v33, 0.0  ;;  %v5883_v52 = vadd.f32 %v5813_v10, %v12039_v9 }
 0x514   :  { %v7587_v44 = vpop.f32.mrf.mxu1 }
 0x515   :  { %5958 = vst [vmem:[%s12200_s6 + $0x50] sm:$0xff] %v5935_v18  ;;  %v5913_v56 = vadd.f32 %v12077_v7, %v5883_v52 }
 0x516   :  { %v5818_v42 = vpop.f32.mrf.mxu1 }
 0x517   :  { %v5936_v59 = vmax.f32 %v5913_v56, 0.0  ;;  %v5884_v25 = vadd.f32 %v5818_v42, %v12042_v41 }
 0x518   :  { %v7590_v27 = vpop.f32.mrf.mxu1 }
 0x519   :  { %5959 = vst [vmem:[%s12200_s6 + $0x58] sm:$0xff] %v5936_v59  ;;  %v5914_v2 = vadd.f32 %v12077_v7, %v5884_v25 }
 0x51a   :  { %v5823_v21 = vpop.f32.mrf.mxu1 }
 0x51b   :  { %v5937_v9 = vmax.f32 %v5914_v2, 0.0  ;;  %v5885_v28 = vadd.f32 %v5823_v21, %v12045_v19 }
 0x51c   :  { %v7593_v8 = vpop.f32.mrf.mxu1 }
 0x51d   :  { %5960 = vst [vmem:[%s12200_s6 + $0x60] sm:$0xff] %v5937_v9  ;;  %v5915_v57 = vadd.f32 %v12077_v7, %v5885_v28 }
 0x51e   :  { %v5828_v63 = vpop.f32.mrf.mxu1 }
 0x51f   :  { %v5938_v41 = vmax.f32 %v5915_v57, 0.0  ;;  %v5886_v3 = vadd.f32 %v5828_v63, %v12048_v38 }
 0x520   :  { %v7596_v54 = vpop.f32.mrf.mxu1 }
 0x521   :  { %5961 = vst [vmem:[%s12200_s6 + $0x68] sm:$0xff] %v5938_v41  ;;  %v5916_v1 = vadd.f32 %v12077_v7, %v5886_v3 }
 0x522   :  { %v5833_v50 = vpop.f32.mrf.mxu1 }
 0x523   :  { %v5939_v19 = vmax.f32 %v5916_v1, 0.0  ;;  %v5887_v53 = vadd.f32 %v5833_v50, %v12051_v47 }
 0x524   :  { %v7599_v14 = vpop.f32.mrf.mxu1 }
 0x525   :  { %5962 = vst [vmem:[%s12200_s6 + $0x70] sm:$0xff] %v5939_v19  ;;  %v5917_v36 = vadd.f32 %v12077_v7, %v5887_v53 }
 0x526   :  { %v5838_v31 = vpop.f32.mrf.mxu1 }
 0x527   :  { %v5940_v38 = vmax.f32 %v5917_v36, 0.0  ;;  %v5888_v43 = vadd.f32 %v5838_v31, %v12054_v17 }
 0x528   :  { %v7602_v45 = vpop.f32.mrf.mxu1 }
 0x529   :  { %5963 = vst [vmem:[%s12200_s6 + $0x78] sm:$0xff] %v5940_v38  ;;  %v5918_v62 = vadd.f32 %v12077_v7, %v5888_v43 }
 0x52a   :  { %v5843_v58 = vpop.f32.mrf.mxu1 }
 0x52b   :  { %v5941_v47 = vmax.f32 %v5918_v62, 0.0  ;;  %v5889_v23 = vadd.f32 %v5843_v58, %v12057_v60 }
 0x52c   :  { %v7605_v61 = vpop.f32.mrf.mxu1 }
 0x52d   :  { %5964 = vst [vmem:[%s12200_s6 + $0x80] sm:$0xff] %v5941_v47  ;;  %v5919_v30 = vadd.f32 %v12077_v7, %v5889_v23 }
 0x52e   :  { %v5848_v4 = vpop.f32.mrf.mxu1 }
 0x52f   :  { %v5942_v17 = vmax.f32 %v5919_v30, 0.0  ;;  %v5890_v49 = vadd.f32 %v5848_v4, %v12060_v15 }
 0x530   :  { %v7608_v13 = vpop.f32.mrf.mxu1 }
 0x531   :  { %5965 = vst [vmem:[%s12200_s6 + $0x88] sm:$0xff] %v5942_v17  ;;  %v5920_v16 = vadd.f32 %v12077_v7, %v5890_v49 }
 0x532   :  { %v5853_v26 = vpop.f32.mrf.mxu1 }
 0x533   :  { %v5943_v60 = vmax.f32 %v5920_v16, 0.0  ;;  %v5891_v35 = vadd.f32 %v5853_v26, %v12063_v55 }
 0x534   :  { %v7611_v34 = vpop.f32.mrf.mxu1 }
 0x535   :  { %5966 = vst [vmem:[%s12200_s6 + $0x90] sm:$0xff] %v5943_v60  ;;  %v5921_v40 = vadd.f32 %v12077_v7, %v5891_v35 }
 0x536   :  { %v5858_v29 = vpop.f32.mrf.mxu1 }
 0x537   :  { %v5944_v15 = vmax.f32 %v5921_v40, 0.0  ;;  %v5892_v6 = vadd.f32 %v5858_v29, %v12066_v48 }
 0x538   :  { %v7614_v20 = vpop.f32.mrf.mxu1 }
 0x539   :  { %5967 = vst [vmem:[%s12200_s6 + $0x98] sm:$0xff] %v5944_v15  ;;  %v5922_v22 = vadd.f32 %v12077_v7, %v5892_v6 }
 0x53a   :  { %v5863_v12 = vpop.f32.mrf.mxu1 }
 0x53b   :  { %v5945_v55 = vmax.f32 %v5922_v22, 0.0  ;;  %v5893_v11 = vadd.f32 %v5863_v12, %v12069_v51 }
 0x53c   :  { %v7617_v24 = vpop.f32.mrf.mxu1 }
 0x53d   :  { %5968 = vst [vmem:[%s12200_s6 + $0xa0] sm:$0xff] %v5945_v55  ;;  %v5923_v32 = vadd.f32 %v12077_v7, %v5893_v11 }
 0x53e   :  { %v5868_v5 = vpop.f32.mrf.mxu1 }
 0x53f   :  { %v5946_v48 = vmax.f32 %v5923_v32, 0.0  ;;  %v5894_v0 = vadd.f32 %v5868_v5, %v12072_v39 }
 0x540   :  { %v7620_v46 = vpop.f32.mrf.mxu1 }
 0x541   :  { %5969 = vst [vmem:[%s12200_s6 + $0xa8] sm:$0xff] %v5946_v48  ;;  %v5924_v37 = vadd.f32 %v12077_v7, %v5894_v0 }
 0x543   :  { %v5947_v33 = vmax.f32 %v5924_v37, 0.0 }
 0x545   :  { %5970 = vst [vmem:[%s12200_s6 + $0xb0] sm:$0x3] %v5947_v33 }

</bundles_post_ra>
